<compile_context>
chip_gen: v7x
topology: tpu7x:2x2x1
jax: 0.10.0
libtpu: 0.0.40
codegen_flags: <defaults>
</compile_context>

<pallas_src>
import functools

import jax
import jax.numpy as jnp
from jax.experimental import pallas as pl
from jax.experimental.pallas import tpu as pltpu


_BN_EPS = 1e-5          # nn.BatchNorm1d default eps (training-mode batch stats)
_LEAKY_SLOPE = 0.01     # nn.LeakyReLU default negative_slope
_INV_TEMP = 1.0 / 0.05  # hard-coded /0.05 in simcse_encoder
_NORM_EPS = 1e-12       # F.normalize default eps
_MOMENTUM = 0.999       # self.m


# ---------------------------------------------------------------------------
# Small helpers (host side)
# ---------------------------------------------------------------------------
def _round_up(x, m):
    return (x + m - 1) // m * m


def _choose_vocab_tiling(vocab, tk_max=1024):
    """Pad the vocab (contraction) dim so it splits into lane-aligned k-tiles.
    tk_max=1024 amortizes per-grid-step overhead while keeping Kernel B's f32
    master streams comfortably inside VMEM on v7x (64 MiB)."""
    tk = min(_round_up(vocab, 128), tk_max)
    return _round_up(vocab, tk), tk


def _pad2d(a, rows, cols, dtype):
    a = a.astype(dtype)
    return jnp.pad(a, ((0, rows - a.shape[0]), (0, cols - a.shape[1])))


def _vmem_limit(est_bytes):
    """2x headroom over the estimated resident bytes, ceiling at 3/4 of the
    physical VMEM of the current chip (48 MiB on v7x, 96 MiB on v5e/v6e)."""
    try:
        cap = int(pltpu.get_tpu_info().vmem_capacity_bytes)
    except Exception:
        cap = 64 * 1024 * 1024
    ceiling = cap * 3 // 4
    return int(min(max(2 * est_bytes, 32 * 1024 * 1024), ceiling))


def _resident_spec(shape):
    """Whole-array block with a constant block index across the vocab-reduction
    grid axis (DMA'd once, then kept resident in VMEM)."""
    return pl.BlockSpec(shape, lambda k: (0,) * len(shape))


# ---------------------------------------------------------------------------
# In-kernel math helpers
# ---------------------------------------------------------------------------
def _bn_leaky_masked(h, g, be, row_valid, n_valid):
    """BatchNorm1d (training batch stats over the `n_valid` valid rows, biased
    var) + LeakyReLU.  Padded rows flow through but do not affect statistics."""
    inv = 1.0 / n_valid
    mu = jnp.sum(jnp.where(row_valid, h, 0.0), axis=0, keepdims=True) * inv
    c = h - mu
    var = jnp.sum(jnp.where(row_valid, c * c, 0.0), axis=0, keepdims=True) * inv
    h = c * jax.lax.rsqrt(var + _BN_EPS) * g + be
    return jnp.where(h >= 0.0, h, _LEAKY_SLOPE * h)


def _bn_leaky_two_stream(h, g, be, is_q, batch):
    """BatchNorm1d + LeakyReLU with statistics computed separately for the first
    `batch` rows (query stream) and the last `batch` rows (x stream), so the
    stacked kernel matches two independent PyTorch forward passes."""
    inv_b = 1.0 / batch
    mu_q = jnp.sum(jnp.where(is_q, h, 0.0), axis=0, keepdims=True) * inv_b
    mu_x = jnp.sum(jnp.where(is_q, 0.0, h), axis=0, keepdims=True) * inv_b
    mu = jnp.where(is_q, mu_q, mu_x)
    c = h - mu
    c2 = c * c
    var_q = jnp.sum(jnp.where(is_q, c2, 0.0), axis=0, keepdims=True) * inv_b
    var_x = jnp.sum(jnp.where(is_q, 0.0, c2), axis=0, keepdims=True) * inv_b
    var = jnp.where(is_q, var_q, var_x)
    h = c * jax.lax.rsqrt(var + _BN_EPS) * g + be
    return jnp.where(h >= 0.0, h, _LEAKY_SLOPE * h)


# ---------------------------------------------------------------------------
# Kernel A: stacked [query; x] through the params_q MLP.
#   grid = (Vp // tk,) over the vocab contraction dim of Linear(vocab, 1024).
#   outputs: q_out = main_module(query)        (raw, padded topics)
#            theta = softmax(main_module(x))   (padded topics, masked softmax)
# ---------------------------------------------------------------------------
def q_mlp_kernel(xq_ref, w1_ref, b1_ref, g1_ref, be1_ref,
                 w2_ref, b2_ref, g2_ref, be2_ref,
                 w3_ref, b3_ref,
                 qout_ref, theta_ref, acc_ref, *, batch, topic_num):
    k = pl.program_id(0)

    @pl.when(k == 0)
    def _():
        acc_ref[...] = jnp.zeros_like(acc_ref)

    # Layer-1 partial matmul over the current vocab tile (bf16 MXU, f32 acc).
    acc_ref[...] += jnp.dot(xq_ref[...], w1_ref[...],
                            preferred_element_type=jnp.float32)

    @pl.when(k == pl.num_programs(0) - 1)
    def _():
        rows = jax.lax.broadcasted_iota(jnp.int32, (2 * batch, 1), 0)
        is_q = rows < batch   # stream 0 = augmented query, stream 1 = raw x

        # Linear bias + BN(1024) + LeakyReLU (per-stream stats).
        h = _bn_leaky_two_stream(acc_ref[...] + b1_ref[...],
                                 g1_ref[...], be1_ref[...], is_q, batch)

        # Linear(1024, hidden) + BN(hidden) + LeakyReLU.
        h2 = jnp.dot(h.astype(jnp.bfloat16), w2_ref[...],
                     preferred_element_type=jnp.float32) + b2_ref[...]
        h2 = _bn_leaky_two_stream(h2, g2_ref[...], be2_ref[...], is_q, batch)

        # Linear(hidden, topic)  (padded topic columns are exactly 0).
        out = jnp.dot(h2.astype(jnp.bfloat16), w3_ref[...],
                      preferred_element_type=jnp.float32) + b3_ref[...]

        # Stream 0: raw topic logits of the query -> SimCSE head (Kernel B).
        qout_ref[...] = out[:batch, :]

        # Stream 1: softmax(dim=1) over the *real* topic columns only.
        logits_x = out[batch:, :]
        col = jax.lax.broadcasted_iota(jnp.int32, logits_x.shape, 1)
        masked = jnp.where(col < topic_num, logits_x, -1e30)
        m = jnp.max(masked, axis=1, keepdims=True)
        e = jnp.exp(masked - m)
        theta_ref[...] = e / jnp.sum(e, axis=1, keepdims=True)   # exact denom


def run_q_mlp(xq2, shadow_q, pq, *, batch, topic_num, tk):
    two_b, vp = xq2.shape
    assert two_b == 2 * batch
    hp = shadow_q["w2"].shape[1]
    tp = shadow_q["w3"].shape[1]
    grid = (vp // tk,)

    in_specs = [
        pl.BlockSpec((two_b, tk), lambda k: (0, k)),   # stacked [query; x] k-tile
        pl.BlockSpec((tk, 1024), lambda k: (k, 0)),    # w1_q bf16 shadow k-tile
        _resident_spec((1, 1024)), _resident_spec((1, 1024)), _resident_spec((1, 1024)),
        _resident_spec((1024, hp)),
        _resident_spec((1, hp)), _resident_spec((1, hp)), _resident_spec((1, hp)),
        _resident_spec((hp, tp)),
        _resident_spec((1, tp)),
    ]
    out_specs = (_resident_spec((batch, tp)), _resident_spec((batch, tp)))

    # Streaming tiles double-buffered; resident/constant-index blocks counted
    # twice as well (Mosaic may still allocate buffer_count copies of them).
    est = (2 * (two_b * tk * 2 + tk * 1024 * 2)
           + 2 * (3 * 1024 * 4
                  + 1024 * hp * 2 + 3 * hp * 4
                  + hp * tp * 2 + tp * 4
                  + 2 * batch * tp * 4)
           + two_b * 1024 * 4)                         # f32 accumulator scratch

    return pl.pallas_call(
        functools.partial(q_mlp_kernel, batch=batch, topic_num=topic_num),
        out_shape=(jax.ShapeDtypeStruct((batch, tp), jnp.float32),
                   jax.ShapeDtypeStruct((batch, tp), jnp.float32)),
        grid_spec=pltpu.PrefetchScalarGridSpec(
            num_scalar_prefetch=0,
            grid=grid,
            in_specs=in_specs,
            out_specs=out_specs,
            scratch_shapes=[pltpu.VMEM((two_b, 1024), jnp.float32)]),
        compiler_params=pltpu.CompilerParams(
            dimension_semantics=("arbitrary",),        # vocab axis is a reduction
            vmem_limit_bytes=_vmem_limit(est)),
    )(xq2, shadow_q["w1"], pq["b1"], pq["g1"], pq["be1"],
      shadow_q["w2"], pq["b2"], pq["g2"], pq["be2"],
      shadow_q["w3"], pq["b3"])


# ---------------------------------------------------------------------------
# Kernel B: momentum-update of w1_k fused with the key MLP and SimCSE logits.
#   outputs: updated f32 master w1_k, l_pos (B, Bp) lane-dense, l_neg (B, K),
#            and the normalized key embeddings (for the queue enqueue).
# ---------------------------------------------------------------------------
def key_logits_kernel(key_ref, w1q_ref, w1k_ref,
                      b1_ref, g1_ref, be1_ref,
                      w2_ref, b2_ref, g2_ref, be2_ref,
                      w3_ref, b3_ref, qout_ref, queue_ref,
                      w1k_new_ref, lpos_ref, lneg_ref, knorm_ref,
                      acc_ref, *, batch):
    k = pl.program_id(0)

    @pl.when(k == 0)
    def _():
        acc_ref[...] = jnp.zeros_like(acc_ref)

    # Fused momentum update of the layer-1 key weights (f32 master):
    #   w1_k <- m * w1_k + (1 - m) * w1_q
    # The blended tile is written back and used (as bf16) for the MXU matmul,
    # collapsing the separate XLA blend + cast passes over the largest tensor.
    w1_new = _MOMENTUM * w1k_ref[...] + (1.0 - _MOMENTUM) * w1q_ref[...]
    w1k_new_ref[...] = w1_new
    acc_ref[...] += jnp.dot(key_ref[...], w1_new.astype(jnp.bfloat16),
                            preferred_element_type=jnp.float32)

    @pl.when(k == pl.num_programs(0) - 1)
    def _():
        rows = jax.lax.broadcasted_iota(jnp.int32, (acc_ref.shape[0], 1), 0)
        valid = rows < batch   # key rows are padded to a 128 multiple

        h = _bn_leaky_masked(acc_ref[...] + b1_ref[...],
                             g1_ref[...], be1_ref[...], valid, batch)
        h2 = jnp.dot(h.astype(jnp.bfloat16), w2_ref[...],
                     preferred_element_type=jnp.float32) + b2_ref[...]
        h2 = _bn_leaky_masked(h2, g2_ref[...], be2_ref[...], valid, batch)
        k_out = jnp.dot(h2.astype(jnp.bfloat16), w3_ref[...],
                        preferred_element_type=jnp.float32) + b3_ref[...]

        # F.normalize(dim=1) on q and k (eps = 1e-12, exact reciprocal: the
        # logits are scaled by 1/0.05 so approx-EUP error would be amplified).
        q = qout_ref[...]
        qn = q / jnp.maximum(jnp.sqrt(jnp.sum(q * q, axis=1, keepdims=True)),
                             _NORM_EPS)
        kn = k_out / jnp.maximum(
            jnp.sqrt(jnp.sum(k_out * k_out, axis=1, keepdims=True)), _NORM_EPS)
        knorm_ref[...] = kn

        # CosineSimilarity(dim=-1): qn/kn are unit vectors and the queue columns
        # are unit-norm by construction, so the re-normalization denominator is
        # ~1 and is dropped (differs from PyTorch only when a pre-normalization
        # norm is below 1e-12).
        pos = jax.lax.dot_general(qn, kn, (((1,), (1,)), ((), ())),
                                  preferred_element_type=jnp.float32)
        neg = jnp.dot(qn, queue_ref[...], preferred_element_type=jnp.float32)
        lpos_ref[...] = pos * _INV_TEMP
        lneg_ref[...] = neg * _INV_TEMP


def run_key_logits(key_p, w1q_f32, w1k_f32, pk, w2k_bf, w3k_bf,
                   qout, queue_pad, *, batch, tk):
    bp, vp = key_p.shape
    hp = w2k_bf.shape[1]
    tp = w3k_bf.shape[1]
    kq = queue_pad.shape[1]
    grid = (vp // tk,)

    in_specs = [
        pl.BlockSpec((bp, tk), lambda k: (0, k)),      # augmented key k-tile (bf16)
        pl.BlockSpec((tk, 1024), lambda k: (k, 0)),    # w1_q f32 master k-tile
        pl.BlockSpec((tk, 1024), lambda k: (k, 0)),    # w1_k f32 master k-tile
        _resident_spec((1, 1024)), _resident_spec((1, 1024)), _resident_spec((1, 1024)),
        _resident_spec((1024, hp)),
        _resident_spec((1, hp)), _resident_spec((1, hp)), _resident_spec((1, hp)),
        _resident_spec((hp, tp)),
        _resident_spec((1, tp)),
        _resident_spec((batch, tp)),                   # q_out (padded topics)
        _resident_spec((tp, kq)),                      # queue (padded topics)
    ]
    out_specs = (
        pl.BlockSpec((tk, 1024), lambda k: (k, 0)),    # updated f32 master w1_k
        _resident_spec((batch, bp)),                   # l_pos (lane-dense)
        _resident_spec((batch, kq)),                   # l_neg
        _resident_spec((bp, tp)),                      # normalized key embeddings
    )

    est = (2 * (bp * tk * 2 + 2 * tk * 1024 * 4 + tk * 1024 * 4)   # streams (in+out)
           + tk * 1024 * 6                                          # blend f32 + bf16 temps
           + 2 * (3 * 1024 * 4
                  + 1024 * hp * 2 + 3 * hp * 4
                  + hp * tp * 2 + tp * 4
                  + batch * tp * 4 + tp * kq * 4
                  + batch * bp * 4 + batch * kq * 4 + bp * tp * 4)
           + bp * 1024 * 4)                                         # accumulator scratch

    return pl.pallas_call(
        functools.partial(key_logits_kernel, batch=batch),
        out_shape=(jax.ShapeDtypeStruct((vp, 1024), jnp.float32),
                   jax.ShapeDtypeStruct((batch, bp), jnp.float32),
                   jax.ShapeDtypeStruct((batch, kq), jnp.float32),
                   jax.ShapeDtypeStruct((bp, tp), jnp.float32)),
        grid_spec=pltpu.PrefetchScalarGridSpec(
            num_scalar_prefetch=0,
            grid=grid,
            in_specs=in_specs,
            out_specs=out_specs,
            scratch_shapes=[pltpu.VMEM((bp, 1024), jnp.float32)]),
        compiler_params=pltpu.CompilerParams(
            dimension_semantics=("arbitrary",),
            vmem_limit_bytes=_vmem_limit(est)),
    )(key_p, w1q_f32, w1k_f32, pk["b1"], pk["g1"], pk["be1"],
      w2k_bf, pk["b2"], pk["g2"], pk["be2"],
      w3k_bf, pk["b3"], qout, queue_pad)


# ---------------------------------------------------------------------------
# Glue: data augmentation, params, full forward.
# ---------------------------------------------------------------------------
def set_smaller_values_to_zero(x, rng):
    rmin = jnp.min(x, axis=1, keepdims=True)
    rmax = jnp.max(x, axis=1, keepdims=True)
    probs = (x - rmin) / (rmax - rmin + 1e-9)
    mask = jax.random.uniform(rng, x.shape) > probs
    return x * mask


def dropout(x, rng, p):
    if p <= 0.0:
        return x
    keep = jax.random.bernoulli(rng, 1.0 - p, x.shape)
    return jnp.where(keep, x / (1.0 - p), 0.0)


def data_aug(x, rng, p):
    k1, k2, k3, k4 = jax.random.split(rng, 4)
    query = dropout(set_smaller_values_to_zero(x, k1), k2, p)
    key = dropout(set_smaller_values_to_zero(x, k3), k4, p)
    return query, key


def init_encoder_params(rng, vocab_size, hidden_num, topic_num, vp, hp, tp):
    """Parameters are stored PRE-PADDED to lane-dense shapes (zero padding is
    exactly neutral through Linear/BN/LeakyReLU/softmax here), so no per-call
    pad pass is needed."""
    ks = jax.random.split(rng, 6)
    f32 = jnp.float32
    w1 = 0.05 * jax.random.normal(ks[0], (vocab_size, 1024), f32)
    b1 = 0.01 * jax.random.normal(ks[1], (1, 1024), f32)
    w2 = 0.05 * jax.random.normal(ks[2], (1024, hidden_num), f32)
    b2 = 0.01 * jax.random.normal(ks[3], (1, hidden_num), f32)
    w3 = 0.05 * jax.random.normal(ks[4], (hidden_num, topic_num), f32)
    b3 = 0.01 * jax.random.normal(ks[5], (1, topic_num), f32)
    return {
        "w1": _pad2d(w1, vp, 1024, f32),
        "b1": b1,
        "g1": jnp.ones((1, 1024), f32),
        "be1": jnp.zeros((1, 1024), f32),
        "w2": _pad2d(w2, 1024, hp, f32),
        "b2": _pad2d(b2, 1, hp, f32),
        "g2": _pad2d(jnp.ones((1, hidden_num), f32), 1, hp, f32),
        "be2": jnp.zeros((1, hp), f32),
        "w3": _pad2d(w3, hp, tp, f32),
        "b3": _pad2d(b3, 1, tp, f32),
    }


def make_bf16_shadow(params):
    """Persistent bf16 copies of the query-encoder matmul weights; recomputed
    only when params_q change (e.g. after an optimizer step), not per forward."""
    return {n: params[n].astype(jnp.bfloat16) for n in ("w1", "w2", "w3")}


def encoder_forward(x, params_q, shadow_q, params_k, queue, queue_ptr, rng, *,
                    dropout_p, topic_num):
    """Functional Encoder.forward: returns
    (softmax(main_module(x)), logits, labels, new_params_k, new_queue, new_ptr)."""
    batch, vocab = x.shape
    vp = params_q["w1"].shape[0]
    tp = params_q["w3"].shape[1]
    vp_chk, tk = _choose_vocab_tiling(vocab)
    assert vp_chk == vp, "params must be padded with the same vocab tiling"
    assert batch % 8 == 0, "batch must be a multiple of 8 (sublane alignment)"
    bp = _round_up(batch, 128)    # key rows padded -> lane-dense l_pos block

    # data_aug (no-grad, stochastic)
    query, key_in = data_aug(x, rng, dropout_p)

    # _momentum_update_key_encoder: small tensors in JAX; w1 (the dominant one)
    # is blended inside Kernel B and written back from there.
    pk = {n: _MOMENTUM * params_k[n] + (1.0 - _MOMENTUM) * params_q[n]
          for n in params_k if n != "w1"}
    w2k_bf = pk["w2"].astype(jnp.bfloat16)
    w3k_bf = pk["w3"].astype(jnp.bfloat16)

    # Activations: pad + cast (small next to the weight streams).  Stacking
    # [query ; x] shares one launch and one weight fetch for both q-passes.
    xq2 = _pad2d(jnp.concatenate([query, x], axis=0), 2 * batch, vp, jnp.bfloat16)
    key_p = _pad2d(key_in, bp, vp, jnp.bfloat16)
    queue_p = _pad2d(queue, tp, queue.shape[1], jnp.float32)

    qout_pad, theta_pad = run_q_mlp(xq2, shadow_q, params_q,
                                    batch=batch, topic_num=topic_num, tk=tk)
    theta = theta_pad[:, :topic_num]

    w1k_new, lpos_pad, lneg, k_norm = run_key_logits(
        key_p, params_q["w1"], params_k["w1"], pk, w2k_bf, w3k_bf,
        qout_pad, queue_p, batch=batch, tk=tk)
    pk["w1"] = w1k_new

    logits = jnp.concatenate([lpos_pad[:, :batch], lneg], axis=1)
    labels = jnp.arange(batch, dtype=jnp.int32)

    # _dequeue_and_enqueue (functional): queue columns <- normalized key codes.
    keys_t = k_norm[:batch, :topic_num].T
    new_queue = jax.lax.dynamic_update_slice(queue, keys_t, (0, queue_ptr))
    new_ptr = (queue_ptr + batch) % queue.shape[1]

    # TODO(synk): BatchNorm1d running statistics (eval-mode buffers) are not
    # tracked; this is the training-mode forward (batch statistics) only.
    return theta, logits, labels, pk, new_queue, new_ptr


if __name__ == "__main__":
    # Small, module-consistent shapes (K=1024 is fixed in the module and the
    # module asserts K % batch == 0).
    batch = 8
    vocab_size = 64     # args.vocab_size
    hidden_num = 32     # hidden_num
    topic_num = 16      # args.topic_num
    K = 1024            # self.K
    dropout_p = 0.1     # args.dropout

    vp, tk = _choose_vocab_tiling(vocab_size)
    hp = _round_up(hidden_num, 128)
    tp = _round_up(topic_num, 128)

    root = jax.random.PRNGKey(0)
    k_x, k_params, k_queue, k_aug = jax.random.split(root, 4)

    x = jax.random.normal(k_x, (batch, vocab_size), jnp.float32)

    params_q = init_encoder_params(k_params, vocab_size, hidden_num, topic_num,
                                   vp, hp, tp)
    # key encoder starts as an exact copy of the query encoder (as in __init__)
    params_k = {n: params_q[n] for n in params_q}
    # persistent bf16 shadow of the query weights (built once, reused)
    shadow_q = make_bf16_shadow(params_q)

    # register_buffer('queue', randn(topic_num, K)); queue = F.normalize(queue, dim=0)
    queue = jax.random.normal(k_queue, (topic_num, K), jnp.float32)
    queue = queue / jnp.maximum(
        jnp.sqrt(jnp.sum(queue * queue, axis=0, keepdims=True)), 1e-12)
    queue_ptr = jnp.int32(0)

    fwd = jax.jit(functools.partial(encoder_forward,
                                    dropout_p=dropout_p, topic_num=topic_num))
    theta, logits, labels, params_k, queue, queue_ptr = fwd(
        x, params_q, shadow_q, params_k, queue, queue_ptr, k_aug)
    jax.block_until_ready((theta, logits, labels, params_k, queue, queue_ptr))

    assert theta.shape == (batch, topic_num)
    assert logits.shape == (batch, batch + K)
    assert labels.shape == (batch,)
    assert params_k["w1"].shape == (vp, 1024)
    assert queue.shape == (topic_num, K)
    assert bool(jnp.all(jnp.isfinite(theta))) and bool(jnp.all(jnp.isfinite(logits)))
    # exact softmax denominator -> rows sum to 1 within f32 rounding
    assert bool(jnp.allclose(jnp.sum(theta, axis=1), 1.0, atol=1e-3))

    print("KERNEL_OK")
</pallas_src>

<mosaic_0001>
module attributes {stable_mosaic.version = 11 : i64} {
  func.func @key_logits_kernel(%arg0: i32, %arg1: memref<128x128xbf16, #tpu.memory_space<vmem>>, %arg2: memref<128x1024xf32, #tpu.memory_space<vmem>>, %arg3: memref<128x1024xf32, #tpu.memory_space<vmem>>, %arg4: memref<1x1024xf32, #tpu.memory_space<vmem>>, %arg5: memref<1x1024xf32, #tpu.memory_space<vmem>>, %arg6: memref<1x1024xf32, #tpu.memory_space<vmem>>, %arg7: memref<1024x128xbf16, #tpu.memory_space<vmem>>, %arg8: memref<1x128xf32, #tpu.memory_space<vmem>>, %arg9: memref<1x128xf32, #tpu.memory_space<vmem>>, %arg10: memref<1x128xf32, #tpu.memory_space<vmem>>, %arg11: memref<128x128xbf16, #tpu.memory_space<vmem>>, %arg12: memref<1x128xf32, #tpu.memory_space<vmem>>, %arg13: memref<8x128xf32, #tpu.memory_space<vmem>>, %arg14: memref<128x1024xf32, #tpu.memory_space<vmem>>, %arg15: memref<128x1024xf32, #tpu.memory_space<vmem>>, %arg16: memref<8x128xf32, #tpu.memory_space<vmem>>, %arg17: memref<8x1024xf32, #tpu.memory_space<vmem>>, %arg18: memref<128x128xf32, #tpu.memory_space<vmem>>, %arg19: memref<128x1024xf32, #tpu.memory_space<vmem>>) attributes {dimension_semantics = [#tpu.dimension_semantics<arbitrary>], iteration_bounds = array<i64: 1>, scalar_prefetch = 0 : i64, scratch_operands = 1 : i64, tpu.core_type = #tpu.core_type<tc>, window_params = [{transform_indices = @transform_0, window_bounds = array<i64: 128, 128>}, {transform_indices = @transform_1, window_bounds = array<i64: 128, 1024>}, {transform_indices = @transform_2, window_bounds = array<i64: 128, 1024>}, {pipeline_mode = #tpu.pipeline_mode<synchronous>, transform_indices = @transform_3, window_bounds = array<i64: 1, 1024>}, {pipeline_mode = #tpu.pipeline_mode<synchronous>, transform_indices = @transform_4, window_bounds = array<i64: 1, 1024>}, {pipeline_mode = #tpu.pipeline_mode<synchronous>, transform_indices = @transform_5, window_bounds = array<i64: 1, 1024>}, {pipeline_mode = #tpu.pipeline_mode<synchronous>, transform_indices = @transform_6, window_bounds = array<i64: 1024, 128>}, {pipeline_mode = #tpu.pipeline_mode<synchronous>, transform_indices = @transform_7, window_bounds = array<i64: 1, 128>}, {pipeline_mode = #tpu.pipeline_mode<synchronous>, transform_indices = @transform_8, window_bounds = array<i64: 1, 128>}, {pipeline_mode = #tpu.pipeline_mode<synchronous>, transform_indices = @transform_9, window_bounds = array<i64: 1, 128>}, {pipeline_mode = #tpu.pipeline_mode<synchronous>, transform_indices = @transform_10, window_bounds = array<i64: 128, 128>}, {pipeline_mode = #tpu.pipeline_mode<synchronous>, transform_indices = @transform_11, window_bounds = array<i64: 1, 128>}, {pipeline_mode = #tpu.pipeline_mode<synchronous>, transform_indices = @transform_12, window_bounds = array<i64: 8, 128>}, {pipeline_mode = #tpu.pipeline_mode<synchronous>, transform_indices = @transform_13, window_bounds = array<i64: 128, 1024>}, {transform_indices = @transform_14, window_bounds = array<i64: 128, 1024>}, {pipeline_mode = #tpu.pipeline_mode<synchronous>, transform_indices = @transform_15, window_bounds = array<i64: 8, 128>}, {pipeline_mode = #tpu.pipeline_mode<synchronous>, transform_indices = @transform_16, window_bounds = array<i64: 8, 1024>}, {pipeline_mode = #tpu.pipeline_mode<synchronous>, transform_indices = @transform_17, window_bounds = array<i64: 128, 128>}]} {
    %c0_i32 = arith.constant 0 : i32
    %0 = arith.cmpi eq, %arg0, %c0_i32 : i32
    %1 = arith.extui %0 : i1 to i32
    %c0_i32_0 = arith.constant 0 : i32
    %2 = arith.cmpi ne, %1, %c0_i32_0 : i32
    scf.if %2 {
      %cst_16 = arith.constant 0.000000e+00 : f32
      %20 = vector.broadcast %cst_16 : f32 to vector<128x1024xf32>
      %c0_17 = arith.constant 0 : index
      %c0_18 = arith.constant 0 : index
      %21 = vector.load %arg19[%c0_17, %c0_18] : memref<128x1024xf32, #tpu.memory_space<vmem>>, vector<128x1024xf32>
      tpu.vector_store %arg19[%c0_17, %c0_18], %20 {strides = array<i32>} : memref<128x1024xf32, #tpu.memory_space<vmem>>, vector<128x1024xf32>,
    } else {
    }
    %c0 = arith.constant 0 : index
    %c0_1 = arith.constant 0 : index
    %3 = vector.load %arg3[%c0, %c0_1] : memref<128x1024xf32, #tpu.memory_space<vmem>>, vector<128x1024xf32>
    %cst = arith.constant 9.990000e-01 : f32
    %4 = vector.broadcast %cst : f32 to vector<128x1024xf32>
    %5 = arith.mulf %4, %3 : vector<128x1024xf32>
    %c0_2 = arith.constant 0 : index
    %c0_3 = arith.constant 0 : index
    %6 = vector.load %arg2[%c0_2, %c0_3] : memref<128x1024xf32, #tpu.memory_space<vmem>>, vector<128x1024xf32>
    %cst_4 = arith.constant 1.000000e-03 : f32
    %7 = vector.broadcast %cst_4 : f32 to vector<128x1024xf32>
    %8 = arith.mulf %7, %6 : vector<128x1024xf32>
    %9 = arith.addf %5, %8 : vector<128x1024xf32>
    %c0_5 = arith.constant 0 : index
    %c0_6 = arith.constant 0 : index
    %10 = vector.load %arg15[%c0_5, %c0_6] : memref<128x1024xf32, #tpu.memory_space<vmem>>, vector<128x1024xf32>
    tpu.vector_store %arg15[%c0_5, %c0_6], %9 {strides = array<i32>} : memref<128x1024xf32, #tpu.memory_space<vmem>>, vector<128x1024xf32>,
    %c0_7 = arith.constant 0 : index
    %c0_8 = arith.constant 0 : index
    %11 = vector.load %arg19[%c0_7, %c0_8] : memref<128x1024xf32, #tpu.memory_space<vmem>>, vector<128x1024xf32>
    %c0_9 = arith.constant 0 : index
    %c0_10 = arith.constant 0 : index
    %12 = vector.load %arg1[%c0_9, %c0_10] : memref<128x128xbf16, #tpu.memory_space<vmem>>, vector<128x128xbf16>
    %13 = arith.truncf %9 : vector<128x1024xf32> to vector<128x1024xbf16>
    %cst_11 = arith.constant dense<0.000000e+00> : vector<128x1024xf32>
    %14 = tpu.matmul %12, %13, %cst_11 {dimension_numbers = #tpu.dot_dimension_numbers<[1], [0], [0], [1], [0, 0, 1, 1], [], []>} : vector<128x128xbf16>, vector<128x1024xbf16>, vector<128x1024xf32> -> vector<128x1024xf32>
    %15 = arith.addf %11, %14 : vector<128x1024xf32>
    %c0_12 = arith.constant 0 : index
    %c0_13 = arith.constant 0 : index
    %16 = vector.load %arg19[%c0_12, %c0_13] : memref<128x1024xf32, #tpu.memory_space<vmem>>, vector<128x1024xf32>
    tpu.vector_store %arg19[%c0_12, %c0_13], %15 {strides = array<i32>} : memref<128x1024xf32, #tpu.memory_space<vmem>>, vector<128x1024xf32>,
    %c0_i32_14 = arith.constant 0 : i32
    %17 = arith.cmpi eq, %arg0, %c0_i32_14 : i32
    %18 = arith.extui %17 : i1 to i32
    %c0_i32_15 = arith.constant 0 : i32
    %19 = arith.cmpi ne, %18, %c0_i32_15 : i32
    scf.if %19 {
      %20 = tpu.iota {dimensions = array<i32: 0>} : vector<128x1xi32>
      %c8_i32 = arith.constant 8 : i32
      %21 = vector.broadcast %c8_i32 : i32 to vector<128x1xi32>
      %22 = arith.cmpi slt, %20, %21 : vector<128x1xi32>
      %c0_16 = arith.constant 0 : index
      %c0_17 = arith.constant 0 : index
      %23 = vector.load %arg19[%c0_16, %c0_17] : memref<128x1024xf32, #tpu.memory_space<vmem>>, vector<128x1024xf32>
      %c0_18 = arith.constant 0 : index
      %c0_19 = arith.constant 0 : index
      %24 = vector.load %arg4[%c0_18, %c0_19] : memref<1x1024xf32, #tpu.memory_space<vmem>>, vector<1x1024xf32>
      %25 = vector.broadcast %24 : vector<1x1024xf32> to vector<128x1024xf32>
      %26 = arith.addf %23, %25 : vector<128x1024xf32>
      %c0_20 = arith.constant 0 : index
      %c0_21 = arith.constant 0 : index
      %27 = vector.load %arg5[%c0_20, %c0_21] : memref<1x1024xf32, #tpu.memory_space<vmem>>, vector<1x1024xf32>
      %c0_22 = arith.constant 0 : index
      %c0_23 = arith.constant 0 : index
      %28 = vector.load %arg6[%c0_22, %c0_23] : memref<1x1024xf32, #tpu.memory_space<vmem>>, vector<1x1024xf32>
      %cst_24 = arith.constant 0.000000e+00 : f32
      %29 = vector.shape_cast %22 : vector<128x1xi1> to vector<128x1xi1>
      %30 = vector.broadcast %29 : vector<128x1xi1> to vector<128x1024xi1>
      %31 = vector.broadcast %cst_24 : f32 to vector<128x1024xf32>
      %32 = arith.select %30, %26, %31 : vector<128x1024xi1>, vector<128x1024xf32>
      %cst_25 = arith.constant dense<0.000000e+00> : vector<1024xf32>
      %33 = vector.multi_reduction <add>, %32, %cst_25 [0] : vector<128x1024xf32> to vector<1024xf32>
      %34 = vector.shape_cast %33 : vector<1024xf32> to vector<1x1024xf32>
      %cst_26 = arith.constant 1.250000e-01 : f32
      %35 = vector.broadcast %cst_26 : f32 to vector<1x1024xf32>
      %36 = arith.mulf %34, %35 : vector<1x1024xf32>
      %37 = vector.broadcast %36 : vector<1x1024xf32> to vector<128x1024xf32>
      %38 = arith.subf %26, %37 : vector<128x1024xf32>
      %39 = arith.mulf %38, %38 : vector<128x1024xf32>
      %cst_27 = arith.constant 0.000000e+00 : f32
      %40 = vector.shape_cast %22 : vector<128x1xi1> to vector<128x1xi1>
      %41 = vector.broadcast %40 : vector<128x1xi1> to vector<128x1024xi1>
      %42 = vector.broadcast %cst_27 : f32 to vector<128x1024xf32>
      %43 = arith.select %41, %39, %42 : vector<128x1024xi1>, vector<128x1024xf32>
      %cst_28 = arith.constant dense<0.000000e+00> : vector<1024xf32>
      %44 = vector.multi_reduction <add>, %43, %cst_28 [0] : vector<128x1024xf32> to vector<1024xf32>
      %45 = vector.shape_cast %44 : vector<1024xf32> to vector<1x1024xf32>
      %cst_29 = arith.constant 1.250000e-01 : f32
      %46 = vector.broadcast %cst_29 : f32 to vector<1x1024xf32>
      %47 = arith.mulf %45, %46 : vector<1x1024xf32>
      %cst_30 = arith.constant 9.99999974E-6 : f32
      %48 = vector.broadcast %cst_30 : f32 to vector<1x1024xf32>
      %49 = arith.addf %47, %48 : vector<1x1024xf32>
      %50 = math.rsqrt %49 : vector<1x1024xf32>
      %51 = vector.broadcast %50 : vector<1x1024xf32> to vector<128x1024xf32>
      %52 = arith.mulf %38, %51 : vector<128x1024xf32>
      %53 = vector.broadcast %27 : vector<1x1024xf32> to vector<128x1024xf32>
      %54 = arith.mulf %52, %53 : vector<128x1024xf32>
      %55 = vector.broadcast %28 : vector<1x1024xf32> to vector<128x1024xf32>
      %56 = arith.addf %54, %55 : vector<128x1024xf32>
      %cst_31 = arith.constant 0.000000e+00 : f32
      %57 = vector.broadcast %cst_31 : f32 to vector<128x1024xf32>
      %58 = arith.cmpf oge, %56, %57 : vector<128x1024xf32>
      %cst_32 = arith.constant 0.00999999977 : f32
      %59 = vector.broadcast %cst_32 : f32 to vector<128x1024xf32>
      %60 = arith.mulf %59, %56 : vector<128x1024xf32>
      %61 = arith.select %58, %56, %60 : vector<128x1024xi1>, vector<128x1024xf32>
      %62 = arith.truncf %61 : vector<128x1024xf32> to vector<128x1024xbf16>
      %c0_33 = arith.constant 0 : index
      %c0_34 = arith.constant 0 : index
      %63 = vector.load %arg7[%c0_33, %c0_34] : memref<1024x128xbf16, #tpu.memory_space<vmem>>, vector<1024x128xbf16>
      %cst_35 = arith.constant dense<0.000000e+00> : vector<128x128xf32>
      %64 = tpu.matmul %62, %63, %cst_35 {dimension_numbers = #tpu.dot_dimension_numbers<[1], [0], [0], [1], [0, 0, 1, 1], [], []>} : vector<128x1024xbf16>, vector<1024x128xbf16>, vector<128x128xf32> -> vector<128x128xf32>
      %c0_36 = arith.constant 0 : index
      %c0_37 = arith.constant 0 : index
      %65 = vector.load %arg8[%c0_36, %c0_37] : memref<1x128xf32, #tpu.memory_space<vmem>>, vector<1x128xf32>
      %66 = vector.broadcast %65 : vector<1x128xf32> to vector<128x128xf32>
      %67 = arith.addf %64, %66 : vector<128x128xf32>
      %c0_38 = arith.constant 0 : index
      %c0_39 = arith.constant 0 : index
      %68 = vector.load %arg9[%c0_38, %c0_39] : memref<1x128xf32, #tpu.memory_space<vmem>>, vector<1x128xf32>
      %c0_40 = arith.constant 0 : index
      %c0_41 = arith.constant 0 : index
      %69 = vector.load %arg10[%c0_40, %c0_41] : memref<1x128xf32, #tpu.memory_space<vmem>>, vector<1x128xf32>
      %cst_42 = arith.constant 0.000000e+00 : f32
      %70 = vector.shape_cast %22 : vector<128x1xi1> to vector<128x1xi1>
      %71 = vector.broadcast %70 : vector<128x1xi1> to vector<128x128xi1>
      %72 = vector.broadcast %cst_42 : f32 to vector<128x128xf32>
      %73 = arith.select %71, %67, %72 : vector<128x128xi1>, vector<128x128xf32>
      %cst_43 = arith.constant dense<0.000000e+00> : vector<128xf32>
      %74 = vector.multi_reduction <add>, %73, %cst_43 [0] : vector<128x128xf32> to vector<128xf32>
      %75 = vector.shape_cast %74 : vector<128xf32> to vector<1x128xf32>
      %cst_44 = arith.constant 1.250000e-01 : f32
      %76 = vector.broadcast %cst_44 : f32 to vector<1x128xf32>
      %77 = arith.mulf %75, %76 : vector<1x128xf32>
      %78 = vector.broadcast %77 : vector<1x128xf32> to vector<128x128xf32>
      %79 = arith.subf %67, %78 : vector<128x128xf32>
      %80 = arith.mulf %79, %79 : vector<128x128xf32>
      %cst_45 = arith.constant 0.000000e+00 : f32
      %81 = vector.shape_cast %22 : vector<128x1xi1> to vector<128x1xi1>
      %82 = vector.broadcast %81 : vector<128x1xi1> to vector<128x128xi1>
      %83 = vector.broadcast %cst_45 : f32 to vector<128x128xf32>
      %84 = arith.select %82, %80, %83 : vector<128x128xi1>, vector<128x128xf32>
      %cst_46 = arith.constant dense<0.000000e+00> : vector<128xf32>
      %85 = vector.multi_reduction <add>, %84, %cst_46 [0] : vector<128x128xf32> to vector<128xf32>
      %86 = vector.shape_cast %85 : vector<128xf32> to vector<1x128xf32>
      %cst_47 = arith.constant 1.250000e-01 : f32
      %87 = vector.broadcast %cst_47 : f32 to vector<1x128xf32>
      %88 = arith.mulf %86, %87 : vector<1x128xf32>
      %cst_48 = arith.constant 9.99999974E-6 : f32
      %89 = vector.broadcast %cst_48 : f32 to vector<1x128xf32>
      %90 = arith.addf %88, %89 : vector<1x128xf32>
      %91 = math.rsqrt %90 : vector<1x128xf32>
      %92 = vector.broadcast %91 : vector<1x128xf32> to vector<128x128xf32>
      %93 = arith.mulf %79, %92 : vector<128x128xf32>
      %94 = vector.broadcast %68 : vector<1x128xf32> to vector<128x128xf32>
      %95 = arith.mulf %93, %94 : vector<128x128xf32>
      %96 = vector.broadcast %69 : vector<1x128xf32> to vector<128x128xf32>
      %97 = arith.addf %95, %96 : vector<128x128xf32>
      %cst_49 = arith.constant 0.000000e+00 : f32
      %98 = vector.broadcast %cst_49 : f32 to vector<128x128xf32>
      %99 = arith.cmpf oge, %97, %98 : vector<128x128xf32>
      %cst_50 = arith.constant 0.00999999977 : f32
      %100 = vector.broadcast %cst_50 : f32 to vector<128x128xf32>
      %101 = arith.mulf %100, %97 : vector<128x128xf32>
      %102 = arith.select %99, %97, %101 : vector<128x128xi1>, vector<128x128xf32>
      %103 = arith.truncf %102 : vector<128x128xf32> to vector<128x128xbf16>
      %c0_51 = arith.constant 0 : index
      %c0_52 = arith.constant 0 : index
      %104 = vector.load %arg11[%c0_51, %c0_52] : memref<128x128xbf16, #tpu.memory_space<vmem>>, vector<128x128xbf16>
      %cst_53 = arith.constant dense<0.000000e+00> : vector<128x128xf32>
      %105 = tpu.matmul %103, %104, %cst_53 {dimension_numbers = #tpu.dot_dimension_numbers<[1], [0], [0], [1], [0, 0, 1, 1], [], []>} : vector<128x128xbf16>, vector<128x128xbf16>, vector<128x128xf32> -> vector<128x128xf32>
      %c0_54 = arith.constant 0 : index
      %c0_55 = arith.constant 0 : index
      %106 = vector.load %arg12[%c0_54, %c0_55] : memref<1x128xf32, #tpu.memory_space<vmem>>, vector<1x128xf32>
      %107 = vector.broadcast %106 : vector<1x128xf32> to vector<128x128xf32>
      %108 = arith.addf %105, %107 : vector<128x128xf32>
      %c0_56 = arith.constant 0 : index
      %c0_57 = arith.constant 0 : index
      %109 = vector.load %arg13[%c0_56, %c0_57] : memref<8x128xf32, #tpu.memory_space<vmem>>, vector<8x128xf32>
      %110 = arith.mulf %109, %109 : vector<8x128xf32>
      %cst_58 = arith.constant dense<0.000000e+00> : vector<8xf32>
      %111 = vector.multi_reduction <add>, %110, %cst_58 [1] : vector<8x128xf32> to vector<8xf32>
      %112 = vector.shape_cast %111 : vector<8xf32> to vector<8x1xf32>
      %113 = math.sqrt %112 : vector<8x1xf32>
      %cst_59 = arith.constant 9.99999996E-13 : f32
      %114 = vector.broadcast %cst_59 : f32 to vector<8x1xf32>
      %115 = arith.maximumf %113, %114 : vector<8x1xf32>
      %116 = vector.broadcast %115 : vector<8x1xf32> to vector<8x128xf32>
      %117 = arith.divf %109, %116 : vector<8x128xf32>
      %118 = arith.mulf %108, %108 : vector<128x128xf32>
      %cst_60 = arith.constant dense<0.000000e+00> : vector<128xf32>
      %119 = vector.multi_reduction <add>, %118, %cst_60 [1] : vector<128x128xf32> to vector<128xf32>
      %120 = vector.shape_cast %119 : vector<128xf32> to vector<128x1xf32>
      %121 = math.sqrt %120 : vector<128x1xf32>
      %cst_61 = arith.constant 9.99999996E-13 : f32
      %122 = vector.broadcast %cst_61 : f32 to vector<128x1xf32>
      %123 = arith.maximumf %121, %122 : vector<128x1xf32>
      %124 = vector.broadcast %123 : vector<128x1xf32> to vector<128x128xf32>
      %125 = arith.divf %108, %124 : vector<128x128xf32>
      %c0_62 = arith.constant 0 : index
      %c0_63 = arith.constant 0 : index
      %126 = vector.load %arg18[%c0_62, %c0_63] : memref<128x128xf32, #tpu.memory_space<vmem>>, vector<128x128xf32>
      tpu.vector_store %arg18[%c0_62, %c0_63], %125 {strides = array<i32>} : memref<128x128xf32, #tpu.memory_space<vmem>>, vector<128x128xf32>,
      %cst_64 = arith.constant dense<0.000000e+00> : vector<8x128xf32>
      %127 = tpu.matmul %117, %125, %cst_64 {dimension_numbers = #tpu.dot_dimension_numbers<[1], [1], [0], [0], [0, 0, 1, 0], [], []>} : vector<8x128xf32>, vector<128x128xf32>, vector<8x128xf32> -> vector<8x128xf32>
      %c0_65 = arith.constant 0 : index
      %c0_66 = arith.constant 0 : index
      %128 = vector.load %arg14[%c0_65, %c0_66] : memref<128x1024xf32, #tpu.memory_space<vmem>>, vector<128x1024xf32>
      %cst_67 = arith.constant dense<0.000000e+00> : vector<8x1024xf32>
      %129 = tpu.matmul %117, %128, %cst_67 {dimension_numbers = #tpu.dot_dimension_numbers<[1], [0], [0], [1], [0, 0, 1, 1], [], []>} : vector<8x128xf32>, vector<128x1024xf32>, vector<8x1024xf32> -> vector<8x1024xf32>
      %cst_68 = arith.constant 2.000000e+01 : f32
      %130 = vector.broadcast %cst_68 : f32 to vector<8x128xf32>
      %131 = arith.mulf %127, %130 : vector<8x128xf32>
      %c0_69 = arith.constant 0 : index
      %c0_70 = arith.constant 0 : index
      %132 = vector.load %arg16[%c0_69, %c0_70] : memref<8x128xf32, #tpu.memory_space<vmem>>, vector<8x128xf32>
      tpu.vector_store %arg16[%c0_69, %c0_70], %131 {strides = array<i32>} : memref<8x128xf32, #tpu.memory_space<vmem>>, vector<8x128xf32>,
      %cst_71 = arith.constant 2.000000e+01 : f32
      %133 = vector.broadcast %cst_71 : f32 to vector<8x1024xf32>
      %134 = arith.mulf %129, %133 : vector<8x1024xf32>
      %c0_72 = arith.constant 0 : index
      %c0_73 = arith.constant 0 : index
      %135 = vector.load %arg17[%c0_72, %c0_73] : memref<8x1024xf32, #tpu.memory_space<vmem>>, vector<8x1024xf32>
      tpu.vector_store %arg17[%c0_72, %c0_73], %134 {strides = array<i32>} : memref<8x1024xf32, #tpu.memory_space<vmem>>, vector<8x1024xf32>,
    } else {
    }
    return
  }
  func.func @transform_0(%arg0: i32) -> (i32, i32) {
    %c0_i32 = arith.constant 0 : i32
    %c0_i32_0 = arith.constant 0 : i32
    return %c0_i32, %arg0 : i32, i32
  }
  func.func @transform_1(%arg0: i32) -> (i32, i32) {
    %c0_i32 = arith.constant 0 : i32
    %c0_i32_0 = arith.constant 0 : i32
    return %arg0, %c0_i32 : i32, i32
  }
  func.func @transform_2(%arg0: i32) -> (i32, i32) {
    %c0_i32 = arith.constant 0 : i32
    %c0_i32_0 = arith.constant 0 : i32
    return %arg0, %c0_i32 : i32, i32
  }
  func.func @transform_3(%arg0: i32) -> (i32, i32) {
    %c0_i32 = arith.constant 0 : i32
    %c0_i32_0 = arith.constant 0 : i32
    %c0_i32_1 = arith.constant 0 : i32
    return %c0_i32, %c0_i32_0 : i32, i32
  }
  func.func @transform_4(%arg0: i32) -> (i32, i32) {
    %c0_i32 = arith.constant 0 : i32
    %c0_i32_0 = arith.constant 0 : i32
    %c0_i32_1 = arith.constant 0 : i32
    return %c0_i32, %c0_i32_0 : i32, i32
  }
  func.func @transform_5(%arg0: i32) -> (i32, i32) {
    %c0_i32 = arith.constant 0 : i32
    %c0_i32_0 = arith.constant 0 : i32
    %c0_i32_1 = arith.constant 0 : i32
    return %c0_i32, %c0_i32_0 : i32, i32
  }
  func.func @transform_6(%arg0: i32) -> (i32, i32) {
    %c0_i32 = arith.constant 0 : i32
    %c0_i32_0 = arith.constant 0 : i32
    %c0_i32_1 = arith.constant 0 : i32
    return %c0_i32, %c0_i32_0 : i32, i32
  }
  func.func @transform_7(%arg0: i32) -> (i32, i32) {
    %c0_i32 = arith.constant 0 : i32
    %c0_i32_0 = arith.constant 0 : i32
    %c0_i32_1 = arith.constant 0 : i32
    return %c0_i32, %c0_i32_0 : i32, i32
  }
  func.func @transform_8(%arg0: i32) -> (i32, i32) {
    %c0_i32 = arith.constant 0 : i32
    %c0_i32_0 = arith.constant 0 : i32
    %c0_i32_1 = arith.constant 0 : i32
    return %c0_i32, %c0_i32_0 : i32, i32
  }
  func.func @transform_9(%arg0: i32) -> (i32, i32) {
    %c0_i32 = arith.constant 0 : i32
    %c0_i32_0 = arith.constant 0 : i32
    %c0_i32_1 = arith.constant 0 : i32
    return %c0_i32, %c0_i32_0 : i32, i32
  }
  func.func @transform_10(%arg0: i32) -> (i32, i32) {
    %c0_i32 = arith.constant 0 : i32
    %c0_i32_0 = arith.constant 0 : i32
    %c0_i32_1 = arith.constant 0 : i32
    return %c0_i32, %c0_i32_0 : i32, i32
  }
  func.func @transform_11(%arg0: i32) -> (i32, i32) {
    %c0_i32 = arith.constant 0 : i32
    %c0_i32_0 = arith.constant 0 : i32
    %c0_i32_1 = arith.constant 0 : i32
    return %c0_i32, %c0_i32_0 : i32, i32
  }
  func.func @transform_12(%arg0: i32) -> (i32, i32) {
    %c0_i32 = arith.constant 0 : i32
    %c0_i32_0 = arith.constant 0 : i32
    %c0_i32_1 = arith.constant 0 : i32
    return %c0_i32, %c0_i32_0 : i32, i32
  }
  func.func @transform_13(%arg0: i32) -> (i32, i32) {
    %c0_i32 = arith.constant 0 : i32
    %c0_i32_0 = arith.constant 0 : i32
    %c0_i32_1 = arith.constant 0 : i32
    return %c0_i32, %c0_i32_0 : i32, i32
  }
  func.func @transform_14(%arg0: i32) -> (i32, i32) {
    %c0_i32 = arith.constant 0 : i32
    %c0_i32_0 = arith.constant 0 : i32
    return %arg0, %c0_i32 : i32, i32
  }
  func.func @transform_15(%arg0: i32) -> (i32, i32) {
    %c0_i32 = arith.constant 0 : i32
    %c0_i32_0 = arith.constant 0 : i32
    %c0_i32_1 = arith.constant 0 : i32
    return %c0_i32, %c0_i32_0 : i32, i32
  }
  func.func @transform_16(%arg0: i32) -> (i32, i32) {
    %c0_i32 = arith.constant 0 : i32
    %c0_i32_0 = arith.constant 0 : i32
    %c0_i32_1 = arith.constant 0 : i32
    return %c0_i32, %c0_i32_0 : i32, i32
  }
  func.func @transform_17(%arg0: i32) -> (i32, i32) {
    %c0_i32 = arith.constant 0 : i32
    %c0_i32_0 = arith.constant 0 : i32
    %c0_i32_1 = arith.constant 0 : i32
    return %c0_i32, %c0_i32_0 : i32, i32
  }
}

module attributes {stable_mosaic.version = 11 : i64} {
  func.func @q_mlp_kernel(%arg0: i32, %arg1: memref<16x128xbf16, #tpu.memory_space<vmem>>, %arg2: memref<128x1024xbf16, #tpu.memory_space<vmem>>, %arg3: memref<1x1024xf32, #tpu.memory_space<vmem>>, %arg4: memref<1x1024xf32, #tpu.memory_space<vmem>>, %arg5: memref<1x1024xf32, #tpu.memory_space<vmem>>, %arg6: memref<1024x128xbf16, #tpu.memory_space<vmem>>, %arg7: memref<1x128xf32, #tpu.memory_space<vmem>>, %arg8: memref<1x128xf32, #tpu.memory_space<vmem>>, %arg9: memref<1x128xf32, #tpu.memory_space<vmem>>, %arg10: memref<128x128xbf16, #tpu.memory_space<vmem>>, %arg11: memref<1x128xf32, #tpu.memory_space<vmem>>, %arg12: memref<8x128xf32, #tpu.memory_space<vmem>>, %arg13: memref<8x128xf32, #tpu.memory_space<vmem>>, %arg14: memref<16x1024xf32, #tpu.memory_space<vmem>>) attributes {dimension_semantics = [#tpu.dimension_semantics<arbitrary>], iteration_bounds = array<i64: 1>, scalar_prefetch = 0 : i64, scratch_operands = 1 : i64, tpu.core_type = #tpu.core_type<tc>, window_params = [{transform_indices = @transform_0, window_bounds = array<i64: 16, 128>}, {transform_indices = @transform_1, window_bounds = array<i64: 128, 1024>}, {pipeline_mode = #tpu.pipeline_mode<synchronous>, transform_indices = @transform_2, window_bounds = array<i64: 1, 1024>}, {pipeline_mode = #tpu.pipeline_mode<synchronous>, transform_indices = @transform_3, window_bounds = array<i64: 1, 1024>}, {pipeline_mode = #tpu.pipeline_mode<synchronous>, transform_indices = @transform_4, window_bounds = array<i64: 1, 1024>}, {pipeline_mode = #tpu.pipeline_mode<synchronous>, transform_indices = @transform_5, window_bounds = array<i64: 1024, 128>}, {pipeline_mode = #tpu.pipeline_mode<synchronous>, transform_indices = @transform_6, window_bounds = array<i64: 1, 128>}, {pipeline_mode = #tpu.pipeline_mode<synchronous>, transform_indices = @transform_7, window_bounds = array<i64: 1, 128>}, {pipeline_mode = #tpu.pipeline_mode<synchronous>, transform_indices = @transform_8, window_bounds = array<i64: 1, 128>}, {pipeline_mode = #tpu.pipeline_mode<synchronous>, transform_indices = @transform_9, window_bounds = array<i64: 128, 128>}, {pipeline_mode = #tpu.pipeline_mode<synchronous>, transform_indices = @transform_10, window_bounds = array<i64: 1, 128>}, {pipeline_mode = #tpu.pipeline_mode<synchronous>, transform_indices = @transform_11, window_bounds = array<i64: 8, 128>}, {pipeline_mode = #tpu.pipeline_mode<synchronous>, transform_indices = @transform_12, window_bounds = array<i64: 8, 128>}]} {
    %c0_i32 = arith.constant 0 : i32
    %0 = arith.cmpi eq, %arg0, %c0_i32 : i32
    %1 = arith.extui %0 : i1 to i32
    %c0_i32_0 = arith.constant 0 : i32
    %2 = arith.cmpi ne, %1, %c0_i32_0 : i32
    scf.if %2 {
      %cst_10 = arith.constant 0.000000e+00 : f32
      %12 = vector.broadcast %cst_10 : f32 to vector<16x1024xf32>
      %c0_11 = arith.constant 0 : index
      %c0_12 = arith.constant 0 : index
      %13 = vector.load %arg14[%c0_11, %c0_12] : memref<16x1024xf32, #tpu.memory_space<vmem>>, vector<16x1024xf32>
      tpu.vector_store %arg14[%c0_11, %c0_12], %12 {strides = array<i32>} : memref<16x1024xf32, #tpu.memory_space<vmem>>, vector<16x1024xf32>,
    } else {
    }
    %c0 = arith.constant 0 : index
    %c0_1 = arith.constant 0 : index
    %3 = vector.load %arg14[%c0, %c0_1] : memref<16x1024xf32, #tpu.memory_space<vmem>>, vector<16x1024xf32>
    %c0_2 = arith.constant 0 : index
    %c0_3 = arith.constant 0 : index
    %4 = vector.load %arg1[%c0_2, %c0_3] : memref<16x128xbf16, #tpu.memory_space<vmem>>, vector<16x128xbf16>
    %c0_4 = arith.constant 0 : index
    %c0_5 = arith.constant 0 : index
    %5 = vector.load %arg2[%c0_4, %c0_5] : memref<128x1024xbf16, #tpu.memory_space<vmem>>, vector<128x1024xbf16>
    %cst = arith.constant dense<0.000000e+00> : vector<16x1024xf32>
    %6 = tpu.matmul %4, %5, %cst {dimension_numbers = #tpu.dot_dimension_numbers<[1], [0], [0], [1], [0, 0, 1, 1], [], []>} : vector<16x128xbf16>, vector<128x1024xbf16>, vector<16x1024xf32> -> vector<16x1024xf32>
    %7 = arith.addf %3, %6 : vector<16x1024xf32>
    %c0_6 = arith.constant 0 : index
    %c0_7 = arith.constant 0 : index
    %8 = vector.load %arg14[%c0_6, %c0_7] : memref<16x1024xf32, #tpu.memory_space<vmem>>, vector<16x1024xf32>
    tpu.vector_store %arg14[%c0_6, %c0_7], %7 {strides = array<i32>} : memref<16x1024xf32, #tpu.memory_space<vmem>>, vector<16x1024xf32>,
    %c0_i32_8 = arith.constant 0 : i32
    %9 = arith.cmpi eq, %arg0, %c0_i32_8 : i32
    %10 = arith.extui %9 : i1 to i32
    %c0_i32_9 = arith.constant 0 : i32
    %11 = arith.cmpi ne, %10, %c0_i32_9 : i32
    scf.if %11 {
      %12 = tpu.iota {dimensions = array<i32: 0>} : vector<16x1xi32>
      %c8_i32 = arith.constant 8 : i32
      %13 = vector.broadcast %c8_i32 : i32 to vector<16x1xi32>
      %14 = arith.cmpi slt, %12, %13 : vector<16x1xi32>
      %c0_10 = arith.constant 0 : index
      %c0_11 = arith.constant 0 : index
      %15 = vector.load %arg14[%c0_10, %c0_11] : memref<16x1024xf32, #tpu.memory_space<vmem>>, vector<16x1024xf32>
      %c0_12 = arith.constant 0 : index
      %c0_13 = arith.constant 0 : index
      %16 = vector.load %arg3[%c0_12, %c0_13] : memref<1x1024xf32, #tpu.memory_space<vmem>>, vector<1x1024xf32>
      %17 = vector.broadcast %16 : vector<1x1024xf32> to vector<16x1024xf32>
      %18 = arith.addf %15, %17 : vector<16x1024xf32>
      %c0_14 = arith.constant 0 : index
      %c0_15 = arith.constant 0 : index
      %19 = vector.load %arg4[%c0_14, %c0_15] : memref<1x1024xf32, #tpu.memory_space<vmem>>, vector<1x1024xf32>
      %c0_16 = arith.constant 0 : index
      %c0_17 = arith.constant 0 : index
      %20 = vector.load %arg5[%c0_16, %c0_17] : memref<1x1024xf32, #tpu.memory_space<vmem>>, vector<1x1024xf32>
      %cst_18 = arith.constant 0.000000e+00 : f32
      %21 = vector.shape_cast %14 : vector<16x1xi1> to vector<16x1xi1>
      %22 = vector.broadcast %21 : vector<16x1xi1> to vector<16x1024xi1>
      %23 = vector.broadcast %cst_18 : f32 to vector<16x1024xf32>
      %24 = arith.select %22, %18, %23 : vector<16x1024xi1>, vector<16x1024xf32>
      %cst_19 = arith.constant dense<0.000000e+00> : vector<1024xf32>
      %25 = vector.multi_reduction <add>, %24, %cst_19 [0] : vector<16x1024xf32> to vector<1024xf32>
      %26 = vector.shape_cast %25 : vector<1024xf32> to vector<1x1024xf32>
      %cst_20 = arith.constant 1.250000e-01 : f32
      %27 = vector.broadcast %cst_20 : f32 to vector<1x1024xf32>
      %28 = arith.mulf %26, %27 : vector<1x1024xf32>
      %cst_21 = arith.constant 0.000000e+00 : f32
      %29 = vector.shape_cast %14 : vector<16x1xi1> to vector<16x1xi1>
      %30 = vector.broadcast %29 : vector<16x1xi1> to vector<16x1024xi1>
      %31 = vector.broadcast %cst_21 : f32 to vector<16x1024xf32>
      %32 = arith.select %30, %31, %18 : vector<16x1024xi1>, vector<16x1024xf32>
      %cst_22 = arith.constant dense<0.000000e+00> : vector<1024xf32>
      %33 = vector.multi_reduction <add>, %32, %cst_22 [0] : vector<16x1024xf32> to vector<1024xf32>
      %34 = vector.shape_cast %33 : vector<1024xf32> to vector<1x1024xf32>
      %cst_23 = arith.constant 1.250000e-01 : f32
      %35 = vector.broadcast %cst_23 : f32 to vector<1x1024xf32>
      %36 = arith.mulf %34, %35 : vector<1x1024xf32>
      %37 = vector.shape_cast %14 : vector<16x1xi1> to vector<16x1xi1>
      %38 = vector.broadcast %37 : vector<16x1xi1> to vector<16x1024xi1>
      %39 = vector.shape_cast %28 : vector<1x1024xf32> to vector<1x1024xf32>
      %40 = vector.broadcast %39 : vector<1x1024xf32> to vector<16x1024xf32>
      %41 = vector.shape_cast %36 : vector<1x1024xf32> to vector<1x1024xf32>
      %42 = vector.broadcast %41 : vector<1x1024xf32> to vector<16x1024xf32>
      %43 = arith.select %38, %40, %42 : vector<16x1024xi1>, vector<16x1024xf32>
      %44 = arith.subf %18, %43 : vector<16x1024xf32>
      %45 = arith.mulf %44, %44 : vector<16x1024xf32>
      %cst_24 = arith.constant 0.000000e+00 : f32
      %46 = vector.shape_cast %14 : vector<16x1xi1> to vector<16x1xi1>
      %47 = vector.broadcast %46 : vector<16x1xi1> to vector<16x1024xi1>
      %48 = vector.broadcast %cst_24 : f32 to vector<16x1024xf32>
      %49 = arith.select %47, %45, %48 : vector<16x1024xi1>, vector<16x1024xf32>
      %cst_25 = arith.constant dense<0.000000e+00> : vector<1024xf32>
      %50 = vector.multi_reduction <add>, %49, %cst_25 [0] : vector<16x1024xf32> to vector<1024xf32>
      %51 = vector.shape_cast %50 : vector<1024xf32> to vector<1x1024xf32>
      %cst_26 = arith.constant 1.250000e-01 : f32
      %52 = vector.broadcast %cst_26 : f32 to vector<1x1024xf32>
      %53 = arith.mulf %51, %52 : vector<1x1024xf32>
      %cst_27 = arith.constant 0.000000e+00 : f32
      %54 = vector.shape_cast %14 : vector<16x1xi1> to vector<16x1xi1>
      %55 = vector.broadcast %54 : vector<16x1xi1> to vector<16x1024xi1>
      %56 = vector.broadcast %cst_27 : f32 to vector<16x1024xf32>
      %57 = arith.select %55, %56, %45 : vector<16x1024xi1>, vector<16x1024xf32>
      %cst_28 = arith.constant dense<0.000000e+00> : vector<1024xf32>
      %58 = vector.multi_reduction <add>, %57, %cst_28 [0] : vector<16x1024xf32> to vector<1024xf32>
      %59 = vector.shape_cast %58 : vector<1024xf32> to vector<1x1024xf32>
      %cst_29 = arith.constant 1.250000e-01 : f32
      %60 = vector.broadcast %cst_29 : f32 to vector<1x1024xf32>
      %61 = arith.mulf %59, %60 : vector<1x1024xf32>
      %62 = vector.shape_cast %14 : vector<16x1xi1> to vector<16x1xi1>
      %63 = vector.broadcast %62 : vector<16x1xi1> to vector<16x1024xi1>
      %64 = vector.shape_cast %53 : vector<1x1024xf32> to vector<1x1024xf32>
      %65 = vector.broadcast %64 : vector<1x1024xf32> to vector<16x1024xf32>
      %66 = vector.shape_cast %61 : vector<1x1024xf32> to vector<1x1024xf32>
      %67 = vector.broadcast %66 : vector<1x1024xf32> to vector<16x1024xf32>
      %68 = arith.select %63, %65, %67 : vector<16x1024xi1>, vector<16x1024xf32>
      %cst_30 = arith.constant 9.99999974E-6 : f32
      %69 = vector.broadcast %cst_30 : f32 to vector<16x1024xf32>
      %70 = arith.addf %68, %69 : vector<16x1024xf32>
      %71 = math.rsqrt %70 : vector<16x1024xf32>
      %72 = arith.mulf %44, %71 : vector<16x1024xf32>
      %73 = vector.broadcast %19 : vector<1x1024xf32> to vector<16x1024xf32>
      %74 = arith.mulf %72, %73 : vector<16x1024xf32>
      %75 = vector.broadcast %20 : vector<1x1024xf32> to vector<16x1024xf32>
      %76 = arith.addf %74, %75 : vector<16x1024xf32>
      %cst_31 = arith.constant 0.000000e+00 : f32
      %77 = vector.broadcast %cst_31 : f32 to vector<16x1024xf32>
      %78 = arith.cmpf oge, %76, %77 : vector<16x1024xf32>
      %cst_32 = arith.constant 0.00999999977 : f32
      %79 = vector.broadcast %cst_32 : f32 to vector<16x1024xf32>
      %80 = arith.mulf %79, %76 : vector<16x1024xf32>
      %81 = arith.select %78, %76, %80 : vector<16x1024xi1>, vector<16x1024xf32>
      %82 = arith.truncf %81 : vector<16x1024xf32> to vector<16x1024xbf16>
      %c0_33 = arith.constant 0 : index
      %c0_34 = arith.constant 0 : index
      %83 = vector.load %arg6[%c0_33, %c0_34] : memref<1024x128xbf16, #tpu.memory_space<vmem>>, vector<1024x128xbf16>
      %cst_35 = arith.constant dense<0.000000e+00> : vector<16x128xf32>
      %84 = tpu.matmul %82, %83, %cst_35 {dimension_numbers = #tpu.dot_dimension_numbers<[1], [0], [0], [1], [0, 0, 1, 1], [], []>} : vector<16x1024xbf16>, vector<1024x128xbf16>, vector<16x128xf32> -> vector<16x128xf32>
      %c0_36 = arith.constant 0 : index
      %c0_37 = arith.constant 0 : index
      %85 = vector.load %arg7[%c0_36, %c0_37] : memref<1x128xf32, #tpu.memory_space<vmem>>, vector<1x128xf32>
      %86 = vector.broadcast %85 : vector<1x128xf32> to vector<16x128xf32>
      %87 = arith.addf %84, %86 : vector<16x128xf32>
      %c0_38 = arith.constant 0 : index
      %c0_39 = arith.constant 0 : index
      %88 = vector.load %arg8[%c0_38, %c0_39] : memref<1x128xf32, #tpu.memory_space<vmem>>, vector<1x128xf32>
      %c0_40 = arith.constant 0 : index
      %c0_41 = arith.constant 0 : index
      %89 = vector.load %arg9[%c0_40, %c0_41] : memref<1x128xf32, #tpu.memory_space<vmem>>, vector<1x128xf32>
      %cst_42 = arith.constant 0.000000e+00 : f32
      %90 = vector.shape_cast %14 : vector<16x1xi1> to vector<16x1xi1>
      %91 = vector.broadcast %90 : vector<16x1xi1> to vector<16x128xi1>
      %92 = vector.broadcast %cst_42 : f32 to vector<16x128xf32>
      %93 = arith.select %91, %87, %92 : vector<16x128xi1>, vector<16x128xf32>
      %cst_43 = arith.constant dense<0.000000e+00> : vector<128xf32>
      %94 = vector.multi_reduction <add>, %93, %cst_43 [0] : vector<16x128xf32> to vector<128xf32>
      %95 = vector.shape_cast %94 : vector<128xf32> to vector<1x128xf32>
      %cst_44 = arith.constant 1.250000e-01 : f32
      %96 = vector.broadcast %cst_44 : f32 to vector<1x128xf32>
      %97 = arith.mulf %95, %96 : vector<1x128xf32>
      %cst_45 = arith.constant 0.000000e+00 : f32
      %98 = vector.shape_cast %14 : vector<16x1xi1> to vector<16x1xi1>
      %99 = vector.broadcast %98 : vector<16x1xi1> to vector<16x128xi1>
      %100 = vector.broadcast %cst_45 : f32 to vector<16x128xf32>
      %101 = arith.select %99, %100, %87 : vector<16x128xi1>, vector<16x128xf32>
      %cst_46 = arith.constant dense<0.000000e+00> : vector<128xf32>
      %102 = vector.multi_reduction <add>, %101, %cst_46 [0] : vector<16x128xf32> to vector<128xf32>
      %103 = vector.shape_cast %102 : vector<128xf32> to vector<1x128xf32>
      %cst_47 = arith.constant 1.250000e-01 : f32
      %104 = vector.broadcast %cst_47 : f32 to vector<1x128xf32>
      %105 = arith.mulf %103, %104 : vector<1x128xf32>
      %106 = vector.shape_cast %14 : vector<16x1xi1> to vector<16x1xi1>
      %107 = vector.broadcast %106 : vector<16x1xi1> to vector<16x128xi1>
      %108 = vector.shape_cast %97 : vector<1x128xf32> to vector<1x128xf32>
      %109 = vector.broadcast %108 : vector<1x128xf32> to vector<16x128xf32>
      %110 = vector.shape_cast %105 : vector<1x128xf32> to vector<1x128xf32>
      %111 = vector.broadcast %110 : vector<1x128xf32> to vector<16x128xf32>
      %112 = arith.select %107, %109, %111 : vector<16x128xi1>, vector<16x128xf32>
      %113 = arith.subf %87, %112 : vector<16x128xf32>
      %114 = arith.mulf %113, %113 : vector<16x128xf32>
      %cst_48 = arith.constant 0.000000e+00 : f32
      %115 = vector.shape_cast %14 : vector<16x1xi1> to vector<16x1xi1>
      %116 = vector.broadcast %115 : vector<16x1xi1> to vector<16x128xi1>
      %117 = vector.broadcast %cst_48 : f32 to vector<16x128xf32>
      %118 = arith.select %116, %114, %117 : vector<16x128xi1>, vector<16x128xf32>
      %cst_49 = arith.constant dense<0.000000e+00> : vector<128xf32>
      %119 = vector.multi_reduction <add>, %118, %cst_49 [0] : vector<16x128xf32> to vector<128xf32>
      %120 = vector.shape_cast %119 : vector<128xf32> to vector<1x128xf32>
      %cst_50 = arith.constant 1.250000e-01 : f32
      %121 = vector.broadcast %cst_50 : f32 to vector<1x128xf32>
      %122 = arith.mulf %120, %121 : vector<1x128xf32>
      %cst_51 = arith.constant 0.000000e+00 : f32
      %123 = vector.shape_cast %14 : vector<16x1xi1> to vector<16x1xi1>
      %124 = vector.broadcast %123 : vector<16x1xi1> to vector<16x128xi1>
      %125 = vector.broadcast %cst_51 : f32 to vector<16x128xf32>
      %126 = arith.select %124, %125, %114 : vector<16x128xi1>, vector<16x128xf32>
      %cst_52 = arith.constant dense<0.000000e+00> : vector<128xf32>
      %127 = vector.multi_reduction <add>, %126, %cst_52 [0] : vector<16x128xf32> to vector<128xf32>
      %128 = vector.shape_cast %127 : vector<128xf32> to vector<1x128xf32>
      %cst_53 = arith.constant 1.250000e-01 : f32
      %129 = vector.broadcast %cst_53 : f32 to vector<1x128xf32>
      %130 = arith.mulf %128, %129 : vector<1x128xf32>
      %131 = vector.shape_cast %14 : vector<16x1xi1> to vector<16x1xi1>
      %132 = vector.broadcast %131 : vector<16x1xi1> to vector<16x128xi1>
      %133 = vector.shape_cast %122 : vector<1x128xf32> to vector<1x128xf32>
      %134 = vector.broadcast %133 : vector<1x128xf32> to vector<16x128xf32>
      %135 = vector.shape_cast %130 : vector<1x128xf32> to vector<1x128xf32>
      %136 = vector.broadcast %135 : vector<1x128xf32> to vector<16x128xf32>
      %137 = arith.select %132, %134, %136 : vector<16x128xi1>, vector<16x128xf32>
      %cst_54 = arith.constant 9.99999974E-6 : f32
      %138 = vector.broadcast %cst_54 : f32 to vector<16x128xf32>
      %139 = arith.addf %137, %138 : vector<16x128xf32>
      %140 = math.rsqrt %139 : vector<16x128xf32>
      %141 = arith.mulf %113, %140 : vector<16x128xf32>
      %142 = vector.broadcast %88 : vector<1x128xf32> to vector<16x128xf32>
      %143 = arith.mulf %141, %142 : vector<16x128xf32>
      %144 = vector.broadcast %89 : vector<1x128xf32> to vector<16x128xf32>
      %145 = arith.addf %143, %144 : vector<16x128xf32>
      %cst_55 = arith.constant 0.000000e+00 : f32
      %146 = vector.broadcast %cst_55 : f32 to vector<16x128xf32>
      %147 = arith.cmpf oge, %145, %146 : vector<16x128xf32>
      %cst_56 = arith.constant 0.00999999977 : f32
      %148 = vector.broadcast %cst_56 : f32 to vector<16x128xf32>
      %149 = arith.mulf %148, %145 : vector<16x128xf32>
      %150 = arith.select %147, %145, %149 : vector<16x128xi1>, vector<16x128xf32>
      %151 = arith.truncf %150 : vector<16x128xf32> to vector<16x128xbf16>
      %c0_57 = arith.constant 0 : index
      %c0_58 = arith.constant 0 : index
      %152 = vector.load %arg10[%c0_57, %c0_58] : memref<128x128xbf16, #tpu.memory_space<vmem>>, vector<128x128xbf16>
      %cst_59 = arith.constant dense<0.000000e+00> : vector<16x128xf32>
      %153 = tpu.matmul %151, %152, %cst_59 {dimension_numbers = #tpu.dot_dimension_numbers<[1], [0], [0], [1], [0, 0, 1, 1], [], []>} : vector<16x128xbf16>, vector<128x128xbf16>, vector<16x128xf32> -> vector<16x128xf32>
      %c0_60 = arith.constant 0 : index
      %c0_61 = arith.constant 0 : index
      %154 = vector.load %arg11[%c0_60, %c0_61] : memref<1x128xf32, #tpu.memory_space<vmem>>, vector<1x128xf32>
      %155 = vector.broadcast %154 : vector<1x128xf32> to vector<16x128xf32>
      %156 = arith.addf %153, %155 : vector<16x128xf32>
      %157 = vector.extract_strided_slice %156 {offsets = [0, 0], sizes = [8, 128], strides = [1, 1]} : vector<16x128xf32> to vector<8x128xf32>
      %c0_62 = arith.constant 0 : index
      %c0_63 = arith.constant 0 : index
      %158 = vector.load %arg12[%c0_62, %c0_63] : memref<8x128xf32, #tpu.memory_space<vmem>>, vector<8x128xf32>
      tpu.vector_store %arg12[%c0_62, %c0_63], %157 {strides = array<i32>} : memref<8x128xf32, #tpu.memory_space<vmem>>, vector<8x128xf32>,
      %159 = vector.extract_strided_slice %156 {offsets = [8, 0], sizes = [8, 128], strides = [1, 1]} : vector<16x128xf32> to vector<8x128xf32>
      %160 = tpu.iota {dimensions = array<i32: 1>} : vector<8x128xi32>
      %c16_i32 = arith.constant 16 : i32
      %161 = vector.broadcast %c16_i32 : i32 to vector<8x128xi32>
      %162 = arith.cmpi slt, %160, %161 : vector<8x128xi32>
      %cst_64 = arith.constant -1.000000e+30 : f32
      %163 = vector.broadcast %cst_64 : f32 to vector<8x128xf32>
      %164 = arith.select %162, %159, %163 : vector<8x128xi1>, vector<8x128xf32>
      %cst_65 = arith.constant dense<0xFF800000> : vector<8xf32>
      %165 = vector.multi_reduction <maximumf>, %164, %cst_65 [1] : vector<8x128xf32> to vector<8xf32>
      %166 = vector.shape_cast %165 : vector<8xf32> to vector<8x1xf32>
      %167 = vector.broadcast %166 : vector<8x1xf32> to vector<8x128xf32>
      %168 = arith.subf %164, %167 : vector<8x128xf32>
      %169 = math.exp %168 : vector<8x128xf32>
      %cst_66 = arith.constant dense<0.000000e+00> : vector<8xf32>
      %170 = vector.multi_reduction <add>, %169, %cst_66 [1] : vector<8x128xf32> to vector<8xf32>
      %171 = vector.shape_cast %170 : vector<8xf32> to vector<8x1xf32>
      %172 = vector.broadcast %171 : vector<8x1xf32> to vector<8x128xf32>
      %173 = arith.divf %169, %172 : vector<8x128xf32>
      %c0_67 = arith.constant 0 : index
      %c0_68 = arith.constant 0 : index
      %174 = vector.load %arg13[%c0_67, %c0_68] : memref<8x128xf32, #tpu.memory_space<vmem>>, vector<8x128xf32>
      tpu.vector_store %arg13[%c0_67, %c0_68], %173 {strides = array<i32>} : memref<8x128xf32, #tpu.memory_space<vmem>>, vector<8x128xf32>,
    } else {
    }
    return
  }
  func.func @transform_0(%arg0: i32) -> (i32, i32) {
    %c0_i32 = arith.constant 0 : i32
    %c0_i32_0 = arith.constant 0 : i32
    return %c0_i32, %arg0 : i32, i32
  }
  func.func @transform_1(%arg0: i32) -> (i32, i32) {
    %c0_i32 = arith.constant 0 : i32
    %c0_i32_0 = arith.constant 0 : i32
    return %arg0, %c0_i32 : i32, i32
  }
  func.func @transform_2(%arg0: i32) -> (i32, i32) {
    %c0_i32 = arith.constant 0 : i32
    %c0_i32_0 = arith.constant 0 : i32
    %c0_i32_1 = arith.constant 0 : i32
    return %c0_i32, %c0_i32_0 : i32, i32
  }
  func.func @transform_3(%arg0: i32) -> (i32, i32) {
    %c0_i32 = arith.constant 0 : i32
    %c0_i32_0 = arith.constant 0 : i32
    %c0_i32_1 = arith.constant 0 : i32
    return %c0_i32, %c0_i32_0 : i32, i32
  }
  func.func @transform_4(%arg0: i32) -> (i32, i32) {
    %c0_i32 = arith.constant 0 : i32
    %c0_i32_0 = arith.constant 0 : i32
    %c0_i32_1 = arith.constant 0 : i32
    return %c0_i32, %c0_i32_0 : i32, i32
  }
  func.func @transform_5(%arg0: i32) -> (i32, i32) {
    %c0_i32 = arith.constant 0 : i32
    %c0_i32_0 = arith.constant 0 : i32
    %c0_i32_1 = arith.constant 0 : i32
    return %c0_i32, %c0_i32_0 : i32, i32
  }
  func.func @transform_6(%arg0: i32) -> (i32, i32) {
    %c0_i32 = arith.constant 0 : i32
    %c0_i32_0 = arith.constant 0 : i32
    %c0_i32_1 = arith.constant 0 : i32
    return %c0_i32, %c0_i32_0 : i32, i32
  }
  func.func @transform_7(%arg0: i32) -> (i32, i32) {
    %c0_i32 = arith.constant 0 : i32
    %c0_i32_0 = arith.constant 0 : i32
    %c0_i32_1 = arith.constant 0 : i32
    return %c0_i32, %c0_i32_0 : i32, i32
  }
  func.func @transform_8(%arg0: i32) -> (i32, i32) {
    %c0_i32 = arith.constant 0 : i32
    %c0_i32_0 = arith.constant 0 : i32
    %c0_i32_1 = arith.constant 0 : i32
    return %c0_i32, %c0_i32_0 : i32, i32
  }
  func.func @transform_9(%arg0: i32) -> (i32, i32) {
    %c0_i32 = arith.constant 0 : i32
    %c0_i32_0 = arith.constant 0 : i32
    %c0_i32_1 = arith.constant 0 : i32
    return %c0_i32, %c0_i32_0 : i32, i32
  }
  func.func @transform_10(%arg0: i32) -> (i32, i32) {
    %c0_i32 = arith.constant 0 : i32
    %c0_i32_0 = arith.constant 0 : i32
    %c0_i32_1 = arith.constant 0 : i32
    return %c0_i32, %c0_i32_0 : i32, i32
  }
  func.func @transform_11(%arg0: i32) -> (i32, i32) {
    %c0_i32 = arith.constant 0 : i32
    %c0_i32_0 = arith.constant 0 : i32
    %c0_i32_1 = arith.constant 0 : i32
    return %c0_i32, %c0_i32_0 : i32, i32
  }
  func.func @transform_12(%arg0: i32) -> (i32, i32) {
    %c0_i32 = arith.constant 0 : i32
    %c0_i32_0 = arith.constant 0 : i32
    %c0_i32_1 = arith.constant 0 : i32
    return %c0_i32, %c0_i32_0 : i32, i32
  }
}

</mosaic_0001>

<bundles_post_ra>
// kernel: encoder_forward.2
= control target key start
LH: loop header
LB: loop body
LE: loop exit
PB: predicated region body
PF: predicated region fallthrough
CT: control target
= control target key end

     0   :  { %18 = vsyncpa [#allocation4], 0  ;;  %s3254_s0 = inlined_call_operand.vmem [shape: bf16[16,128], index: 0, kind: input, shape index: {}]   ;;  %s3255_s1 = inlined_call_operand.hbm [shape: bf16[128,1024], index: 1, kind: input, shape index: {}]   ;;  %s3256_s2 = inlined_call_operand.vmem [shape: f32[1,1024], index: 2, kind: input, shape index: {}]   ;;  %s3257_s3 = inlined_call_operand.vmem [shape: f32[1,1024], index: 3, kind: input, shape index: {}]   ;;  %s3258_s4 = inlined_call_operand.vmem [shape: f32[1,1024], index: 4, kind: input, shape index: {}]   ;;  %s3259_s5 = inlined_call_operand.hbm [shape: bf16[1024,128], index: 5, kind: input, shape index: {}]   ;;  %s3260_s6 = inlined_call_operand.vmem [shape: f32[1,128], index: 6, kind: input, shape index: {}]   ;;  %s3261_s7 = inlined_call_operand.vmem [shape: f32[1,128], index: 7, kind: input, shape index: {}]   ;;  %s3262_s8 = inlined_call_operand.vmem [shape: f32[1,128], index: 8, kind: input, shape index: {}]   ;;  %s3263_s9 = inlined_call_operand.hbm [shape: bf16[128,128], index: 9, kind: input, shape index: {}]   ;;  %s3264_s10 = inlined_call_operand.vmem [shape: f32[1,128], index: 10, kind: input, shape index: {}]   ;;  %s3265_s11 = inlined_call_operand.vmem [shape: f32[8,128], index: 11, kind: output, shape index: {0}]   ;;  %s3266_s12 = inlined_call_operand.hbm [shape: f32[8,128], index: 12, kind: output, shape index: {1}]  }
   0x1   :  { %19 = vsyncpa [#allocation7], 0 }
   0x2   :  { %20 = vsyncpa [#allocation5], 0  ;;  %s2790_s21 = smov [#allocation6]   ;;  %s2696_s25 = scalar_lea.hbm %s3259_s5, 8192 }
   0x3   :  { %s46_s22 = sshll.u32 %s2790_s21, 4  ;;  %p2697_p0 = scmp.ne.s32.totalorder %s3259_s5, %s2696_s25  ;;  %s47_s22 = int_to_ptr.vmem [resolvable:$true] %s46_s22 }
   0x4   :  { %p2700_p1 = scmp.lt.u32.totalorder %s2696_s25, %s3259_s5 }
   0x6   :  { %p2702_p2 = pnand %p2700_p1, %p2697_p0 }
   0x8   :  { %2705 = shalt.err (!%p2702_p2)
}
   0x9   :  { %s2706_s30 = scalar_lea.vmem %s47_s22, 8192  ;;  %p2711_p4 = scmp.lt.s32.totalorder %s47_s22, %s47_s22 }
   0xa   :  { %p2707_p3 = scmp.ne.s32.totalorder %s47_s22, %s2706_s30  ;;  %p2712_p5 = scmp.lt.s32.totalorder %s2706_s30, %s2706_s30 }
   0xc   :  { %p2713_p6 = por %p2712_p5, %p2711_p4 }
   0xe   :  { %p2714_p7 = pnand %p2713_p6, %p2707_p3 }
  0x10   :  { %2717 = shalt.err (!%p2714_p7)
}
  0x11   :  { %s2791_s13 = smov 64   ;;  %s2792_s14 = smov 4  }
  0x12   :  { %52 = dma.hbm_to_vmem [thread:$0]  %s3259_s5, 8192, %s47_s22, [#allocation7], %s2791_s13, %s2791_s13, %s2792_s14  }
  0x13   :  { %s2793_s17 = smov [#allocation3]   ;;  %s2718_s21 = scalar_lea.hbm %s3255_s1, 8192 }
  0x14   :  { %s28_s18 = sshll.u32 %s2793_s17, 4  ;;  %p2719_p8 = scmp.ne.s32.totalorder %s3255_s1, %s2718_s21  ;;  %s29_s18 = int_to_ptr.vmem [resolvable:$true] %s28_s18 }
  0x15   :  { %p2722_p9 = scmp.lt.u32.totalorder %s2718_s21, %s3255_s1 }
  0x17   :  { %p2724_p10 = pnand %p2722_p9, %p2719_p8 }
  0x19   :  { %2727 = shalt.err (!%p2724_p10)
}
  0x1a   :  { %s2728_s27 = scalar_lea.vmem %s29_s18, 8192  ;;  %p2733_p12 = scmp.lt.s32.totalorder %s29_s18, %s29_s18 }
  0x1b   :  { %p2729_p11 = scmp.ne.s32.totalorder %s29_s18, %s2728_s27  ;;  %p2734_p13 = scmp.lt.s32.totalorder %s2728_s27, %s2728_s27 }
  0x1d   :  { %p2735_p0 = por %p2734_p13, %p2733_p12 }
  0x1f   :  { %p2736_p1 = pnand %p2735_p0, %p2729_p11 }
  0x21   :  { %2739 = shalt.err (!%p2736_p1)
}
  0x22   :  { %s2794_s5 = smov 512   ;;  %s2795_s22 = smov 32  }
  0x23   :  { %34 = dma.hbm_to_vmem [thread:$0]  %s3255_s1, 8192, %s29_s18, [#allocation4], %s2794_s5, %s2794_s5, %s2795_s22  }
  0x24   :  { %s2796_s30 = smov [#allocation8]   ;;  %s2740_s19 = scalar_lea.hbm %s3263_s9, 1024 }
  0x25   :  { %s64_s15 = sshll.u32 %s2796_s30, 4  ;;  %p2741_p2 = scmp.ne.s32.totalorder %s3263_s9, %s2740_s19  ;;  %s65_s15 = int_to_ptr.vmem [resolvable:$true] %s64_s15 }
  0x26   :  { %p2744_p3 = scmp.lt.u32.totalorder %s2740_s19, %s3263_s9 }
  0x28   :  { %p2746_p4 = pnand %p2744_p3, %p2741_p2 }
  0x2a   :  { %2749 = shalt.err (!%p2746_p4)
}
  0x2b   :  { %s2750_s25 = scalar_lea.vmem %s65_s15, 1024  ;;  %p2755_p6 = scmp.lt.s32.totalorder %s65_s15, %s65_s15 }
  0x2c   :  { %p2751_p5 = scmp.ne.s32.totalorder %s65_s15, %s2750_s25  ;;  %p2756_p7 = scmp.lt.s32.totalorder %s2750_s25, %s2750_s25 }
  0x2e   :  { %p2757_p8 = por %p2756_p7, %p2755_p6 }
  0x30   :  { %p2758_p9 = pnand %p2757_p8, %p2751_p5 }
  0x32   :  { %2761 = shalt.err (!%p2758_p9)
}
  0x33   :  { %70 = dma.hbm_to_vmem [thread:$0]  %s3263_s9, 1024, %s65_s15, [#allocation7], %s2791_s13, %s2791_s13, %s2792_s14  }
  0x34   :  { %2784 = dma.done.wait [#allocation4], 8192  }
  0x35   :  { %2785 = vsyncadd [#allocation4], 4294959104 }
  0x36   :  { %2786 = dma.done.wait [#allocation7], 9216  }
  0x37   :  { %2787 = vsyncadd [#allocation7], 4294958080  ;;  %v2797_v0 = vmov 0   ;;  %v121_v1 = vld [vmem:[#allocation3] sm:$0xff]  ;;  %v122_v3 = vld [vmem:[#allocation3 + $0x8] sm:$0xff] }
  0x38   :  { %543 = vmatprep.mubr.bf16.mxu0 %v2797_v0  ;;  %586 = vmatprep.mubr.bf16.mxu1 %v2797_v0  ;;  %v125_v2 = vld [vmem:[#allocation3 + $0x20] sm:$0xff]  ;;  %v126_v5 = vld [vmem:[#allocation3 + $0x28] sm:$0xff]  ;;  %v123_v60 = vld [vmem:[#allocation3 + $0x10] sm:$0xff] }
  0x39   :  { %v2316_v4 = vcombine.high %v121_v1, %v125_v2  ;;  %v2315_v6 = vcombine.low %v121_v1, %v125_v2  ;;  %v129_v7 = vld [vmem:[#allocation3 + $0x40] sm:$0xff]  ;;  %v2318_v9 = vcombine.high %v122_v3, %v126_v5  ;;  %v2317_v10 = vcombine.low %v122_v3, %v126_v5  ;;  %v130_v12 = vld [vmem:[#allocation3 + $0x48] sm:$0xff]  ;;  %v127_v61 = vld [vmem:[#allocation3 + $0x30] sm:$0xff] }
  0x3a   :  { %v133_v8 = vld [vmem:[#allocation3 + $0x60] sm:$0xff]  ;;  %v134_v13 = vld [vmem:[#allocation3 + $0x68] sm:$0xff]  ;;  %v124_v1 = vld [vmem:[#allocation3 + $0x18] sm:$0xff] }
  0x3b   :  { %v2324_v11 = vcombine.high %v129_v7, %v133_v8  ;;  %v137_v14 = vld [vmem:[#allocation3 + $0x80] sm:$0xff]  ;;  %511 = vmatprep.subr.bf16.mxu0 %v2316_v4  ;;  %v2326_v15 = vcombine.high %v130_v12, %v134_v13  ;;  %v138_v17 = vld [vmem:[#allocation3 + $0x88] sm:$0xff]  ;;  %554 = vmatprep.subr.bf16.mxu1 %v2318_v9  ;;  %v2323_v19 = vcombine.low %v129_v7, %v133_v8  ;;  %v128_v2 = vld [vmem:[#allocation3 + $0x38] sm:$0xff] }
  0x3c   :  { %v141_v16 = vld [vmem:[#allocation3 + $0xa0] sm:$0xff]  ;;  %v142_v18 = vld [vmem:[#allocation3 + $0xa8] sm:$0xff]  ;;  %512 = vmatpush1.bf16.msra.mxu0 %v2315_v6  ;;  %555 = vmatpush1.bf16.msra.mxu1 %v2317_v10  ;;  %v2325_v20 = vcombine.low %v130_v12, %v134_v13  ;;  %v131_v5 = vld [vmem:[#allocation3 + $0x50] sm:$0xff]  ;;  %v2320_v9 = vcombine.high %v123_v60, %v127_v61  ;;  %v2322_v12 = vcombine.high %v124_v1, %v128_v2 }
  0x3d   :  { %513 = vmatprep.subr.bf16.mxu0 %v2324_v11  ;;  %v2332_v21 = vcombine.high %v137_v14, %v141_v16  ;;  %556 = vmatprep.subr.bf16.mxu1 %v2326_v15  ;;  %v2334_v22 = vcombine.high %v138_v17, %v142_v18  ;;  %v145_v23 = vld [vmem:[#allocation3 + $0xc0] sm:$0xff]  ;;  %v146_v25 = vld [vmem:[#allocation3 + $0xc8] sm:$0xff]  ;;  %v2331_v27 = vcombine.low %v137_v14, %v141_v16  ;;  %v135_v6 = vld [vmem:[#allocation3 + $0x70] sm:$0xff] }
  0x3e   :  { %v149_v24 = vld [vmem:[#allocation3 + $0xe0] sm:$0xff]  ;;  %v150_v26 = vld [vmem:[#allocation3 + $0xe8] sm:$0xff]  ;;  %v2333_v28 = vcombine.low %v138_v17, %v142_v18  ;;  %v132_v10 = vld [vmem:[#allocation3 + $0x58] sm:$0xff]  ;;  %v2319_v13 = vcombine.low %v123_v60, %v127_v61  ;;  %v2321_v16 = vcombine.low %v124_v1, %v128_v2  ;;  %v2328_v17 = vcombine.high %v131_v5, %v135_v6 }
  0x3f   :  { %v2340_v29 = vcombine.high %v145_v23, %v149_v24  ;;  %v2342_v30 = vcombine.high %v146_v25, %v150_v26  ;;  %v153_v31 = vld [vmem:[#allocation3 + $0x100] sm:$0xff]  ;;  %v154_v33 = vld [vmem:[#allocation3 + $0x108] sm:$0xff]  ;;  %v2339_v35 = vcombine.low %v145_v23, %v149_v24  ;;  %v2341_v36 = vcombine.low %v146_v25, %v150_v26  ;;  %v136_v11 = vld [vmem:[#allocation3 + $0x78] sm:$0xff] }
  0x40   :  { %514 = vmatpush1.bf16.msra.mxu0 %v2323_v19  ;;  %557 = vmatpush1.bf16.msra.mxu1 %v2325_v20  ;;  %v157_v32 = vld [vmem:[#allocation3 + $0x120] sm:$0xff]  ;;  %v158_v34 = vld [vmem:[#allocation3 + $0x128] sm:$0xff]  ;;  %v139_v14 = vld [vmem:[#allocation3 + $0x90] sm:$0xff]  ;;  %v2330_v20 = vcombine.high %v132_v10, %v136_v11  ;;  %v2329_v24 = vcombine.low %v132_v10, %v136_v11 }
  0x41   :  { %515 = vmatprep.subr.bf16.mxu0 %v2332_v21  ;;  %558 = vmatprep.subr.bf16.mxu1 %v2334_v22  ;;  %v2348_v37 = vcombine.high %v153_v31, %v157_v32  ;;  %v2350_v38 = vcombine.high %v154_v33, %v158_v34  ;;  %v161_v39 = vld [vmem:[#allocation3 + $0x140] sm:$0xff]  ;;  %v162_v41 = vld [vmem:[#allocation3 + $0x148] sm:$0xff]  ;;  %v2347_v43 = vcombine.low %v153_v31, %v157_v32  ;;  %v143_v15 = vld [vmem:[#allocation3 + $0xb0] sm:$0xff] }
  0x42   :  { %v165_v40 = vld [vmem:[#allocation3 + $0x160] sm:$0xff]  ;;  %v166_v42 = vld [vmem:[#allocation3 + $0x168] sm:$0xff]  ;;  %v2349_v44 = vcombine.low %v154_v33, %v158_v34  ;;  %v140_v18 = vld [vmem:[#allocation3 + $0x98] sm:$0xff]  ;;  %v2327_v21 = vcombine.low %v131_v5, %v135_v6  ;;  %v2336_v25 = vcombine.high %v139_v14, %v143_v15 }
  0x43   :  { %v2356_v45 = vcombine.high %v161_v39, %v165_v40  ;;  %v2358_v46 = vcombine.high %v162_v41, %v166_v42  ;;  %v169_v47 = vld [vmem:[#allocation3 + $0x180] sm:$0xff]  ;;  %v170_v49 = vld [vmem:[#allocation3 + $0x188] sm:$0xff]  ;;  %v2355_v51 = vcombine.low %v161_v39, %v165_v40  ;;  %v2357_v52 = vcombine.low %v162_v41, %v166_v42  ;;  %v144_v19 = vld [vmem:[#allocation3 + $0xb8] sm:$0xff] }
  0x44   :  { %516 = vmatpush1.bf16.msra.mxu0 %v2331_v27  ;;  %559 = vmatpush1.bf16.msra.mxu1 %v2333_v28  ;;  %v173_v48 = vld [vmem:[#allocation3 + $0x1a0] sm:$0xff]  ;;  %v174_v50 = vld [vmem:[#allocation3 + $0x1a8] sm:$0xff]  ;;  %v147_v22 = vld [vmem:[#allocation3 + $0xd0] sm:$0xff]  ;;  %v2338_v28 = vcombine.high %v140_v18, %v144_v19  ;;  %v2337_v32 = vcombine.low %v140_v18, %v144_v19 }
  0x45   :  { %517 = vmatprep.subr.bf16.mxu0 %v2340_v29  ;;  %560 = vmatprep.subr.bf16.mxu1 %v2342_v30  ;;  %v2364_v53 = vcombine.high %v169_v47, %v173_v48  ;;  %v177_v54 = vld [vmem:[#allocation3 + $0x1c0] sm:$0xff]  ;;  %v178_v56 = vld [vmem:[#allocation3 + $0x1c8] sm:$0xff]  ;;  %v2366_v57 = vcombine.high %v170_v49, %v174_v50  ;;  %v2363_v59 = vcombine.low %v169_v47, %v173_v48  ;;  %v151_v23 = vld [vmem:[#allocation3 + $0xf0] sm:$0xff] }
  0x46   :  { %v181_v55 = vld [vmem:[#allocation3 + $0x1e0] sm:$0xff]  ;;  %v182_v58 = vld [vmem:[#allocation3 + $0x1e8] sm:$0xff]  ;;  %v2365_v62 = vcombine.low %v170_v49, %v174_v50  ;;  %v148_v26 = vld [vmem:[#allocation3 + $0xd8] sm:$0xff]  ;;  %v2335_v29 = vcombine.low %v139_v14, %v143_v15  ;;  %v2344_v33 = vcombine.high %v147_v22, %v151_v23 }
  0x47   :  { %v2372_v63 = vcombine.high %v177_v54, %v181_v55  ;;  %v2374_v3 = vcombine.high %v178_v56, %v182_v58  ;;  %v2371_v4 = vcombine.low %v177_v54, %v181_v55  ;;  %v2373_v7 = vcombine.low %v178_v56, %v182_v58  ;;  %v2913_v8 = vld [vmem:[%s3254_s0] sm:$0xff]   ;;  %v152_v27 = vld [vmem:[#allocation3 + $0xf8] sm:$0xff]  ;;  %v155_v30 = vld [vmem:[#allocation3 + $0x110] sm:$0xff] }
  0x48   :  { %518 = vmatpush1.bf16.msra.mxu0 %v2339_v35  ;;  %561 = vmatpush1.bf16.msra.mxu1 %v2341_v36  ;;  %v159_v31 = vld [vmem:[#allocation3 + $0x130] sm:$0xff]  ;;  %v156_v34 = vld [vmem:[#allocation3 + $0x118] sm:$0xff]  ;;  %v2346_v36 = vcombine.high %v148_v26, %v152_v27  ;;  %v2345_v40 = vcombine.low %v148_v26, %v152_v27  ;;  %v2586_v5 = vld [vmem:[#allocation6] sm:$0xff]  }
  0x49   :  { %519 = vmatprep.subr.bf16.mxu0 %v2348_v37  ;;  %562 = vmatprep.subr.bf16.mxu1 %v2350_v38  ;;  %v160_v35 = vld [vmem:[#allocation3 + $0x138] sm:$0xff]  ;;  %v2343_v37 = vcombine.low %v147_v22, %v151_v23  ;;  %v163_v38 = vld [vmem:[#allocation3 + $0x150] sm:$0xff]  ;;  %v2587_v6 = vld [vmem:[#allocation6 + $0x80] sm:$0xff]  }
  0x4a   :  { %v167_v39 = vld [vmem:[#allocation3 + $0x170] sm:$0xff]  ;;  %v164_v41 = vld [vmem:[#allocation3 + $0x158] sm:$0xff]  ;;  %v2353_v47 = vcombine.low %v156_v34, %v160_v35  ;;  %v2590_v10 = vld [vmem:[#allocation6 + $0x8] sm:$0xff]  }
  0x4b   :  { %v168_v42 = vld [vmem:[#allocation3 + $0x178] sm:$0xff]  ;;  %v2360_v48 = vcombine.high %v163_v38, %v167_v39  ;;  %v183_v54 = vld [vmem:[#allocation3 + $0x1f0] sm:$0xff]  ;;  %v2591_v11 = vld [vmem:[#allocation6 + $0x88] sm:$0xff]  }
  0x4c   :  { %520 = vmatpush1.bf16.msra.mxu0 %v2347_v43  ;;  %563 = vmatpush1.bf16.msra.mxu1 %v2349_v44  ;;  %v2354_v43 = vcombine.high %v156_v34, %v160_v35  ;;  %v2351_v44 = vcombine.low %v155_v30, %v159_v31  ;;  %v172_v49 = vld [vmem:[#allocation3 + $0x198] sm:$0xff]  ;;  %v2361_v55 = vcombine.low %v164_v41, %v168_v42  ;;  %v2594_v14 = vld [vmem:[#allocation6 + $0x10] sm:$0xff]   ;;  %v2600_v19 = vld [vmem:[#allocation6 + $0x60] sm:$0xff]  }
  0x4d   :  { %521 = vmatprep.subr.bf16.mxu0 %v2356_v45  ;;  %564 = vmatprep.subr.bf16.mxu1 %v2358_v46  ;;  %v171_v45 = vld [vmem:[#allocation3 + $0x190] sm:$0xff]  ;;  %v176_v50 = vld [vmem:[#allocation3 + $0x1b8] sm:$0xff]  ;;  %v2603_v22 = vld [vmem:[#allocation6 + $0xa0] sm:$0xff]  }
  0x4e   :  { %v175_v46 = vld [vmem:[#allocation3 + $0x1b0] sm:$0xff]  ;;  %v184_v58 = vld [vmem:[#allocation3 + $0x1f8] sm:$0xff]  ;;  %v2369_v61 = vcombine.low %v172_v49, %v176_v50  ;;  %v2604_v23 = vld [vmem:[#allocation6 + $0x68] sm:$0xff]  }
  0x4f   :  { %v2368_v56 = vcombine.high %v171_v45, %v175_v46  ;;  %v2367_v60 = vcombine.low %v171_v45, %v175_v46  ;;  %v2596_v15 = vld [vmem:[#allocation6 + $0x58] sm:$0xff]   ;;  %v2607_v26 = vld [vmem:[#allocation6 + $0xa8] sm:$0xff]   ;;  %v2608_v27 = vld [vmem:[#allocation6 + $0x70] sm:$0xff]  }
  0x50   :  { %522 = vmatpush1.bf16.msra.mxu0 %v2355_v51  ;;  %565 = vmatpush1.bf16.msra.mxu1 %v2357_v52  ;;  %v2362_v51 = vcombine.high %v164_v41, %v168_v42  ;;  %v2359_v52 = vcombine.low %v163_v38, %v167_v39  ;;  %v2599_v18 = vld [vmem:[#allocation6 + $0x98] sm:$0xff]   ;;  %v2616_v35 = vld [vmem:[#allocation6 + $0x140] sm:$0xff]  }
  0x51   :  { %523 = vmatprep.subr.bf16.mxu0 %v2364_v53  ;;  %566 = vmatprep.subr.bf16.mxu1 %v2366_v57  ;;  %v179_v53 = vld [vmem:[#allocation3 + $0x1d0] sm:$0xff]  ;;  %v180_v57 = vld [vmem:[#allocation3 + $0x1d8] sm:$0xff] }
  0x52   :  { %v2375_v1 = vcombine.low %v179_v53, %v183_v54  ;;  %v2377_v2 = vcombine.low %v180_v57, %v184_v58  ;;  %v2615_v34 = vld [vmem:[#allocation6 + $0xb8] sm:$0xff]  }
  0x54   :  { %524 = vmatpush1.bf16.msra.mxu0 %v2363_v59  ;;  %567 = vmatpush1.bf16.msra.mxu1 %v2365_v62  ;;  %v2370_v59 = vcombine.high %v172_v49, %v176_v50  ;;  %v2376_v62 = vcombine.high %v179_v53, %v183_v54  ;;  %v2943_v49 = vld [vmem:[%s3258_s4] sm:$0xff] }
  0x55   :  { %525 = vmatprep.subr.bf16.mxu0 %v2372_v63  ;;  %568 = vmatprep.subr.bf16.mxu1 %v2374_v3  ;;  %v2378_v63 = vcombine.high %v180_v57, %v184_v58  ;;  %v2584_v3 = vld [vmem:[#allocation6 + $0x40] sm:$0xff]  }
  0x58   :  { %526 = vmatpush1.bf16.msra.mxu0 %v2371_v4  ;;  %569 = vmatpush1.bf16.msra.mxu1 %v2373_v7  ;;  %v2585_v4 = vld [vmem:[#allocation6 + $0xc0] sm:$0xff]   ;;  %v2588_v7 = vld [vmem:[#allocation6 + $0x48] sm:$0xff]  }
  0x59   :  { %597 = vmatprep.subr.bf16.mxu0 %v2320_v9  ;;  %640 = vmatprep.subr.bf16.mxu1 %v2322_v12  ;;  %v2589_v9 = vld [vmem:[#allocation6 + $0xc8] sm:$0xff]   ;;  %v2592_v12 = vld [vmem:[#allocation6 + $0x50] sm:$0xff]  }
  0x5b   :  { %544 = vmatmul.mubr.bf16.vlgmr.msra.gmra.mrb[0].mxu0 %v2913_v8  ;;  %587 = vmatmul.mubr.bf16.vlgmr.msra.gmra.mrb[0].mxu1 %v2913_v8 }
  0x5c   :  { %598 = vmatpush1.bf16.msra.mxu0 %v2319_v13  ;;  %641 = vmatpush1.bf16.msra.mxu1 %v2321_v16  ;;  %v2593_v13 = vld [vmem:[#allocation6 + $0xd0] sm:$0xff]   ;;  %v2597_v16 = vld [vmem:[#allocation6 + $0xd8] sm:$0xff]  }
  0x5d   :  { %599 = vmatprep.subr.bf16.mxu0 %v2328_v17  ;;  %642 = vmatprep.subr.bf16.mxu1 %v2330_v20  ;;  %v2598_v17 = vld [vmem:[#allocation6 + $0x18] sm:$0xff]   ;;  %v2601_v20 = vld [vmem:[#allocation6 + $0xe0] sm:$0xff]  }
  0x5e   :  { %629 = vmatprep.mubr.bf16.mxu0 %v2797_v0  ;;  %672 = vmatprep.mubr.bf16.mxu1 %v2797_v0  ;;  %v2352_v0 = vcombine.high %v155_v30, %v159_v31  ;;  %v2611_v30 = vld [vmem:[#allocation6 + $0xb0] sm:$0xff]   ;;  %v2612_v31 = vld [vmem:[#allocation6 + $0x78] sm:$0xff]  }
  0x60   :  { %600 = vmatpush1.bf16.msra.mxu0 %v2327_v21  ;;  %643 = vmatpush1.bf16.msra.mxu1 %v2329_v24  ;;  %v2602_v21 = vld [vmem:[#allocation6 + $0x20] sm:$0xff]   ;;  %v2605_v24 = vld [vmem:[#allocation6 + $0xe8] sm:$0xff]  }
  0x61   :  { %601 = vmatprep.subr.bf16.mxu0 %v2336_v25  ;;  %644 = vmatprep.subr.bf16.mxu1 %v2338_v28  ;;  %v2606_v25 = vld [vmem:[#allocation6 + $0x28] sm:$0xff]   ;;  %v2609_v28 = vld [vmem:[#allocation6 + $0xf0] sm:$0xff]  }
  0x64   :  { %602 = vmatpush1.bf16.msra.mxu0 %v2335_v29  ;;  %645 = vmatpush1.bf16.msra.mxu1 %v2337_v32  ;;  %v2610_v29 = vld [vmem:[#allocation6 + $0x30] sm:$0xff]   ;;  %v2613_v32 = vld [vmem:[#allocation6 + $0xf8] sm:$0xff]  }
  0x65   :  { %603 = vmatprep.subr.bf16.mxu0 %v2344_v33  ;;  %646 = vmatprep.subr.bf16.mxu1 %v2346_v36  ;;  %v2614_v33 = vld [vmem:[#allocation6 + $0x38] sm:$0xff]   ;;  %v2617_v36 = vld [vmem:[#allocation6 + $0x1c0] sm:$0xff]  }
  0x68   :  { %604 = vmatpush1.bf16.msra.mxu0 %v2343_v37  ;;  %647 = vmatpush1.bf16.msra.mxu1 %v2345_v40  ;;  %v741_v37 = vlaneseq  ;;  %v739_v40 = vld [vmem:[%s3256_s2] sm:$0xff] }
  0x69   :  { %605 = vmatprep.subr.bf16.mxu0 %v2352_v0  ;;  %648 = vmatprep.subr.bf16.mxu1 %v2354_v43 }
  0x6a   :  { %v742_v38 = vshrl.u32 %v741_v37, 7 }
  0x6c   :  { %606 = vmatpush1.bf16.msra.mxu0 %v2351_v44  ;;  %649 = vmatpush1.bf16.msra.mxu1 %v2353_v47  ;;  %v743_v39 = vsub.s32 0, %v742_v38  ;;  %v751_v0 = vsub.s32 2, %v742_v38  ;;  %v747_v41 = vsub.s32 1, %v742_v38  ;;  %v2925_v42 = vsub.s32 3, %v742_v38 }
  0x6d   :  { %607 = vmatprep.subr.bf16.mxu0 %v2360_v48  ;;  %650 = vmatprep.subr.bf16.mxu1 %v2362_v51  ;;  %v2927_v43 = vsub.s32 4, %v742_v38  ;;  %v2929_v44 = vsub.s32 6, %v742_v38  ;;  %v2931_v45 = vsub.s32 5, %v742_v38  ;;  %v2933_v46 = vsub.s32 7, %v742_v38  ;;  %v2938_v48 = vld [vmem:[%s3257_s3] sm:$0xff] }
  0x6e   :  { %v744_v47 = vrot.slane %v739_v40, %v743_v39  ;;  %v752_v50 = vrot.slane %v739_v40, %v751_v0  ;;  %v748_v51 = vrot.slane %v739_v40, %v747_v41 }
  0x6f   :  { %v2947_v53 = vrot.slane %v739_v40, %v2927_v43  ;;  %v2956_v57 = vrot.slane %v739_v40, %v2931_v45  ;;  %v2959_v58 = vrot.slane %v739_v40, %v2933_v46 }
  0x70   :  { %608 = vmatpush1.bf16.msra.mxu0 %v2359_v52  ;;  %651 = vmatpush1.bf16.msra.mxu1 %v2361_v55  ;;  %v756_v52 = vrot.slane %v739_v40, %v2925_v42  ;;  %v2950_v55 = vrot.slane %v2938_v48, %v743_v39 }
  0x71   :  { %609 = vmatprep.subr.bf16.mxu0 %v2368_v56  ;;  %652 = vmatprep.subr.bf16.mxu1 %v2370_v59  ;;  %v2953_v56 = vrot.slane %v739_v40, %v2929_v44 }
  0x74   :  { %610 = vmatpush1.bf16.msra.mxu0 %v2367_v60  ;;  %653 = vmatpush1.bf16.msra.mxu1 %v2369_v61  ;;  %v2964_v60 = vrot.slane %v2943_v49, %v743_v39 }
  0x75   :  { %611 = vmatprep.subr.bf16.mxu0 %v2376_v62  ;;  %654 = vmatprep.subr.bf16.mxu1 %v2378_v63  ;;  %v2967_v62 = vrot.slane %v2938_v48, %v751_v0 }
  0x78   :  { %612 = vmatpush1.bf16.msra.mxu0 %v2375_v1  ;;  %655 = vmatpush1.bf16.msra.mxu1 %v2377_v2  ;;  %v2970_v1 = vrot.slane %v2938_v48, %v747_v41 }
  0x79   :  { %2455 = vmatprep.subr.bf16.mxu0 %v2584_v3  ;;  %2477 = vmatprep.subr.bf16.mxu1 %v2585_v4  ;;  %v2975_v3 = vrot.slane %v2943_v49, %v751_v0 }
  0x7b   :  { %630 = vmatmul.mubr.bf16.vlgmr.msra.gmra.mrb[4].mxu0 %v2913_v8  ;;  %673 = vmatmul.mubr.bf16.vlgmr.msra.gmra.mrb[4].mxu1 %v2913_v8  ;;  %v2595_v8 = vld [vmem:[#allocation6 + $0x90] sm:$0xff]  }
  0x7c   :  { %2456 = vmatpush3.bf16.msra.mxu0 %v2586_v5  ;;  %2478 = vmatpush3.bf16.msra.mxu1 %v2587_v6  ;;  %v2981_v6 = vrot.slane %v2938_v48, %v2925_v42 }
  0x7d   :  { %2457 = vmatprep.subr.bf16.mxu0 %v2588_v7  ;;  %2479 = vmatprep.subr.bf16.mxu1 %v2589_v9 }
  0x80   :  { %2458 = vmatpush3.bf16.msra.mxu0 %v2590_v10  ;;  %2480 = vmatpush3.bf16.msra.mxu1 %v2591_v11 }
  0x81   :  { %2459 = vmatprep.subr.bf16.mxu0 %v2592_v12  ;;  %2481 = vmatprep.subr.bf16.mxu1 %v2593_v13 }
  0x84   :  { %2460 = vmatpush3.bf16.msra.mxu0 %v2594_v14  ;;  %2482 = vmatpush3.bf16.msra.mxu1 %v2595_v8  ;;  %v2989_v14 = vrot.slane %v2943_v49, %v747_v41 }
  0x85   :  { %2461 = vmatprep.subr.bf16.mxu0 %v2596_v15  ;;  %2483 = vmatprep.subr.bf16.mxu1 %v2597_v16 }
  0x88   :  { %2462 = vmatpush3.bf16.msra.mxu0 %v2598_v17  ;;  %2484 = vmatpush3.bf16.msra.mxu1 %v2599_v18 }
  0x89   :  { %2463 = vmatprep.subr.bf16.mxu0 %v2600_v19  ;;  %2485 = vmatprep.subr.bf16.mxu1 %v2601_v20 }
  0x8c   :  { %2464 = vmatpush3.bf16.msra.mxu0 %v2602_v21  ;;  %2486 = vmatpush3.bf16.msra.mxu1 %v2603_v22 }
  0x8d   :  { %2465 = vmatprep.subr.bf16.mxu0 %v2604_v23  ;;  %2487 = vmatprep.subr.bf16.mxu1 %v2605_v24 }
  0x90   :  { %2466 = vmatpush3.bf16.msra.mxu0 %v2606_v25  ;;  %2488 = vmatpush3.bf16.msra.mxu1 %v2607_v26 }
  0x91   :  { %2467 = vmatprep.subr.bf16.mxu0 %v2608_v27  ;;  %2489 = vmatprep.subr.bf16.mxu1 %v2609_v28 }
  0x94   :  { %2468 = vmatpush3.bf16.msra.mxu0 %v2610_v29  ;;  %2490 = vmatpush3.bf16.msra.mxu1 %v2611_v30 }
  0x95   :  { %2469 = vmatprep.subr.bf16.mxu0 %v2612_v31  ;;  %2491 = vmatprep.subr.bf16.mxu1 %v2613_v32 }
  0x98   :  { %2470 = vmatpush3.bf16.msra.mxu0 %v2614_v33  ;;  %2492 = vmatpush3.bf16.msra.mxu1 %v2615_v34 }
  0x99   :  { %2499 = vmatprep.subr.bf16.mxu0 %v2616_v35  ;;  %2521 = vmatprep.subr.bf16.mxu1 %v2617_v36 }
 0x12e   :  { %v545_v54 = vpop.f32.mrb[0].mxu0  ;;  %v588_v61 = vpop.f32.mrb[0].mxu1 }
 0x12f   :  { %v2961_v59 = vadd.f32 %v744_v47, %v545_v54  ;;  %v547_v63 = vpop.f32.mrb[1].mxu0  ;;  %v2972_v2 = vadd.f32 %v752_v50, %v588_v61  ;;  %v590_v5 = vpop.f32.mrb[1].mxu1 }
 0x130   :  { %v2977_v4 = vadd.f32 %v748_v51, %v547_v63  ;;  %v549_v7 = vpop.f32.mrb[2].mxu0  ;;  %v2984_v10 = vadd.f32 %v756_v52, %v590_v5  ;;  %v592_v12 = vpop.f32.mrb[2].mxu1 }
 0x131   :  { %v820_v9 = vrot.slane %v2961_v59, 4  ;;  %v2986_v11 = vadd.f32 %v744_v47, %v549_v7  ;;  %v551_v13 = vpop.f32.mrb[3].mxu0  ;;  %v834_v8 = vrot.slane %v2972_v2, 4  ;;  %v2993_v16 = vadd.f32 %v752_v50, %v592_v12  ;;  %v594_v18 = vpop.f32.mrb[3].mxu1 }
 0x132   :  { %v827_v15 = vrot.slane %v2977_v4, 4  ;;  %v2995_v17 = vadd.f32 %v748_v51, %v551_v13  ;;  %v841_v20 = vrot.slane %v2984_v10, 4  ;;  %v3000_v22 = vadd.f32 %v756_v52, %v594_v18 }
 0x133   :  { %v821_v19 = vadd.f32 %v820_v9, %v2961_v59  ;;  %v900_v21 = vrot.slane %v2986_v11, 4  ;;  %v835_v23 = vadd.f32 %v834_v8, %v2972_v2  ;;  %v914_v25 = vrot.slane %v2993_v16, 4 }
 0x134   :  { %v828_v24 = vadd.f32 %v827_v15, %v2977_v4  ;;  %v907_v26 = vrot.slane %v2995_v17, 4  ;;  %v842_v28 = vadd.f32 %v841_v20, %v2984_v10  ;;  %v921_v30 = vrot.slane %v3000_v22, 4 }
 0x135   :  { %v822_v27 = vrot.slane %v821_v19, 2  ;;  %v901_v29 = vadd.f32 %v900_v21, %v2986_v11  ;;  %v836_v31 = vrot.slane %v835_v23, 2  ;;  %v915_v33 = vadd.f32 %v914_v25, %v2993_v16 }
 0x136   :  { %v829_v32 = vrot.slane %v828_v24, 2  ;;  %v908_v34 = vadd.f32 %v907_v26, %v2995_v17  ;;  %v843_v36 = vrot.slane %v842_v28, 2  ;;  %v922_v39 = vadd.f32 %v921_v30, %v3000_v22 }
 0x137   :  { %v823_v35 = vadd.f32 %v822_v27, %v821_v19  ;;  %v902_v38 = vrot.slane %v901_v29, 2  ;;  %v837_v40 = vadd.f32 %v836_v31, %v835_v23  ;;  %v916_v41 = vrot.slane %v915_v33, 2 }
 0x138   :  { %v830_v0 = vadd.f32 %v829_v32, %v828_v24  ;;  %v909_v47 = vrot.slane %v908_v34, 2  ;;  %v844_v51 = vadd.f32 %v843_v36, %v842_v28  ;;  %v923_v54 = vrot.slane %v922_v39, 2 }
 0x139   :  { %v824_v50 = vrot.slane %v823_v35, 1  ;;  %v903_v52 = vadd.f32 %v902_v38, %v901_v29  ;;  %v838_v61 = vrot.slane %v837_v40, 1  ;;  %v917_v5 = vadd.f32 %v916_v41, %v915_v33 }
 0x13a   :  { %v831_v63 = vrot.slane %v830_v0, 1  ;;  %v910_v7 = vadd.f32 %v909_v47, %v908_v34  ;;  %v845_v12 = vrot.slane %v844_v51, 1  ;;  %v924_v8 = vadd.f32 %v923_v54, %v922_v39 }
 0x13b   :  { %v825_v9 = vadd.f32 %v824_v50, %v823_v35  ;;  %v904_v13 = vrot.slane %v903_v52, 1  ;;  %v839_v15 = vadd.f32 %v838_v61, %v837_v40  ;;  %v918_v19 = vrot.slane %v917_v5, 1 }
 0x13c   :  { %v832_v18 = vadd.f32 %v831_v63, %v830_v0  ;;  %v911_v20 = vrot.slane %v910_v7, 1  ;;  %v846_v23 = vadd.f32 %v845_v12, %v844_v51  ;;  %v925_v25 = vrot.slane %v924_v8, 1 }
 0x13d   :  { %v875_v21 = vmul.f32 0.125, %v825_v9  ;;  %v905_v24 = vadd.f32 %v904_v13, %v903_v52  ;;  %v877_v26 = vmul.f32 0.125, %v839_v15  ;;  %v919_v28 = vadd.f32 %v918_v19, %v917_v5 }
 0x13e   :  { %v876_v27 = vmul.f32 0.125, %v832_v18  ;;  %v912_v29 = vadd.f32 %v911_v20, %v910_v7  ;;  %v878_v31 = vmul.f32 0.125, %v846_v23  ;;  %v926_v33 = vadd.f32 %v925_v25, %v924_v8 }
 0x13f   :  { %v3013_v30 = vsub.f32 %v2961_v59, %v875_v21  ;;  %v955_v32 = vmul.f32 0.125, %v905_v24  ;;  %v3016_v34 = vsub.f32 %v2972_v2, %v877_v26  ;;  %v957_v36 = vmul.f32 0.125, %v919_v28 }
 0x140   :  { %v3019_v35 = vsub.f32 %v2977_v4, %v876_v27  ;;  %v956_v38 = vmul.f32 0.125, %v912_v29  ;;  %v3024_v40 = vsub.f32 %v2984_v10, %v878_v31  ;;  %v958_v0 = vmul.f32 0.125, %v926_v33 }
 0x141   :  { %v995_v39 = vmul.f32 %v3013_v30, %v3013_v30  ;;  %v3027_v59 = vsub.f32 %v2986_v11, %v955_v32  ;;  %v997_v41 = vmul.f32 %v3016_v34, %v3016_v34  ;;  %v3034_v4 = vsub.f32 %v2993_v16, %v957_v36 }
 0x142   :  { %v996_v2 = vmul.f32 %v3019_v35, %v3019_v35  ;;  %v3037_v47 = vsub.f32 %v2995_v17, %v956_v38  ;;  %v998_v10 = vmul.f32 %v3024_v40, %v3024_v40  ;;  %v3044_v51 = vsub.f32 %v3000_v22, %v958_v0 }
 0x143   :  { %v1028_v50 = vrot.slane %v995_v39, 4  ;;  %v1003_v11 = vmul.f32 %v3027_v59, %v3027_v59  ;;  %v1042_v52 = vrot.slane %v997_v41, 4  ;;  %v1005_v61 = vmul.f32 %v3034_v4, %v3034_v4 }
 0x144   :  { %v1035_v54 = vrot.slane %v996_v2, 4  ;;  %v1004_v16 = vmul.f32 %v3037_v47, %v3037_v47  ;;  %v1049_v63 = vrot.slane %v998_v10, 4  ;;  %v1006_v7 = vmul.f32 %v3044_v51, %v3044_v51 }
 0x145   :  { %v1029_v17 = vadd.f32 %v1028_v50, %v995_v39  ;;  %v1108_v5 = vrot.slane %v1003_v11, 4  ;;  %v1043_v9 = vadd.f32 %v1042_v52, %v997_v41  ;;  %v1122_v13 = vrot.slane %v1005_v61, 4 }
 0x146   :  { %v1036_v12 = vadd.f32 %v1035_v54, %v996_v2  ;;  %v1115_v8 = vrot.slane %v1004_v16, 4  ;;  %v1050_v15 = vadd.f32 %v1049_v63, %v998_v10  ;;  %v1129_v19 = vrot.slane %v1006_v7, 4 }
 0x147   :  { %v1030_v22 = vrot.slane %v1029_v17, 2  ;;  %v1109_v18 = vadd.f32 %v1108_v5, %v1003_v11  ;;  %v1044_v20 = vrot.slane %v1043_v9, 2  ;;  %v1123_v23 = vadd.f32 %v1122_v13, %v1005_v61 }
 0x148   :  { %v1037_v21 = vrot.slane %v1036_v12, 2  ;;  %v1116_v24 = vadd.f32 %v1115_v8, %v1004_v16  ;;  %v1051_v26 = vrot.slane %v1050_v15, 2  ;;  %v1130_v28 = vadd.f32 %v1129_v19, %v1006_v7 }
 0x149   :  { %v1031_v25 = vadd.f32 %v1030_v22, %v1029_v17  ;;  %v1110_v27 = vrot.slane %v1109_v18, 2  ;;  %v1045_v29 = vadd.f32 %v1044_v20, %v1043_v9  ;;  %v1124_v32 = vrot.slane %v1123_v23, 2 }
 0x14a   :  { %v1038_v31 = vadd.f32 %v1037_v21, %v1036_v12  ;;  %v1117_v33 = vrot.slane %v1116_v24, 2  ;;  %v1052_v38 = vadd.f32 %v1051_v26, %v1050_v15  ;;  %v1131_v0 = vrot.slane %v1130_v28, 2 }
 0x14b   :  { %v1032_v36 = vrot.slane %v1031_v25, 1  ;;  %v1111_v39 = vadd.f32 %v1110_v27, %v1109_v18  ;;  %v1046_v41 = vrot.slane %v1045_v29, 1  ;;  %v1125_v50 = vadd.f32 %v1124_v32, %v1123_v23 }
 0x14c   :  { %v1039_v2 = vrot.slane %v1038_v31, 1  ;;  %v1118_v10 = vadd.f32 %v1117_v33, %v1116_v24  ;;  %v1053_v52 = vrot.slane %v1052_v38, 1  ;;  %v1132_v61 = vadd.f32 %v1131_v0, %v1130_v28 }
 0x14d   :  { %v1033_v11 = vadd.f32 %v1032_v36, %v1031_v25  ;;  %v1112_v54 = vrot.slane %v1111_v39, 1  ;;  %v1047_v16 = vadd.f32 %v1046_v41, %v1045_v29  ;;  %v1126_v63 = vrot.slane %v1125_v50, 1 }
 0x14e   :  { %v1040_v17 = vadd.f32 %v1039_v2, %v1038_v31  ;;  %v1119_v5 = vrot.slane %v1118_v10, 1  ;;  %v631_v7 = vpop.f32.mrb[4].mxu0  ;;  %v1054_v12 = vadd.f32 %v1053_v52, %v1052_v38  ;;  %v1133_v8 = vrot.slane %v1132_v61, 1  ;;  %v674_v22 = vpop.f32.mrb[4].mxu1 }
 0x14f   :  { %v1083_v9 = vmul.f32 0.125, %v1033_v11  ;;  %v1113_v13 = vadd.f32 %v1112_v54, %v1111_v39  ;;  %v633_v15 = vpop.f32.mrb[5].mxu0  ;;  %v1085_v18 = vmul.f32 0.125, %v1047_v16  ;;  %v1127_v20 = vadd.f32 %v1126_v63, %v1125_v50  ;;  %v676_v23 = vpop.f32.mrb[5].mxu1 }
 0x150   :  { %v1084_v19 = vmul.f32 0.125, %v1040_v17  ;;  %v1120_v21 = vadd.f32 %v1119_v5, %v1118_v10  ;;  %v635_v24 = vpop.f32.mrb[6].mxu0  ;;  %v1086_v26 = vmul.f32 0.125, %v1054_v12  ;;  %v1134_v28 = vadd.f32 %v1133_v8, %v1132_v61  ;;  %v678_v29 = vpop.f32.mrb[6].mxu1 }
 0x151   :  { %v1187_v25 = vadd.f32 1e-05, %v1083_v9  ;;  %v1163_v27 = vmul.f32 0.125, %v1113_v13  ;;  %v637_v31 = vpop.f32.mrb[7].mxu0  ;;  %v1189_v32 = vadd.f32 1e-05, %v1085_v18  ;;  %v3053_v11 = vadd.f32 %v2947_v53, %v631_v7 }
 0x152   :  { %v1188_v33 = vadd.f32 1e-05, %v1084_v19  ;;  %v1165_v36 = vmul.f32 0.125, %v1127_v20  ;;  %v1164_v38 = vmul.f32 0.125, %v1120_v21  ;;  %v1190_v39 = vadd.f32 1e-05, %v1086_v26 }
 0x153   :  { %2656 = vrsqrt.f32 %v1187_v25  ;;  %v1195_v0 = vadd.f32 1e-05, %v1163_v27  ;;  %v1166_v41 = vmul.f32 0.125, %v1134_v28  ;;  %v680_v2 = vpop.f32.mrb[7].mxu1  ;;  %v3056_v54 = vadd.f32 %v2953_v56, %v674_v22 }
 0x154   :  { %2658 = vrsqrt.f32 %v1189_v32  ;;  %v1197_v50 = vadd.f32 1e-05, %v1165_v36  ;;  %v1196_v10 = vadd.f32 1e-05, %v1164_v38  ;;  %v3059_v61 = vadd.f32 %v2956_v57, %v633_v15 }
 0x155   :  { %2660 = vrsqrt.f32 %v1188_v33  ;;  %v1198_v52 = vadd.f32 1e-05, %v1166_v41  ;;  %v848_v16 = vrot.slane %v3053_v11, 4  ;;  %v3063_v17 = vadd.f32 %v2959_v58, %v676_v23 }
 0x156   :  { %2662 = vrsqrt.f32 %v1190_v39  ;;  %v3066_v63 = vadd.f32 %v2947_v53, %v635_v24  ;;  %v862_v5 = vrot.slane %v3056_v54, 4  ;;  %v855_v7 = vrot.slane %v3059_v61, 4 }
 0x157   :  { %2664 = vrsqrt.f32 %v1195_v0  ;;  %v3071_v9 = vadd.f32 %v2953_v56, %v678_v29  ;;  %v849_v12 = vadd.f32 %v848_v16, %v3053_v11  ;;  %v869_v13 = vrot.slane %v3063_v17, 4 }
 0x158   :  { %2666 = vrsqrt.f32 %v1197_v50  ;;  %v928_v8 = vrot.slane %v3066_v63, 4  ;;  %v863_v22 = vadd.f32 %v862_v5, %v3056_v54  ;;  %v856_v53 = vadd.f32 %v855_v7, %v3059_v61 }
 0x159   :  { %2668 = vrsqrt.f32 %v1196_v10  ;;  %v942_v15 = vrot.slane %v3071_v9, 4  ;;  %v850_v18 = vrot.slane %v849_v12, 2  ;;  %v870_v19 = vadd.f32 %v869_v13, %v3063_v17 }
 0x15a   :  { %2670 = vrsqrt.f32 %v1198_v52  ;;  %v929_v56 = vadd.f32 %v928_v8, %v3066_v63  ;;  %v864_v20 = vrot.slane %v863_v22, 2  ;;  %v857_v21 = vrot.slane %v856_v53, 2 }
 0x15b   :  { %v943_v23 = vadd.f32 %v942_v15, %v3071_v9  ;;  %v3084_v24 = vrot.slane %v2943_v49, %v2925_v42  ;;  %v851_v25 = vadd.f32 %v850_v18, %v849_v12  ;;  %v3088_v26 = vrot.slane %v2938_v48, %v2927_v43 }
 0x15c   :  { %v871_v27 = vrot.slane %v870_v19, 2  ;;  %v3091_v28 = vadd.f32 %v2956_v57, %v637_v31  ;;  %v865_v32 = vadd.f32 %v864_v20, %v863_v22  ;;  %v3095_v33 = vrot.slane %v2938_v48, %v2929_v44 }
 0x15d   :  { %v2657_v29 = vpop.eup %2656  ;;  %v858_v36 = vadd.f32 %v857_v21, %v856_v53  ;;  %v930_v38 = vrot.slane %v929_v56, 2  ;;  %v852_v0 = vrot.slane %v851_v25, 1  ;;  %v944_v50 = vrot.slane %v943_v23, 2 }
 0x15e   :  { %v2659_v39 = vpop.eup %2658  ;;  %v1219_v42 = vmul.f32 %v2657_v29, %v3013_v30  ;;  %v872_v41 = vadd.f32 %v871_v27, %v870_v19  ;;  %v866_v16 = vrot.slane %v865_v32, 1  ;;  %v3100_v31 = vadd.f32 %v2959_v58, %v680_v2 }
 0x15f   :  { %v2661_v10 = vpop.eup %2660  ;;  %v1221_v52 = vmul.f32 %v2659_v39, %v3016_v34  ;;  %v859_v57 = vrot.slane %v858_v36, 1  ;;  %v853_v13 = vadd.f32 %v852_v0, %v851_v25  ;;  %v935_v8 = vrot.slane %v3091_v28, 4 }
 0x160   :  { %v2663_v5 = vpop.eup %2662  ;;  %v1276_v7 = vmul.f32 %v2950_v55, %v1219_v42  ;;  %v1220_v12 = vmul.f32 %v2661_v10, %v3019_v35  ;;  %v867_v53 = vadd.f32 %v866_v16, %v865_v32  ;;  %v873_v18 = vrot.slane %v872_v41, 1 }
 0x161   :  { %v2665_v30 = vpop.eup %2664  ;;  %v1222_v22 = vmul.f32 %v2663_v5, %v3024_v40  ;;  %v860_v15 = vadd.f32 %v859_v57, %v858_v36  ;;  %v879_v20 = vmul.f32 0.125, %v853_v13  ;;  %v931_v58 = vadd.f32 %v930_v38, %v929_v56 }
 0x162   :  { %v2667_v34 = vpop.eup %2666  ;;  %v1227_v19 = vmul.f32 %v2665_v30, %v3027_v59  ;;  %v945_v2 = vadd.f32 %v944_v50, %v943_v23  ;;  %v3108_v27 = vadd.f32 %v2964_v60, %v1276_v7  ;;  %v3111_v35 = vmul.f32 %v2967_v62, %v1221_v52 }
 0x163   :  { %v2669_v21 = vpop.eup %2668  ;;  %v1229_v25 = vmul.f32 %v2667_v34, %v3034_v4  ;;  %v881_v29 = vmul.f32 0.125, %v867_v53  ;;  %v3117_v59 = vsub.f32 %v3053_v11, %v879_v20  ;;  %v880_v56 = vmul.f32 0.125, %v860_v15 }
 0x164   :  { %v2671_v40 = vpop.eup %2670  ;;  %v1284_v32 = vmul.f32 %v2950_v55, %v1227_v19  ;;  %v1228_v36 = vmul.f32 %v2669_v21, %v3037_v47  ;;  %v3120_v23 = vmul.f32 %v2970_v1, %v1220_v12  ;;  %v3123_v38 = vmul.f32 %v2981_v6, %v1222_v22 }
 0x165   :  { %v3126_v39 = vsub.f32 %v3056_v54, %v881_v29  ;;  %v874_v4 = vadd.f32 %v873_v18, %v872_v41  ;;  %v3129_v42 = vmul.f32 %v2967_v62, %v1229_v25  ;;  %v3132_v55 = vmul.f32 %v2671_v40, %v3044_v51 }
 0x166   :  { %v999_v47 = vmul.f32 %v3117_v59, %v3117_v59  ;;  %v3137_v11 = vsub.f32 %v3059_v61, %v880_v56  ;;  %v3140_v0 = vadd.f32 %v2964_v60, %v1284_v32  ;;  %v3143_v50 = vmul.f32 %v2970_v1, %v1228_v36 }
 0x167   :  { %v1001_v54 = vmul.f32 %v3126_v39, %v3126_v39  ;;  %v882_v62 = vmul.f32 0.125, %v874_v4  ;;  %v932_v10 = vrot.slane %v931_v58, 1  ;;  %v946_v52 = vrot.slane %v945_v2, 1 }
 0x168   :  { %v1056_v41 = vrot.slane %v999_v47, 4  ;;  %v1000_v51 = vmul.f32 %v3137_v11, %v3137_v11  ;;  %v936_v60 = vadd.f32 %v935_v8, %v3091_v28  ;;  %v949_v57 = vrot.slane %v3100_v31, 4 }
 0x169   :  { %v1070_v16 = vrot.slane %v1001_v54, 4  ;;  %v3150_v61 = vsub.f32 %v3063_v17, %v882_v62  ;;  %v933_v7 = vadd.f32 %v932_v10, %v931_v58  ;;  %v947_v12 = vadd.f32 %v946_v52, %v945_v2 }
 0x16a   :  { %v1057_v1 = vadd.f32 %v1056_v41, %v999_v47  ;;  %v1063_v5 = vrot.slane %v1000_v51, 4  ;;  %v937_v22 = vrot.slane %v936_v60, 2  ;;  %v950_v53 = vadd.f32 %v949_v57, %v3100_v31 }
 0x16b   :  { %v1071_v13 = vadd.f32 %v1070_v16, %v1001_v54  ;;  %v1002_v30 = vmul.f32 %v3150_v61, %v3150_v61  ;;  %v959_v34 = vmul.f32 0.125, %v933_v7  ;;  %v961_v17 = vmul.f32 0.125, %v947_v12 }
 0x16c   :  { %v1058_v15 = vrot.slane %v1057_v1, 2  ;;  %v1064_v18 = vadd.f32 %v1063_v5, %v1000_v51  ;;  %v938_v8 = vadd.f32 %v937_v22, %v936_v60  ;;  %v951_v21 = vrot.slane %v950_v53, 2 }
 0x16d   :  { %v1072_v19 = vrot.slane %v1071_v13, 2  ;;  %v1077_v20 = vrot.slane %v1002_v30, 4  ;;  %v3158_v58 = vsub.f32 %v3066_v63, %v959_v34  ;;  %v3161_v2 = vsub.f32 %v3071_v9, %v961_v17 }
 0x16e   :  { %v1059_v25 = vadd.f32 %v1058_v15, %v1057_v1  ;;  %v1065_v29 = vrot.slane %v1064_v18, 2  ;;  %v939_v36 = vrot.slane %v938_v8, 1  ;;  %v952_v56 = vadd.f32 %v951_v21, %v950_v53 }
 0x16f   :  { %v1073_v40 = vadd.f32 %v1072_v19, %v1071_v13  ;;  %v1078_v32 = vadd.f32 %v1077_v20, %v1002_v30  ;;  %v1007_v54 = vmul.f32 %v3158_v58, %v3158_v58  ;;  %v1009_v62 = vmul.f32 %v3161_v2, %v3161_v2 }
 0x170   :  { %v1060_v4 = vrot.slane %v1059_v25, 1  ;;  %v1066_v47 = vadd.f32 %v1065_v29, %v1064_v18  ;;  %v940_v10 = vadd.f32 %v939_v36, %v938_v8  ;;  %v953_v63 = vrot.slane %v952_v56, 1 }
 0x171   :  { %v1074_v41 = vrot.slane %v1073_v40, 1  ;;  %v1079_v51 = vrot.slane %v1078_v32, 2  ;;  %v1136_v9 = vrot.slane %v1007_v54, 4  ;;  %v1150_v60 = vrot.slane %v1009_v62, 4 }
 0x172   :  { %v1061_v52 = vadd.f32 %v1060_v4, %v1059_v25  ;;  %v1067_v16 = vrot.slane %v1066_v47, 1  ;;  %v960_v5 = vmul.f32 0.125, %v940_v10  ;;  %v954_v7 = vadd.f32 %v953_v63, %v952_v56 }
 0x173   :  { %v1075_v57 = vadd.f32 %v1074_v41, %v1073_v40  ;;  %v1080_v1 = vadd.f32 %v1079_v51, %v1078_v32  ;;  %v1137_v30 = vadd.f32 %v1136_v9, %v1007_v54  ;;  %v1151_v22 = vadd.f32 %v1150_v60, %v1009_v62 }
 0x174   :  { %v1087_v12 = vmul.f32 0.125, %v1061_v52  ;;  %v1068_v13 = vadd.f32 %v1067_v16, %v1066_v47  ;;  %v3168_v18 = vsub.f32 %v3091_v28, %v960_v5  ;;  %v962_v34 = vmul.f32 0.125, %v954_v7 }
 0x175   :  { %v1089_v53 = vmul.f32 0.125, %v1075_v57  ;;  %v1081_v15 = vrot.slane %v1080_v1, 1  ;;  %v1138_v20 = vrot.slane %v1137_v30, 2  ;;  %v1152_v8 = vrot.slane %v1151_v22, 2 }
 0x176   :  { %v1191_v17 = vadd.f32 1e-05, %v1087_v12  ;;  %v1088_v19 = vmul.f32 0.125, %v1068_v13  ;;  %v1008_v29 = vmul.f32 %v3168_v18, %v3168_v18  ;;  %v3173_v40 = vsub.f32 %v3100_v31, %v962_v34 }
 0x177   :  { %v1193_v21 = vadd.f32 1e-05, %v1089_v53  ;;  %v1082_v25 = vadd.f32 %v1081_v15, %v1080_v1  ;;  %v1139_v36 = vadd.f32 %v1138_v20, %v1137_v30  ;;  %v1153_v56 = vadd.f32 %v1152_v8, %v1151_v22 }
 0x178   :  { %2672 = vrsqrt.f32 %v1191_v17  ;;  %v1192_v32 = vadd.f32 1e-05, %v1088_v19  ;;  %v1143_v4 = vrot.slane %v1008_v29, 4  ;;  %v1010_v47 = vmul.f32 %v3173_v40, %v3173_v40 }
 0x179   :  { %2674 = vrsqrt.f32 %v1193_v21  ;;  %v1090_v28 = vmul.f32 0.125, %v1082_v25  ;;  %v1287_v54 = vmul.f32 %v2981_v6, %v3132_v55  ;;  %v1140_v62 = vrot.slane %v1139_v36, 1 }
 0x17a   :  { %v1154_v41 = vrot.slane %v1153_v56, 1  ;;  %v1334_v51 = vadd.f32 %v2989_v14, %v3120_v23  ;;  %v1144_v10 = vadd.f32 %v1143_v4, %v1008_v29  ;;  %v1157_v63 = vrot.slane %v1010_v47, 4 }
 0x17b   :  { %v1194_v31 = vadd.f32 1e-05, %v1090_v28  ;;  %v1342_v52 = vadd.f32 %v2989_v14, %v3143_v50  ;;  %2676 = vrsqrt.f32 %v1192_v32  ;;  %v1141_v16 = vadd.f32 %v1140_v62, %v1139_v36 }
 0x17c   :  { %v1155_v9 = vadd.f32 %v1154_v41, %v1153_v56  ;;  %v1366_v60 = vmul.f32 0.01, %v1334_v51  ;;  %v1145_v57 = vrot.slane %v1144_v10, 2  ;;  %v1158_v1 = vadd.f32 %v1157_v63, %v1010_v47 }
 0x17d   :  { %vm1350_vm0 = vcmp.ge.f32.partialorder %v1334_v51, 0.0  ;;  %vm1358_vm1 = vcmp.ge.f32.partialorder %v1342_v52, 0.0  ;;  %2678 = vrsqrt.f32 %v1194_v31  ;;  %v1167_v6 = vmul.f32 0.125, %v1141_v16 }
 0x17e   :  { %v1169_v55 = vmul.f32 0.125, %v1155_v9  ;;  %v1374_v5 = vmul.f32 0.01, %v1342_v52  ;;  %v1146_v7 = vadd.f32 %v1145_v57, %v1144_v10  ;;  %v1159_v23 = vrot.slane %v1158_v1, 2 }
 0x17f   :  { %v1336_v12 = vadd.f32 %v3084_v24, %v3123_v38  ;;  %v1344_v13 = vadd.f32 %v3084_v24, %v1287_v54  ;;  %v1199_v14 = vadd.f32 1e-05, %v1167_v6  ;;  %v1382_v30 = vsel %vm1350_vm0, %v1334_v51, %v1366_v60 }
 0x180   :  { %v1201_v50 = vadd.f32 1e-05, %v1169_v55  ;;  %v1390_v22 = vsel %vm1358_vm1, %v1342_v52, %v1374_v5  ;;  %v1147_v53 = vrot.slane %v1146_v7, 1  ;;  %v1160_v15 = vadd.f32 %v1159_v23, %v1158_v1  ;;  %v2618_v52 = vld [vmem:[#allocation6 + $0x100] sm:$0xff]   ;;  %v2622_v23 = vld [vmem:[#allocation6 + $0x108] sm:$0xff]  }
 0x181   :  { %v1398_v34 = vpack.c.bf16 %v1390_v22, %v1382_v30  ;;  %vm1352_vm2 = vcmp.ge.f32.partialorder %v1336_v12, 0.0  ;;  %2680 = vrsqrt.f32 %v1199_v14  ;;  %vm1360_vm3 = vcmp.ge.f32.partialorder %v1344_v13, 0.0  ;;  %v2621_v30 = vld [vmem:[#allocation6 + $0x1c8] sm:$0xff]   ;;  %v2624_v22 = vld [vmem:[#allocation6 + $0x150] sm:$0xff]  }
 0x182   :  { %v2673_v17 = vpop.eup %2672  ;;  %v1368_v19 = vmul.f32 0.01, %v1336_v12  ;;  %v1376_v20 = vmul.f32 0.01, %v1344_v13  ;;  %v1335_v21 = vadd.f32 %v2975_v3, %v3111_v35  ;;  %2682 = vrsqrt.f32 %v1201_v50 }
 0x183   :  { %v2675_v8 = vpop.eup %2674  ;;  %v1148_v38 = vadd.f32 %v1147_v53, %v1146_v7  ;;  %v1161_v24 = vrot.slane %v1160_v15, 1  ;;  %1956 = vmatprep.mubr.bf16.mxu0 %v1398_v34  ;;  %v1223_v25 = vmul.f32 %v2673_v17, %v3117_v59  ;;  %vm1349_vm4 = vcmp.ge.f32.partialorder %v3108_v27, 0.0  ;;  %v2619_v7 = vld [vmem:[#allocation6 + $0x180] sm:$0xff]  }
 0x184   :  { %v1225_v29 = vmul.f32 %v2675_v8, %v3126_v39  ;;  %v1392_v32 = vsel %vm1360_vm3, %v1344_v13, %v1376_v20  ;;  %v1384_v28 = vsel %vm1352_vm2, %v1336_v12, %v1368_v19  ;;  %vm1357_vm5 = vcmp.ge.f32.partialorder %v3140_v0, 0.0  ;;  %v2623_v19 = vld [vmem:[#allocation6 + $0x188] sm:$0xff]  }
 0x185   :  { %v1168_v36 = vmul.f32 0.125, %v1148_v38  ;;  %v1162_v56 = vadd.f32 %v1161_v24, %v1160_v15  ;;  %v2677_v4 = vpop.eup %2676  ;;  %v1343_v35 = vadd.f32 %v2975_v3, %v3129_v42  ;;  %v1400_v47 = vpack.c.bf16 %v1392_v32, %v1384_v28  ;;  %v2627_v32 = vld [vmem:[#allocation6 + $0x190] sm:$0xff]   ;;  %v2629_v28 = vld [vmem:[#allocation6 + $0x1d8] sm:$0xff]  }
 0x186   :  { %v1365_v54 = vmul.f32 0.01, %v3108_v27  ;;  %v1373_v59 = vmul.f32 0.01, %v3140_v0  ;;  %v1312_v39 = vrot.slane %v2943_v49, %v2927_v43  ;;  %v1320_v62 = vrot.slane %v2943_v49, %v2929_v44  ;;  %v2620_v44 = vld [vmem:[#allocation6 + $0x148] sm:$0xff]  }
 0x187   :  { %v1200_v41 = vadd.f32 1e-05, %v1168_v36  ;;  %v1170_v51 = vmul.f32 0.125, %v1162_v56  ;;  %v2679_v31 = vpop.eup %2678  ;;  %v1280_v10 = vmul.f32 %v3088_v26, %v1223_v25  ;;  %v1282_v63 = vmul.f32 %v3095_v33, %v1225_v29  ;;  %1997 = vmatprep.mubr.bf16.mxu1 %v1400_v47 }
 0x188   :  { %v1381_v3 = vsel %vm1349_vm4, %v3108_v27, %v1365_v54  ;;  %v1389_v42 = vsel %vm1357_vm5, %v3140_v0, %v1373_v59  ;;  %vm1351_vm6 = vcmp.ge.f32.partialorder %v1335_v21, 0.0  ;;  %vm1359_vm7 = vcmp.ge.f32.partialorder %v1343_v35, 0.0 }
 0x189   :  { %2684 = vrsqrt.f32 %v1200_v41  ;;  %v1202_v43 = vadd.f32 1e-05, %v1170_v51  ;;  %v1397_v16 = vpack.c.bf16 %v1389_v42, %v1381_v3  ;;  %v1367_v9 = vmul.f32 0.01, %v1335_v21  ;;  %v2633_v42 = vld [vmem:[#allocation6 + $0x1e0] sm:$0xff]  }
 0x18a   :  { %v1375_v60 = vmul.f32 0.01, %v1343_v35  ;;  %v1224_v57 = vmul.f32 %v2677_v4, %v3137_v11  ;;  %v1259_v1 = vrot.slane %v2938_v48, %v2931_v45  ;;  %v1226_v27 = vmul.f32 %v2679_v31, %v3150_v61  ;;  %v2632_v4 = vld [vmem:[#allocation6 + $0x160] sm:$0xff]   ;;  %v2631_v31 = vld [vmem:[#allocation6 + $0x198] sm:$0xff]  }
 0x18b   :  { %2686 = vrsqrt.f32 %v1202_v43  ;;  %1957 = vmatmul.mubr.bf16.vlgmr.msra.gmra.mrb[8].mxu0 %v1397_v16  ;;  %v2681_v6 = vpop.eup %2680  ;;  %v1267_v0 = vrot.slane %v2938_v48, %v2933_v46  ;;  %v1383_v55 = vsel %vm1351_vm6, %v1335_v21, %v1367_v9  ;;  %v1337_v13 = vadd.f32 %v1312_v39, %v1280_v10  ;;  %v2628_v21 = vld [vmem:[#allocation6 + $0x158] sm:$0xff]   ;;  %v2634_v10 = vld [vmem:[#allocation6 + $0x120] sm:$0xff]   ;;  %v2638_v9 = vld [vmem:[#allocation6 + $0x128] sm:$0xff]  }
 0x18c   :  { %v1391_v5 = vsel %vm1359_vm7, %v1343_v35, %v1375_v60  ;;  %2500 = vmatpush3.bf16.msra.mxu0 %v2618_v52  ;;  %v2683_v12 = vpop.eup %2682  ;;  %v1339_v14 = vadd.f32 %v1320_v62, %v1282_v63  ;;  %v1231_v11 = vmul.f32 %v2681_v6, %v3158_v58  ;;  %v1281_v61 = vmul.f32 %v1259_v1, %v1224_v57  ;;  %v2626_v58 = vld [vmem:[#allocation6 + $0x110] sm:$0xff]   ;;  %v2636_v52 = vld [vmem:[#allocation6 + $0x168] sm:$0xff]  }
 0x18d   :  { %v1399_v50 = vpack.c.bf16 %v1391_v5, %v1383_v55  ;;  %2501 = vmatprep.subr.bf16.mxu0 %v2620_v44  ;;  %v1233_v53 = vmul.f32 %v2683_v12, %v3161_v2  ;;  %v1316_v48 = vrot.slane %v2943_v49, %v2931_v45  ;;  %v1283_v34 = vmul.f32 %v1267_v0, %v1226_v27  ;;  %v2625_v2 = vld [vmem:[#allocation6 + $0x1d0] sm:$0xff]   ;;  %v2637_v6 = vld [vmem:[#allocation6 + $0x1e8] sm:$0xff]  }
 0x18e   :  { %v1288_v15 = vmul.f32 %v3088_v26, %v1231_v11  ;;  %v1324_v20 = vrot.slane %v2943_v49, %v2933_v46  ;;  %v1369_v26 = vmul.f32 0.01, %v1337_v13  ;;  %v1371_v38 = vmul.f32 0.01, %v1339_v14  ;;  %v2630_v46 = vld [vmem:[#allocation6 + $0x118] sm:$0xff]   ;;  %v2640_v27 = vld [vmem:[#allocation6 + $0x170] sm:$0xff]  }
 0x18f   :  { %1998 = vmatmul.mubr.bf16.vlgmr.msra.gmra.mrb[8].mxu1 %v1399_v50  ;;  %v1290_v17 = vmul.f32 %v3095_v33, %v1233_v53  ;;  %vm1353_vm8 = vcmp.ge.f32.partialorder %v1337_v13, 0.0  ;;  %vm1355_vm9 = vcmp.ge.f32.partialorder %v1339_v14, 0.0  ;;  %v1338_v25 = vadd.f32 %v1316_v48, %v1281_v61  ;;  %v2642_v12 = vld [vmem:[#allocation6 + $0x130] sm:$0xff]   ;;  %v2646_v50 = vld [vmem:[#allocation6 + $0x138] sm:$0xff]   ;;  %v2648_v53 = vld [vmem:[#allocation8] sm:$0xff]  }
 0x190   :  { %2522 = vmatpush3.bf16.msra.mxu1 %v2619_v7  ;;  %2502 = vmatpush3.bf16.msra.mxu0 %v2622_v23  ;;  %v1345_v8 = vadd.f32 %v1312_v39, %v1288_v15  ;;  %v1340_v49 = vadd.f32 %v1324_v20, %v1283_v34  ;;  %v1385_v35 = vsel %vm1353_vm8, %v1337_v13, %v1369_v26  ;;  %v2639_v23 = vld [vmem:[#allocation6 + $0x1a8] sm:$0xff]   ;;  %v2641_v13 = vld [vmem:[#allocation6 + $0x1f0] sm:$0xff]   ;;  %v2798_v61 = vmov 0.0   ;;  %v2651_v34 = vld [vmem:[#allocation8 + $0x18] sm:$0xff]  }
 0x191   :  { %2523 = vmatprep.subr.bf16.mxu1 %v2621_v30  ;;  %2503 = vmatprep.subr.bf16.mxu0 %v2624_v22  ;;  %v1347_v24 = vadd.f32 %v1320_v62, %v1290_v17  ;;  %v1387_v54 = vsel %vm1355_vm9, %v1339_v14, %v1371_v38  ;;  %v1370_v3 = vmul.f32 0.01, %v1338_v25  ;;  %vm1354_vm12 = vcmp.ge.f32.partialorder %v1338_v25, 0.0  ;;  %v2644_v14 = vld [vmem:[#allocation6 + $0x178] sm:$0xff]   ;;  %v2643_v11 = vld [vmem:[#allocation6 + $0x1b0] sm:$0xff]   ;;  %v2649_v15 = vld [vmem:[#allocation8 + $0x8] sm:$0xff]  }
 0x192   :  { %vm1361_vm10 = vcmp.ge.f32.partialorder %v1345_v8, 0.0  ;;  %v1377_v33 = vmul.f32 0.01, %v1345_v8  ;;  %v1372_v44 = vmul.f32 0.01, %v1340_v49  ;;  %vm1356_vm14 = vcmp.ge.f32.partialorder %v1340_v49, 0.0 }
 0x193   :  { %v2685_v45 = vpop.eup %2684  ;;  %vm1363_vm11 = vcmp.ge.f32.partialorder %v1347_v24, 0.0  ;;  %v1379_v36 = vmul.f32 0.01, %v1347_v24  ;;  %v1386_v60 = vsel %vm1354_vm12, %v1338_v25, %v1370_v3  ;;  %v2645_v30 = vld [vmem:[#allocation6 + $0x1f8] sm:$0xff]   ;;  %v2652_v17 = vld [vmem:[#allocation8 + $0x20] sm:$0xff]   ;;  %vm2799_vm0 = vmmov 0  }
 0x194   :  { %v1232_v29 = vmul.f32 %v2685_v45, %v3168_v18  ;;  %2524 = vmatpush3.bf16.msra.mxu1 %v2623_v19  ;;  %2504 = vmatpush3.bf16.msra.mxu0 %v2626_v58  ;;  %v1393_v47 = vsel %vm1361_vm10, %v1345_v8, %v1377_v33  ;;  %v1388_v55 = vsel %vm1356_vm14, %v1340_v49, %v1372_v44  ;;  %v2647_v22 = vld [vmem:[#allocation6 + $0x1b8] sm:$0xff]   ;;  %v2653_v19 = vld [vmem:[#allocation8 + $0x28] sm:$0xff]   ;;  %v2654_v58 = vld [vmem:[#allocation8 + $0x30] sm:$0xff]  }
 0x195   :  { %v2687_v56 = vpop.eup %2686  ;;  %2525 = vmatprep.subr.bf16.mxu1 %v2625_v2  ;;  %2505 = vmatprep.subr.bf16.mxu0 %v2628_v21  ;;  %v1401_v39 = vpack.c.bf16 %v1393_v47, %v1385_v35  ;;  %v1395_v62 = vsel %vm1363_vm11, %v1347_v24, %v1379_v36  ;;  %v2379_v2 = vld [vmem:[%s3260_s6] ss:$0 sm:$0xff] }
 0x196   :  { %v1289_v59 = vmul.f32 %v1259_v1, %v1232_v29  ;;  %v1234_v18 = vmul.f32 %v2687_v56, %v3173_v40  ;;  %v1403_v41 = vpack.c.bf16 %v1395_v62, %v1387_v54  ;;  %v2635_v40 = vld [vmem:[#allocation6 + $0x1a0] sm:$0xff]  }
 0x198   :  { %v1291_v51 = vmul.f32 %v1267_v0, %v1234_v18  ;;  %2526 = vmatpush3.bf16.msra.mxu1 %v2627_v32  ;;  %2506 = vmatpush3.bf16.msra.mxu0 %v2630_v46  ;;  %v1346_v63 = vadd.f32 %v1316_v48, %v1289_v59  ;;  %v2650_v48 = vld [vmem:[#allocation8 + $0x10] sm:$0xff]  }
 0x199   :  { %2527 = vmatprep.subr.bf16.mxu1 %v2629_v28  ;;  %2507 = vmatprep.subr.bf16.mxu0 %v2632_v4 }
 0x19a   :  { %vm1362_vm13 = vcmp.ge.f32.partialorder %v1346_v63, 0.0  ;;  %v1378_v43 = vmul.f32 0.01, %v1346_v63  ;;  %v1348_v16 = vadd.f32 %v1324_v20, %v1291_v51  ;;  %v2655_v20 = vld [vmem:[#allocation8 + $0x38] sm:$0xff]  }
 0x19c   :  { %2528 = vmatpush3.bf16.msra.mxu1 %v2631_v31  ;;  %2508 = vmatpush3.bf16.msra.mxu0 %v2634_v10  ;;  %v1394_v57 = vsel %vm1362_vm13, %v1346_v63, %v1378_v43  ;;  %vm1364_vm15 = vcmp.ge.f32.partialorder %v1348_v16, 0.0  ;;  %v1380_v1 = vmul.f32 0.01, %v1348_v16 }
 0x19d   :  { %2529 = vmatprep.subr.bf16.mxu1 %v2633_v42  ;;  %2509 = vmatprep.subr.bf16.mxu0 %v2636_v52  ;;  %v1402_v0 = vpack.c.bf16 %v1394_v57, %v1386_v60 }
 0x19e   :  { %v1396_v5 = vsel %vm1364_vm15, %v1348_v16, %v1380_v1 }
 0x19f   :  { %2038 = vmatprep.mubr.bf16.mxu0 %v1402_v0  ;;  %v1404_v7 = vpack.c.bf16 %v1396_v5, %v1388_v55 }
 0x1a0   :  { %2530 = vmatpush3.bf16.msra.mxu1 %v2635_v40  ;;  %2510 = vmatpush3.bf16.msra.mxu0 %v2638_v9 }
 0x1a1   :  { %2531 = vmatprep.subr.bf16.mxu1 %v2637_v6  ;;  %2511 = vmatprep.subr.bf16.mxu0 %v2640_v27 }
 0x1a2   :  { %2079 = vmatprep.mubr.bf16.mxu1 %v1404_v7 }
 0x1a4   :  { %2532 = vmatpush3.bf16.msra.mxu1 %v2639_v23  ;;  %2512 = vmatpush3.bf16.msra.mxu0 %v2642_v12 }
 0x1a5   :  { %2533 = vmatprep.subr.bf16.mxu1 %v2641_v13  ;;  %2513 = vmatprep.subr.bf16.mxu0 %v2644_v14 }
 0x1a8   :  { %2534 = vmatpush3.bf16.msra.mxu1 %v2643_v11  ;;  %2514 = vmatpush3.bf16.msra.mxu0 %v2646_v50 }
 0x1a9   :  { %2535 = vmatprep.subr.bf16.mxu1 %v2645_v30  ;;  %2552 = vmatprep.subr.bf16.mxu0 %v2798_v61 }
 0x1ab   :  { %2039 = vmatmul.mubr.bf16.vlgmr.msra.gmra.mrb[12].mxu0 %v1401_v39 }
 0x1ac   :  { %2536 = vmatpush3.bf16.msra.mxu1 %v2647_v22  ;;  %2553 = vmatpush3.bf16.msra.mxu0 %v2648_v53 }
 0x1ad   :  { %2554 = vmatprep.subr.bf16.mxu0 %v2798_v61  ;;  %2568 = vmatprep.mubr.msk.bf16.mxu0 %vm2799_vm0, %v2798_v61 }
 0x1af   :  { %2080 = vmatmul.mubr.bf16.vlgmr.msra.gmra.mrb[12].mxu1 %v1403_v41 }
 0x1b0   :  { %2555 = vmatpush3.bf16.msra.mxu0 %v2649_v15 }
 0x1b1   :  { %2556 = vmatprep.subr.bf16.mxu0 %v2798_v61 }
 0x1b4   :  { %2557 = vmatpush3.bf16.msra.mxu0 %v2650_v48 }
 0x1b5   :  { %2558 = vmatprep.subr.bf16.mxu0 %v2798_v61 }
 0x1b8   :  { %2559 = vmatpush3.bf16.msra.mxu0 %v2651_v34 }
 0x1b9   :  { %2560 = vmatprep.subr.bf16.mxu0 %v2798_v61 }
 0x1bc   :  { %2561 = vmatpush3.bf16.msra.mxu0 %v2652_v17 }
 0x1bd   :  { %2562 = vmatprep.subr.bf16.mxu0 %v2798_v61 }
 0x1c0   :  { %2563 = vmatpush3.bf16.msra.mxu0 %v2653_v19 }
 0x1c1   :  { %2564 = vmatprep.subr.bf16.mxu0 %v2798_v61 }
 0x1c4   :  { %2565 = vmatpush3.bf16.msra.mxu0 %v2654_v58 }
 0x1c5   :  { %2566 = vmatprep.subr.bf16.mxu0 %v2798_v61 }
 0x1c8   :  { %2567 = vmatpush3.bf16.msra.mxu0 %v2655_v20 }
 0x25e   :  { %v2471_v8 = vpop.f32.mrb[8].mxu0 }
 0x25f   :  { %v2472_v21 = vpop.f32.mrb[9].mxu0 }
 0x260   :  { %v2473_v26 = vadd.f32 %v2472_v21, %v2471_v8  ;;  %v2474_v38 = vpop.f32.mrb[10].mxu0 }
 0x261   :  { %v2475_v24 = vpop.f32.mrb[11].mxu0 }
 0x262   :  { %v2493_v45 = vpop.f32.mrb[8].mxu1  ;;  %v1959_v25 = vadd.f32 %v2473_v26, %v2379_v2  ;;  %v2476_v33 = vadd.f32 %v2475_v24, %v2474_v38  ;;  %v2444_v24 = vld [vmem:[%s3261_s7] ss:$0 sm:$0xff] }
 0x263   :  { %v2494_v29 = vpop.f32.mrb[9].mxu1 }
 0x264   :  { %v2495_v32 = vadd.f32 %v2494_v29, %v2493_v45  ;;  %v2496_v46 = vpop.f32.mrb[10].mxu1  ;;  %v1962_v49 = vadd.f32 %v2476_v33, %v2379_v2  ;;  %v2445_v33 = vld [vmem:[%s3262_s8] ss:$0 sm:$0xff] }
 0x265   :  { %v2497_v36 = vpop.f32.mrb[11].mxu1 }
 0x266   :  { %v2000_v56 = vadd.f32 %v2495_v32, %v1959_v25  ;;  %v2498_v28 = vadd.f32 %v2497_v36, %v2496_v46 }
 0x268   :  { %v2003_v4 = vadd.f32 %v2498_v28, %v1962_v49 }
 0x27e   :  { %v2515_v35 = vpop.f32.mrb[12].mxu0 }
 0x27f   :  { %v2516_v47 = vpop.f32.mrb[13].mxu0 }
 0x280   :  { %v2517_v54 = vadd.f32 %v2516_v47, %v2515_v35  ;;  %v2518_v59 = vpop.f32.mrb[14].mxu0 }
 0x281   :  { %v2519_v18 = vpop.f32.mrb[15].mxu0 }
 0x282   :  { %v2537_v39 = vpop.f32.mrb[12].mxu1  ;;  %v2041_v62 = vadd.f32 %v2517_v54, %v2000_v56  ;;  %v2520_v41 = vadd.f32 %v2519_v18, %v2518_v59  ;;  %v2446_v54 = vld [vmem:[%s3264_s10] ss:$0 sm:$0xff]  ;;  %v2281_v59 = vand.u32 127, %v741_v37  ;;  %s2800_s10 = smov [#allocation9]  }
 0x283   :  { %v2538_v51 = vpop.f32.mrb[13].mxu1  ;;  %s2302_s16 = sshll.u32 %s2800_s10, 4  ;;  %s2303_s16 = int_to_ptr.vmem [resolvable:$true] %s2302_s16 }
 0x284   :  { %v2539_v31 = vadd.f32 %v2538_v51, %v2537_v39  ;;  %v2540_v10 = vpop.f32.mrb[14].mxu1  ;;  %v2044_v63 = vadd.f32 %v2520_v41, %v2003_v4  ;;  %vm2282_vm3 = vcmp.lt.s32.totalorder %v2281_v59, 16  ;;  %s2762_s17 = scalar_lea.vmem %s2303_s16, 128  ;;  %p2767_p11 = scmp.lt.s32.totalorder %s2303_s16, %s2303_s16 }
 0x285   :  { %v2541_v3 = vpop.f32.mrb[15].mxu1  ;;  %p2763_p10 = scmp.ne.s32.totalorder %s2303_s16, %s2762_s17  ;;  %p2768_p12 = scmp.lt.s32.totalorder %s2762_s17, %s2762_s17 }
 0x286   :  { %v2082_v42 = vadd.f32 %v2539_v31, %v2041_v62  ;;  %v2542_v52 = vadd.f32 %v2541_v3, %v2540_v10 }
 0x287   :  { %p2769_p13 = por %p2768_p12, %p2767_p11 }
 0x288   :  { %v2093_v43 = vrot.slane %v2082_v42, 4  ;;  %v2085_v16 = vadd.f32 %v2542_v52, %v2044_v63 }
 0x289   :  { %p2770_p0 = pnand %p2769_p13, %p2763_p10 }
 0x28a   :  { %v2094_v44 = vadd.f32 %v2093_v43, %v2082_v42  ;;  %v2103_v40 = vrot.slane %v2085_v16, 4 }
 0x28c   :  { %v2095_v9 = vrot.slane %v2094_v44, 2  ;;  %v2104_v60 = vadd.f32 %v2103_v40, %v2085_v16 }
 0x28e   :  { %v2096_v57 = vadd.f32 %v2095_v9, %v2094_v44  ;;  %v2105_v1 = vrot.slane %v2104_v60, 2 }
 0x290   :  { %v2097_v6 = vrot.slane %v2096_v57, 1  ;;  %v2106_v27 = vadd.f32 %v2105_v1, %v2104_v60 }
 0x292   :  { %v2098_v0 = vadd.f32 %v2097_v6, %v2096_v57  ;;  %v2107_v55 = vrot.slane %v2106_v27, 1 }
 0x294   :  { %v2099_v5 = vmul.f32 0.125, %v2098_v0  ;;  %v2108_v7 = vadd.f32 %v2107_v55, %v2106_v27 }
 0x296   :  { %v2112_v23 = vsub.f32 %v2082_v42, %v2099_v5  ;;  %v2109_v12 = vmul.f32 0.125, %v2108_v7 }
 0x298   :  { %v2114_v13 = vmul.f32 %v2112_v23, %v2112_v23  ;;  %v2113_v14 = vsub.f32 %v2085_v16, %v2109_v12 }
 0x29a   :  { %v2119_v11 = vrot.slane %v2114_v13, 4  ;;  %v2115_v50 = vmul.f32 %v2113_v14, %v2113_v14 }
 0x29c   :  { %v2120_v30 = vadd.f32 %v2119_v11, %v2114_v13  ;;  %v2129_v22 = vrot.slane %v2115_v50, 4 }
 0x29e   :  { %v2121_v53 = vrot.slane %v2120_v30, 2  ;;  %v2130_v61 = vadd.f32 %v2129_v22, %v2115_v50 }
 0x2a0   :  { %v2122_v15 = vadd.f32 %v2121_v53, %v2120_v30  ;;  %v2131_v48 = vrot.slane %v2130_v61, 2 }
 0x2a2   :  { %v2123_v34 = vrot.slane %v2122_v15, 1  ;;  %v2132_v17 = vadd.f32 %v2131_v48, %v2130_v61 }
 0x2a4   :  { %v2124_v19 = vadd.f32 %v2123_v34, %v2122_v15  ;;  %v2133_v58 = vrot.slane %v2132_v17, 1 }
 0x2a6   :  { %v2125_v20 = vmul.f32 0.125, %v2124_v19  ;;  %v2134_v8 = vadd.f32 %v2133_v58, %v2132_v17 }
 0x2a8   :  { %v2138_v2 = vadd.f32 1e-05, %v2125_v20  ;;  %v2135_v21 = vmul.f32 0.125, %v2134_v8 }
 0x2aa   :  { %2688 = vrsqrt.f32 %v2138_v2  ;;  %v2139_v26 = vadd.f32 1e-05, %v2135_v21 }
 0x2ac   :  { %2690 = vrsqrt.f32 %v2139_v26 }
 0x2b4   :  { %v2689_v38 = vpop.eup %2688 }
 0x2b5   :  { %v2142_v45 = vmul.f32 %v2689_v38, %v2112_v23 }
 0x2b6   :  { %v2691_v25 = vpop.eup %2690 }
 0x2b7   :  { %v2150_v29 = vmul.f32 %v2444_v24, %v2142_v45  ;;  %v2143_v32 = vmul.f32 %v2691_v25, %v2113_v14 }
 0x2b9   :  { %v2151_v46 = vmul.f32 %v2444_v24, %v2143_v32  ;;  %v2158_v49 = vadd.f32 %v2445_v33, %v2150_v29 }
 0x2bb   :  { %v2159_v36 = vadd.f32 %v2445_v33, %v2151_v46  ;;  %v2162_v56 = vmul.f32 0.01, %v2158_v49  ;;  %vm2160_vm1 = vcmp.ge.f32.partialorder %v2158_v49, 0.0 }
 0x2bd   :  { %vm2161_vm2 = vcmp.ge.f32.partialorder %v2159_v36, 0.0  ;;  %v2163_v28 = vmul.f32 0.01, %v2159_v36  ;;  %v2164_v4 = vsel %vm2160_vm1, %v2158_v49, %v2162_v56 }
 0x2bf   :  { %v2165_v35 = vsel %vm2161_vm2, %v2159_v36, %v2163_v28 }
 0x2c0   :  { %v2166_v47 = vpack.c.bf16 %v2165_v35, %v2164_v4 }
 0x2c2   :  { %2569 = vmatmul.mubr.bf16.vlgmr.msra.gmra.mrb[16].mxu0 %v2166_v47 }
 0x395   :  { %v2272_v18 = vpop.f32.mrb[16].mxu0 }
 0x396   :  { %v2273_v39 = vadd.f32 %v2446_v54, %v2272_v18  ;;  %v2570_v62 = vpop.f32.mrb[17].mxu0 }
 0x397   :  { %v2275_v41 = vpop.f32.mrb[18].mxu0 }
 0x398   :  { %2279 = vst [vmem:[%s3265_s11] sm:$0xff] %v2273_v39  ;;  %v2276_v51 = vadd.f32 %v2446_v54, %v2275_v41  ;;  %v2571_v31 = vpop.f32.mrb[19].mxu0 }
 0x39a   :  { %v2283_v10 = vsel %vm2282_vm3, %v2276_v51, -1e+30 }
 0x39b   :  { %2284 = vmax.xlane.f32.xlu0 %v2283_v10 }
 0x428   :  { %v2285_v63 = vpop.xlane.xlu0 %2284 }
 0x429   :  { %v2286_v3 = vsub.f32 %v2283_v10, %v2285_v63 }
 0x42b   :  { %v2287_v42 = vmul.f32 1.442695, %v2286_v3 }
 0x42d   :  { %2692 = vpow2.f32 %v2287_v42 }
 0x437   :  { %v2693_v52 = vpop.eup %2692 }
 0x438   :  { %2289 = vadd.xlane.f32.xlu0 %v2693_v52 }
 0x4c5   :  { %v2290_v37 = vpop.xlane.xlu0 %2289 }
 0x4c6   :  { %2694 = vrcp.f32 %v2290_v37 }
 0x4d0   :  { %v2695_v43 = vpop.eup %2694 }
 0x4d1   :  { %v2292_v16 = vmul.f32 %v2695_v43, %v2693_v52 }
 0x4d3   :  { %2293 = vst [vmem:[#allocation9] sm:$0xff] %v2292_v16 }
 0x4d4   :  { %2773 = shalt.err (!%p2770_p0)
}
 0x4d5   :  { %s2774_s20 = scalar_lea.hbm %s3266_s12, 128 }
 0x4d6   :  { %p2775_p1 = scmp.ne.s32.totalorder %s3266_s12, %s2774_s20  ;;  %p2778_p2 = scmp.lt.u32.totalorder %s2774_s20, %s3266_s12 }
 0x4d8   :  { %p2780_p3 = pnand %p2778_p2, %p2775_p1 }
 0x4da   :  { %2783 = shalt.err (!%p2780_p3)
}
 0x4db   :  { %2305 = dma.vmem_to_hbm [thread:$0]  %s2303_s16, 128, %s3266_s12, [#allocation5]  }
 0x4dc   :  { %2788 = dma.done.wait [#allocation5], 128  }
 0x4dd   :  { %2789 = vsyncadd [#allocation5], 4294967168 }
 0x4de   :  { %2311 = vsyncpa [#allocation4], 1 }
 0x4df   :  { %2312 = vsyncpa [#allocation7], 1 }
 0x4e0   :  { %2313 = vsyncpa [#allocation5], 1 }

// kernel: encoder_forward.3
= control target key start
LH: loop header
LB: loop body
LE: loop exit
PB: predicated region body
PF: predicated region fallthrough
CT: control target
= control target key end

     0   :  { %s11282_s0 = inlined_call_operand.vmem [shape: bf16[128,128], index: 0, kind: input, shape index: {}]   ;;  %s11283_s1 = inlined_call_operand.vmem [shape: f32[128,1024], index: 1, kind: input, shape index: {}]   ;;  %s11284_s2 = inlined_call_operand.vmem [shape: f32[128,1024], index: 2, kind: input, shape index: {}]   ;;  %s11285_s3 = inlined_call_operand.vmem [shape: f32[1,1024], index: 3, kind: input, shape index: {}]   ;;  %s11286_s4 = inlined_call_operand.vmem [shape: f32[1,1024], index: 4, kind: input, shape index: {}]   ;;  %s11287_s5 = inlined_call_operand.vmem [shape: f32[1,1024], index: 5, kind: input, shape index: {}]   ;;  %s11288_s6 = inlined_call_operand.vmem [shape: bf16[1024,128], index: 6, kind: input, shape index: {}]   ;;  %s11289_s7 = inlined_call_operand.vmem [shape: f32[1,128], index: 7, kind: input, shape index: {}]   ;;  %s11290_s8 = inlined_call_operand.vmem [shape: f32[1,128], index: 8, kind: input, shape index: {}]   ;;  %s11291_s9 = inlined_call_operand.vmem [shape: f32[1,128], index: 9, kind: input, shape index: {}]   ;;  %s11292_s10 = inlined_call_operand.vmem [shape: bf16[128,128], index: 10, kind: input, shape index: {}]   ;;  %s11293_s11 = inlined_call_operand.vmem [shape: f32[1,128], index: 11, kind: input, shape index: {}]   ;;  %s11294_s12 = inlined_call_operand.vmem [shape: f32[8,128], index: 12, kind: input, shape index: {}]   ;;  %s11295_s13 = inlined_call_operand.vmem [shape: f32[128,1024], index: 13, kind: input, shape index: {}]   ;;  %s11296_s14 = inlined_call_operand.hbm [shape: f32[128,1024], index: 14, kind: output, shape index: {0}]   ;;  %s11297_s15 = inlined_call_operand.vmem [shape: f32[8,128], index: 15, kind: output, shape index: {1}]   ;;  %s11298_s16 = inlined_call_operand.vmem [shape: f32[8,1024], index: 16, kind: output, shape index: {2}]   ;;  %s11299_s17 = inlined_call_operand.vmem [shape: f32[128,128], index: 17, kind: output, shape index: {3}]  }
   0x1   :  { %11419 = sst [smem:[#allocation94_spill]] %s11282_s0 }
   0x2   :  { %11420 = sst [smem:[#allocation95_spill]] %s11283_s1 }
   0x3   :  { %v186_v0 = vld [vmem:[%s11284_s2 + $0x8] sm:$0xff]  ;;  %s11421_s0 = sld [smem:[#allocation95_spill]]  ;;  %v188_v6 = vld [vmem:[%s11284_s2 + $0x18] sm:$0xff]  ;;  %v6939_v7 = vmov 0   ;;  %v185_v15 = vld [vmem:[%s11284_s2] sm:$0xff]  ;;  %s11422_s30 = sld [smem:[#allocation94_spill]] }
   0x4   :  { %v194_v1 = vld [vmem:[%s11284_s2 + $0x48] sm:$0xff]  ;;  %v314_v3 = vmul.f32 0.999, %v186_v0  ;;  %1241 = vmatprep.mubr.bf16.mxu0 %v6939_v7  ;;  %1354 = vmatprep.mubr.bf16.mxu1 %v6939_v7  ;;  %v196_v10 = vld [vmem:[%s11284_s2 + $0x58] sm:$0xff]  ;;  %v316_v12 = vmul.f32 0.999, %v188_v6 }
   0x5   :  { %v322_v4 = vmul.f32 0.999, %v194_v1  ;;  %v324_v13 = vmul.f32 0.999, %v196_v10  ;;  %v193_v20 = vld [vmem:[%s11284_s2 + $0x40] sm:$0xff]  ;;  %v187_v25 = vld [vmem:[%s11284_s2 + $0x10] sm:$0xff] }
   0x6   :  { %v313_v22 = vmul.f32 0.999, %v185_v15  ;;  %v321_v23 = vmul.f32 0.999, %v193_v20  ;;  %v195_v30 = vld [vmem:[%s11284_s2 + $0x50] sm:$0xff]  ;;  %v202_v40 = vld [vmem:[%s11284_s2 + $0x88] sm:$0xff] }
   0x7   :  { %v315_v34 = vmul.f32 0.999, %v187_v25  ;;  %v323_v35 = vmul.f32 0.999, %v195_v30  ;;  %v210_v41 = vld [vmem:[%s11284_s2 + $0xc8] sm:$0xff]  ;;  %v204_v51 = vld [vmem:[%s11284_s2 + $0x98] sm:$0xff] }
   0x8   :  { %v330_v43 = vmul.f32 0.999, %v202_v40  ;;  %v338_v44 = vmul.f32 0.999, %v210_v41  ;;  %v212_v52 = vld [vmem:[%s11284_s2 + $0xd8] sm:$0xff]  ;;  %v201_v62 = vld [vmem:[%s11284_s2 + $0x80] sm:$0xff] }
   0x9   :  { %v442_v2 = vld [vmem:[%s11421_s0 + $0x8] sm:$0xff]  ;;  %v444_v11 = vld [vmem:[%s11421_s0 + $0x18] sm:$0xff]  ;;  %v441_v21 = vld [vmem:[%s11421_s0] sm:$0xff]  ;;  %v332_v54 = vmul.f32 0.999, %v204_v51 }
   0xa   :  { %v450_v5 = vld [vmem:[%s11421_s0 + $0x48] sm:$0xff]  ;;  %v570_v8 = vmul.f32 0.001, %v442_v2  ;;  %v452_v14 = vld [vmem:[%s11421_s0 + $0x58] sm:$0xff]  ;;  %v572_v18 = vmul.f32 0.001, %v444_v11 }
   0xb   :  { %v578_v9 = vmul.f32 0.001, %v450_v5  ;;  %v580_v19 = vmul.f32 0.001, %v452_v14  ;;  %v449_v24 = vld [vmem:[%s11421_s0 + $0x40] sm:$0xff]  ;;  %v443_v31 = vld [vmem:[%s11421_s0 + $0x10] sm:$0xff] }
   0xc   :  { %v698_v16 = vadd.f32 %v570_v8, %v314_v3  ;;  %v700_v27 = vadd.f32 %v572_v18, %v316_v12  ;;  %v569_v29 = vmul.f32 0.001, %v441_v21  ;;  %v451_v32 = vld [vmem:[%s11421_s0 + $0x50] sm:$0xff]  ;;  %v577_v33 = vmul.f32 0.001, %v449_v24  ;;  %v458_v45 = vld [vmem:[%s11421_s0 + $0x88] sm:$0xff] }
   0xd   :  { %v706_v17 = vadd.f32 %v578_v9, %v322_v4  ;;  %v708_v28 = vadd.f32 %v580_v19, %v324_v13  ;;  %v571_v38 = vmul.f32 0.001, %v443_v31  ;;  %v579_v39 = vmul.f32 0.001, %v451_v32  ;;  %v466_v46 = vld [vmem:[%s11421_s0 + $0xc8] sm:$0xff]  ;;  %v460_v56 = vld [vmem:[%s11421_s0 + $0x98] sm:$0xff] }
   0xe   :  { %826 = vst [vmem:[#allocation3 + $0x8] sm:$0xff] %v698_v16  ;;  %828 = vst [vmem:[#allocation3 + $0x18] sm:$0xff] %v700_v27  ;;  %v697_v37 = vadd.f32 %v569_v29, %v313_v22  ;;  %v705_v42 = vadd.f32 %v577_v33, %v321_v23  ;;  %v586_v49 = vmul.f32 0.001, %v458_v45  ;;  %v594_v50 = vmul.f32 0.001, %v466_v46 }
   0xf   :  { %834 = vst [vmem:[#allocation3 + $0x48] sm:$0xff] %v706_v17  ;;  %v1098_v26 = vpack.c.bf16 %v706_v17, %v698_v16  ;;  %836 = vst [vmem:[#allocation3 + $0x58] sm:$0xff] %v708_v28  ;;  %v1100_v36 = vpack.c.bf16 %v708_v28, %v700_v27  ;;  %v699_v47 = vadd.f32 %v571_v38, %v315_v34  ;;  %v340_v55 = vmul.f32 0.999, %v212_v52  ;;  %v468_v57 = vld [vmem:[%s11421_s0 + $0xd8] sm:$0xff]  ;;  %v209_v63 = vld [vmem:[%s11284_s2 + $0xc0] sm:$0xff] }
  0x10   :  { %825 = vst [vmem:[#allocation3] sm:$0xff] %v697_v37  ;;  %v707_v48 = vadd.f32 %v579_v39, %v323_v35  ;;  %833 = vst [vmem:[#allocation3 + $0x40] sm:$0xff] %v705_v42  ;;  %v1097_v53 = vpack.c.bf16 %v705_v42, %v697_v37  ;;  %v714_v59 = vadd.f32 %v586_v49, %v330_v43  ;;  %v588_v61 = vmul.f32 0.001, %v460_v56  ;;  %v457_v0 = vld [vmem:[%s11421_s0 + $0x80] sm:$0xff]  ;;  %v203_v9 = vld [vmem:[%s11284_s2 + $0x90] sm:$0xff] }
  0x11   :  { %1209 = vmatprep.subr.bf16.mxu0 %v1098_v26  ;;  %1322 = vmatprep.subr.bf16.mxu1 %v1100_v36  ;;  %827 = vst [vmem:[#allocation3 + $0x10] sm:$0xff] %v699_v47  ;;  %v722_v60 = vadd.f32 %v594_v50, %v338_v44  ;;  %v596_v1 = vmul.f32 0.001, %v468_v57  ;;  %v329_v2 = vmul.f32 0.999, %v201_v62  ;;  %v465_v6 = vld [vmem:[%s11421_s0 + $0xc0] sm:$0xff] }
  0x12   :  { %835 = vst [vmem:[#allocation3 + $0x50] sm:$0xff] %v707_v48  ;;  %v1099_v58 = vpack.c.bf16 %v707_v48, %v699_v47  ;;  %1210 = vmatpush1.bf16.msra.mxu0 %v1097_v53  ;;  %v337_v3 = vmul.f32 0.999, %v209_v63  ;;  %842 = vst [vmem:[#allocation3 + $0x88] sm:$0xff] %v714_v59  ;;  %v716_v5 = vadd.f32 %v588_v61, %v332_v54  ;;  %v585_v8 = vmul.f32 0.001, %v457_v0 }
  0x13   :  { %850 = vst [vmem:[#allocation3 + $0xc8] sm:$0xff] %v722_v60  ;;  %v1106_v4 = vpack.c.bf16 %v722_v60, %v714_v59  ;;  %v211_v10 = vld [vmem:[%s11284_s2 + $0xd0] sm:$0xff]  ;;  %v724_v11 = vadd.f32 %v596_v1, %v340_v55  ;;  %v593_v12 = vmul.f32 0.001, %v465_v6  ;;  %v331_v13 = vmul.f32 0.999, %v203_v9 }
  0x14   :  { %1323 = vmatpush1.bf16.msra.mxu1 %v1099_v58  ;;  %v339_v14 = vmul.f32 0.999, %v211_v10  ;;  %844 = vst [vmem:[#allocation3 + $0x98] sm:$0xff] %v716_v5  ;;  %v713_v15 = vadd.f32 %v585_v8, %v329_v2  ;;  %v459_v16 = vld [vmem:[%s11421_s0 + $0x90] sm:$0xff]  ;;  %v218_v18 = vld [vmem:[%s11284_s2 + $0x108] sm:$0xff]  ;;  %v220_v28 = vld [vmem:[%s11284_s2 + $0x118] sm:$0xff] }
  0x15   :  { %1211 = vmatprep.subr.bf16.mxu0 %v1106_v4  ;;  %v467_v17 = vld [vmem:[%s11421_s0 + $0xd0] sm:$0xff]  ;;  %852 = vst [vmem:[#allocation3 + $0xd8] sm:$0xff] %v724_v11  ;;  %v1108_v19 = vpack.c.bf16 %v724_v11, %v716_v5  ;;  %v721_v20 = vadd.f32 %v593_v12, %v337_v3  ;;  %v587_v21 = vmul.f32 0.001, %v459_v16  ;;  %v226_v23 = vld [vmem:[%s11284_s2 + $0x148] sm:$0xff]  ;;  %v228_v33 = vld [vmem:[%s11284_s2 + $0x158] sm:$0xff] }
  0x16   :  { %v595_v22 = vmul.f32 0.001, %v467_v17  ;;  %v474_v24 = vld [vmem:[%s11421_s0 + $0x108] sm:$0xff]  ;;  %841 = vst [vmem:[#allocation3 + $0x80] sm:$0xff] %v713_v15  ;;  %v346_v25 = vmul.f32 0.999, %v218_v18 }
  0x17   :  { %v354_v26 = vmul.f32 0.999, %v226_v23  ;;  %v482_v27 = vld [vmem:[%s11421_s0 + $0x148] sm:$0xff]  ;;  %1324 = vmatprep.subr.bf16.mxu1 %v1108_v19  ;;  %849 = vst [vmem:[#allocation3 + $0xc0] sm:$0xff] %v721_v20  ;;  %v1105_v29 = vpack.c.bf16 %v721_v20, %v713_v15  ;;  %v715_v30 = vadd.f32 %v587_v21, %v331_v13  ;;  %v602_v32 = vmul.f32 0.001, %v474_v24 }
  0x18   :  { %v723_v31 = vadd.f32 %v595_v22, %v339_v14  ;;  %v476_v34 = vld [vmem:[%s11421_s0 + $0x118] sm:$0xff]  ;;  %v610_v36 = vmul.f32 0.001, %v482_v27  ;;  %v348_v37 = vmul.f32 0.999, %v220_v28  ;;  %v217_v43 = vld [vmem:[%s11284_s2 + $0x100] sm:$0xff] }
  0x19   :  { %v484_v35 = vld [vmem:[%s11421_s0 + $0x158] sm:$0xff]  ;;  %v356_v38 = vmul.f32 0.999, %v228_v33  ;;  %1212 = vmatpush1.bf16.msra.mxu0 %v1105_v29  ;;  %843 = vst [vmem:[#allocation3 + $0x90] sm:$0xff] %v715_v30  ;;  %v730_v40 = vadd.f32 %v602_v32, %v346_v25  ;;  %v604_v41 = vmul.f32 0.001, %v476_v34 }
  0x1a   :  { %851 = vst [vmem:[#allocation3 + $0xd0] sm:$0xff] %v723_v31  ;;  %v1107_v39 = vpack.c.bf16 %v723_v31, %v715_v30  ;;  %v612_v42 = vmul.f32 0.001, %v484_v35  ;;  %v225_v44 = vld [vmem:[%s11284_s2 + $0x140] sm:$0xff]  ;;  %v738_v45 = vadd.f32 %v610_v36, %v354_v26  ;;  %v345_v46 = vmul.f32 0.999, %v217_v43 }
  0x1b   :  { %v353_v47 = vmul.f32 0.999, %v225_v44  ;;  %v473_v48 = vld [vmem:[%s11421_s0 + $0x100] sm:$0xff]  ;;  %858 = vst [vmem:[#allocation3 + $0x108] sm:$0xff] %v730_v40  ;;  %v732_v50 = vadd.f32 %v604_v41, %v348_v37  ;;  %v219_v54 = vld [vmem:[%s11284_s2 + $0x110] sm:$0xff]  ;;  %v234_v1 = vld [vmem:[%s11284_s2 + $0x188] sm:$0xff] }
  0x1c   :  { %v481_v49 = vld [vmem:[%s11421_s0 + $0x140] sm:$0xff]  ;;  %1325 = vmatpush1.bf16.msra.mxu1 %v1107_v39  ;;  %v740_v51 = vadd.f32 %v612_v42, %v356_v38  ;;  %v601_v52 = vmul.f32 0.001, %v473_v48  ;;  %v227_v55 = vld [vmem:[%s11284_s2 + $0x150] sm:$0xff]  ;;  %866 = vst [vmem:[#allocation3 + $0x148] sm:$0xff] %v738_v45  ;;  %v1114_v56 = vpack.c.bf16 %v738_v45, %v730_v40  ;;  %v242_v2 = vld [vmem:[%s11284_s2 + $0x1c8] sm:$0xff] }
  0x1d   :  { %v609_v53 = vmul.f32 0.001, %v481_v49  ;;  %v347_v57 = vmul.f32 0.999, %v219_v54  ;;  %v355_v58 = vmul.f32 0.999, %v227_v55 }
  0x1e   :  { %v475_v59 = vld [vmem:[%s11421_s0 + $0x110] sm:$0xff]  ;;  %860 = vst [vmem:[#allocation3 + $0x118] sm:$0xff] %v732_v50  ;;  %868 = vst [vmem:[#allocation3 + $0x158] sm:$0xff] %v740_v51  ;;  %v1116_v61 = vpack.c.bf16 %v740_v51, %v732_v50  ;;  %v729_v62 = vadd.f32 %v601_v52, %v345_v46  ;;  %v490_v3 = vld [vmem:[%s11421_s0 + $0x188] sm:$0xff]  ;;  %1213 = vmatprep.subr.bf16.mxu0 %v1114_v56  ;;  %v362_v5 = vmul.f32 0.999, %v234_v1 }
  0x1f   :  { %v483_v60 = vld [vmem:[%s11421_s0 + $0x150] sm:$0xff]  ;;  %v737_v63 = vadd.f32 %v609_v53, %v353_v47  ;;  %v603_v0 = vmul.f32 0.001, %v475_v59  ;;  %v370_v6 = vmul.f32 0.999, %v242_v2  ;;  %v498_v10 = vld [vmem:[%s11421_s0 + $0x1c8] sm:$0xff] }
  0x20   :  { %v611_v4 = vmul.f32 0.001, %v483_v60  ;;  %1326 = vmatprep.subr.bf16.mxu1 %v1116_v61  ;;  %857 = vst [vmem:[#allocation3 + $0x100] sm:$0xff] %v729_v62  ;;  %v618_v11 = vmul.f32 0.001, %v490_v3  ;;  %v236_v12 = vld [vmem:[%s11284_s2 + $0x198] sm:$0xff] }
  0x21   :  { %865 = vst [vmem:[#allocation3 + $0x140] sm:$0xff] %v737_v63  ;;  %v1113_v8 = vpack.c.bf16 %v737_v63, %v729_v62  ;;  %v731_v9 = vadd.f32 %v603_v0, %v347_v57  ;;  %v244_v13 = vld [vmem:[%s11284_s2 + $0x1d8] sm:$0xff]  ;;  %v626_v15 = vmul.f32 0.001, %v498_v10  ;;  %v364_v16 = vmul.f32 0.999, %v236_v12 }
  0x22   :  { %v739_v14 = vadd.f32 %v611_v4, %v355_v58  ;;  %v372_v17 = vmul.f32 0.999, %v244_v13  ;;  %v746_v18 = vadd.f32 %v618_v11, %v362_v5  ;;  %v492_v19 = vld [vmem:[%s11421_s0 + $0x198] sm:$0xff]  ;;  %v233_v21 = vld [vmem:[%s11284_s2 + $0x180] sm:$0xff]  ;;  %v235_v31 = vld [vmem:[%s11284_s2 + $0x190] sm:$0xff] }
  0x23   :  { %1214 = vmatpush1.bf16.msra.mxu0 %v1113_v8  ;;  %859 = vst [vmem:[#allocation3 + $0x110] sm:$0xff] %v731_v9  ;;  %v500_v20 = vld [vmem:[%s11421_s0 + $0x1d8] sm:$0xff]  ;;  %v754_v23 = vadd.f32 %v626_v15, %v370_v6  ;;  %v620_v24 = vmul.f32 0.001, %v492_v19  ;;  %v241_v26 = vld [vmem:[%s11284_s2 + $0x1c0] sm:$0xff]  ;;  %v243_v36 = vld [vmem:[%s11284_s2 + $0x1d0] sm:$0xff] }
  0x24   :  { %867 = vst [vmem:[#allocation3 + $0x150] sm:$0xff] %v739_v14  ;;  %v1115_v22 = vpack.c.bf16 %v739_v14, %v731_v9  ;;  %v628_v25 = vmul.f32 0.001, %v500_v20  ;;  %v489_v27 = vld [vmem:[%s11421_s0 + $0x180] sm:$0xff]  ;;  %874 = vst [vmem:[#allocation3 + $0x188] sm:$0xff] %v746_v18  ;;  %v491_v37 = vld [vmem:[%s11421_s0 + $0x190] sm:$0xff] }
  0x25   :  { %v361_v28 = vmul.f32 0.999, %v233_v21  ;;  %v369_v29 = vmul.f32 0.999, %v241_v26  ;;  %v497_v30 = vld [vmem:[%s11421_s0 + $0x1c0] sm:$0xff]  ;;  %882 = vst [vmem:[#allocation3 + $0x1c8] sm:$0xff] %v754_v23  ;;  %v1122_v32 = vpack.c.bf16 %v754_v23, %v746_v18  ;;  %v748_v33 = vadd.f32 %v620_v24, %v364_v16 }
  0x26   :  { %1327 = vmatpush1.bf16.msra.mxu1 %v1115_v22  ;;  %v756_v34 = vadd.f32 %v628_v25, %v372_v17  ;;  %v617_v35 = vmul.f32 0.001, %v489_v27  ;;  %v499_v38 = vld [vmem:[%s11421_s0 + $0x1d0] sm:$0xff]  ;;  %v625_v39 = vmul.f32 0.001, %v497_v30  ;;  %v250_v46 = vld [vmem:[%s11284_s2 + $0x208] sm:$0xff] }
  0x27   :  { %v363_v40 = vmul.f32 0.999, %v235_v31  ;;  %v371_v41 = vmul.f32 0.999, %v243_v36  ;;  %1215 = vmatprep.subr.bf16.mxu0 %v1122_v32  ;;  %876 = vst [vmem:[#allocation3 + $0x198] sm:$0xff] %v748_v33  ;;  %v258_v47 = vld [vmem:[%s11284_s2 + $0x248] sm:$0xff] }
  0x28   :  { %884 = vst [vmem:[#allocation3 + $0x1d8] sm:$0xff] %v756_v34  ;;  %v1124_v42 = vpack.c.bf16 %v756_v34, %v748_v33  ;;  %v745_v43 = vadd.f32 %v617_v35, %v361_v28  ;;  %v619_v44 = vmul.f32 0.001, %v491_v37  ;;  %v627_v45 = vmul.f32 0.001, %v499_v38  ;;  %v506_v51 = vld [vmem:[%s11421_s0 + $0x208] sm:$0xff] }
  0x29   :  { %v753_v48 = vadd.f32 %v625_v39, %v369_v29  ;;  %v378_v49 = vmul.f32 0.999, %v250_v46  ;;  %v386_v50 = vmul.f32 0.999, %v258_v47  ;;  %v514_v52 = vld [vmem:[%s11421_s0 + $0x248] sm:$0xff]  ;;  %v252_v57 = vld [vmem:[%s11284_s2 + $0x218] sm:$0xff] }
  0x2a   :  { %1328 = vmatprep.subr.bf16.mxu1 %v1124_v42  ;;  %873 = vst [vmem:[#allocation3 + $0x180] sm:$0xff] %v745_v43  ;;  %v747_v53 = vadd.f32 %v619_v44, %v363_v40  ;;  %v755_v54 = vadd.f32 %v627_v45, %v371_v41  ;;  %v634_v55 = vmul.f32 0.001, %v506_v51  ;;  %v642_v56 = vmul.f32 0.001, %v514_v52  ;;  %v260_v58 = vld [vmem:[%s11284_s2 + $0x258] sm:$0xff] }
  0x2b   :  { %881 = vst [vmem:[#allocation3 + $0x1c0] sm:$0xff] %v753_v48  ;;  %v1121_v59 = vpack.c.bf16 %v753_v48, %v745_v43  ;;  %v380_v60 = vmul.f32 0.999, %v252_v57  ;;  %v388_v61 = vmul.f32 0.999, %v260_v58  ;;  %v508_v62 = vld [vmem:[%s11421_s0 + $0x218] sm:$0xff] }
  0x2c   :  { %v516_v63 = vld [vmem:[%s11421_s0 + $0x258] sm:$0xff]  ;;  %875 = vst [vmem:[#allocation3 + $0x190] sm:$0xff] %v747_v53  ;;  %883 = vst [vmem:[#allocation3 + $0x1d0] sm:$0xff] %v755_v54  ;;  %v1123_v0 = vpack.c.bf16 %v755_v54, %v747_v53  ;;  %v762_v1 = vadd.f32 %v634_v55, %v378_v49  ;;  %v770_v2 = vadd.f32 %v642_v56, %v386_v50  ;;  %v636_v3 = vmul.f32 0.001, %v508_v62  ;;  %v249_v4 = vld [vmem:[%s11284_s2 + $0x200] sm:$0xff] }
  0x2d   :  { %v257_v5 = vld [vmem:[%s11284_s2 + $0x240] sm:$0xff]  ;;  %1216 = vmatpush1.bf16.msra.mxu0 %v1121_v59  ;;  %v644_v8 = vmul.f32 0.001, %v516_v63  ;;  %v377_v9 = vmul.f32 0.999, %v249_v4  ;;  %v251_v15 = vld [vmem:[%s11284_s2 + $0x210] sm:$0xff] }
  0x2e   :  { %v505_v6 = vld [vmem:[%s11421_s0 + $0x200] sm:$0xff]  ;;  %v385_v10 = vmul.f32 0.999, %v257_v5  ;;  %1329 = vmatpush1.bf16.msra.mxu1 %v1123_v0  ;;  %890 = vst [vmem:[#allocation3 + $0x208] sm:$0xff] %v762_v1  ;;  %898 = vst [vmem:[#allocation3 + $0x248] sm:$0xff] %v770_v2  ;;  %v1130_v11 = vpack.c.bf16 %v770_v2, %v762_v1  ;;  %v764_v12 = vadd.f32 %v636_v3, %v380_v60  ;;  %v259_v16 = vld [vmem:[%s11284_s2 + $0x250] sm:$0xff] }
  0x2f   :  { %v513_v13 = vld [vmem:[%s11421_s0 + $0x240] sm:$0xff]  ;;  %v633_v14 = vmul.f32 0.001, %v505_v6  ;;  %v772_v17 = vadd.f32 %v644_v8, %v388_v61  ;;  %v379_v19 = vmul.f32 0.999, %v251_v15  ;;  %v507_v22 = vld [vmem:[%s11421_s0 + $0x210] sm:$0xff] }
  0x30   :  { %v641_v18 = vmul.f32 0.001, %v513_v13  ;;  %v387_v20 = vmul.f32 0.999, %v259_v16  ;;  %1217 = vmatprep.subr.bf16.mxu0 %v1130_v11  ;;  %892 = vst [vmem:[#allocation3 + $0x218] sm:$0xff] %v764_v12  ;;  %v515_v23 = vld [vmem:[%s11421_s0 + $0x250] sm:$0xff] }
  0x31   :  { %v761_v21 = vadd.f32 %v633_v14, %v377_v9  ;;  %v266_v24 = vld [vmem:[%s11284_s2 + $0x288] sm:$0xff]  ;;  %900 = vst [vmem:[#allocation3 + $0x258] sm:$0xff] %v772_v17  ;;  %v1132_v25 = vpack.c.bf16 %v772_v17, %v764_v12  ;;  %v635_v27 = vmul.f32 0.001, %v507_v22  ;;  %v643_v28 = vmul.f32 0.001, %v515_v23 }
  0x32   :  { %v769_v26 = vadd.f32 %v641_v18, %v385_v10  ;;  %v274_v29 = vld [vmem:[%s11284_s2 + $0x2c8] sm:$0xff]  ;;  %v394_v31 = vmul.f32 0.999, %v266_v24  ;;  %v268_v34 = vld [vmem:[%s11284_s2 + $0x298] sm:$0xff]  ;;  %v265_v49 = vld [vmem:[%s11284_s2 + $0x280] sm:$0xff] }
  0x33   :  { %v522_v30 = vld [vmem:[%s11421_s0 + $0x288] sm:$0xff]  ;;  %889 = vst [vmem:[#allocation3 + $0x200] sm:$0xff] %v761_v21  ;;  %v402_v32 = vmul.f32 0.999, %v274_v29  ;;  %1330 = vmatprep.subr.bf16.mxu1 %v1132_v25  ;;  %v763_v36 = vadd.f32 %v635_v27, %v379_v19  ;;  %v771_v37 = vadd.f32 %v643_v28, %v387_v20  ;;  %v276_v39 = vld [vmem:[%s11284_s2 + $0x2d8] sm:$0xff]  ;;  %v273_v50 = vld [vmem:[%s11284_s2 + $0x2c0] sm:$0xff] }
  0x34   :  { %v530_v33 = vld [vmem:[%s11421_s0 + $0x2c8] sm:$0xff]  ;;  %897 = vst [vmem:[#allocation3 + $0x240] sm:$0xff] %v769_v26  ;;  %v1129_v35 = vpack.c.bf16 %v769_v26, %v761_v21  ;;  %v650_v38 = vmul.f32 0.001, %v522_v30  ;;  %v524_v40 = vld [vmem:[%s11421_s0 + $0x298] sm:$0xff]  ;;  %v521_v54 = vld [vmem:[%s11421_s0 + $0x280] sm:$0xff] }
  0x35   :  { %v532_v41 = vld [vmem:[%s11421_s0 + $0x2d8] sm:$0xff]  ;;  %v658_v42 = vmul.f32 0.001, %v530_v33  ;;  %v396_v43 = vmul.f32 0.999, %v268_v34  ;;  %891 = vst [vmem:[#allocation3 + $0x210] sm:$0xff] %v763_v36  ;;  %v1131_v45 = vpack.c.bf16 %v771_v37, %v763_v36 }
  0x36   :  { %v404_v44 = vmul.f32 0.999, %v276_v39  ;;  %1218 = vmatpush1.bf16.msra.mxu0 %v1129_v35  ;;  %899 = vst [vmem:[#allocation3 + $0x250] sm:$0xff] %v771_v37  ;;  %v778_v46 = vadd.f32 %v650_v38, %v394_v31  ;;  %v652_v47 = vmul.f32 0.001, %v524_v40  ;;  %v529_v55 = vld [vmem:[%s11421_s0 + $0x2c0] sm:$0xff] }
  0x37   :  { %v660_v48 = vmul.f32 0.001, %v532_v41  ;;  %v786_v51 = vadd.f32 %v658_v42, %v402_v32  ;;  %v393_v52 = vmul.f32 0.999, %v265_v49  ;;  %v401_v53 = vmul.f32 0.999, %v273_v50  ;;  %1331 = vmatpush1.bf16.msra.mxu1 %v1131_v45 }
  0x38   :  { %906 = vst [vmem:[#allocation3 + $0x288] sm:$0xff] %v778_v46  ;;  %v780_v56 = vadd.f32 %v652_v47, %v396_v43  ;;  %v649_v58 = vmul.f32 0.001, %v521_v54  ;;  %v657_v59 = vmul.f32 0.001, %v529_v55  ;;  %v267_v60 = vld [vmem:[%s11284_s2 + $0x290] sm:$0xff] }
  0x39   :  { %v788_v57 = vadd.f32 %v660_v48, %v404_v44  ;;  %v275_v61 = vld [vmem:[%s11284_s2 + $0x2d0] sm:$0xff]  ;;  %914 = vst [vmem:[#allocation3 + $0x2c8] sm:$0xff] %v786_v51  ;;  %v1138_v62 = vpack.c.bf16 %v786_v51, %v778_v46  ;;  %v395_v63 = vmul.f32 0.999, %v267_v60  ;;  %v282_v8 = vld [vmem:[%s11284_s2 + $0x308] sm:$0xff]  ;;  %v284_v18 = vld [vmem:[%s11284_s2 + $0x318] sm:$0xff] }
  0x3a   :  { %v403_v0 = vmul.f32 0.999, %v275_v61  ;;  %v523_v1 = vld [vmem:[%s11421_s0 + $0x290] sm:$0xff]  ;;  %908 = vst [vmem:[#allocation3 + $0x298] sm:$0xff] %v780_v56  ;;  %v777_v4 = vadd.f32 %v649_v58, %v393_v52  ;;  %v785_v5 = vadd.f32 %v657_v59, %v401_v53  ;;  %v290_v9 = vld [vmem:[%s11284_s2 + $0x348] sm:$0xff]  ;;  %v292_v19 = vld [vmem:[%s11284_s2 + $0x358] sm:$0xff] }
  0x3b   :  { %v531_v2 = vld [vmem:[%s11421_s0 + $0x2d0] sm:$0xff]  ;;  %916 = vst [vmem:[#allocation3 + $0x2d8] sm:$0xff] %v788_v57  ;;  %v1140_v3 = vpack.c.bf16 %v788_v57, %v780_v56  ;;  %v651_v6 = vmul.f32 0.001, %v523_v1  ;;  %v538_v10 = vld [vmem:[%s11421_s0 + $0x308] sm:$0xff]  ;;  %1219 = vmatprep.subr.bf16.mxu0 %v1138_v62  ;;  %v540_v25 = vld [vmem:[%s11421_s0 + $0x318] sm:$0xff] }
  0x3c   :  { %v659_v11 = vmul.f32 0.001, %v531_v2  ;;  %v410_v12 = vmul.f32 0.999, %v282_v8  ;;  %v418_v13 = vmul.f32 0.999, %v290_v9  ;;  %v1137_v14 = vpack.c.bf16 %v785_v5, %v777_v4 }
  0x3d   :  { %1332 = vmatprep.subr.bf16.mxu1 %v1140_v3  ;;  %905 = vst [vmem:[#allocation3 + $0x280] sm:$0xff] %v777_v4  ;;  %913 = vst [vmem:[#allocation3 + $0x2c0] sm:$0xff] %v785_v5  ;;  %v779_v15 = vadd.f32 %v651_v6, %v395_v63  ;;  %v546_v16 = vld [vmem:[%s11421_s0 + $0x348] sm:$0xff]  ;;  %v666_v17 = vmul.f32 0.001, %v538_v10  ;;  %v548_v26 = vld [vmem:[%s11421_s0 + $0x358] sm:$0xff] }
  0x3e   :  { %v787_v20 = vadd.f32 %v659_v11, %v403_v0  ;;  %v674_v21 = vmul.f32 0.001, %v546_v16  ;;  %v412_v22 = vmul.f32 0.999, %v284_v18  ;;  %v420_v23 = vmul.f32 0.999, %v292_v19  ;;  %1220 = vmatpush1.bf16.msra.mxu0 %v1137_v14 }
  0x3f   :  { %907 = vst [vmem:[#allocation3 + $0x290] sm:$0xff] %v779_v15  ;;  %v794_v24 = vadd.f32 %v666_v17, %v410_v12  ;;  %v281_v27 = vld [vmem:[%s11284_s2 + $0x300] sm:$0xff]  ;;  %v668_v30 = vmul.f32 0.001, %v540_v25  ;;  %v676_v31 = vmul.f32 0.001, %v548_v26 }
  0x40   :  { %915 = vst [vmem:[#allocation3 + $0x2d0] sm:$0xff] %v787_v20  ;;  %v1139_v28 = vpack.c.bf16 %v787_v20, %v779_v15  ;;  %v802_v29 = vadd.f32 %v674_v21, %v418_v13  ;;  %v289_v32 = vld [vmem:[%s11284_s2 + $0x340] sm:$0xff]  ;;  %v409_v34 = vmul.f32 0.999, %v281_v27  ;;  %v283_v37 = vld [vmem:[%s11284_s2 + $0x310] sm:$0xff]  ;;  %v298_v52 = vld [vmem:[%s11284_s2 + $0x388] sm:$0xff] }
  0x41   :  { %v537_v33 = vld [vmem:[%s11421_s0 + $0x300] sm:$0xff]  ;;  %922 = vst [vmem:[#allocation3 + $0x308] sm:$0xff] %v794_v24  ;;  %v417_v35 = vmul.f32 0.999, %v289_v32  ;;  %v796_v39 = vadd.f32 %v668_v30, %v412_v22  ;;  %v804_v40 = vadd.f32 %v676_v31, %v420_v23  ;;  %v291_v42 = vld [vmem:[%s11284_s2 + $0x350] sm:$0xff]  ;;  %v306_v53 = vld [vmem:[%s11284_s2 + $0x3c8] sm:$0xff] }
  0x42   :  { %v545_v36 = vld [vmem:[%s11421_s0 + $0x340] sm:$0xff]  ;;  %1333 = vmatpush1.bf16.msra.mxu1 %v1139_v28  ;;  %930 = vst [vmem:[#allocation3 + $0x348] sm:$0xff] %v802_v29  ;;  %v1146_v38 = vpack.c.bf16 %v802_v29, %v794_v24  ;;  %v665_v41 = vmul.f32 0.001, %v537_v33  ;;  %v539_v43 = vld [vmem:[%s11421_s0 + $0x310] sm:$0xff]  ;;  %v554_v57 = vld [vmem:[%s11421_s0 + $0x388] sm:$0xff] }
  0x43   :  { %v547_v44 = vld [vmem:[%s11421_s0 + $0x350] sm:$0xff]  ;;  %v673_v45 = vmul.f32 0.001, %v545_v36  ;;  %v411_v46 = vmul.f32 0.999, %v283_v37  ;;  %924 = vst [vmem:[#allocation3 + $0x318] sm:$0xff] %v796_v39  ;;  %v1148_v48 = vpack.c.bf16 %v804_v40, %v796_v39 }
  0x44   :  { %v419_v47 = vmul.f32 0.999, %v291_v42  ;;  %1221 = vmatprep.subr.bf16.mxu0 %v1146_v38  ;;  %932 = vst [vmem:[#allocation3 + $0x358] sm:$0xff] %v804_v40  ;;  %v793_v49 = vadd.f32 %v665_v41, %v409_v34  ;;  %v667_v50 = vmul.f32 0.001, %v539_v43  ;;  %v562_v58 = vld [vmem:[%s11421_s0 + $0x3c8] sm:$0xff] }
  0x45   :  { %v675_v51 = vmul.f32 0.001, %v547_v44  ;;  %v801_v54 = vadd.f32 %v673_v45, %v417_v35  ;;  %v426_v55 = vmul.f32 0.999, %v298_v52  ;;  %v434_v56 = vmul.f32 0.999, %v306_v53  ;;  %1334 = vmatprep.subr.bf16.mxu1 %v1148_v48 }
  0x46   :  { %921 = vst [vmem:[#allocation3 + $0x300] sm:$0xff] %v793_v49  ;;  %v795_v59 = vadd.f32 %v667_v50, %v411_v46  ;;  %v682_v61 = vmul.f32 0.001, %v554_v57  ;;  %v690_v62 = vmul.f32 0.001, %v562_v58  ;;  %v300_v63 = vld [vmem:[%s11284_s2 + $0x398] sm:$0xff] }
  0x47   :  { %v803_v60 = vadd.f32 %v675_v51, %v419_v47  ;;  %v308_v0 = vld [vmem:[%s11284_s2 + $0x3d8] sm:$0xff]  ;;  %929 = vst [vmem:[#allocation3 + $0x340] sm:$0xff] %v801_v54  ;;  %v1145_v1 = vpack.c.bf16 %v801_v54, %v793_v49  ;;  %v428_v2 = vmul.f32 0.999, %v300_v63  ;;  %v297_v11 = vld [vmem:[%s11284_s2 + $0x380] sm:$0xff]  ;;  %v299_v21 = vld [vmem:[%s11284_s2 + $0x390] sm:$0xff] }
  0x48   :  { %v436_v3 = vmul.f32 0.999, %v308_v0  ;;  %v556_v4 = vld [vmem:[%s11421_s0 + $0x398] sm:$0xff]  ;;  %923 = vst [vmem:[#allocation3 + $0x310] sm:$0xff] %v795_v59  ;;  %v810_v8 = vadd.f32 %v682_v61, %v426_v55  ;;  %v818_v9 = vadd.f32 %v690_v62, %v434_v56  ;;  %v305_v12 = vld [vmem:[%s11284_s2 + $0x3c0] sm:$0xff]  ;;  %v307_v22 = vld [vmem:[%s11284_s2 + $0x3d0] sm:$0xff] }
  0x49   :  { %v564_v5 = vld [vmem:[%s11421_s0 + $0x3d8] sm:$0xff]  ;;  %931 = vst [vmem:[#allocation3 + $0x350] sm:$0xff] %v803_v60  ;;  %v1147_v6 = vpack.c.bf16 %v803_v60, %v795_v59  ;;  %v684_v10 = vmul.f32 0.001, %v556_v4  ;;  %v553_v13 = vld [vmem:[%s11421_s0 + $0x380] sm:$0xff]  ;;  %1222 = vmatpush1.bf16.msra.mxu0 %v1145_v1  ;;  %v555_v28 = vld [vmem:[%s11421_s0 + $0x390] sm:$0xff] }
  0x4a   :  { %v692_v14 = vmul.f32 0.001, %v564_v5  ;;  %v425_v15 = vmul.f32 0.999, %v297_v11  ;;  %v433_v16 = vmul.f32 0.999, %v305_v12  ;;  %v1154_v17 = vpack.c.bf16 %v818_v9, %v810_v8 }
  0x4b   :  { %1335 = vmatpush1.bf16.msra.mxu1 %v1147_v6  ;;  %938 = vst [vmem:[#allocation3 + $0x388] sm:$0xff] %v810_v8  ;;  %946 = vst [vmem:[#allocation3 + $0x3c8] sm:$0xff] %v818_v9  ;;  %v812_v18 = vadd.f32 %v684_v10, %v428_v2  ;;  %v561_v19 = vld [vmem:[%s11421_s0 + $0x3c0] sm:$0xff]  ;;  %v681_v20 = vmul.f32 0.001, %v553_v13  ;;  %v563_v29 = vld [vmem:[%s11421_s0 + $0x3d0] sm:$0xff] }
  0x4c   :  { %v820_v23 = vadd.f32 %v692_v14, %v436_v3  ;;  %v689_v24 = vmul.f32 0.001, %v561_v19  ;;  %v427_v25 = vmul.f32 0.999, %v299_v21  ;;  %v435_v26 = vmul.f32 0.999, %v307_v22  ;;  %1223 = vmatprep.subr.bf16.mxu0 %v1154_v17 }
  0x4d   :  { %940 = vst [vmem:[#allocation3 + $0x398] sm:$0xff] %v812_v18  ;;  %v809_v27 = vadd.f32 %v681_v20, %v425_v15  ;;  %v683_v32 = vmul.f32 0.001, %v555_v28  ;;  %v691_v33 = vmul.f32 0.001, %v563_v29  ;;  %v6747_v34 = vld [vmem:[%s11422_s30] sm:$0xff]  }
  0x4e   :  { %948 = vst [vmem:[#allocation3 + $0x3d8] sm:$0xff] %v820_v23  ;;  %v1156_v30 = vpack.c.bf16 %v820_v23, %v812_v18  ;;  %v817_v31 = vadd.f32 %v689_v24, %v433_v16  ;;  %v190_v35 = vld [vmem:[%s11284_s2 + $0x28] sm:$0xff]  ;;  %v189_v43 = vld [vmem:[%s11284_s2 + $0x20] sm:$0xff]  ;;  %v192_v56 = vld [vmem:[%s11284_s2 + $0x38] sm:$0xff] }
  0x4f   :  { %937 = vst [vmem:[#allocation3 + $0x380] sm:$0xff] %v809_v27  ;;  %v198_v36 = vld [vmem:[%s11284_s2 + $0x68] sm:$0xff]  ;;  %v811_v38 = vadd.f32 %v683_v32, %v427_v25  ;;  %v819_v39 = vadd.f32 %v691_v33, %v435_v26  ;;  %v318_v40 = vmul.f32 0.999, %v190_v35  ;;  %v197_v48 = vld [vmem:[%s11284_s2 + $0x60] sm:$0xff]  ;;  %v200_v57 = vld [vmem:[%s11284_s2 + $0x78] sm:$0xff] }
  0x50   :  { %1336 = vmatprep.subr.bf16.mxu1 %v1156_v30  ;;  %945 = vst [vmem:[#allocation3 + $0x3c0] sm:$0xff] %v817_v31  ;;  %v1153_v37 = vpack.c.bf16 %v817_v31, %v809_v27  ;;  %v446_v41 = vld [vmem:[%s11421_s0 + $0x28] sm:$0xff]  ;;  %v326_v44 = vmul.f32 0.999, %v198_v36  ;;  %v317_v49 = vmul.f32 0.999, %v189_v43 }
  0x51   :  { %v454_v42 = vld [vmem:[%s11421_s0 + $0x68] sm:$0xff]  ;;  %v574_v45 = vmul.f32 0.001, %v446_v41  ;;  %939 = vst [vmem:[#allocation3 + $0x390] sm:$0xff] %v811_v38  ;;  %947 = vst [vmem:[#allocation3 + $0x3d0] sm:$0xff] %v819_v39  ;;  %v1155_v47 = vpack.c.bf16 %v819_v39, %v811_v38  ;;  %v445_v50 = vld [vmem:[%s11421_s0 + $0x20] sm:$0xff] }
  0x52   :  { %v582_v46 = vmul.f32 0.001, %v454_v42  ;;  %1224 = vmatpush1.bf16.msra.mxu0 %v1153_v37  ;;  %v453_v51 = vld [vmem:[%s11421_s0 + $0x60] sm:$0xff]  ;;  %v325_v54 = vmul.f32 0.999, %v197_v48  ;;  %v448_v63 = vld [vmem:[%s11421_s0 + $0x38] sm:$0xff] }
  0x53   :  { %v702_v52 = vadd.f32 %v574_v45, %v318_v40  ;;  %v573_v55 = vmul.f32 0.001, %v445_v50  ;;  %1337 = vmatpush1.bf16.msra.mxu1 %v1155_v47  ;;  %v581_v58 = vmul.f32 0.001, %v453_v51  ;;  %v320_v59 = vmul.f32 0.999, %v192_v56 }
  0x54   :  { %v710_v53 = vadd.f32 %v582_v46, %v326_v44  ;;  %v328_v60 = vmul.f32 0.999, %v200_v57  ;;  %v456_v0 = vld [vmem:[%s11421_s0 + $0x78] sm:$0xff]  ;;  %v191_v1 = vld [vmem:[%s11284_s2 + $0x30] sm:$0xff]  ;;  %v576_v3 = vmul.f32 0.001, %v448_v63 }
  0x55   :  { %1242 = vmatmul.mubr.bf16.vlgmr.msra.gmra.mrb[0].mxu0 %v6747_v34  ;;  %830 = vst [vmem:[#allocation3 + $0x28] sm:$0xff] %v702_v52  ;;  %v701_v62 = vadd.f32 %v573_v55, %v317_v49  ;;  %v709_v2 = vadd.f32 %v581_v58, %v325_v54  ;;  %v584_v4 = vmul.f32 0.001, %v456_v0  ;;  %v199_v5 = vld [vmem:[%s11284_s2 + $0x70] sm:$0xff]  ;;  %v319_v8 = vmul.f32 0.999, %v191_v1 }
  0x56   :  { %838 = vst [vmem:[#allocation3 + $0x68] sm:$0xff] %v710_v53  ;;  %v1102_v61 = vpack.c.bf16 %v710_v53, %v702_v52  ;;  %v447_v6 = vld [vmem:[%s11421_s0 + $0x30] sm:$0xff]  ;;  %1251 = vmatprep.mubr.bf16.mxu0 %v6939_v7  ;;  %1355 = vmatmul.mubr.bf16.vlgmr.msra.gmra.mrb[0].mxu1 %v6747_v34  ;;  %v327_v9 = vmul.f32 0.999, %v199_v5  ;;  %v7477_v11 = vld [vmem:[%s11422_s30 + $0x8] sm:$0xff]   ;;  %v704_v13 = vadd.f32 %v576_v3, %v320_v59  ;;  %v205_v25 = vld [vmem:[%s11284_s2 + $0xa0] sm:$0xff] }
  0x57   :  { %829 = vst [vmem:[#allocation3 + $0x20] sm:$0xff] %v701_v62  ;;  %v455_v10 = vld [vmem:[%s11421_s0 + $0x70] sm:$0xff]  ;;  %837 = vst [vmem:[#allocation3 + $0x60] sm:$0xff] %v709_v2  ;;  %v1101_v12 = vpack.c.bf16 %v709_v2, %v701_v62  ;;  %v712_v14 = vadd.f32 %v584_v4, %v328_v60  ;;  %v575_v15 = vmul.f32 0.001, %v447_v6  ;;  %1364 = vmatprep.mubr.bf16.mxu1 %v6939_v7  ;;  %v206_v17 = vld [vmem:[%s11284_s2 + $0xa8] sm:$0xff] }
  0x58   :  { %1435 = vmatprep.subr.bf16.mxu0 %v1102_v61  ;;  %v583_v16 = vmul.f32 0.001, %v455_v10  ;;  %v214_v18 = vld [vmem:[%s11284_s2 + $0xe8] sm:$0xff]  ;;  %832 = vst [vmem:[#allocation3 + $0x38] sm:$0xff] %v704_v13  ;;  %v334_v22 = vmul.f32 0.999, %v206_v17 }
  0x59   :  { %v462_v19 = vld [vmem:[%s11421_s0 + $0xa8] sm:$0xff]  ;;  %1436 = vmatpush1.bf16.msra.mxu0 %v1101_v12  ;;  %840 = vst [vmem:[#allocation3 + $0x78] sm:$0xff] %v712_v14  ;;  %v1104_v20 = vpack.c.bf16 %v712_v14, %v704_v13  ;;  %v703_v21 = vadd.f32 %v575_v15, %v319_v8  ;;  %v342_v23 = vmul.f32 0.999, %v214_v18  ;;  %v213_v29 = vld [vmem:[%s11284_s2 + $0xe0] sm:$0xff]  ;;  %v208_v34 = vld [vmem:[%s11284_s2 + $0xb8] sm:$0xff] }
  0x5a   :  { %v470_v24 = vld [vmem:[%s11421_s0 + $0xe8] sm:$0xff]  ;;  %v711_v26 = vadd.f32 %v583_v16, %v327_v9  ;;  %v590_v27 = vmul.f32 0.001, %v462_v19  ;;  %v461_v30 = vld [vmem:[%s11421_s0 + $0xa0] sm:$0xff]  ;;  %v333_v31 = vmul.f32 0.999, %v205_v25 }
  0x5b   :  { %v598_v28 = vmul.f32 0.001, %v470_v24  ;;  %1548 = vmatprep.subr.bf16.mxu1 %v1104_v20  ;;  %831 = vst [vmem:[#allocation3 + $0x30] sm:$0xff] %v703_v21  ;;  %v341_v32 = vmul.f32 0.999, %v213_v29  ;;  %v469_v33 = vld [vmem:[%s11421_s0 + $0xe0] sm:$0xff] }
  0x5c   :  { %839 = vst [vmem:[#allocation3 + $0x70] sm:$0xff] %v711_v26  ;;  %v1103_v35 = vpack.c.bf16 %v711_v26, %v703_v21  ;;  %v718_v36 = vadd.f32 %v590_v27, %v334_v22  ;;  %v589_v38 = vmul.f32 0.001, %v461_v30  ;;  %v216_v39 = vld [vmem:[%s11284_s2 + $0xf8] sm:$0xff]  ;;  %v597_v42 = vmul.f32 0.001, %v469_v33 }
  0x5d   :  { %1252 = vmatmul.mubr.bf16.gmra.mrb[4].mxu0 %v7477_v11  ;;  %v726_v37 = vadd.f32 %v598_v28, %v342_v23  ;;  %v464_v40 = vld [vmem:[%s11421_s0 + $0xb8] sm:$0xff]  ;;  %v336_v43 = vmul.f32 0.999, %v208_v34  ;;  %v344_v44 = vmul.f32 0.999, %v216_v39  ;;  %v207_v49 = vld [vmem:[%s11284_s2 + $0xb0] sm:$0xff] }
  0x5e   :  { %v472_v41 = vld [vmem:[%s11421_s0 + $0xf8] sm:$0xff]  ;;  %1261 = vmatprep.mubr.bf16.mxu0 %v6939_v7  ;;  %1549 = vmatpush1.bf16.msra.mxu1 %v1103_v35  ;;  %846 = vst [vmem:[#allocation3 + $0xa8] sm:$0xff] %v718_v36  ;;  %v717_v46 = vadd.f32 %v589_v38, %v333_v31  ;;  %v592_v47 = vmul.f32 0.001, %v464_v40  ;;  %v215_v50 = vld [vmem:[%s11284_s2 + $0xf0] sm:$0xff]  ;;  %v725_v51 = vadd.f32 %v597_v42, %v341_v32  ;;  %v222_v62 = vld [vmem:[%s11284_s2 + $0x128] sm:$0xff] }
  0x5f   :  { %854 = vst [vmem:[#allocation3 + $0xe8] sm:$0xff] %v726_v37  ;;  %v1110_v45 = vpack.c.bf16 %v726_v37, %v718_v36  ;;  %v600_v48 = vmul.f32 0.001, %v472_v41  ;;  %1365 = vmatmul.mubr.bf16.gmra.mrb[4].mxu1 %v7477_v11  ;;  %v335_v52 = vmul.f32 0.999, %v207_v49  ;;  %v463_v54 = vld [vmem:[%s11421_s0 + $0xb0] sm:$0xff] }
  0x60   :  { %v343_v53 = vmul.f32 0.999, %v215_v50  ;;  %v471_v55 = vld [vmem:[%s11421_s0 + $0xf0] sm:$0xff]  ;;  %845 = vst [vmem:[#allocation3 + $0xa0] sm:$0xff] %v717_v46  ;;  %v720_v56 = vadd.f32 %v592_v47, %v336_v43  ;;  %v591_v58 = vmul.f32 0.001, %v463_v54  ;;  %1374 = vmatprep.mubr.bf16.mxu1 %v6939_v7  ;;  %v1109_v60 = vpack.c.bf16 %v725_v51, %v717_v46 }
  0x61   :  { %1437 = vmatprep.subr.bf16.mxu0 %v1110_v45  ;;  %v728_v57 = vadd.f32 %v600_v48, %v344_v44  ;;  %v599_v59 = vmul.f32 0.001, %v471_v55  ;;  %853 = vst [vmem:[#allocation3 + $0xe0] sm:$0xff] %v725_v51  ;;  %v7535_v61 = vld [vmem:[%s11422_s30 + $0x10] sm:$0xff]   ;;  %v230_v2 = vld [vmem:[%s11284_s2 + $0x168] sm:$0xff]  ;;  %v221_v12 = vld [vmem:[%s11284_s2 + $0x120] sm:$0xff] }
  0x62   :  { %848 = vst [vmem:[#allocation3 + $0xb8] sm:$0xff] %v720_v56  ;;  %v719_v0 = vadd.f32 %v591_v58, %v335_v52  ;;  %v350_v3 = vmul.f32 0.999, %v222_v62  ;;  %v478_v4 = vld [vmem:[%s11421_s0 + $0x128] sm:$0xff]  ;;  %1438 = vmatpush1.bf16.msra.mxu0 %v1109_v60  ;;  %v358_v6 = vmul.f32 0.999, %v230_v2 }
  0x63   :  { %856 = vst [vmem:[#allocation3 + $0xf8] sm:$0xff] %v728_v57  ;;  %v1112_v63 = vpack.c.bf16 %v728_v57, %v720_v56  ;;  %v727_v1 = vadd.f32 %v599_v59, %v343_v53  ;;  %v486_v5 = vld [vmem:[%s11421_s0 + $0x168] sm:$0xff]  ;;  %v606_v8 = vmul.f32 0.001, %v478_v4  ;;  %v229_v13 = vld [vmem:[%s11284_s2 + $0x160] sm:$0xff]  ;;  %v224_v20 = vld [vmem:[%s11284_s2 + $0x138] sm:$0xff] }
  0x64   :  { %v614_v9 = vmul.f32 0.001, %v486_v5  ;;  %847 = vst [vmem:[#allocation3 + $0xb0] sm:$0xff] %v719_v0  ;;  %v477_v14 = vld [vmem:[%s11421_s0 + $0x120] sm:$0xff]  ;;  %v349_v17 = vmul.f32 0.999, %v221_v12 }
  0x65   :  { %1550 = vmatprep.subr.bf16.mxu1 %v1112_v63  ;;  %855 = vst [vmem:[#allocation3 + $0xf0] sm:$0xff] %v727_v1  ;;  %v1111_v10 = vpack.c.bf16 %v727_v1, %v719_v0  ;;  %1262 = vmatmul.mubr.bf16.gmra.mrb[8].mxu0 %v7535_v61  ;;  %v734_v15 = vadd.f32 %v606_v8, %v350_v3  ;;  %v357_v18 = vmul.f32 0.999, %v229_v13  ;;  %v485_v19 = vld [vmem:[%s11421_s0 + $0x160] sm:$0xff]  ;;  %v605_v21 = vmul.f32 0.001, %v477_v14 }
  0x66   :  { %v742_v16 = vadd.f32 %v614_v9, %v358_v6  ;;  %1271 = vmatprep.mubr.bf16.mxu0 %v6939_v7  ;;  %v613_v22 = vmul.f32 0.001, %v485_v19  ;;  %v232_v23 = vld [vmem:[%s11284_s2 + $0x178] sm:$0xff]  ;;  %v352_v26 = vmul.f32 0.999, %v224_v20  ;;  %v223_v29 = vld [vmem:[%s11284_s2 + $0x130] sm:$0xff] }
  0x67   :  { %1551 = vmatpush1.bf16.msra.mxu1 %v1111_v10  ;;  %v480_v24 = vld [vmem:[%s11421_s0 + $0x138] sm:$0xff]  ;;  %862 = vst [vmem:[#allocation3 + $0x128] sm:$0xff] %v734_v15  ;;  %v360_v27 = vmul.f32 0.999, %v232_v23  ;;  %v733_v30 = vadd.f32 %v605_v21, %v349_v17  ;;  %v231_v34 = vld [vmem:[%s11284_s2 + $0x170] sm:$0xff]  ;;  %v238_v45 = vld [vmem:[%s11284_s2 + $0x1a8] sm:$0xff] }
  0x68   :  { %1375 = vmatmul.mubr.bf16.gmra.mrb[8].mxu1 %v7535_v61  ;;  %870 = vst [vmem:[#allocation3 + $0x168] sm:$0xff] %v742_v16  ;;  %v1118_v25 = vpack.c.bf16 %v742_v16, %v734_v15  ;;  %v488_v28 = vld [vmem:[%s11421_s0 + $0x178] sm:$0xff]  ;;  %v741_v31 = vadd.f32 %v613_v22, %v357_v18  ;;  %v608_v32 = vmul.f32 0.001, %v480_v24  ;;  %v479_v35 = vld [vmem:[%s11421_s0 + $0x130] sm:$0xff]  ;;  %v246_v46 = vld [vmem:[%s11284_s2 + $0x1e8] sm:$0xff] }
  0x69   :  { %v616_v33 = vmul.f32 0.001, %v488_v28  ;;  %1384 = vmatprep.mubr.bf16.mxu1 %v6939_v7  ;;  %v351_v36 = vmul.f32 0.999, %v223_v29  ;;  %v359_v37 = vmul.f32 0.999, %v231_v34 }
  0x6a   :  { %1439 = vmatprep.subr.bf16.mxu0 %v1118_v25  ;;  %v487_v38 = vld [vmem:[%s11421_s0 + $0x170] sm:$0xff]  ;;  %v7592_v39 = vld [vmem:[%s11422_s30 + $0x18] sm:$0xff]   ;;  %861 = vst [vmem:[#allocation3 + $0x120] sm:$0xff] %v733_v30  ;;  %869 = vst [vmem:[#allocation3 + $0x160] sm:$0xff] %v741_v31  ;;  %v1117_v40 = vpack.c.bf16 %v741_v31, %v733_v30  ;;  %v736_v41 = vadd.f32 %v608_v32, %v352_v26  ;;  %v607_v43 = vmul.f32 0.001, %v479_v35 }
  0x6b   :  { %v744_v42 = vadd.f32 %v616_v33, %v360_v27  ;;  %v615_v44 = vmul.f32 0.001, %v487_v38  ;;  %v494_v47 = vld [vmem:[%s11421_s0 + $0x1a8] sm:$0xff]  ;;  %v366_v50 = vmul.f32 0.999, %v238_v45  ;;  %v237_v53 = vld [vmem:[%s11284_s2 + $0x1a0] sm:$0xff] }
  0x6c   :  { %1440 = vmatpush1.bf16.msra.mxu0 %v1117_v40  ;;  %864 = vst [vmem:[#allocation3 + $0x138] sm:$0xff] %v736_v41  ;;  %v735_v49 = vadd.f32 %v607_v43, %v351_v36  ;;  %v374_v51 = vmul.f32 0.999, %v246_v46  ;;  %v502_v52 = vld [vmem:[%s11421_s0 + $0x1e8] sm:$0xff]  ;;  %v622_v55 = vmul.f32 0.001, %v494_v47 }
  0x6d   :  { %872 = vst [vmem:[#allocation3 + $0x178] sm:$0xff] %v744_v42  ;;  %v1120_v48 = vpack.c.bf16 %v744_v42, %v736_v41  ;;  %v743_v54 = vadd.f32 %v615_v44, %v359_v37  ;;  %1272 = vmatmul.mubr.bf16.gmra.mrb[12].mxu0 %v7592_v39  ;;  %v630_v56 = vmul.f32 0.001, %v502_v52  ;;  %v245_v57 = vld [vmem:[%s11284_s2 + $0x1e0] sm:$0xff]  ;;  %v365_v59 = vmul.f32 0.999, %v237_v53 }
  0x6e   :  { %v493_v58 = vld [vmem:[%s11421_s0 + $0x1a0] sm:$0xff]  ;;  %863 = vst [vmem:[#allocation3 + $0x130] sm:$0xff] %v735_v49  ;;  %v373_v60 = vmul.f32 0.999, %v245_v57  ;;  %v240_v63 = vld [vmem:[%s11284_s2 + $0x1b8] sm:$0xff]  ;;  %1281 = vmatprep.mubr.bf16.mxu0 %v6939_v7  ;;  %v750_v1 = vadd.f32 %v622_v55, %v366_v50  ;;  %v239_v16 = vld [vmem:[%s11284_s2 + $0x1b0] sm:$0xff] }
  0x6f   :  { %1552 = vmatprep.subr.bf16.mxu1 %v1120_v48  ;;  %v501_v62 = vld [vmem:[%s11421_s0 + $0x1e0] sm:$0xff]  ;;  %871 = vst [vmem:[#allocation3 + $0x170] sm:$0xff] %v743_v54  ;;  %v1119_v0 = vpack.c.bf16 %v743_v54, %v735_v49  ;;  %v758_v2 = vadd.f32 %v630_v56, %v374_v51  ;;  %v621_v3 = vmul.f32 0.001, %v493_v58  ;;  %v248_v4 = vld [vmem:[%s11284_s2 + $0x1f8] sm:$0xff]  ;;  %v247_v17 = vld [vmem:[%s11284_s2 + $0x1f0] sm:$0xff] }
  0x70   :  { %1385 = vmatmul.mubr.bf16.gmra.mrb[12].mxu1 %v7592_v39  ;;  %v496_v5 = vld [vmem:[%s11421_s0 + $0x1b8] sm:$0xff]  ;;  %v629_v8 = vmul.f32 0.001, %v501_v62  ;;  %v368_v9 = vmul.f32 0.999, %v240_v63  ;;  %878 = vst [vmem:[#allocation3 + $0x1a8] sm:$0xff] %v750_v1 }
  0x71   :  { %v504_v6 = vld [vmem:[%s11421_s0 + $0x1f8] sm:$0xff]  ;;  %v376_v10 = vmul.f32 0.999, %v248_v4  ;;  %1394 = vmatprep.mubr.bf16.mxu1 %v6939_v7  ;;  %1553 = vmatpush1.bf16.msra.mxu1 %v1119_v0  ;;  %886 = vst [vmem:[#allocation3 + $0x1e8] sm:$0xff] %v758_v2  ;;  %v1126_v12 = vpack.c.bf16 %v758_v2, %v750_v1  ;;  %v749_v13 = vadd.f32 %v621_v3, %v365_v59  ;;  %v624_v14 = vmul.f32 0.001, %v496_v5 }
  0x72   :  { %v632_v15 = vmul.f32 0.001, %v504_v6  ;;  %v757_v18 = vadd.f32 %v629_v8, %v373_v60  ;;  %v367_v19 = vmul.f32 0.999, %v239_v16  ;;  %v375_v20 = vmul.f32 0.999, %v247_v17 }
  0x73   :  { %v495_v21 = vld [vmem:[%s11421_s0 + $0x1b0] sm:$0xff]  ;;  %1441 = vmatprep.subr.bf16.mxu0 %v1126_v12  ;;  %877 = vst [vmem:[#allocation3 + $0x1a0] sm:$0xff] %v749_v13  ;;  %v752_v23 = vadd.f32 %v624_v14, %v368_v9  ;;  %v7649_v28 = vld [vmem:[%s11422_s30 + $0x20] sm:$0xff]   ;;  %v254_v29 = vld [vmem:[%s11284_s2 + $0x228] sm:$0xff] }
  0x74   :  { %v503_v22 = vld [vmem:[%s11421_s0 + $0x1f0] sm:$0xff]  ;;  %v760_v24 = vadd.f32 %v632_v15, %v376_v10  ;;  %v623_v25 = vmul.f32 0.001, %v495_v21  ;;  %885 = vst [vmem:[#allocation3 + $0x1e0] sm:$0xff] %v757_v18  ;;  %v1125_v27 = vpack.c.bf16 %v757_v18, %v749_v13  ;;  %v262_v33 = vld [vmem:[%s11284_s2 + $0x268] sm:$0xff]  ;;  %v253_v42 = vld [vmem:[%s11284_s2 + $0x220] sm:$0xff] }
  0x75   :  { %v631_v26 = vmul.f32 0.001, %v503_v22  ;;  %880 = vst [vmem:[#allocation3 + $0x1b8] sm:$0xff] %v752_v23  ;;  %v382_v34 = vmul.f32 0.999, %v254_v29  ;;  %v510_v35 = vld [vmem:[%s11421_s0 + $0x228] sm:$0xff]  ;;  %1282 = vmatmul.mubr.bf16.gmra.mrb[16].mxu0 %v7649_v28 }
  0x76   :  { %888 = vst [vmem:[#allocation3 + $0x1f8] sm:$0xff] %v760_v24  ;;  %v1128_v30 = vpack.c.bf16 %v760_v24, %v752_v23  ;;  %v751_v31 = vadd.f32 %v623_v25, %v367_v19  ;;  %v518_v36 = vld [vmem:[%s11421_s0 + $0x268] sm:$0xff]  ;;  %1442 = vmatpush1.bf16.msra.mxu0 %v1125_v27  ;;  %v390_v37 = vmul.f32 0.999, %v262_v33  ;;  %v638_v38 = vmul.f32 0.001, %v510_v35  ;;  %1291 = vmatprep.mubr.bf16.mxu0 %v6939_v7 }
  0x77   :  { %v759_v32 = vadd.f32 %v631_v26, %v375_v20  ;;  %v646_v40 = vmul.f32 0.001, %v518_v36  ;;  %v261_v43 = vld [vmem:[%s11284_s2 + $0x260] sm:$0xff]  ;;  %v381_v47 = vmul.f32 0.999, %v253_v42  ;;  %v256_v50 = vld [vmem:[%s11284_s2 + $0x238] sm:$0xff] }
  0x78   :  { %1554 = vmatprep.subr.bf16.mxu1 %v1128_v30  ;;  %879 = vst [vmem:[#allocation3 + $0x1b0] sm:$0xff] %v751_v31  ;;  %v509_v44 = vld [vmem:[%s11421_s0 + $0x220] sm:$0xff]  ;;  %1395 = vmatmul.mubr.bf16.gmra.mrb[16].mxu1 %v7649_v28  ;;  %v766_v45 = vadd.f32 %v638_v38, %v382_v34  ;;  %v389_v48 = vmul.f32 0.999, %v261_v43  ;;  %v264_v53 = vld [vmem:[%s11284_s2 + $0x278] sm:$0xff]  ;;  %v255_v59 = vld [vmem:[%s11284_s2 + $0x230] sm:$0xff] }
  0x79   :  { %887 = vst [vmem:[#allocation3 + $0x1f0] sm:$0xff] %v759_v32  ;;  %v1127_v41 = vpack.c.bf16 %v759_v32, %v751_v31  ;;  %v774_v46 = vadd.f32 %v646_v40, %v390_v37  ;;  %v517_v49 = vld [vmem:[%s11421_s0 + $0x260] sm:$0xff]  ;;  %v637_v51 = vmul.f32 0.001, %v509_v44  ;;  %v512_v54 = vld [vmem:[%s11421_s0 + $0x238] sm:$0xff]  ;;  %1404 = vmatprep.mubr.bf16.mxu1 %v6939_v7  ;;  %v263_v1 = vld [vmem:[%s11284_s2 + $0x270] sm:$0xff] }
  0x7a   :  { %v645_v52 = vmul.f32 0.001, %v517_v49  ;;  %894 = vst [vmem:[#allocation3 + $0x228] sm:$0xff] %v766_v45  ;;  %v384_v56 = vmul.f32 0.999, %v256_v50  ;;  %v520_v58 = vld [vmem:[%s11421_s0 + $0x278] sm:$0xff] }
  0x7b   :  { %1555 = vmatpush1.bf16.msra.mxu1 %v1127_v41  ;;  %902 = vst [vmem:[#allocation3 + $0x268] sm:$0xff] %v774_v46  ;;  %v1134_v55 = vpack.c.bf16 %v774_v46, %v766_v45  ;;  %v392_v57 = vmul.f32 0.999, %v264_v53  ;;  %v765_v60 = vadd.f32 %v637_v51, %v381_v47  ;;  %v640_v63 = vmul.f32 0.001, %v512_v54  ;;  %v511_v2 = vld [vmem:[%s11421_s0 + $0x230] sm:$0xff] }
  0x7c   :  { %v773_v62 = vadd.f32 %v645_v52, %v389_v48  ;;  %v648_v0 = vmul.f32 0.001, %v520_v58  ;;  %v383_v3 = vmul.f32 0.999, %v255_v59  ;;  %v391_v4 = vmul.f32 0.999, %v263_v1 }
  0x7d   :  { %1443 = vmatprep.subr.bf16.mxu0 %v1134_v55  ;;  %v519_v5 = vld [vmem:[%s11421_s0 + $0x270] sm:$0xff]  ;;  %v7706_v6 = vld [vmem:[%s11422_s30 + $0x28] sm:$0xff]   ;;  %893 = vst [vmem:[#allocation3 + $0x220] sm:$0xff] %v765_v60  ;;  %v768_v9 = vadd.f32 %v640_v63, %v384_v56  ;;  %v639_v12 = vmul.f32 0.001, %v511_v2  ;;  %v269_v22 = vld [vmem:[%s11284_s2 + $0x2a0] sm:$0xff] }
  0x7e   :  { %901 = vst [vmem:[#allocation3 + $0x260] sm:$0xff] %v773_v62  ;;  %v1133_v8 = vpack.c.bf16 %v773_v62, %v765_v60  ;;  %v776_v10 = vadd.f32 %v648_v0, %v392_v57  ;;  %v647_v13 = vmul.f32 0.001, %v519_v5  ;;  %v270_v14 = vld [vmem:[%s11284_s2 + $0x2a8] sm:$0xff]  ;;  %1292 = vmatmul.mubr.bf16.gmra.mrb[20].mxu0 %v7706_v6  ;;  %v277_v26 = vld [vmem:[%s11284_s2 + $0x2e0] sm:$0xff]  ;;  %v272_v32 = vld [vmem:[%s11284_s2 + $0x2b8] sm:$0xff] }
  0x7f   :  { %v278_v15 = vld [vmem:[%s11284_s2 + $0x2e8] sm:$0xff]  ;;  %896 = vst [vmem:[#allocation3 + $0x238] sm:$0xff] %v768_v9  ;;  %v767_v18 = vadd.f32 %v639_v12, %v383_v3  ;;  %v398_v19 = vmul.f32 0.999, %v270_v14  ;;  %v525_v27 = vld [vmem:[%s11421_s0 + $0x2a0] sm:$0xff]  ;;  %1301 = vmatprep.mubr.bf16.mxu0 %v6939_v7  ;;  %v280_v37 = vld [vmem:[%s11284_s2 + $0x2f8] sm:$0xff] }
  0x80   :  { %v526_v16 = vld [vmem:[%s11421_s0 + $0x2a8] sm:$0xff]  ;;  %1444 = vmatpush1.bf16.msra.mxu0 %v1133_v8  ;;  %904 = vst [vmem:[#allocation3 + $0x278] sm:$0xff] %v776_v10  ;;  %v1136_v17 = vpack.c.bf16 %v776_v10, %v768_v9  ;;  %v406_v20 = vmul.f32 0.999, %v278_v15  ;;  %v775_v23 = vadd.f32 %v647_v13, %v391_v4  ;;  %1405 = vmatmul.mubr.bf16.gmra.mrb[20].mxu1 %v7706_v6  ;;  %v397_v29 = vmul.f32 0.999, %v269_v22 }
  0x81   :  { %v534_v21 = vld [vmem:[%s11421_s0 + $0x2e8] sm:$0xff]  ;;  %v654_v24 = vmul.f32 0.001, %v526_v16  ;;  %895 = vst [vmem:[#allocation3 + $0x230] sm:$0xff] %v767_v18  ;;  %v405_v30 = vmul.f32 0.999, %v277_v26  ;;  %1414 = vmatprep.mubr.bf16.mxu1 %v6939_v7 }
  0x82   :  { %v662_v25 = vmul.f32 0.001, %v534_v21  ;;  %1556 = vmatprep.subr.bf16.mxu1 %v1136_v17  ;;  %v533_v31 = vld [vmem:[%s11421_s0 + $0x2e0] sm:$0xff]  ;;  %903 = vst [vmem:[#allocation3 + $0x270] sm:$0xff] %v775_v23  ;;  %v1135_v33 = vpack.c.bf16 %v775_v23, %v767_v18  ;;  %v653_v36 = vmul.f32 0.001, %v525_v27 }
  0x83   :  { %v782_v34 = vadd.f32 %v654_v24, %v398_v19  ;;  %v528_v38 = vld [vmem:[%s11421_s0 + $0x2b8] sm:$0xff]  ;;  %v661_v41 = vmul.f32 0.001, %v533_v31  ;;  %v400_v42 = vmul.f32 0.999, %v272_v32  ;;  %v271_v48 = vld [vmem:[%s11284_s2 + $0x2b0] sm:$0xff] }
  0x84   :  { %v790_v35 = vadd.f32 %v662_v25, %v406_v20  ;;  %v536_v40 = vld [vmem:[%s11421_s0 + $0x2f8] sm:$0xff]  ;;  %v408_v43 = vmul.f32 0.999, %v280_v37  ;;  %1557 = vmatpush1.bf16.msra.mxu1 %v1135_v33  ;;  %v781_v45 = vadd.f32 %v653_v36, %v397_v29  ;;  %v656_v46 = vmul.f32 0.001, %v528_v38  ;;  %v279_v49 = vld [vmem:[%s11284_s2 + $0x2f0] sm:$0xff] }
  0x85   :  { %910 = vst [vmem:[#allocation3 + $0x2a8] sm:$0xff] %v782_v34  ;;  %v664_v47 = vmul.f32 0.001, %v536_v40  ;;  %v789_v50 = vadd.f32 %v661_v41, %v405_v30  ;;  %v399_v51 = vmul.f32 0.999, %v271_v48  ;;  %v527_v53 = vld [vmem:[%s11421_s0 + $0x2b0] sm:$0xff] }
  0x86   :  { %918 = vst [vmem:[#allocation3 + $0x2e8] sm:$0xff] %v790_v35  ;;  %v1142_v44 = vpack.c.bf16 %v790_v35, %v782_v34  ;;  %v407_v52 = vmul.f32 0.999, %v279_v49  ;;  %v535_v54 = vld [vmem:[%s11421_s0 + $0x2f0] sm:$0xff]  ;;  %909 = vst [vmem:[#allocation3 + $0x2a0] sm:$0xff] %v781_v45  ;;  %v784_v55 = vadd.f32 %v656_v46, %v400_v42  ;;  %v286_v62 = vld [vmem:[%s11284_s2 + $0x328] sm:$0xff] }
  0x87   :  { %v792_v56 = vadd.f32 %v664_v47, %v408_v43  ;;  %v655_v57 = vmul.f32 0.001, %v527_v53  ;;  %v663_v58 = vmul.f32 0.001, %v535_v54  ;;  %917 = vst [vmem:[#allocation3 + $0x2e0] sm:$0xff] %v789_v50  ;;  %v1141_v59 = vpack.c.bf16 %v789_v50, %v781_v45  ;;  %v7763_v60 = vld [vmem:[%s11422_s30 + $0x30] sm:$0xff]  }
  0x88   :  { %1445 = vmatprep.subr.bf16.mxu0 %v1142_v44  ;;  %912 = vst [vmem:[#allocation3 + $0x2b8] sm:$0xff] %v784_v55  ;;  %v294_v2 = vld [vmem:[%s11284_s2 + $0x368] sm:$0xff]  ;;  %v414_v3 = vmul.f32 0.999, %v286_v62  ;;  %1415 = vmatmul.mubr.bf16.gmra.mrb[24].mxu1 %v7763_v60  ;;  %v285_v13 = vld [vmem:[%s11284_s2 + $0x320] sm:$0xff]  ;;  %v288_v21 = vld [vmem:[%s11284_s2 + $0x338] sm:$0xff] }
  0x89   :  { %920 = vst [vmem:[#allocation3 + $0x2f8] sm:$0xff] %v792_v56  ;;  %v1144_v63 = vpack.c.bf16 %v792_v56, %v784_v55  ;;  %v783_v0 = vadd.f32 %v655_v57, %v399_v51  ;;  %v791_v1 = vadd.f32 %v663_v58, %v407_v52  ;;  %v542_v4 = vld [vmem:[%s11421_s0 + $0x328] sm:$0xff]  ;;  %1446 = vmatpush1.bf16.msra.mxu0 %v1141_v59  ;;  %v422_v8 = vmul.f32 0.999, %v294_v2  ;;  %v293_v14 = vld [vmem:[%s11284_s2 + $0x360] sm:$0xff]  ;;  %v296_v24 = vld [vmem:[%s11284_s2 + $0x378] sm:$0xff] }
  0x8a   :  { %v550_v5 = vld [vmem:[%s11421_s0 + $0x368] sm:$0xff]  ;;  %v670_v9 = vmul.f32 0.001, %v542_v4  ;;  %1302 = vmatmul.mubr.bf16.gmra.mrb[24].mxu0 %v7763_v60  ;;  %v541_v15 = vld [vmem:[%s11421_s0 + $0x320] sm:$0xff]  ;;  %v413_v18 = vmul.f32 0.999, %v285_v13  ;;  %1424 = vmatprep.mubr.bf16.mxu1 %v6939_v7 }
  0x8b   :  { %v678_v10 = vmul.f32 0.001, %v550_v5  ;;  %1558 = vmatprep.subr.bf16.mxu1 %v1144_v63  ;;  %911 = vst [vmem:[#allocation3 + $0x2b0] sm:$0xff] %v783_v0  ;;  %919 = vst [vmem:[#allocation3 + $0x2f0] sm:$0xff] %v791_v1  ;;  %v1143_v12 = vpack.c.bf16 %v791_v1, %v783_v0  ;;  %v421_v19 = vmul.f32 0.999, %v293_v14  ;;  %1311 = vmatprep.mubr.bf16.mxu0 %v6939_v7 }
  0x8c   :  { %v798_v16 = vadd.f32 %v670_v9, %v414_v3  ;;  %v549_v20 = vld [vmem:[%s11421_s0 + $0x360] sm:$0xff]  ;;  %v669_v22 = vmul.f32 0.001, %v541_v15  ;;  %v544_v25 = vld [vmem:[%s11421_s0 + $0x338] sm:$0xff]  ;;  %v416_v27 = vmul.f32 0.999, %v288_v21 }
  0x8d   :  { %v806_v17 = vadd.f32 %v678_v10, %v422_v8  ;;  %1559 = vmatpush1.bf16.msra.mxu1 %v1143_v12  ;;  %v677_v23 = vmul.f32 0.001, %v549_v20  ;;  %v424_v29 = vmul.f32 0.999, %v296_v24  ;;  %v552_v30 = vld [vmem:[%s11421_s0 + $0x378] sm:$0xff]  ;;  %v287_v31 = vld [vmem:[%s11284_s2 + $0x330] sm:$0xff] }
  0x8e   :  { %926 = vst [vmem:[#allocation3 + $0x328] sm:$0xff] %v798_v16  ;;  %v797_v32 = vadd.f32 %v669_v22, %v413_v18  ;;  %v672_v34 = vmul.f32 0.001, %v544_v25  ;;  %v680_v35 = vmul.f32 0.001, %v552_v30  ;;  %v295_v36 = vld [vmem:[%s11284_s2 + $0x370] sm:$0xff] }
  0x8f   :  { %934 = vst [vmem:[#allocation3 + $0x368] sm:$0xff] %v806_v17  ;;  %v1150_v26 = vpack.c.bf16 %v806_v17, %v798_v16  ;;  %v805_v33 = vadd.f32 %v677_v23, %v421_v19  ;;  %v543_v37 = vld [vmem:[%s11421_s0 + $0x330] sm:$0xff]  ;;  %v415_v38 = vmul.f32 0.999, %v287_v31  ;;  %v423_v40 = vmul.f32 0.999, %v295_v36 }
  0x90   :  { %v551_v41 = vld [vmem:[%s11421_s0 + $0x370] sm:$0xff]  ;;  %v7820_v42 = vld [vmem:[%s11422_s30 + $0x38] sm:$0xff]   ;;  %925 = vst [vmem:[#allocation3 + $0x320] sm:$0xff] %v797_v32  ;;  %v800_v44 = vadd.f32 %v672_v34, %v416_v27  ;;  %v808_v45 = vadd.f32 %v680_v35, %v424_v29  ;;  %v671_v46 = vmul.f32 0.001, %v543_v37  ;;  %v302_v48 = vld [vmem:[%s11284_s2 + $0x3a8] sm:$0xff] }
  0x91   :  { %1447 = vmatprep.subr.bf16.mxu0 %v1150_v26  ;;  %933 = vst [vmem:[#allocation3 + $0x360] sm:$0xff] %v805_v33  ;;  %v1149_v43 = vpack.c.bf16 %v805_v33, %v797_v32  ;;  %v679_v47 = vmul.f32 0.001, %v551_v41  ;;  %1425 = vmatmul.mubr.bf16.gmra.mrb[28].mxu1 %v7820_v42  ;;  %v310_v49 = vld [vmem:[%s11284_s2 + $0x3e8] sm:$0xff]  ;;  %v430_v53 = vmul.f32 0.999, %v302_v48 }
  0x92   :  { %v558_v50 = vld [vmem:[%s11421_s0 + $0x3a8] sm:$0xff]  ;;  %928 = vst [vmem:[#allocation3 + $0x338] sm:$0xff] %v800_v44  ;;  %936 = vst [vmem:[#allocation3 + $0x378] sm:$0xff] %v808_v45  ;;  %v1152_v51 = vpack.c.bf16 %v808_v45, %v800_v44  ;;  %v799_v52 = vadd.f32 %v671_v46, %v415_v38  ;;  %v438_v54 = vmul.f32 0.999, %v310_v49  ;;  %v301_v56 = vld [vmem:[%s11284_s2 + $0x3a0] sm:$0xff]  ;;  %1580 = vmatprep.mubr.bf16.mxu1 %v6939_v7  ;;  %1312 = vmatmul.mubr.bf16.gmra.mrb[28].mxu0 %v7820_v42 }
  0x93   :  { %1448 = vmatpush1.bf16.msra.mxu0 %v1149_v43  ;;  %v566_v55 = vld [vmem:[%s11421_s0 + $0x3e8] sm:$0xff]  ;;  %v807_v57 = vadd.f32 %v679_v47, %v423_v40  ;;  %v686_v58 = vmul.f32 0.001, %v558_v50  ;;  %v309_v62 = vld [vmem:[%s11284_s2 + $0x3e0] sm:$0xff]  ;;  %v429_v0 = vmul.f32 0.999, %v301_v56  ;;  %1467 = vmatprep.mubr.bf16.mxu0 %v6939_v7 }
  0x94   :  { %v694_v59 = vmul.f32 0.001, %v566_v55  ;;  %v557_v63 = vld [vmem:[%s11421_s0 + $0x3a0] sm:$0xff]  ;;  %1560 = vmatprep.subr.bf16.mxu1 %v1152_v51  ;;  %927 = vst [vmem:[#allocation3 + $0x330] sm:$0xff] %v799_v52  ;;  %v437_v1 = vmul.f32 0.999, %v309_v62 }
  0x95   :  { %v565_v2 = vld [vmem:[%s11421_s0 + $0x3e0] sm:$0xff]  ;;  %v304_v3 = vld [vmem:[%s11284_s2 + $0x3b8] sm:$0xff]  ;;  %935 = vst [vmem:[#allocation3 + $0x370] sm:$0xff] %v807_v57  ;;  %v1151_v4 = vpack.c.bf16 %v807_v57, %v799_v52  ;;  %v814_v5 = vadd.f32 %v686_v58, %v430_v53  ;;  %v685_v9 = vmul.f32 0.001, %v557_v63  ;;  %v303_v21 = vld [vmem:[%s11284_s2 + $0x3b0] sm:$0xff] }
  0x96   :  { %v822_v8 = vadd.f32 %v694_v59, %v438_v54  ;;  %v312_v10 = vld [vmem:[%s11284_s2 + $0x3f8] sm:$0xff]  ;;  %v693_v14 = vmul.f32 0.001, %v565_v2  ;;  %v432_v15 = vmul.f32 0.999, %v304_v3  ;;  %v311_v22 = vld [vmem:[%s11284_s2 + $0x3f0] sm:$0xff] }
  0x97   :  { %v560_v12 = vld [vmem:[%s11421_s0 + $0x3b8] sm:$0xff]  ;;  %v440_v16 = vmul.f32 0.999, %v312_v10  ;;  %1561 = vmatpush1.bf16.msra.mxu1 %v1151_v4  ;;  %942 = vst [vmem:[#allocation3 + $0x3a8] sm:$0xff] %v814_v5  ;;  %v813_v18 = vadd.f32 %v685_v9, %v429_v0  ;;  %v431_v24 = vmul.f32 0.999, %v303_v21 }
  0x98   :  { %v568_v13 = vld [vmem:[%s11421_s0 + $0x3f8] sm:$0xff]  ;;  %950 = vst [vmem:[#allocation3 + $0x3e8] sm:$0xff] %v822_v8  ;;  %v1158_v17 = vpack.c.bf16 %v822_v8, %v814_v5  ;;  %v688_v19 = vmul.f32 0.001, %v560_v12  ;;  %v821_v23 = vadd.f32 %v693_v14, %v437_v1  ;;  %v439_v25 = vmul.f32 0.999, %v311_v22 }
  0x99   :  { %v696_v20 = vmul.f32 0.001, %v568_v13  ;;  %v559_v26 = vld [vmem:[%s11421_s0 + $0x3b0] sm:$0xff]  ;;  %941 = vst [vmem:[#allocation3 + $0x3a0] sm:$0xff] %v813_v18  ;;  %v6755_v34 = vld [vmem:[%s11288_s6 + $0x40] sm:$0xff]   ;;  %v6914_v44 = vld [vmem:[%s11422_s30 + $0x8] sm:$0xff]  }
  0x9a   :  { %v567_v27 = vld [vmem:[%s11421_s0 + $0x3f0] sm:$0xff]  ;;  %1449 = vmatprep.subr.bf16.mxu0 %v1158_v17  ;;  %v816_v29 = vadd.f32 %v688_v19, %v432_v15  ;;  %v687_v31 = vmul.f32 0.001, %v559_v26  ;;  %949 = vst [vmem:[#allocation3 + $0x3e0] sm:$0xff] %v821_v23  ;;  %v1157_v33 = vpack.c.bf16 %v821_v23, %v813_v18  ;;  %v6756_v38 = vld [vmem:[%s11288_s6] sm:$0xff]  }
  0x9b   :  { %v824_v30 = vadd.f32 %v696_v20, %v440_v16  ;;  %v695_v32 = vmul.f32 0.001, %v567_v27  ;;  %v6757_v40 = vld [vmem:[%s11288_s6 + $0xc0] sm:$0xff]  }
  0x9c   :  { %944 = vst [vmem:[#allocation3 + $0x3b8] sm:$0xff] %v816_v29  ;;  %v815_v36 = vadd.f32 %v687_v31, %v431_v24  ;;  %1450 = vmatpush1.bf16.msra.mxu0 %v1157_v33  ;;  %v6913_v43 = vld [vmem:[%s11422_s30] sm:$0xff]  }
  0x9d   :  { %952 = vst [vmem:[#allocation3 + $0x3f8] sm:$0xff] %v824_v30  ;;  %v1160_v35 = vpack.c.bf16 %v824_v30, %v816_v29  ;;  %v823_v37 = vadd.f32 %v695_v32, %v439_v25  ;;  %6232 = vmatprep.subr.bf16.mxu0 %v6755_v34 }
  0x9e   :  { %943 = vst [vmem:[#allocation3 + $0x3b0] sm:$0xff] %v815_v36 }
  0x9f   :  { %1562 = vmatprep.subr.bf16.mxu1 %v1160_v35  ;;  %951 = vst [vmem:[#allocation3 + $0x3f0] sm:$0xff] %v823_v37  ;;  %v1159_v41 = vpack.c.bf16 %v823_v37, %v815_v36  ;;  %1468 = vmatmul.mubr.bf16.vlgmr.msra.gmra.mrb[32].mxu0 %v6913_v43 }
  0xa0   :  { %1477 = vmatprep.mubr.bf16.mxu0 %v6939_v7  ;;  %6233 = vmatpush3.bf16.msra.mxu0 %v6756_v38 }
  0xa1   :  { %1563 = vmatpush1.bf16.msra.mxu1 %v1159_v41 }
  0xa2   :  { %6296 = vmatprep.subr.bf16.mxu1 %v6757_v40 }
  0xa4   :  { %1581 = vmatmul.mubr.bf16.vlgmr.msra.gmra.mrb[32].mxu1 %v6913_v43 }
  0xa5   :  { %1590 = vmatprep.mubr.bf16.mxu1 %v6939_v7 }
  0xa7   :  { %1478 = vmatmul.mubr.bf16.gmra.mrb[36].mxu0 %v7477_v11 }
  0xa8   :  { %1487 = vmatprep.mubr.bf16.mxu0 %v6939_v7 }
  0xac   :  { %1591 = vmatmul.mubr.bf16.gmra.mrb[36].mxu1 %v6914_v44 }
  0xad   :  { %1600 = vmatprep.mubr.bf16.mxu1 %v6939_v7 }
  0xaf   :  { %1488 = vmatmul.mubr.bf16.gmra.mrb[40].mxu0 %v7535_v61 }
  0xb0   :  { %1497 = vmatprep.mubr.bf16.mxu0 %v6939_v7 }
  0xb4   :  { %1601 = vmatmul.mubr.bf16.gmra.mrb[40].mxu1 %v7535_v61 }
  0xb5   :  { %1610 = vmatprep.mubr.bf16.mxu1 %v6939_v7 }
  0xb7   :  { %1498 = vmatmul.mubr.bf16.gmra.mrb[44].mxu0 %v7592_v39 }
  0xb8   :  { %1507 = vmatprep.mubr.bf16.mxu0 %v6939_v7 }
  0xbc   :  { %1611 = vmatmul.mubr.bf16.gmra.mrb[44].mxu1 %v7592_v39 }
  0xbd   :  { %1620 = vmatprep.mubr.bf16.mxu1 %v6939_v7 }
  0xbf   :  { %1508 = vmatmul.mubr.bf16.gmra.mrb[48].mxu0 %v7649_v28 }
  0xc0   :  { %1517 = vmatprep.mubr.bf16.mxu0 %v6939_v7 }
  0xc4   :  { %1621 = vmatmul.mubr.bf16.gmra.mrb[48].mxu1 %v7649_v28 }
  0xc5   :  { %1630 = vmatprep.mubr.bf16.mxu1 %v6939_v7 }
  0xc7   :  { %1518 = vmatmul.mubr.bf16.gmra.mrb[52].mxu0 %v7706_v6 }
  0xc8   :  { %1527 = vmatprep.mubr.bf16.mxu0 %v6939_v7 }
  0xcc   :  { %1631 = vmatmul.mubr.bf16.gmra.mrb[52].mxu1 %v7706_v6 }
  0xcd   :  { %1640 = vmatprep.mubr.bf16.mxu1 %v6939_v7 }
  0xce   :  { %23 = vsyncpa [#allocation4], 0  ;;  %v6758_v11 = vld [vmem:[%s11288_s6 + $0x80] sm:$0xff]   ;;  %v6759_v61 = vld [vmem:[%s11288_s6 + $0x48] sm:$0xff]   ;;  %v2083_v4 = vlaneseq }
  0xcf   :  { %1528 = vmatmul.mubr.bf16.gmra.mrb[56].mxu0 %v7763_v60  ;;  %6297 = vmatpush3.bf16.msra.mxu1 %v6758_v11  ;;  %v6761_v39 = vld [vmem:[%s11288_s6 + $0xc8] sm:$0xff]   ;;  %v6764_v45 = vld [vmem:[%s11288_s6 + $0x10] sm:$0xff]   ;;  %v6767_v47 = vld [vmem:[%s11288_s6 + $0x58] sm:$0xff]  }
  0xd0   :  { %1537 = vmatprep.mubr.bf16.mxu0 %v6939_v7  ;;  %v6760_v28 = vld [vmem:[%s11288_s6 + $0x8] sm:$0xff]   ;;  %6234 = vmatprep.subr.bf16.mxu0 %v6759_v61  ;;  %v6766_v46 = vld [vmem:[%s11288_s6 + $0x90] sm:$0xff]   ;;  %v6769_v48 = vld [vmem:[%s11288_s6 + $0xd8] sm:$0xff]   ;;  %v2084_v8 = vshrl.u32 %v2083_v4, 7 }
  0xd1   :  { %v6762_v6 = vld [vmem:[%s11288_s6 + $0x88] sm:$0xff]   ;;  %6298 = vmatprep.subr.bf16.mxu1 %v6761_v39  ;;  %6235 = vmatpush3.bf16.msra.mxu0 %v6760_v28  ;;  %v6768_v49 = vld [vmem:[%s11288_s6 + $0x18] sm:$0xff]   ;;  %v6771_v50 = vld [vmem:[%s11288_s6 + $0x60] sm:$0xff]  }
  0xd2   :  { %v6773_v51 = vld [vmem:[%s11288_s6 + $0xe0] sm:$0xff]   ;;  %v6775_v54 = vld [vmem:[%s11288_s6 + $0x68] sm:$0xff]   ;;  %v6779_v58 = vld [vmem:[%s11288_s6 + $0x70] sm:$0xff]   ;;  %v2085_v10 = vsub.s32 0, %v2084_v8  ;;  %v2089_v13 = vsub.s32 1, %v2084_v8  ;;  %v2093_v14 = vsub.s32 2, %v2084_v8 }
  0xd3   :  { %6299 = vmatpush3.bf16.msra.mxu1 %v6762_v6  ;;  %v6772_v52 = vld [vmem:[%s11288_s6 + $0x20] sm:$0xff]   ;;  %v6777_v55 = vld [vmem:[%s11288_s6 + $0xe8] sm:$0xff]   ;;  %v6781_v59 = vld [vmem:[%s11288_s6 + $0xf0] sm:$0xff]   ;;  %v2097_v15 = vsub.s32 3, %v2084_v8 }
  0xd4   :  { %1641 = vmatmul.mubr.bf16.gmra.mrb[56].mxu1 %v7763_v60  ;;  %v6765_v60 = vld [vmem:[%s11288_s6 + $0xd0] sm:$0xff]   ;;  %v6774_v53 = vld [vmem:[%s11288_s6 + $0xa0] sm:$0xff]   ;;  %v6776_v56 = vld [vmem:[%s11288_s6 + $0x28] sm:$0xff]  }
  0xd5   :  { %1650 = vmatprep.mubr.bf16.mxu1 %v6939_v7  ;;  %v6763_v7 = vld [vmem:[%s11288_s6 + $0x50] sm:$0xff]   ;;  %6300 = vmatprep.subr.bf16.mxu1 %v6765_v60  ;;  %v6778_v57 = vld [vmem:[%s11288_s6 + $0xa8] sm:$0xff]   ;;  %v6783_v0 = vld [vmem:[%s11288_s6 + $0x78] sm:$0xff]  }
  0xd6   :  { %6236 = vmatprep.subr.bf16.mxu0 %v6763_v7  ;;  %v6780_v62 = vld [vmem:[%s11288_s6 + $0x30] sm:$0xff]   ;;  %v6785_v1 = vld [vmem:[%s11288_s6 + $0xf8] sm:$0xff]   ;;  %v6787_v5 = vld [vmem:[%s11288_s6 + $0x140] sm:$0xff]  }
  0xd7   :  { %1538 = vmatmul.mubr.bf16.gmra.mrb[60].mxu0 %v7820_v42  ;;  %6301 = vmatpush3.bf16.msra.mxu1 %v6766_v46  ;;  %v6782_v63 = vld [vmem:[%s11288_s6 + $0xb0] sm:$0xff]   ;;  %v6784_v2 = vld [vmem:[%s11288_s6 + $0x38] sm:$0xff]   ;;  %v6789_v9 = vld [vmem:[%s11288_s6 + $0x1c0] sm:$0xff]  }
  0xd8   :  { %6237 = vmatpush3.bf16.msra.mxu0 %v6764_v45  ;;  %6302 = vmatprep.subr.bf16.mxu1 %v6769_v48  ;;  %v6786_v3 = vld [vmem:[%s11288_s6 + $0xb8] sm:$0xff]   ;;  %v8012_v12 = vld [vmem:[%s11285_s3] sm:$0xff]  ;;  %v8068_v48 = vsub.s32 4, %v2084_v8 }
  0xd9   :  { %6238 = vmatprep.subr.bf16.mxu0 %v6767_v47  ;;  %v8015_v16 = vrot.slane %v8012_v12, %v2085_v10  ;;  %v8018_v17 = vrot.slane %v8012_v12, %v2089_v13  ;;  %v8021_v18 = vrot.slane %v8012_v12, %v2093_v14  ;;  %v8024_v20 = vrot.slane %v8012_v12, %v2097_v15  ;;  %v8039_v31 = vld [vmem:[%s11286_s4] sm:$0xff] }
  0xda   :  { %v8044_v32 = vld [vmem:[%s11287_s5] sm:$0xff]  ;;  %v8055_v44 = vrot.slane %v8039_v31, %v2085_v10  ;;  %v8062_v39 = vrot.slane %v8039_v31, %v2093_v14  ;;  %s6943_s5 = smov [#allocation3]  }
  0xdb   :  { %11423 = vst [vmem:[#allocation6_spill] sm:$0xff] %v8015_v16  ;;  %11424 = vst [vmem:[#allocation7_spill] sm:$0xff] %v8018_v17  ;;  %v8058_v11 = vrot.slane %v8044_v32, %v2085_v10  ;;  %v8065_v28 = vrot.slane %v8044_v32, %v2093_v14 }
  0xdc   :  { %1651 = vmatmul.mubr.bf16.gmra.mrb[60].mxu1 %v7820_v42  ;;  %6239 = vmatpush3.bf16.msra.mxu0 %v6768_v49  ;;  %v6770_v42 = vld [vmem:[%s11288_s6 + $0x98] sm:$0xff]   ;;  %11425 = vst [vmem:[#allocation8_spill] sm:$0xff] %v8021_v18  ;;  %v8070_v49 = vsub.s32 6, %v2084_v8 }
  0xdd   :  { %6303 = vmatpush3.bf16.msra.mxu1 %v6770_v42  ;;  %6240 = vmatprep.subr.bf16.mxu0 %v6771_v50 }
  0xde   :  { %6304 = vmatprep.subr.bf16.mxu1 %v6773_v51 }
  0xe0   :  { %6241 = vmatpush3.bf16.msra.mxu0 %v6772_v52  ;;  %v8072_v52 = vsub.s32 5, %v2084_v8 }
  0xe1   :  { %6305 = vmatpush3.bf16.msra.mxu1 %v6774_v53  ;;  %6242 = vmatprep.subr.bf16.mxu0 %v6775_v54  ;;  %v8074_v53 = vsub.s32 7, %v2084_v8  ;;  %v8090_v8 = vrot.slane %v8012_v12, %v8068_v48 }
  0xe2   :  { %6306 = vmatprep.subr.bf16.mxu1 %v6777_v55 }
  0xe3   :  { %11428 = vst [vmem:[#allocation11_spill] sm:$0xff] %v8090_v8 }
  0xe4   :  { %6243 = vmatpush3.bf16.msra.mxu0 %v6776_v56  ;;  %v8077_v56 = vrot.slane %v8039_v31, %v2089_v13 }
  0xe5   :  { %6307 = vmatpush3.bf16.msra.mxu1 %v6778_v57  ;;  %6244 = vmatprep.subr.bf16.mxu0 %v6779_v58  ;;  %v8080_v57 = vrot.slane %v8039_v31, %v2097_v15 }
  0xe6   :  { %6308 = vmatprep.subr.bf16.mxu1 %v6781_v59 }
  0xe8   :  { %6245 = vmatpush3.bf16.msra.mxu0 %v6780_v62 }
  0xe9   :  { %6309 = vmatpush3.bf16.msra.mxu1 %v6782_v63  ;;  %6246 = vmatprep.subr.bf16.mxu0 %v6783_v0  ;;  %v8083_v0 = vrot.slane %v8044_v32, %v2089_v13  ;;  %v8098_v13 = vrot.slane %v8012_v12, %v8072_v52 }
  0xea   :  { %6310 = vmatprep.subr.bf16.mxu1 %v6785_v1  ;;  %v8086_v1 = vrot.slane %v8044_v32, %v2097_v15  ;;  %v8102_v15 = vrot.slane %v8012_v12, %v8074_v53 }
  0xeb   :  { %11426 = vst [vmem:[#allocation9_spill] sm:$0xff] %v8083_v0  ;;  %11430 = vst [vmem:[#allocation13_spill] sm:$0xff] %v8098_v13 }
  0xec   :  { %6247 = vmatpush3.bf16.msra.mxu0 %v6784_v2  ;;  %11427 = vst [vmem:[#allocation10_spill] sm:$0xff] %v8086_v1  ;;  %11431 = vst [vmem:[#allocation14_spill] sm:$0xff] %v8102_v15 }
  0xed   :  { %6311 = vmatpush3.bf16.msra.mxu1 %v6786_v3  ;;  %6360 = vmatprep.subr.bf16.mxu0 %v6787_v5 }
  0xee   :  { %6424 = vmatprep.subr.bf16.mxu1 %v6789_v9  ;;  %v8094_v9 = vrot.slane %v8012_v12, %v8070_v49 }
  0xf0   :  { %11429 = vst [vmem:[#allocation12_spill] sm:$0xff] %v8094_v9 }
 0x128   :  { %v1243_v19 = vpop.f32.mrb[0].mxu0 }
 0x129   :  { %v8027_v21 = vadd.f32 %v8015_v16, %v1243_v19  ;;  %v1245_v22 = vpop.f32.mrb[1].mxu0  ;;  %v1356_v23 = vpop.f32.mrb[0].mxu1 }
 0x12a   :  { %v8030_v24 = vadd.f32 %v8018_v17, %v1245_v22  ;;  %v1247_v25 = vpop.f32.mrb[2].mxu0  ;;  %v8034_v27 = vadd.f32 %v8021_v18, %v1356_v23  ;;  %v1358_v29 = vpop.f32.mrb[1].mxu1 }
 0x12b   :  { %v2428_v26 = vrot.slane %v8027_v21, 4  ;;  %v1249_v30 = vpop.f32.mrb[3].mxu0  ;;  %v8048_v34 = vadd.f32 %v8024_v20, %v1358_v29  ;;  %v1360_v35 = vpop.f32.mrb[2].mxu1 }
 0x12c   :  { %v2449_v33 = vrot.slane %v8030_v24, 4  ;;  %v2470_v37 = vrot.slane %v8034_v27, 4  ;;  %v1362_v38 = vpop.f32.mrb[3].mxu1  ;;  %v8110_v29 = vadd.f32 %v8018_v17, %v1249_v30 }
 0x12d   :  { %v2429_v36 = vadd.f32 %v2428_v26, %v8027_v21  ;;  %v2491_v41 = vrot.slane %v8048_v34, 4  ;;  %v8107_v26 = vadd.f32 %v8015_v16, %v1247_v25 }
 0x12e   :  { %v2450_v40 = vadd.f32 %v2449_v33, %v8030_v24  ;;  %v2471_v61 = vadd.f32 %v2470_v37, %v8034_v27  ;;  %v8115_v37 = vadd.f32 %v8021_v18, %v1360_v35 }
 0x12f   :  { %v2430_v43 = vrot.slane %v2429_v36, 2  ;;  %v2492_v7 = vadd.f32 %v2491_v41, %v8048_v34 }
 0x130   :  { %v2451_v6 = vrot.slane %v2450_v40, 2  ;;  %v1253_v60 = vpop.f32.mrb[4].mxu0  ;;  %v2472_v46 = vrot.slane %v2471_v61, 2 }
 0x131   :  { %v2431_v45 = vadd.f32 %v2430_v43, %v2429_v36  ;;  %v1255_v47 = vpop.f32.mrb[5].mxu0  ;;  %v2493_v50 = vrot.slane %v2492_v7, 2  ;;  %v8127_v25 = vadd.f32 %v8015_v16, %v1253_v60 }
 0x132   :  { %v2452_v42 = vadd.f32 %v2451_v6, %v2450_v40  ;;  %v1257_v51 = vpop.f32.mrb[6].mxu0  ;;  %v2473_v55 = vadd.f32 %v2472_v46, %v2471_v61  ;;  %v1366_v58 = vpop.f32.mrb[4].mxu1  ;;  %v8118_v40 = vadd.f32 %v8024_v20, %v1362_v38  ;;  %v8130_v30 = vadd.f32 %v8018_v17, %v1255_v47 }
 0x133   :  { %v2432_v54 = vrot.slane %v2431_v45, 1  ;;  %v1259_v59 = vpop.f32.mrb[7].mxu0  ;;  %v2494_v63 = vadd.f32 %v2493_v50, %v2492_v7  ;;  %v1368_v2 = vpop.f32.mrb[5].mxu1  ;;  %v8139_v6 = vadd.f32 %v8021_v18, %v1366_v58 }
 0x134   :  { %v2453_v62 = vrot.slane %v2452_v42, 1  ;;  %v2474_v4 = vrot.slane %v2473_v55, 1  ;;  %v1370_v5 = vpop.f32.mrb[6].mxu1  ;;  %v8151_v46 = vadd.f32 %v8024_v20, %v1368_v2 }
 0x135   :  { %v2433_v3 = vadd.f32 %v2432_v54, %v2431_v45  ;;  %v2495_v14 = vrot.slane %v2494_v63, 1  ;;  %v1372_v19 = vpop.f32.mrb[7].mxu1  ;;  %11432 = vst [vmem:[#allocation15_spill] sm:$0xff] %v8139_v6  ;;  %v8163_v54 = vadd.f32 %v8021_v18, %v1370_v5 }
 0x136   :  { %v2454_v10 = vadd.f32 %v2453_v62, %v2452_v42  ;;  %v2475_v23 = vadd.f32 %v2474_v4, %v2473_v55  ;;  %11433 = vst [vmem:[#allocation16_spill] sm:$0xff] %v8151_v46 }
 0x137   :  { %v8104_v22 = vmul.f32 0.125, %v2433_v3  ;;  %v2496_v36 = vadd.f32 %v2495_v14, %v2494_v63  ;;  %11434 = vst [vmem:[#allocation17_spill] sm:$0xff] %v8163_v54 }
 0x138   :  { %v8112_v33 = vmul.f32 0.125, %v2454_v10  ;;  %v1263_v12 = vpop.f32.mrb[8].mxu0  ;;  %v8124_v43 = vmul.f32 0.125, %v2475_v23 }
 0x139   :  { %v8122_v41 = vsub.f32 %v8027_v21, %v8104_v22  ;;  %v1265_v61 = vpop.f32.mrb[9].mxu0  ;;  %v8136_v38 = vmul.f32 0.125, %v2496_v36  ;;  %v8142_v21 = vadd.f32 %v8015_v16, %v1257_v51 }
 0x13a   :  { %v8134_v35 = vsub.f32 %v8030_v24, %v8112_v33  ;;  %v1267_v7 = vpop.f32.mrb[10].mxu0  ;;  %v8148_v45 = vsub.f32 %v8034_v27, %v8124_v43  ;;  %v8154_v24 = vadd.f32 %v8018_v17, %v1259_v59  ;;  %v8166_v27 = vadd.f32 %v8024_v20, %v1372_v19 }
 0x13b   :  { %v2717_v60 = vmul.f32 %v8122_v41, %v8122_v41  ;;  %v1376_v47 = vpop.f32.mrb[8].mxu1  ;;  %v1269_v42 = vpop.f32.mrb[11].mxu0  ;;  %v8160_v51 = vsub.f32 %v8048_v34, %v8136_v38 }
 0x13c   :  { %v2718_v50 = vmul.f32 %v8134_v35, %v8134_v35  ;;  %11435 = vst [vmem:[#allocation18_spill] sm:$0xff] %v8166_v27  ;;  %v1378_v55 = vpop.f32.mrb[9].mxu1  ;;  %v2719_v59 = vmul.f32 %v8148_v45, %v8148_v45 }
 0x13d   :  { %v2988_v58 = vrot.slane %v2717_v60, 4  ;;  %v1380_v2 = vpop.f32.mrb[10].mxu1  ;;  %v2720_v3 = vmul.f32 %v8160_v51, %v8160_v51 }
 0x13e   :  { %v3009_v34 = vrot.slane %v2718_v50, 4  ;;  %v1382_v10 = vpop.f32.mrb[11].mxu1  ;;  %v3030_v19 = vrot.slane %v2719_v59, 4 }
 0x13f   :  { %v2989_v14 = vadd.f32 %v2988_v58, %v2717_v60  ;;  %v3051_v62 = vrot.slane %v2720_v3, 4 }
 0x140   :  { %v3010_v63 = vadd.f32 %v3009_v34, %v2718_v50  ;;  %v3031_v9 = vadd.f32 %v3030_v19, %v2719_v59  ;;  %v1273_v23 = vpop.f32.mrb[12].mxu0  ;;  %v8197_v59 = vadd.f32 %v8015_v16, %v1263_v12  ;;  %v8200_v19 = vadd.f32 %v8021_v18, %v1376_v47 }
 0x141   :  { %v2990_v13 = vrot.slane %v2989_v14, 2  ;;  %v3052_v8 = vadd.f32 %v3051_v62, %v2720_v3  ;;  %v1275_v36 = vpop.f32.mrb[13].mxu0  ;;  %v8203_v62 = vadd.f32 %v8018_v17, %v1265_v61  ;;  %v8206_v3 = vadd.f32 %v8024_v20, %v1378_v55 }
 0x142   :  { %v3011_v5 = vrot.slane %v3010_v63, 2  ;;  %v3032_v4 = vrot.slane %v3031_v9, 2  ;;  %11436 = vst [vmem:[#allocation19_spill] sm:$0xff] %v8197_v59  ;;  %v1277_v58 = vpop.f32.mrb[14].mxu0  ;;  %v8209_v12 = vadd.f32 %v8015_v16, %v1267_v7  ;;  %v8212_v47 = vadd.f32 %v8021_v18, %v1380_v2 }
 0x143   :  { %v2991_v15 = vadd.f32 %v2990_v13, %v2989_v14  ;;  %v1386_v60 = vpop.f32.mrb[12].mxu1  ;;  %v3053_v1 = vrot.slane %v3052_v8, 2  ;;  %v1279_v50 = vpop.f32.mrb[15].mxu0  ;;  %v8218_v61 = vadd.f32 %v8024_v20, %v1382_v10 }
 0x144   :  { %v3012_v54 = vadd.f32 %v3011_v5, %v3010_v63  ;;  %v1388_v34 = vpop.f32.mrb[13].mxu1  ;;  %v3033_v14 = vadd.f32 %v3032_v4, %v3031_v9  ;;  %v8215_v5 = vadd.f32 %v8018_v17, %v1269_v42 }
 0x145   :  { %v2992_v13 = vrot.slane %v2991_v15, 1  ;;  %v1390_v27 = vpop.f32.mrb[14].mxu1  ;;  %v3054_v63 = vadd.f32 %v3053_v1, %v3052_v8  ;;  %v8237_v8 = vadd.f32 %v8015_v16, %v1273_v23 }
 0x146   :  { %v3013_v46 = vrot.slane %v3012_v54, 1  ;;  %v1392_v55 = vpop.f32.mrb[15].mxu1  ;;  %v3034_v6 = vrot.slane %v3033_v14, 1  ;;  %v8252_v23 = vadd.f32 %v8021_v18, %v1390_v27 }
 0x147   :  { %v2993_v0 = vadd.f32 %v2992_v13, %v2991_v15  ;;  %v3055_v4 = vrot.slane %v3054_v63, 1 }
 0x148   :  { %v3014_v2 = vadd.f32 %v3013_v46, %v3012_v54  ;;  %v3035_v10 = vadd.f32 %v3034_v6, %v3033_v14  ;;  %v1283_v6 = vpop.f32.mrb[16].mxu0 }
 0x149   :  { %v3141_v42 = vmul.f32 0.125, %v2993_v0  ;;  %v3056_v59 = vadd.f32 %v3055_v4, %v3054_v63  ;;  %v8240_v0 = vadd.f32 %v8021_v18, %v1386_v60  ;;  %v8246_v63 = vadd.f32 %v8024_v20, %v1388_v34  ;;  %v1285_v46 = vpop.f32.mrb[17].mxu0 }
 0x14a   :  { %v3142_v9 = vmul.f32 0.125, %v3014_v2  ;;  %v3143_v7 = vmul.f32 0.125, %v3035_v10  ;;  %v8243_v2 = vadd.f32 %v8018_v17, %v1275_v36  ;;  %v8249_v10 = vadd.f32 %v8015_v16, %v1277_v58  ;;  %v1287_v54 = vpop.f32.mrb[18].mxu0 }
 0x14b   :  { %v3149_v1 = vadd.f32 1e-05, %v3141_v42  ;;  %v3144_v15 = vmul.f32 0.125, %v3056_v59  ;;  %v1396_v4 = vpop.f32.mrb[16].mxu1  ;;  %v8255_v36 = vadd.f32 %v8018_v17, %v1279_v50  ;;  %v8258_v34 = vadd.f32 %v8024_v20, %v1392_v55  ;;  %v1289_v13 = vpop.f32.mrb[19].mxu0 }
 0x14c   :  { %v3150_v14 = vadd.f32 1e-05, %v3142_v9  ;;  %v3151_v42 = vadd.f32 1e-05, %v3143_v7  ;;  %v1398_v60 = vpop.f32.mrb[17].mxu1  ;;  %v8261_v7 = vadd.f32 %v8015_v16, %v1283_v6  ;;  %v8264_v58 = vadd.f32 %v8021_v18, %v1396_v4 }
 0x14d   :  { %6827 = vrsqrt.f32 %v3149_v1  ;;  %v3152_v59 = vadd.f32 1e-05, %v3144_v15  ;;  %v1400_v9 = vpop.f32.mrb[18].mxu1  ;;  %v8267_v27 = vadd.f32 %v8018_v17, %v1285_v46  ;;  %v8270_v50 = vadd.f32 %v8024_v20, %v1398_v60 }
 0x14e   :  { %6829 = vrsqrt.f32 %v3150_v14  ;;  %11437 = vst [vmem:[#allocation20_spill] sm:$0xff] %v8261_v7  ;;  %v1402_v1 = vpop.f32.mrb[19].mxu1  ;;  %v8273_v55 = vadd.f32 %v8015_v16, %v1287_v54  ;;  %v8276_v15 = vadd.f32 %v8021_v18, %v1400_v9  ;;  %v8285_v4 = vadd.f32 %v8018_v17, %v1289_v13 }
 0x14f   :  { %6831 = vrsqrt.f32 %v3151_v42  ;;  %v8316_v42 = vrot.slane %v8039_v31, %v8068_v48  ;;  %v8320_v60 = vrot.slane %v8044_v32, %v8068_v48  ;;  %v8330_v13 = vrot.slane %v8044_v32, %v8070_v49 }
 0x150   :  { %6833 = vrsqrt.f32 %v3152_v59  ;;  %11438 = vst [vmem:[#allocation21_spill] sm:$0xff] %v8276_v15  ;;  %v8294_v59 = vadd.f32 %v8024_v20, %v1402_v1  ;;  %v8324_v1 = vrot.slane %v8039_v31, %v8070_v49  ;;  %v8338_v48 = vrot.slane %v8039_v31, %v8074_v53 }
 0x151   :  { %v1293_v14 = vpop.f32.mrb[20].mxu0  ;;  %11440 = vst [vmem:[#allocation23_spill] sm:$0xff] %v8316_v42  ;;  %11441 = vst [vmem:[#allocation24_spill] sm:$0xff] %v8320_v60  ;;  %v8334_v42 = vrot.slane %v8039_v31, %v8072_v52  ;;  %v8358_v31 = vrot.slane %v8044_v32, %v8074_v53 }
 0x152   :  { %11439 = vst [vmem:[#allocation22_spill] sm:$0xff] %v8294_v59  ;;  %v1295_v6 = vpop.f32.mrb[21].mxu0  ;;  %11442 = vst [vmem:[#allocation25_spill] sm:$0xff] %v8324_v1  ;;  %v8343_v1 = vadd.f32 %v8015_v16, %v1293_v14 }
 0x153   :  { %v1406_v46 = vpop.f32.mrb[20].mxu1  ;;  %v1297_v54 = vpop.f32.mrb[22].mxu0  ;;  %11443 = vst [vmem:[#allocation26_spill] sm:$0xff] %v8330_v13  ;;  %11444 = vst [vmem:[#allocation27_spill] sm:$0xff] %v8334_v42  ;;  %v8354_v13 = vrot.slane %v8044_v32, %v8072_v52 }
 0x154   :  { %v1408_v7 = vpop.f32.mrb[21].mxu1  ;;  %11445 = vst [vmem:[#allocation28_spill] sm:$0xff] %v8338_v48  ;;  %v8346_v9 = vadd.f32 %v8021_v18, %v1406_v46  ;;  %v8348_v59 = vpop.f32.mrb[23].mxu0  ;;  %11449 = vst [vmem:[#allocation32_spill] sm:$0xff] %v8358_v31  ;;  %v11450_v46 = vsub.f32 %v8107_v26, %v8104_v22  ;;  %v11454_v26 = vsub.f32 %v8130_v30, %v8112_v33 }
 0x155   :  { %v1410_v15 = vpop.f32.mrb[22].mxu1  ;;  %11446 = vst [vmem:[#allocation29_spill] sm:$0xff] %v8348_v59  ;;  %11448 = vst [vmem:[#allocation31_spill] sm:$0xff] %v8354_v13  ;;  %v11452_v13 = vsub.f32 %v8142_v21, %v8104_v22  ;;  %v8391_v21 = vadd.f32 %v8018_v17, %v1295_v6  ;;  %v11456_v30 = vsub.f32 %v8115_v37, %v8124_v43 }
 0x156   :  { %v8350_v49 = vpop.f32.mrb[23].mxu1 }
 0x157   :  { %v8340_v60 = vpop.eup %6827  ;;  %11447 = vst [vmem:[#allocation30_spill] sm:$0xff] %v8350_v49  ;;  %v11451_v49 = vsub.f32 %v8127_v25, %v8104_v22  ;;  %v11455_v25 = vsub.f32 %v8154_v24, %v8112_v33 }
 0x158   :  { %v8360_v48 = vpop.eup %6829  ;;  %v3165_v14 = vmul.f32 %v8340_v60, %v8122_v41  ;;  %v3173_v42 = vmul.f32 %v8340_v60, %v11450_v46  ;;  %v3189_v32 = vmul.f32 %v8340_v60, %v11452_v13  ;;  %v11453_v41 = vsub.f32 %v8110_v29, %v8112_v33 }
 0x159   :  { %v3181_v52 = vmul.f32 %v8340_v60, %v11451_v49  ;;  %v8376_v53 = vpop.eup %6831  ;;  %v3182_v46 = vmul.f32 %v8360_v48, %v11454_v26  ;;  %v3190_v49 = vmul.f32 %v8360_v48, %v11455_v25  ;;  %v3166_v24 = vmul.f32 %v8360_v48, %v8134_v35 }
 0x15a   :  { %v3174_v31 = vmul.f32 %v8360_v48, %v11453_v41  ;;  %v8393_v13 = vpop.eup %6833  ;;  %v3334_v59 = vmul.f32 %v8055_v44, %v3165_v14  ;;  %v3167_v29 = vmul.f32 %v8376_v53, %v8148_v45  ;;  %v3342_v41 = vmul.f32 %v8055_v44, %v3173_v42 }
 0x15b   :  { %v3175_v26 = vmul.f32 %v8376_v53, %v11456_v30  ;;  %v3168_v6 = vmul.f32 %v8393_v13, %v8160_v51  ;;  %v11457_v25 = vsub.f32 %v8118_v40, %v8136_v38  ;;  %v8412_v45 = vadd.f32 %v8024_v20, %v1408_v7 }
 0x15c   :  { %v8415_v42 = vadd.f32 %v8058_v11, %v3334_v59  ;;  %v3336_v37 = vmul.f32 %v8062_v39, %v3167_v29  ;;  %v3343_v35 = vmul.f32 %v8077_v56, %v3174_v31  ;;  %v8421_v17 = vadd.f32 %v8058_v11, %v3342_v41 }
 0x15d   :  { %v3176_v14 = vmul.f32 %v8393_v13, %v11457_v25  ;;  %v3344_v30 = vmul.f32 %v8062_v39, %v3175_v26  ;;  %v8428_v25 = vpop.f32.mrb[24].mxu1  ;;  %v3350_v29 = vmul.f32 %v8055_v44, %v3181_v52  ;;  %v8435_v31 = vadd.f32 %v8015_v16, %v1297_v54  ;;  %v8440_v26 = vpop.f32.mrb[24].mxu0 }
 0x15e   :  { %11458 = vst [vmem:[#allocation33_spill] sm:$0xff] %v8415_v42  ;;  %11459 = vst [vmem:[#allocation34_spill] sm:$0xff] %v8421_v17  ;;  %v8431_v59 = vadd.f32 %v8065_v28, %v3336_v37  ;;  %v8438_v41 = vadd.f32 %v8021_v18, %v1410_v15  ;;  %v8446_v7 = vmul.f32 %v8080_v57, %v3168_v6  ;;  %v11464_v37 = vld [vmem:[#allocation15_spill] sm:$0xff]  ;;  %v8457_v15 = vpop.f32.mrb[25].mxu1  ;;  %v8460_v18 = vmul.f32 0.01, %v8415_v42 }
 0x15f   :  { %v3345_v51 = vmul.f32 %v8080_v57, %v3176_v14  ;;  %11460 = vst [vmem:[#allocation35_spill] sm:$0xff] %v8428_v25  ;;  %v8443_v14 = vmul.f32 %v8077_v56, %v3166_v24  ;;  %v8449_v40 = vadd.f32 %v8065_v28, %v3344_v30  ;;  %v11465_v52 = vsub.f32 %v11464_v37, %v8124_v43  ;;  %v8455_v25 = vpop.f32.mrb[25].mxu0  ;;  %v11469_v24 = vld [vmem:[#allocation9_spill] sm:$0xff] }
 0x160   :  { %11461 = vst [vmem:[#allocation36_spill] sm:$0xff] %v8431_v59  ;;  %11463 = vst [vmem:[#allocation38_spill] sm:$0xff] %v8446_v7  ;;  %v3351_v6 = vmul.f32 %v8077_v56, %v3182_v46  ;;  %v11471_v7 = vld [vmem:[#allocation16_spill] sm:$0xff]  ;;  %v8470_v37 = vpop.f32.mrb[26].mxu0 }
 0x161   :  { %11462 = vst [vmem:[#allocation37_spill] sm:$0xff] %v8443_v14  ;;  %v3183_v54 = vmul.f32 %v8376_v53, %v11465_v52  ;;  %11466 = vst [vmem:[#allocation15_spill] sm:$0xff] %v8455_v25  ;;  %v8463_v14 = vadd.f32 %v11469_v24, %v3343_v35  ;;  %v11472_v30 = vsub.f32 %v11471_v7, %v8136_v38  ;;  %v8472_v52 = vpop.f32.mrb[26].mxu1  ;;  %v8475_v25 = vmul.f32 0.01, %v8421_v17  ;;  %v8485_v7 = vpop.f32.mrb[27].mxu0 }
 0x162   :  { %11467 = vst [vmem:[#allocation39_spill] sm:$0xff] %v8457_v15  ;;  %11468 = vst [vmem:[#allocation40_spill] sm:$0xff] %v8460_v18  ;;  %v11475_v15 = vld [vmem:[#allocation10_spill] sm:$0xff]  ;;  %v3358_v35 = vmul.f32 %v8055_v44, %v3189_v32  ;;  %v11477_v18 = vld [vmem:[#allocation17_spill] sm:$0xff]  ;;  %v8493_v17 = vmul.f32 0.01, %v8449_v40 }
 0x163   :  { %11470 = vst [vmem:[#allocation9_spill] sm:$0xff] %v8463_v14  ;;  %v3184_v16 = vmul.f32 %v8393_v13, %v11472_v30  ;;  %11473 = vst [vmem:[#allocation16_spill] sm:$0xff] %v8470_v37  ;;  %v8478_v42 = vadd.f32 %v11475_v15, %v3345_v51  ;;  %v11478_v46 = vsub.f32 %v11477_v18, %v8124_v43  ;;  %v8487_v30 = vpop.f32.mrb[27].mxu1  ;;  %v8490_v37 = vmul.f32 0.01, %v8431_v59 }
 0x164   :  { %11474 = vst [vmem:[#allocation41_spill] sm:$0xff] %v8475_v25  ;;  %11479 = vst [vmem:[#allocation17_spill] sm:$0xff] %v8485_v7  ;;  %v8496_v51 = vadd.f32 %v8058_v11, %v3350_v29  ;;  %v3352_v32 = vmul.f32 %v8062_v39, %v3183_v54  ;;  %v3359_v18 = vmul.f32 %v8077_v56, %v3190_v49  ;;  %v11486_v7 = vld [vmem:[#allocation19_spill] sm:$0xff]  ;;  %vm3641_vm1 = vcmp.ge.f32.partialorder %v8449_v40, 0.0 }
 0x165   :  { %11476 = vst [vmem:[#allocation10_spill] sm:$0xff] %v8478_v42  ;;  %v3191_v14 = vmul.f32 %v8376_v53, %v11478_v46  ;;  %11480 = vst [vmem:[#allocation42_spill] sm:$0xff] %v8487_v30  ;;  %v3353_v25 = vmul.f32 %v8080_v57, %v3184_v16  ;;  %v11484_v46 = vld [vmem:[#allocation18_spill] sm:$0xff]  ;;  %v11488_v16 = vsub.f32 %v8200_v19, %v8124_v43  ;;  %v8530_v19 = vpop.f32.mrb[28].mxu1 }
 0x166   :  { %11481 = vst [vmem:[#allocation43_spill] sm:$0xff] %v8490_v37  ;;  %11482 = vst [vmem:[#allocation44_spill] sm:$0xff] %v8493_v17  ;;  %v11485_v42 = vsub.f32 %v11484_v46, %v8136_v38  ;;  %v11487_v37 = vsub.f32 %v11486_v7, %v8104_v22  ;;  %v8510_v17 = vadd.f32 %v11469_v24, %v3351_v6 }
 0x167   :  { %11483 = vst [vmem:[#allocation45_spill] sm:$0xff] %v8496_v51  ;;  %v3360_v29 = vmul.f32 %v8062_v39, %v3191_v14  ;;  %v3199_v49 = vmul.f32 %v8376_v53, %v11488_v16  ;;  %v11489_v54 = vsub.f32 %v8203_v62, %v8112_v33  ;;  %v8522_v46 = vadd.f32 %v8058_v11, %v3358_v35 }
 0x168   :  { %v3192_v30 = vmul.f32 %v8393_v13, %v11485_v42  ;;  %v3197_v59 = vmul.f32 %v8340_v60, %v11487_v37  ;;  %v11491_v14 = vsub.f32 %v8206_v3, %v8136_v38  ;;  %v8533_v16 = vadd.f32 %v8065_v28, %v3352_v32  ;;  %v8544_v3 = vpop.f32.mrb[29].mxu1 }
 0x169   :  { %v3198_v42 = vmul.f32 %v8360_v48, %v11489_v54  ;;  %11490 = vst [vmem:[#allocation18_spill] sm:$0xff] %v8522_v46  ;;  %v3368_v62 = vmul.f32 %v8062_v39, %v3199_v49  ;;  %v11493_v35 = vsub.f32 %v8209_v12, %v8104_v22  ;;  %v8550_v32 = vadd.f32 %v11469_v24, %v3359_v18 }
 0x16a   :  { %v3361_v37 = vmul.f32 %v8080_v57, %v3192_v30  ;;  %v3366_v6 = vmul.f32 %v8055_v44, %v3197_v59  ;;  %v3200_v7 = vmul.f32 %v8393_v13, %v11491_v14  ;;  %11492 = vst [vmem:[#allocation19_spill] sm:$0xff] %v8533_v16  ;;  %v11494_v59 = vsub.f32 %v8212_v47, %v8124_v43  ;;  %v8557_v16 = vpop.f32.mrb[28].mxu0  ;;  %v8559_v47 = vpop.f32.mrb[30].mxu1 }
 0x16b   :  { %v3205_v54 = vmul.f32 %v8340_v60, %v11493_v35  ;;  %v8547_v14 = vadd.f32 %v11475_v15, %v3353_v25  ;;  %v3367_v49 = vmul.f32 %v8077_v56, %v3198_v42  ;;  %v11495_v12 = vsub.f32 %v8215_v5, %v8112_v33  ;;  %v8571_v46 = vpop.f32.mrb[29].mxu0  ;;  %v8573_v5 = vpop.f32.mrb[31].mxu1 }
 0x16c   :  { %v3207_v30 = vmul.f32 %v8376_v53, %v11494_v59  ;;  %v8562_v59 = vadd.f32 %v8065_v28, %v3360_v29  ;;  %v8565_v25 = vadd.f32 %v11475_v15, %v3361_v37  ;;  %v8568_v18 = vadd.f32 %v8058_v11, %v3366_v6 }
 0x16d   :  { %v3206_v35 = vmul.f32 %v8360_v48, %v11495_v12  ;;  %v3369_v42 = vmul.f32 %v8080_v57, %v3200_v7  ;;  %v3374_v12 = vmul.f32 %v8055_v44, %v3205_v54  ;;  %v11499_v29 = vsub.f32 %v8218_v61, %v8136_v38 }
 0x16e   :  { %11496 = vst [vmem:[#allocation46_spill] sm:$0xff] %v8562_v59  ;;  %11497 = vst [vmem:[#allocation47_spill] sm:$0xff] %v8565_v25  ;;  %v3376_v51 = vmul.f32 %v8062_v39, %v3207_v30  ;;  %v11500_v37 = vsub.f32 %v8237_v8, %v8104_v22  ;;  %v8588_v7 = vadd.f32 %v8065_v28, %v3368_v62  ;;  %vm3648_vm8 = vcmp.ge.f32.partialorder %v8510_v17, 0.0 }
 0x16f   :  { %11498 = vst [vmem:[#allocation48_spill] sm:$0xff] %v8568_v18  ;;  %v3208_v59 = vmul.f32 %v8393_v13, %v11499_v29  ;;  %v8585_v18 = vpop.f32.mrb[30].mxu0  ;;  %v3375_v25 = vmul.f32 %v8077_v56, %v3206_v35  ;;  %v11502_v54 = vsub.f32 %v8240_v0, %v8124_v43  ;;  %v11503_v61 = vsub.f32 %v8243_v2, %v8112_v33 }
 0x170   :  { %v3213_v6 = vmul.f32 %v8340_v60, %v11500_v37  ;;  %11501 = vst [vmem:[#allocation49_spill] sm:$0xff] %v8588_v7  ;;  %v8599_v8 = vpop.f32.mrb[31].mxu0  ;;  %v8602_v37 = vadd.f32 %v11469_v24, %v3367_v49  ;;  %v11505_v35 = vsub.f32 %v8246_v63, %v8136_v38  ;;  %v8626_v63 = vadd.f32 %v8065_v28, %v3376_v51 }
 0x171   :  { %v3215_v30 = vmul.f32 %v8376_v53, %v11502_v54  ;;  %v3214_v29 = vmul.f32 %v8360_v48, %v11503_v61  ;;  %v3377_v62 = vmul.f32 %v8080_v57, %v3208_v59  ;;  %v8611_v54 = vadd.f32 %v11475_v15, %v3369_v42 }
 0x172   :  { %11504 = vst [vmem:[#allocation50_spill] sm:$0xff] %v8602_v37  ;;  %v3382_v7 = vmul.f32 %v8055_v44, %v3213_v6  ;;  %v3216_v0 = vmul.f32 %v8393_v13, %v11505_v35  ;;  %v11506_v61 = vsub.f32 %v8249_v10, %v8104_v22  ;;  %v11507_v59 = vsub.f32 %v8252_v23, %v8124_v43 }
 0x173   :  { %v3384_v2 = vmul.f32 %v8062_v39, %v3215_v30  ;;  %v8623_v37 = vadd.f32 %v8058_v11, %v3374_v12  ;;  %11509 = vst [vmem:[#allocation52_spill] sm:$0xff] %v8626_v63  ;;  %v11511_v30 = vsub.f32 %v8255_v36, %v8112_v33  ;;  %v8636_v35 = vadd.f32 %v11469_v24, %v3375_v25  ;;  %v11515_v25 = vld [vmem:[#allocation20_spill] sm:$0xff] }
 0x174   :  { %v3221_v49 = vmul.f32 %v8340_v60, %v11506_v61  ;;  %v3223_v6 = vmul.f32 %v8376_v53, %v11507_v59  ;;  %v8629_v42 = vadd.f32 %v8058_v11, %v3382_v7  ;;  %v8644_v51 = vadd.f32 %v11475_v15, %v3377_v62 }
 0x175   :  { %11508 = vst [vmem:[#allocation51_spill] sm:$0xff] %v8623_v37  ;;  %v3222_v10 = vmul.f32 %v8360_v48, %v11511_v30  ;;  %v8639_v23 = vadd.f32 %v8065_v28, %v3384_v2  ;;  %v8647_v7 = vmul.f32 %v8077_v56, %v3214_v29  ;;  %v11514_v36 = vsub.f32 %v8258_v34, %v8136_v38 }
 0x176   :  { %11510 = vst [vmem:[#allocation53_spill] sm:$0xff] %v8629_v42  ;;  %v3390_v12 = vmul.f32 %v8055_v44, %v3221_v49  ;;  %v3392_v61 = vmul.f32 %v8062_v39, %v3223_v6  ;;  %11513 = vst [vmem:[#allocation55_spill] sm:$0xff] %v8644_v51  ;;  %v11516_v30 = vsub.f32 %v11515_v25, %v8104_v22  ;;  %vm3656_vm9 = vcmp.ge.f32.partialorder %v8550_v32, 0.0 }
 0x177   :  { %11512 = vst [vmem:[#allocation54_spill] sm:$0xff] %v8639_v23  ;;  %v3224_v59 = vmul.f32 %v8393_v13, %v11514_v36  ;;  %v11519_v29 = vsub.f32 %v8264_v58, %v8124_v43  ;;  %v11520_v34 = vsub.f32 %v8267_v27, %v8112_v33  ;;  %v8672_v25 = vmul.f32 %v8080_v57, %v3216_v0 }
 0x178   :  { %v3229_v2 = vmul.f32 %v8340_v60, %v11516_v30  ;;  %v8658_v49 = vadd.f32 %v8058_v11, %v3390_v12  ;;  %v8661_v6 = vadd.f32 %v8065_v28, %v3392_v61  ;;  %v8675_v30 = vmul.f32 %v8077_v56, %v3222_v10 }
 0x179   :  { %v3231_v62 = vmul.f32 %v8376_v53, %v11519_v29  ;;  %v3230_v36 = vmul.f32 %v8360_v48, %v11520_v34  ;;  %v11521_v61 = vsub.f32 %v8270_v50, %v8136_v38  ;;  %v11522_v27 = vsub.f32 %v8273_v55, %v8104_v22  ;;  %v11523_v34 = vld [vmem:[#allocation21_spill] sm:$0xff] }
 0x17a   :  { %11517 = vst [vmem:[#allocation20_spill] sm:$0xff] %v8658_v49  ;;  %11518 = vst [vmem:[#allocation56_spill] sm:$0xff] %v8661_v6  ;;  %v3398_v12 = vmul.f32 %v8055_v44, %v3229_v2  ;;  %v11524_v10 = vsub.f32 %v11523_v34, %v8124_v43  ;;  %v8693_v2 = vmul.f32 %v8080_v57, %v3224_v59  ;;  %vm3650_vm10 = vcmp.ge.f32.partialorder %v8547_v14, 0.0 }
 0x17b   :  { %v3232_v58 = vmul.f32 %v8393_v13, %v11521_v61  ;;  %v3400_v29 = vmul.f32 %v8062_v39, %v3231_v62  ;;  %v3399_v6 = vmul.f32 %v8077_v56, %v3230_v36  ;;  %v3237_v0 = vmul.f32 %v8340_v60, %v11522_v27  ;;  %v8703_v61 = vpop.f32.mrb[32].mxu0 }
 0x17c   :  { %v3239_v23 = vmul.f32 %v8376_v53, %v11524_v10  ;;  %v8696_v50 = vadd.f32 %v8058_v11, %v3398_v12  ;;  %v11526_v36 = vsub.f32 %v8285_v4, %v8112_v33  ;;  %v8713_v10 = vpop.f32.mrb[33].mxu0 }
 0x17d   :  { %v3401_v62 = vmul.f32 %v8080_v57, %v3232_v58  ;;  %v8706_v27 = vadd.f32 %v8065_v28, %v3400_v29  ;;  %v8709_v34 = vadd.f32 %v11469_v24, %v3399_v6  ;;  %v3406_v59 = vmul.f32 %v8055_v44, %v3237_v0  ;;  %v8727_v0 = vpop.f32.mrb[34].mxu0 }
 0x17e   :  { %11525 = vst [vmem:[#allocation21_spill] sm:$0xff] %v8696_v50  ;;  %v3238_v55 = vmul.f32 %v8360_v48, %v11526_v36  ;;  %v3408_v12 = vmul.f32 %v8062_v39, %v3239_v23  ;;  %v11530_v36 = vld [vmem:[#allocation22_spill] sm:$0xff]  ;;  %v11532_v6 = vsub.f32 %v8343_v1, %v8104_v22  ;;  %v8743_v1 = vpop.f32.mrb[35].mxu0 }
 0x17f   :  { %11527 = vst [vmem:[#allocation57_spill] sm:$0xff] %v8706_v27  ;;  %11528 = vst [vmem:[#allocation58_spill] sm:$0xff] %v8709_v34  ;;  %v8716_v58 = vadd.f32 %v11475_v15, %v3401_v62  ;;  %v11531_v50 = vsub.f32 %v11530_v36, %v8136_v38  ;;  %v8730_v23 = vadd.f32 %v8058_v11, %v3406_v59  ;;  %v11539_v34 = vld [vmem:[#allocation29_spill] sm:$0xff]  ;;  %v8785_v37 = vpop.f32.mrb[36].mxu0 }
 0x180   :  { %v3407_v4 = vmul.f32 %v8077_v56, %v3238_v55  ;;  %v3245_v27 = vmul.f32 %v8340_v60, %v11532_v6  ;;  %v8733_v62 = vadd.f32 %v8065_v28, %v3408_v12  ;;  %v11535_v55 = vsub.f32 %v8346_v9, %v8124_v43  ;;  %v8794_v51 = vpop.f32.mrb[37].mxu0 }
 0x181   :  { %11529 = vst [vmem:[#allocation59_spill] sm:$0xff] %v8716_v58  ;;  %v3240_v29 = vmul.f32 %v8393_v13, %v11531_v50  ;;  %11533 = vst [vmem:[#allocation22_spill] sm:$0xff] %v8730_v23  ;;  %v2670_v50 = vsub.f32 %v8391_v21, %v8112_v33  ;;  %v8741_v58 = vpop.f32.mrb[32].mxu1  ;;  %v2677_v23 = vsub.f32 %v8435_v31, %v8104_v22 }
 0x182   :  { %11534 = vst [vmem:[#allocation60_spill] sm:$0xff] %v8733_v62  ;;  %v3247_v36 = vmul.f32 %v8376_v53, %v11535_v55  ;;  %v8746_v6 = vadd.f32 %v11469_v24, %v3407_v4  ;;  %v3414_v12 = vmul.f32 %v8055_v44, %v3245_v27  ;;  %v2672_v62 = vsub.f32 %v8412_v45, %v8136_v38  ;;  %v8752_v9 = vpop.f32.mrb[33].mxu1 }
 0x183   :  { %v3409_v59 = vmul.f32 %v8080_v57, %v3240_v29  ;;  %v3246_v21 = vmul.f32 %v8360_v48, %v2670_v50  ;;  %v2679_v4 = vsub.f32 %v8438_v41, %v8124_v43  ;;  %v3253_v42 = vmul.f32 %v8340_v60, %v2677_v23 }
 0x184   :  { %11536 = vst [vmem:[#allocation61_spill] sm:$0xff] %v8746_v6  ;;  %v3416_v55 = vmul.f32 %v8062_v39, %v3247_v36  ;;  %v8760_v6 = vpop.f32.mrb[34].mxu1  ;;  %v8766_v27 = vadd.f32 %v8058_v11, %v3414_v12  ;;  %v3248_v45 = vmul.f32 %v8393_v13, %v2672_v62  ;;  %v11540_v36 = vld [vmem:[#allocation7_spill] sm:$0xff] }
 0x185   :  { %v8763_v29 = vadd.f32 %v11475_v15, %v3409_v59  ;;  %v2212_v49 = vadd.f32 %v11540_v36, %v11539_v34  ;;  %v8771_v50 = vpop.f32.mrb[35].mxu1  ;;  %v3415_v41 = vmul.f32 %v8077_v56, %v3246_v21  ;;  %v3255_v59 = vmul.f32 %v8376_v53, %v2679_v4  ;;  %v11543_v34 = vld [vmem:[#allocation6_spill] sm:$0xff]  ;;  %11544 = vst [vmem:[#allocation7_spill] sm:$0xff] %v8785_v37  ;;  %v11546_v4 = vld [vmem:[#allocation35_spill] sm:$0xff] }
 0x186   :  { %11538 = vst [vmem:[#allocation63_spill] sm:$0xff] %v8766_v27  ;;  %v8774_v31 = vadd.f32 %v8065_v28, %v3416_v55  ;;  %v11542_v27 = vld [vmem:[#allocation30_spill] sm:$0xff]  ;;  %v2219_v63 = vadd.f32 %v11543_v34, %v8440_v26  ;;  %v3422_v21 = vmul.f32 %v8055_v44, %v3253_v42  ;;  %11548 = vst [vmem:[#allocation6_spill] sm:$0xff] %v8794_v51 }
 0x187   :  { %11537 = vst [vmem:[#allocation62_spill] sm:$0xff] %v8763_v29  ;;  %v3417_v29 = vmul.f32 %v8080_v57, %v3248_v45  ;;  %v2678_v12 = vsub.f32 %v2212_v49, %v8112_v33  ;;  %v2214_v62 = vadd.f32 %v8024_v20, %v11542_v27  ;;  %v8788_v55 = vadd.f32 %v11469_v24, %v3415_v41  ;;  %v8802_v41 = vpop.f32.mrb[38].mxu0 }
 0x188   :  { %11541 = vst [vmem:[#allocation29_spill] sm:$0xff] %v8774_v31  ;;  %v3424_v23 = vmul.f32 %v8062_v39, %v3255_v59  ;;  %v11547_v31 = vld [vmem:[#allocation8_spill] sm:$0xff]  ;;  %v2685_v37 = vsub.f32 %v2219_v63, %v8104_v22  ;;  %v8805_v42 = vadd.f32 %v8058_v11, %v3422_v21  ;;  %v11556_v21 = vld [vmem:[#allocation39_spill] sm:$0xff] }
 0x189   :  { %11545 = vst [vmem:[#allocation30_spill] sm:$0xff] %v8788_v55  ;;  %v2221_v45 = vadd.f32 %v11547_v31, %v11546_v4  ;;  %v8797_v49 = vadd.f32 %v11475_v15, %v3417_v29  ;;  %v3254_v27 = vmul.f32 %v8360_v48, %v2678_v12  ;;  %v2680_v26 = vsub.f32 %v2214_v62, %v8136_v38  ;;  %v11553_v55 = vld [vmem:[#allocation15_spill] sm:$0xff]  ;;  %v8815_v12 = vpop.f32.mrb[39].mxu0 }
 0x18a   :  { %11550 = vst [vmem:[#allocation8_spill] sm:$0xff] %v8802_v41  ;;  %11551 = vst [vmem:[#allocation64_spill] sm:$0xff] %v8805_v42  ;;  %v8808_v59 = vadd.f32 %v8065_v28, %v3424_v23  ;;  %v2220_v29 = vadd.f32 %v11540_v36, %v11553_v55  ;;  %v3261_v41 = vmul.f32 %v8340_v60, %v2685_v37  ;;  %v11558_v55 = vld [vmem:[#allocation16_spill] sm:$0xff] }
 0x18b   :  { %11549 = vst [vmem:[#allocation35_spill] sm:$0xff] %v8797_v49  ;;  %v2687_v4 = vsub.f32 %v2221_v45, %v8124_v43  ;;  %v8813_v49 = vpop.f32.mrb[36].mxu1  ;;  %11555 = vst [vmem:[#allocation66_spill] sm:$0xff] %v8815_v12  ;;  %v3423_v62 = vmul.f32 %v8077_v56, %v3254_v27  ;;  %v3256_v63 = vmul.f32 %v8393_v13, %v2680_v26 }
 0x18c   :  { %11552 = vst [vmem:[#allocation65_spill] sm:$0xff] %v8808_v59  ;;  %11554 = vst [vmem:[#allocation15_spill] sm:$0xff] %v8813_v49  ;;  %v2222_v42 = vadd.f32 %v8024_v20, %v11556_v21  ;;  %v8822_v23 = vpop.f32.mrb[37].mxu1  ;;  %v2686_v59 = vsub.f32 %v2220_v29, %v8112_v33  ;;  %v2227_v51 = vadd.f32 %v11543_v34, %v11558_v55 }
 0x18d   :  { %11557 = vst [vmem:[#allocation39_spill] sm:$0xff] %v8822_v23  ;;  %v3263_v45 = vmul.f32 %v8376_v53, %v2687_v4  ;;  %v2229_v12 = vadd.f32 %v11547_v31, %v8472_v52  ;;  %v8830_v27 = vpop.f32.mrb[38].mxu1  ;;  %v8833_v26 = vadd.f32 %v11469_v24, %v3423_v62  ;;  %v3425_v37 = vmul.f32 %v8080_v57, %v3256_v63  ;;  %v11563_v63 = vld [vmem:[#allocation17_spill] sm:$0xff] }
 0x18e   :  { %11559 = vst [vmem:[#allocation16_spill] sm:$0xff] %v8830_v27  ;;  %v3430_v21 = vmul.f32 %v8055_v44, %v3261_v41  ;;  %v2688_v23 = vsub.f32 %v2222_v42, %v8136_v38  ;;  %v8838_v4 = vpop.f32.mrb[39].mxu1  ;;  %v3262_v55 = vmul.f32 %v8360_v48, %v2686_v59  ;;  %v2693_v49 = vsub.f32 %v2227_v51, %v8104_v22 }
 0x18f   :  { %11560 = vst [vmem:[#allocation67_spill] sm:$0xff] %v8833_v26  ;;  %v3432_v29 = vmul.f32 %v8062_v39, %v3263_v45  ;;  %v2695_v52 = vsub.f32 %v2229_v12, %v8124_v43  ;;  %v8845_v27 = vadd.f32 %v11475_v15, %v3425_v37  ;;  %v2228_v42 = vadd.f32 %v11540_v36, %v11563_v63  ;;  %v8853_v26 = vpop.f32.mrb[40].mxu0 }
 0x190   :  { %v8848_v62 = vadd.f32 %v8058_v11, %v3430_v21  ;;  %v3264_v41 = vmul.f32 %v8393_v13, %v2688_v23  ;;  %v3431_v51 = vmul.f32 %v8077_v56, %v3262_v55  ;;  %v3269_v59 = vmul.f32 %v8340_v60, %v2693_v49  ;;  %v8861_v37 = vpop.f32.mrb[41].mxu0 }
 0x191   :  { %11561 = vst [vmem:[#allocation68_spill] sm:$0xff] %v8845_v27  ;;  %v8856_v45 = vadd.f32 %v8065_v28, %v3432_v29  ;;  %v3271_v12 = vmul.f32 %v8376_v53, %v2695_v52  ;;  %v2694_v23 = vsub.f32 %v2228_v42, %v8112_v33  ;;  %v2235_v27 = vadd.f32 %v11543_v34, %v8557_v16  ;;  %v8869_v29 = vpop.f32.mrb[42].mxu0 }
 0x192   :  { %11562 = vst [vmem:[#allocation69_spill] sm:$0xff] %v8848_v62  ;;  %v3433_v21 = vmul.f32 %v8080_v57, %v3264_v41  ;;  %v11565_v62 = vld [vmem:[#allocation42_spill] sm:$0xff]  ;;  %v8872_v55 = vadd.f32 %v11469_v24, %v3431_v51  ;;  %v3438_v49 = vmul.f32 %v8055_v44, %v3269_v59  ;;  %v2237_v41 = vadd.f32 %v11547_v31, %v8530_v19  ;;  %v8880_v42 = vpop.f32.mrb[43].mxu0 }
 0x193   :  { %11564 = vst [vmem:[#allocation17_spill] sm:$0xff] %v8856_v45  ;;  %v2230_v63 = vadd.f32 %v8024_v20, %v11565_v62  ;;  %11566 = vst [vmem:[#allocation42_spill] sm:$0xff] %v8869_v29  ;;  %v3440_v52 = vmul.f32 %v8062_v39, %v3271_v12  ;;  %v8878_v45 = vpop.f32.mrb[40].mxu1  ;;  %v3270_v16 = vmul.f32 %v8360_v48, %v2694_v23 }
 0x194   :  { %11567 = vst [vmem:[#allocation70_spill] sm:$0xff] %v8872_v55  ;;  %v8883_v62 = vadd.f32 %v11475_v15, %v3433_v21  ;;  %v2701_v51 = vsub.f32 %v2235_v27, %v8104_v22  ;;  %v8888_v55 = vpop.f32.mrb[41].mxu1  ;;  %v8891_v59 = vadd.f32 %v8058_v11, %v3438_v49  ;;  %v2703_v12 = vsub.f32 %v2237_v41, %v8124_v43 }
 0x195   :  { %v2696_v29 = vsub.f32 %v2230_v63, %v8136_v38  ;;  %v8894_v19 = vadd.f32 %v8065_v28, %v3440_v52  ;;  %v2236_v21 = vadd.f32 %v11540_v36, %v8571_v46  ;;  %v3439_v23 = vmul.f32 %v8077_v56, %v3270_v16  ;;  %v11572_v16 = vld [vmem:[#allocation34_spill] sm:$0xff] }
 0x196   :  { %11568 = vst [vmem:[#allocation71_spill] sm:$0xff] %v8883_v62  ;;  %11569 = vst [vmem:[#allocation72_spill] sm:$0xff] %v8891_v59  ;;  %v8899_v62 = vpop.f32.mrb[42].mxu1  ;;  %v3277_v27 = vmul.f32 %v8340_v60, %v2701_v51  ;;  %v2238_v49 = vadd.f32 %v8024_v20, %v8544_v3  ;;  %v3279_v52 = vmul.f32 %v8376_v53, %v2703_v12  ;;  %vm3639_vm0 = vcmp.ge.f32.partialorder %v11572_v16, 0.0  ;;  %v8921_v12 = vpop.f32.mrb[44].mxu0 }
 0x197   :  { %11570 = vst [vmem:[#allocation73_spill] sm:$0xff] %v8894_v19  ;;  %v3272_v63 = vmul.f32 %v8393_v13, %v2696_v29  ;;  %v8906_v59 = vpop.f32.mrb[43].mxu1  ;;  %v2702_v41 = vsub.f32 %v2236_v21, %v8112_v33  ;;  %v2243_v46 = vadd.f32 %v11543_v34, %v8585_v18  ;;  %v2245_v19 = vadd.f32 %v11547_v31, %v8559_v47  ;;  %v8928_v21 = vpop.f32.mrb[45].mxu0 }
 0x198   :  { %11571 = vst [vmem:[#allocation74_spill] sm:$0xff] %v8906_v59  ;;  %v8916_v29 = vadd.f32 %v11469_v24, %v3439_v23  ;;  %v3446_v3 = vmul.f32 %v8055_v44, %v3277_v27  ;;  %v2704_v59 = vsub.f32 %v2238_v49, %v8136_v38  ;;  %v3448_v18 = vmul.f32 %v8062_v39, %v3279_v52  ;;  %v8939_v52 = vpop.f32.mrb[46].mxu0 }
 0x199   :  { %v3441_v51 = vmul.f32 %v8080_v57, %v3272_v63  ;;  %v3278_v34 = vmul.f32 %v8360_v48, %v2702_v41  ;;  %v2709_v47 = vsub.f32 %v2243_v46, %v8104_v22  ;;  %v2711_v31 = vsub.f32 %v2245_v19, %v8124_v43  ;;  %v8947_v46 = vpop.f32.mrb[44].mxu1 }
 0x19a   :  { %11573 = vst [vmem:[#allocation34_spill] sm:$0xff] %v8916_v29  ;;  %v8934_v63 = vadd.f32 %v8058_v11, %v3446_v3  ;;  %v3280_v27 = vmul.f32 %v8393_v13, %v2704_v59  ;;  %v2244_v49 = vadd.f32 %v11540_v36, %v8599_v8  ;;  %v8942_v41 = vadd.f32 %v8065_v28, %v3448_v18  ;;  %v11577_v36 = vld [vmem:[#allocation37_spill] sm:$0xff] }
 0x19b   :  { %v8931_v23 = vadd.f32 %v11475_v15, %v3441_v51  ;;  %v3447_v22 = vmul.f32 %v8077_v56, %v3278_v34  ;;  %v3285_v43 = vmul.f32 %v8340_v60, %v2709_v47  ;;  %v3287_v19 = vmul.f32 %v8376_v53, %v2711_v31  ;;  %v8949_v51 = vpop.f32.mrb[47].mxu0  ;;  %v11579_v47 = vld [vmem:[#allocation9_spill] sm:$0xff] }
 0x19c   :  { %11575 = vst [vmem:[#allocation76_spill] sm:$0xff] %v8934_v63  ;;  %11576 = vst [vmem:[#allocation77_spill] sm:$0xff] %v8942_v41  ;;  %v3449_v59 = vmul.f32 %v8080_v57, %v3280_v27  ;;  %v2710_v3 = vsub.f32 %v2244_v49, %v8112_v33  ;;  %v2246_v8 = vadd.f32 %v8024_v20, %v8573_v5  ;;  %v8957_v41 = vpop.f32.mrb[45].mxu1  ;;  %vm3640_vm2 = vcmp.ge.f32.partialorder %v11579_v47, 0.0  ;;  %v11603_v63 = vld [vmem:[#allocation12_spill] sm:$0xff] }
 0x19d   :  { %11574 = vst [vmem:[#allocation75_spill] sm:$0xff] %v8931_v23  ;;  %v3504_v18 = vadd.f32 %v11469_v24, %v11577_v36  ;;  %v8960_v60 = vadd.f32 %v11469_v24, %v3447_v22  ;;  %v3454_v53 = vmul.f32 %v8055_v44, %v3285_v43  ;;  %v3456_v34 = vmul.f32 %v8062_v39, %v3287_v19  ;;  %v8965_v31 = vpop.f32.mrb[46].mxu1  ;;  %v11586_v36 = vld [vmem:[#allocation33_spill] sm:$0xff]  ;;  %v11616_v23 = vld [vmem:[#allocation19_spill] sm:$0xff] }
 0x19e   :  { %v8968_v33 = vadd.f32 %v11475_v15, %v3449_v59  ;;  %v3286_v20 = vmul.f32 %v8360_v48, %v2710_v3  ;;  %v2712_v5 = vsub.f32 %v2246_v8, %v8136_v38  ;;  %v8972_v27 = vpop.f32.mrb[47].mxu1  ;;  %v3768_v22 = vmul.f32 0.01, %v11579_v47  ;;  %v11583_v59 = vld [vmem:[#allocation38_spill] sm:$0xff]  ;;  %v8986_v3 = vpop.f32.mrb[48].mxu0 }
 0x19f   :  { %11578 = vst [vmem:[#allocation37_spill] sm:$0xff] %v8960_v60  ;;  %vm3632_vm3 = vcmp.ge.f32.partialorder %v3504_v18, 0.0  ;;  %v8975_v49 = vadd.f32 %v8058_v11, %v3454_v53  ;;  %v8978_v44 = vadd.f32 %v8065_v28, %v3456_v34  ;;  %v3760_v39 = vmul.f32 0.01, %v3504_v18  ;;  %v11584_v38 = vld [vmem:[#allocation10_spill] sm:$0xff]  ;;  %11585 = vst [vmem:[#allocation38_spill] sm:$0xff] %v8986_v3 }
 0x1a0   :  { %11580 = vst [vmem:[#allocation9_spill] sm:$0xff] %v8968_v33  ;;  %v3455_v43 = vmul.f32 %v8077_v56, %v3286_v20  ;;  %v3288_v19 = vmul.f32 %v8393_v13, %v2712_v5  ;;  %v3506_v48 = vadd.f32 %v11475_v15, %v11583_v59  ;;  %vm3642_vm4 = vcmp.ge.f32.partialorder %v11584_v38, 0.0  ;;  %v8993_v53 = vpop.f32.mrb[49].mxu0 }
 0x1a1   :  { %11581 = vst [vmem:[#allocation78_spill] sm:$0xff] %v8975_v49  ;;  %11582 = vst [vmem:[#allocation79_spill] sm:$0xff] %v8978_v44  ;;  %v3888_v8 = vsel %vm3632_vm3, %v3504_v18, %v3760_v39  ;;  %v3896_v11 = vsel %vm3640_vm2, %v11579_v47, %v3768_v22  ;;  %v3770_v28 = vmul.f32 0.01, %v11584_v38  ;;  %vm3631_vm5 = vcmp.ge.f32.partialorder %v11586_v36, 0.0  ;;  %v8999_v20 = vpop.f32.mrb[50].mxu0 }
 0x1a2   :  { %11587 = vst [vmem:[#allocation10_spill] sm:$0xff] %v8993_v53  ;;  %v8996_v56 = vadd.f32 %v11469_v24, %v3455_v43  ;;  %v3457_v13 = vmul.f32 %v8080_v57, %v3288_v19  ;;  %v4016_v34 = vpack.c.bf16 %v3896_v11, %v3888_v8  ;;  %vm3634_vm6 = vcmp.ge.f32.partialorder %v3506_v48, 0.0  ;;  %11589 = vst [vmem:[#allocation80_spill] sm:$0xff] %v8999_v20  ;;  %v11590_v39 = vld [vmem:[#allocation40_spill] sm:$0xff]  ;;  %v11591_v22 = vld [vmem:[#allocation41_spill] sm:$0xff]  ;;  %v9011_v57 = vpop.f32.mrb[48].mxu1 }
 0x1a3   :  { %v3762_v18 = vmul.f32 0.01, %v3506_v48  ;;  %v3898_v5 = vsel %vm3642_vm4, %v11584_v38, %v3770_v28  ;;  %v3887_v47 = vsel %vm3631_vm5, %v11586_v36, %v11590_v39  ;;  %v3895_v59 = vsel %vm3639_vm0, %v11572_v16, %v11591_v22  ;;  %v6788_v43 = vld [vmem:[%s11288_s6 + $0x100] sm:$0xff]   ;;  %11592 = vst [vmem:[#allocation40_spill] sm:$0xff] %v9011_v57  ;;  %v9013_v19 = vpop.f32.mrb[51].mxu0  ;;  %v11595_v11 = vld [vmem:[#allocation36_spill] sm:$0xff] }
 0x1a4   :  { %11588 = vst [vmem:[#allocation33_spill] sm:$0xff] %v8996_v56  ;;  %11593 = vst [vmem:[#allocation41_spill] sm:$0xff] %v9013_v19  ;;  %v9016_v8 = vadd.f32 %v11475_v15, %v3457_v13  ;;  %4630 = vmatprep.mubr.bf16.mxu0 %v4016_v34  ;;  %v4015_v38 = vpack.c.bf16 %v3895_v59, %v3887_v47  ;;  %vm3633_vm7 = vcmp.ge.f32.partialorder %v11595_v11, 0.0  ;;  %v11596_v28 = vld [vmem:[#allocation44_spill] sm:$0xff]  ;;  %v9023_v36 = vpop.f32.mrb[49].mxu1  ;;  %v11598_v22 = vld [vmem:[#allocation43_spill] sm:$0xff] }
 0x1a5   :  { %v3897_v16 = vsel %vm3641_vm1, %v8449_v40, %v11596_v28  ;;  %11597 = vst [vmem:[#allocation36_spill] sm:$0xff] %v9023_v36  ;;  %v3890_v39 = vsel %vm3634_vm6, %v3506_v48, %v3762_v18  ;;  %v3889_v44 = vsel %vm3633_vm7, %v11595_v11, %v11598_v22  ;;  %v6790_v13 = vld [vmem:[%s11288_s6 + $0x180] sm:$0xff]   ;;  %v6791_v34 = vld [vmem:[%s11288_s6 + $0x148] sm:$0xff]   ;;  %v9035_v47 = vpop.f32.mrb[50].mxu1  ;;  %v3776_v18 = vmul.f32 0.01, %v8510_v17 }
 0x1a6   :  { %11594 = vst [vmem:[#allocation81_spill] sm:$0xff] %v9016_v8  ;;  %11599 = vst [vmem:[#allocation44_spill] sm:$0xff] %v9035_v47  ;;  %v4018_v40 = vpack.c.bf16 %v3898_v5, %v3890_v39  ;;  %4631 = vmatmul.mubr.bf16.vlgmr.msra.gmra.mrb[64].mxu0 %v4015_v38  ;;  %v4017_v48 = vpack.c.bf16 %v3897_v16, %v3889_v44  ;;  %v3784_v59 = vmul.f32 0.01, %v8550_v32  ;;  %v6792_v11 = vld [vmem:[%s11288_s6 + $0x108] sm:$0xff]   ;;  %v9042_v28 = vpop.f32.mrb[51].mxu1 }
 0x1a7   :  { %11600 = vst [vmem:[#allocation43_spill] sm:$0xff] %v9042_v28  ;;  %v11601_v22 = vld [vmem:[#allocation47_spill] sm:$0xff]  ;;  %v3778_v49 = vmul.f32 0.01, %v8547_v14  ;;  %6361 = vmatpush3.bf16.msra.mxu0 %v6788_v43  ;;  %v3904_v44 = vsel %vm3648_vm8, %v8510_v17, %v3776_v18  ;;  %v9060_v8 = vadd.f32 %v11603_v63, %v8741_v58  ;;  %v6795_v58 = vld [vmem:[%s11288_s6 + $0x150] sm:$0xff]   ;;  %vm3649_vm14 = vcmp.ge.f32.partialorder %v11616_v23, 0.0 }
 0x1a8   :  { %vm3658_vm11 = vcmp.ge.f32.partialorder %v11601_v22, 0.0  ;;  %v3786_v5 = vmul.f32 0.01, %v11601_v22  ;;  %4727 = vmatprep.mubr.bf16.mxu1 %v4018_v40  ;;  %v3912_v38 = vsel %vm3656_vm9, %v8550_v32, %v3784_v59  ;;  %v11602_v16 = vld [vmem:[#allocation11_spill] sm:$0xff]  ;;  %v9065_v40 = vpop.f32.mrb[52].mxu0  ;;  %v11605_v59 = vld [vmem:[#allocation13_spill] sm:$0xff]  ;;  %6362 = vmatprep.subr.bf16.mxu0 %v6791_v34 }
 0x1a9   :  { %v9056_v39 = vadd.f32 %v11602_v16, %v8703_v61  ;;  %v6793_v43 = vld [vmem:[%s11288_s6 + $0x1c8] sm:$0xff]   ;;  %11604 = vst [vmem:[#allocation47_spill] sm:$0xff] %v9065_v40  ;;  %4728 = vmatmul.mubr.bf16.vlgmr.msra.gmra.mrb[64].mxu1 %v4017_v48  ;;  %v4024_v17 = vpack.c.bf16 %v3912_v38, %v3904_v44  ;;  %v3906_v18 = vsel %vm3650_vm10, %v8547_v14, %v3778_v49  ;;  %v9076_v33 = vpop.f32.mrb[53].mxu0  ;;  %v2554_v48 = vrot.slane %v9060_v8, 4  ;;  %v11607_v14 = vld [vmem:[#allocation14_spill] sm:$0xff]  ;;  %v6796_v34 = vld [vmem:[%s11288_s6 + $0x110] sm:$0xff]  }
 0x1aa   :  { %v3914_v32 = vsel %vm3658_vm11, %v11601_v22, %v3786_v5  ;;  %v9071_v61 = vadd.f32 %v11605_v59, %v8713_v10  ;;  %11606 = vst [vmem:[#allocation11_spill] sm:$0xff] %v9076_v33  ;;  %6425 = vmatpush3.bf16.msra.mxu1 %v6790_v13  ;;  %v9082_v49 = vadd.f32 %v11607_v14, %v8752_v9  ;;  %v6794_v10 = vld [vmem:[%s11288_s6 + $0x188] sm:$0xff]   ;;  %v9087_v22 = vpop.f32.mrb[54].mxu0  ;;  %v9108_v38 = vpop.f32.mrb[52].mxu1  ;;  %v3777_v28 = vmul.f32 0.01, %v11616_v23 }
 0x1ab   :  { %v4026_v56 = vpack.c.bf16 %v3914_v32, %v3906_v18  ;;  %v2512_v60 = vrot.slane %v9056_v39, 4  ;;  %11608 = vst [vmem:[#allocation12_spill] sm:$0xff] %v9087_v22  ;;  %v9091_v5 = vadd.f32 %v11469_v24, %v8647_v7  ;;  %v9095_v44 = vadd.f32 %v11475_v15, %v8672_v25  ;;  %4638 = vmatprep.mubr.bf16.mxu0 %v4024_v17  ;;  %v6797_v7 = vld [vmem:[%s11288_s6 + $0x1d0] sm:$0xff]   ;;  %v9110_v25 = vpop.f32.mrb[55].mxu0  ;;  %v6799_v18 = vld [vmem:[%s11288_s6 + $0x158] sm:$0xff]   ;;  %v9122_v32 = vpop.f32.mrb[53].mxu1 }
 0x1ac   :  { %v9099_v13 = vadd.f32 %v11469_v24, %v8675_v30  ;;  %v2533_v9 = vrot.slane %v9071_v61, 4  ;;  %6363 = vmatpush3.bf16.msra.mxu0 %v6792_v11  ;;  %11609 = vst [vmem:[#allocation13_spill] sm:$0xff] %v9108_v38  ;;  %11610 = vst [vmem:[#allocation14_spill] sm:$0xff] %v9110_v25  ;;  %v9114_v24 = vadd.f32 %v11475_v15, %v8693_v2  ;;  %v2575_v17 = vrot.slane %v9082_v49, 4  ;;  %v11612_v22 = vld [vmem:[#allocation45_spill] sm:$0xff]  ;;  %v11613_v15 = vld [vmem:[#allocation18_spill] sm:$0xff] }
 0x1ad   :  { %4735 = vmatprep.mubr.bf16.mxu1 %v4026_v56  ;;  %v2513_v30 = vadd.f32 %v2512_v60, %v9056_v39  ;;  %v2555_v11 = vadd.f32 %v2554_v48, %v9060_v8  ;;  %6426 = vmatprep.subr.bf16.mxu1 %v6793_v43  ;;  %11611 = vst [vmem:[#allocation82_spill] sm:$0xff] %v9122_v32  ;;  %vm3647_vm12 = vcmp.ge.f32.partialorder %v11612_v22, 0.0  ;;  %vm3655_vm13 = vcmp.ge.f32.partialorder %v11613_v15, 0.0  ;;  %v9128_v60 = vpop.f32.mrb[54].mxu1  ;;  %v11641_v36 = vld [vmem:[#allocation49_spill] sm:$0xff]  ;;  %v11642_v53 = vld [vmem:[#allocation52_spill] sm:$0xff] }
 0x1ae   :  { %v2534_v25 = vadd.f32 %v2533_v9, %v9071_v61  ;;  %v3775_v2 = vmul.f32 0.01, %v11612_v22  ;;  %6364 = vmatprep.subr.bf16.mxu0 %v6795_v58  ;;  %11614 = vst [vmem:[#allocation45_spill] sm:$0xff] %v9128_v60  ;;  %v2576_v43 = vadd.f32 %v2575_v17, %v9082_v49  ;;  %v3783_v33 = vmul.f32 0.01, %v11613_v15  ;;  %6427 = vmatpush3.bf16.msra.mxu1 %v6794_v10  ;;  %v6798_v9 = vld [vmem:[%s11288_s6 + $0x190] sm:$0xff]  }
 0x1af   :  { %v2514_v56 = vrot.slane %v2513_v30, 2  ;;  %v2556_v48 = vrot.slane %v2555_v11, 2  ;;  %v9135_v32 = vpop.f32.mrb[55].mxu1  ;;  %v11617_v58 = vld [vmem:[#allocation46_spill] sm:$0xff]  ;;  %6428 = vmatprep.subr.bf16.mxu1 %v6797_v7  ;;  %v6801_v17 = vld [vmem:[%s11288_s6 + $0x1d8] sm:$0xff]   ;;  %vm3672_vm1 = vcmp.ge.f32.partialorder %v8636_v35, 0.0 }
 0x1b0   :  { %11615 = vst [vmem:[#allocation18_spill] sm:$0xff] %v9135_v32  ;;  %v2535_v38 = vrot.slane %v2534_v25, 2  ;;  %v3903_v40 = vsel %vm3647_vm12, %v11612_v22, %v3775_v2  ;;  %vm3657_vm15 = vcmp.ge.f32.partialorder %v11617_v58, 0.0  ;;  %6365 = vmatpush3.bf16.msra.mxu0 %v6796_v34  ;;  %v2577_v29 = vrot.slane %v2576_v43, 2  ;;  %v6800_v22 = vld [vmem:[%s11288_s6 + $0x118] sm:$0xff]   ;;  %v9149_v2 = vpop.f32.mrb[56].mxu0 }
 0x1b1   :  { %v2515_v10 = vadd.f32 %v2514_v56, %v2513_v30  ;;  %v2557_v60 = vadd.f32 %v2556_v48, %v2555_v11  ;;  %v3911_v32 = vsel %vm3655_vm13, %v11613_v15, %v3783_v33  ;;  %6366 = vmatprep.subr.bf16.mxu0 %v6799_v18  ;;  %11618 = vst [vmem:[#allocation19_spill] sm:$0xff] %v9149_v2  ;;  %v3785_v19 = vmul.f32 0.01, %v11617_v58  ;;  %v6803_v30 = vld [vmem:[%s11288_s6 + $0x160] sm:$0xff]   ;;  %v9156_v11 = vpop.f32.mrb[57].mxu0 }
 0x1b2   :  { %v2536_v34 = vadd.f32 %v2535_v38, %v2534_v25  ;;  %v4023_v7 = vpack.c.bf16 %v3911_v32, %v3903_v40  ;;  %11619 = vst [vmem:[#allocation46_spill] sm:$0xff] %v9156_v11  ;;  %v2578_v15 = vadd.f32 %v2577_v29, %v2576_v43  ;;  %v11620_v56 = vld [vmem:[#allocation50_spill] sm:$0xff]  ;;  %6429 = vmatpush3.bf16.msra.mxu1 %v6798_v9  ;;  %v9159_v48 = vpop.f32.mrb[58].mxu0  ;;  %v6802_v29 = vld [vmem:[%s11288_s6 + $0x198] sm:$0xff]   ;;  %v9171_v32 = vpop.f32.mrb[56].mxu1  ;;  %vm3666_vm2 = vcmp.ge.f32.partialorder %v8611_v54, 0.0 }
 0x1b3   :  { %v2516_v33 = vrot.slane %v2515_v10, 1  ;;  %v2558_v18 = vrot.slane %v2557_v60, 1  ;;  %vm3664_vm0 = vcmp.ge.f32.partialorder %v11620_v56, 0.0  ;;  %11621 = vst [vmem:[#allocation50_spill] sm:$0xff] %v9159_v48  ;;  %v3905_v40 = vsel %vm3649_vm14, %v11616_v23, %v3777_v28  ;;  %6430 = vmatprep.subr.bf16.mxu1 %v6801_v17  ;;  %11622 = vst [vmem:[#allocation83_spill] sm:$0xff] %v9171_v32  ;;  %v9173_v43 = vpop.f32.mrb[59].mxu0 }
 0x1b4   :  { %v2537_v38 = vrot.slane %v2536_v34, 1  ;;  %4639 = vmatmul.mubr.bf16.gmra.mrb[68].mxu0 %v4023_v7  ;;  %v3913_v25 = vsel %vm3657_vm15, %v11617_v58, %v3785_v19  ;;  %11623 = vst [vmem:[#allocation84_spill] sm:$0xff] %v9173_v43  ;;  %v2579_v48 = vrot.slane %v2578_v15, 1  ;;  %v6804_v23 = vld [vmem:[%s11288_s6 + $0x120] sm:$0xff]   ;;  %v9181_v28 = vpop.f32.mrb[57].mxu1  ;;  %v9185_v17 = vadd.f32 %v11602_v16, %v8727_v0 }
 0x1b5   :  { %v2517_v9 = vadd.f32 %v2516_v33, %v2515_v10  ;;  %v2559_v7 = vadd.f32 %v2558_v18, %v2557_v60  ;;  %v4025_v11 = vpack.c.bf16 %v3913_v25, %v3905_v40  ;;  %6367 = vmatpush3.bf16.msra.mxu0 %v6800_v22  ;;  %v6805_v19 = vld [vmem:[%s11288_s6 + $0x1e0] sm:$0xff]   ;;  %11624 = vst [vmem:[#allocation85_spill] sm:$0xff] %v9181_v28  ;;  %v3792_v60 = vmul.f32 0.01, %v11620_v56  ;;  %v6807_v22 = vld [vmem:[%s11288_s6 + $0x168] sm:$0xff]   ;;  %v9192_v33 = vpop.f32.mrb[58].mxu1 }
 0x1b6   :  { %v2538_v58 = vadd.f32 %v2537_v38, %v2536_v34  ;;  %v3800_v10 = vmul.f32 0.01, %v8636_v35  ;;  %6368 = vmatprep.subr.bf16.mxu0 %v6803_v30  ;;  %11625 = vst [vmem:[#allocation86_spill] sm:$0xff] %v9192_v33  ;;  %v2580_v34 = vadd.f32 %v2579_v48, %v2578_v15  ;;  %v9200_v0 = vadd.f32 %v11603_v63, %v8760_v6  ;;  %v9202_v38 = vpop.f32.mrb[59].mxu1  ;;  %v6806_v6 = vld [vmem:[%s11288_s6 + $0x1a0] sm:$0xff]   ;;  %v6809_v48 = vld [vmem:[%s11288_s6 + $0x1e8] sm:$0xff]  }
 0x1b7   :  { %v9194_v18 = vmul.f32 0.125, %v2517_v9  ;;  %v9196_v40 = vmul.f32 0.125, %v2559_v7  ;;  %4736 = vmatmul.mubr.bf16.gmra.mrb[68].mxu1 %v4025_v11  ;;  %11626 = vst [vmem:[#allocation87_spill] sm:$0xff] %v9202_v38  ;;  %v3920_v30 = vsel %vm3664_vm0, %v11620_v56, %v3792_v60  ;;  %v3794_v7 = vmul.f32 0.01, %v8611_v54 }
 0x1b8   :  { %v9204_v25 = vmul.f32 0.125, %v2538_v58  ;;  %v3928_v9 = vsel %vm3672_vm1, %v8636_v35, %v3800_v10  ;;  %6431 = vmatpush3.bf16.msra.mxu1 %v6802_v29  ;;  %v9224_v56 = vmul.f32 0.125, %v2580_v34  ;;  %v6808_v35 = vld [vmem:[%s11288_s6 + $0x128] sm:$0xff]   ;;  %v9241_v29 = vadd.f32 %v11605_v59, %v8743_v1  ;;  %v6811_v58 = vld [vmem:[%s11288_s6 + $0x170] sm:$0xff]  }
 0x1b9   :  { %v9218_v11 = vsub.f32 %v9056_v39, %v9194_v18  ;;  %v9222_v15 = vsub.f32 %v9060_v8, %v9196_v40  ;;  %6369 = vmatpush3.bf16.msra.mxu0 %v6804_v23  ;;  %6432 = vmatprep.subr.bf16.mxu1 %v6805_v19  ;;  %v9233_v39 = vpop.f32.mrb[60].mxu0  ;;  %v9245_v23 = vadd.f32 %v11607_v14, %v8771_v50  ;;  %v11629_v50 = vld [vmem:[#allocation55_spill] sm:$0xff]  ;;  %vm3665_vm6 = vcmp.ge.f32.partialorder %v11641_v36, 0.0 }
 0x1ba   :  { %11627 = vst [vmem:[#allocation88_spill] sm:$0xff] %v9233_v39  ;;  %v9237_v8 = vsub.f32 %v9071_v61, %v9204_v25  ;;  %v4032_v19 = vpack.c.bf16 %v3928_v9, %v3920_v30  ;;  %6370 = vmatprep.subr.bf16.mxu0 %v6807_v22  ;;  %v9250_v60 = vpop.f32.mrb[61].mxu0  ;;  %v9258_v1 = vsub.f32 %v9082_v49, %v9224_v56  ;;  %vm3674_vm3 = vcmp.ge.f32.partialorder %v11629_v50, 0.0  ;;  %v6810_v49 = vld [vmem:[%s11288_s6 + $0x1a8] sm:$0xff]  }
 0x1bb   :  { %11628 = vst [vmem:[#allocation89_spill] sm:$0xff] %v9250_v60  ;;  %v2721_v61 = vmul.f32 %v9218_v11, %v9218_v11  ;;  %v2723_v10 = vmul.f32 %v9222_v15, %v9222_v15  ;;  %v9261_v34 = vpop.f32.mrb[62].mxu0  ;;  %v3802_v30 = vmul.f32 0.01, %v11629_v50  ;;  %v3922_v9 = vsel %vm3666_vm2, %v8611_v54, %v3794_v7  ;;  %v11631_v60 = vld [vmem:[#allocation7_spill] sm:$0xff]  ;;  %v6812_v7 = vld [vmem:[%s11288_s6 + $0x130] sm:$0xff]  }
 0x1bc   :  { %11630 = vst [vmem:[#allocation55_spill] sm:$0xff] %v9261_v34  ;;  %v2722_v22 = vmul.f32 %v9237_v8, %v9237_v8  ;;  %4646 = vmatprep.mubr.bf16.mxu0 %v4032_v19  ;;  %v9271_v39 = vadd.f32 %v11602_v16, %v11631_v60  ;;  %6433 = vmatpush3.bf16.msra.mxu1 %v6806_v6  ;;  %v9276_v34 = vpop.f32.mrb[60].mxu1  ;;  %v9278_v38 = vpop.f32.mrb[63].mxu0  ;;  %vm3673_vm7 = vcmp.ge.f32.partialorder %v11642_v53, 0.0  ;;  %vm3680_vm8 = vcmp.ge.f32.partialorder %v9091_v5, 0.0 }
 0x1bd   :  { %11632 = vst [vmem:[#allocation7_spill] sm:$0xff] %v9276_v34  ;;  %11633 = vst [vmem:[#allocation90_spill] sm:$0xff] %v9278_v38  ;;  %v3072_v19 = vrot.slane %v2721_v61, 4  ;;  %v3114_v43 = vrot.slane %v2723_v10, 4  ;;  %v2724_v33 = vmul.f32 %v9258_v1, %v9258_v1  ;;  %6371 = vmatpush3.bf16.msra.mxu0 %v6808_v35  ;;  %6434 = vmatprep.subr.bf16.mxu1 %v6809_v48  ;;  %v9287_v6 = vpop.f32.mrb[61].mxu1  ;;  %v6813_v35 = vld [vmem:[%s11288_s6 + $0x1f0] sm:$0xff]  }
 0x1be   :  { %11634 = vst [vmem:[#allocation91_spill] sm:$0xff] %v9287_v6  ;;  %v3093_v60 = vrot.slane %v2722_v22, 4  ;;  %v3930_v28 = vsel %vm3674_vm3, %v11629_v50, %v3802_v30  ;;  %6372 = vmatprep.subr.bf16.mxu0 %v6811_v58  ;;  %v6815_v48 = vld [vmem:[%s11288_s6 + $0x178] sm:$0xff]   ;;  %v9302_v54 = vpop.f32.mrb[62].mxu1  ;;  %v11637_v30 = vld [vmem:[#allocation15_spill] sm:$0xff]  ;;  %vm3688_vm9 = vcmp.ge.f32.partialorder %v9099_v13, 0.0 }
 0x1bf   :  { %11635 = vst [vmem:[#allocation92_spill] sm:$0xff] %v9302_v54  ;;  %v3073_v6 = vadd.f32 %v3072_v19, %v2721_v61  ;;  %v3115_v38 = vadd.f32 %v3114_v43, %v2723_v10  ;;  %v3135_v32 = vrot.slane %v2724_v33, 4  ;;  %v4034_v2 = vpack.c.bf16 %v3930_v28, %v3922_v9  ;;  %v9304_v34 = vpop.f32.mrb[63].mxu1  ;;  %v6814_v43 = vld [vmem:[%s11288_s6 + $0x1b0] sm:$0xff]   ;;  %v6816_v9 = vld [vmem:[%s11288_s6 + $0x138] sm:$0xff]   ;;  %v11640_v58 = vld [vmem:[#allocation51_spill] sm:$0xff] }
 0x1c0   :  { %11636 = vst [vmem:[#allocation93_spill] sm:$0xff] %v9304_v34  ;;  %v3094_v47 = vadd.f32 %v3093_v60, %v2722_v22  ;;  %v9312_v20 = vadd.f32 %v11603_v63, %v11637_v30  ;;  %6435 = vmatpush3.bf16.msra.mxu1 %v6810_v49  ;;  %v11638_v22 = vld [vmem:[#allocation48_spill] sm:$0xff]  ;;  %v6817_v19 = vld [vmem:[%s11288_s6 + $0x1f8] sm:$0xff]   ;;  %v11639_v60 = vld [vmem:[#allocation6_spill] sm:$0xff]  ;;  %vm3671_vm5 = vcmp.ge.f32.partialorder %v11640_v58, 0.0  ;;  %vm3682_vm10 = vcmp.ge.f32.partialorder %v9095_v44, 0.0 }
 0x1c1   :  { %v3074_v61 = vrot.slane %v3073_v6, 2  ;;  %v3116_v28 = vrot.slane %v3115_v38, 2  ;;  %v3136_v10 = vadd.f32 %v3135_v32, %v2724_v33  ;;  %4743 = vmatprep.mubr.bf16.mxu1 %v4034_v2  ;;  %vm3663_vm4 = vcmp.ge.f32.partialorder %v11638_v22, 0.0  ;;  %6373 = vmatpush3.bf16.msra.mxu0 %v6812_v7 }
 0x1c2   :  { %v3095_v49 = vrot.slane %v3094_v47, 2  ;;  %v9326_v30 = vadd.f32 %v11605_v59, %v11639_v60  ;;  %v3791_v2 = vmul.f32 0.01, %v11638_v22  ;;  %6436 = vmatprep.subr.bf16.mxu1 %v6813_v35  ;;  %6374 = vmatprep.subr.bf16.mxu0 %v6815_v48  ;;  %v3799_v50 = vmul.f32 0.01, %v11640_v58 }
 0x1c3   :  { %v3075_v32 = vadd.f32 %v3074_v61, %v3073_v6  ;;  %v3117_v33 = vadd.f32 %v3116_v28, %v3115_v38  ;;  %v3137_v7 = vrot.slane %v3136_v10, 2  ;;  %v3793_v48 = vmul.f32 0.01, %v11641_v36 }
 0x1c4   :  { %v3096_v34 = vadd.f32 %v3095_v49, %v3094_v47  ;;  %v3919_v54 = vsel %vm3663_vm4, %v11638_v22, %v3791_v2  ;;  %6437 = vmatpush3.bf16.msra.mxu1 %v6814_v43  ;;  %v3927_v35 = vsel %vm3671_vm5, %v11640_v58, %v3799_v50  ;;  %v6818_v47 = vld [vmem:[%s11288_s6 + $0x1b8] sm:$0xff]   ;;  %v3801_v61 = vmul.f32 0.01, %v11642_v53 }
 0x1c5   :  { %v3076_v60 = vrot.slane %v3075_v32, 1  ;;  %v3118_v57 = vrot.slane %v3117_v33, 1  ;;  %v3138_v3 = vadd.f32 %v3137_v7, %v3136_v10  ;;  %6375 = vmatpush3.bf16.msra.mxu0 %v6816_v9  ;;  %6438 = vmatprep.subr.bf16.mxu1 %v6817_v19  ;;  %v4031_v6 = vpack.c.bf16 %v3927_v35, %v3919_v54  ;;  %v11644_v7 = vld [vmem:[#allocation8_spill] sm:$0xff] }
 0x1c6   :  { %v3097_v38 = vrot.slane %v3096_v34, 1  ;;  %v2611_v10 = vsub.f32 %v9312_v20, %v9196_v40  ;;  %v3921_v50 = vsel %vm3665_vm6, %v11641_v36, %v3793_v48  ;;  %v3929_v54 = vsel %vm3673_vm7, %v11642_v53, %v3801_v61  ;;  %v11645_v53 = vld [vmem:[#allocation16_spill] sm:$0xff] }
 0x1c7   :  { %v3077_v43 = vadd.f32 %v3076_v60, %v3075_v32  ;;  %v3119_v28 = vadd.f32 %v3118_v57, %v3117_v33  ;;  %v3139_v22 = vrot.slane %v3138_v3, 1  ;;  %4647 = vmatmul.mubr.bf16.gmra.mrb[72].mxu0 %v4031_v6  ;;  %v4033_v2 = vpack.c.bf16 %v3929_v54, %v3921_v50  ;;  %v11643_v33 = vld [vmem:[#allocation39_spill] sm:$0xff]  ;;  %v11646_v54 = vld [vmem:[#allocation66_spill] sm:$0xff] }
 0x1c8   :  { %v3098_v49 = vadd.f32 %v3097_v38, %v3096_v34  ;;  %6439 = vmatpush3.bf16.msra.mxu1 %v6818_v47  ;;  %v9354_v34 = vadd.f32 %v11607_v14, %v11643_v33  ;;  %v9358_v60 = vadd.f32 %v11602_v16, %v11644_v7  ;;  %v2153_v47 = vadd.f32 %v11603_v63, %v11645_v53  ;;  %v11647_v7 = vld [vmem:[#allocation42_spill] sm:$0xff]  ;;  %v11649_v53 = vld [vmem:[#allocation53_spill] sm:$0xff] }
 0x1c9   :  { %v3145_v9 = vmul.f32 0.125, %v3077_v43  ;;  %v3147_v19 = vmul.f32 0.125, %v3119_v28  ;;  %v3140_v57 = vadd.f32 %v3139_v22, %v3138_v3  ;;  %4744 = vmatmul.mubr.bf16.gmra.mrb[72].mxu1 %v4033_v2  ;;  %v3808_v6 = vmul.f32 0.01, %v9091_v5 }
 0x1ca   :  { %v3146_v32 = vmul.f32 0.125, %v3098_v49  ;;  %v3816_v48 = vmul.f32 0.01, %v9099_v13  ;;  %vm3690_vm11 = vcmp.ge.f32.partialorder %v9114_v24, 0.0  ;;  %v3810_v22 = vmul.f32 0.01, %v9095_v44 }
 0x1cb   :  { %v3153_v36 = vadd.f32 1e-05, %v3145_v9  ;;  %v3155_v35 = vadd.f32 1e-05, %v3147_v19  ;;  %v3148_v38 = vmul.f32 0.125, %v3140_v57  ;;  %v3936_v43 = vsel %vm3680_vm8, %v9091_v5, %v3808_v6  ;;  %v11650_v6 = vld [vmem:[#allocation20_spill] sm:$0xff] }
 0x1cc   :  { %v3154_v3 = vadd.f32 1e-05, %v3146_v32  ;;  %v3944_v28 = vsel %vm3688_vm9, %v9099_v13, %v3816_v48  ;;  %v3818_v50 = vmul.f32 0.01, %v9114_v24  ;;  %v9374_v9 = vadd.f32 %v11605_v59, %v11646_v54 }
 0x1cd   :  { %6835 = vrsqrt.f32 %v3153_v36  ;;  %v3156_v61 = vadd.f32 1e-05, %v3148_v38  ;;  %v4040_v49 = vpack.c.bf16 %v3944_v28, %v3936_v43  ;;  %v3938_v19 = vsel %vm3682_vm10, %v9095_v44, %v3810_v22  ;;  %v11648_v38 = vld [vmem:[#allocation74_spill] sm:$0xff]  ;;  %v11656_v43 = vld [vmem:[#allocation25_spill] sm:$0xff] }
 0x1ce   :  { %6837 = vrsqrt.f32 %v3155_v35  ;;  %v9379_v57 = vadd.f32 %v11607_v14, %v8838_v4  ;;  %v9383_v5 = vadd.f32 %v11602_v16, %v8853_v26  ;;  %v2617_v2 = vsub.f32 %v9358_v60, %v9194_v18 }
 0x1cf   :  { %6839 = vrsqrt.f32 %v3154_v3  ;;  %4654 = vmatprep.mubr.bf16.mxu0 %v4040_v49  ;;  %v3946_v32 = vsel %vm3690_vm11, %v9114_v24, %v3818_v50  ;;  %v9394_v44 = vadd.f32 %v11603_v63, %v8878_v45  ;;  %v9398_v26 = vadd.f32 %v11605_v59, %v8861_v37  ;;  %v11665_v24 = vld [vmem:[#allocation56_spill] sm:$0xff] }
 0x1d0   :  { %6841 = vrsqrt.f32 %v3156_v61  ;;  %v4042_v4 = vpack.c.bf16 %v3946_v32, %v3938_v19  ;;  %v9402_v33 = vadd.f32 %v11607_v14, %v8888_v55  ;;  %v9406_v60 = vadd.f32 %v11602_v16, %v11647_v7  ;;  %v11662_v55 = vld [vmem:[#allocation26_spill] sm:$0xff] }
 0x1d1   :  { %v2619_v36 = vsub.f32 %v2153_v47, %v9196_v40  ;;  %v9415_v37 = vadd.f32 %v11603_v63, %v8899_v62  ;;  %v9421_v35 = vadd.f32 %v11605_v59, %v8880_v42  ;;  %v9425_v3 = vadd.f32 %v11607_v14, %v11648_v38  ;;  %v11661_v47 = vld [vmem:[#allocation54_spill] sm:$0xff] }
 0x1d2   :  { %4751 = vmatprep.mubr.bf16.mxu1 %v4042_v4  ;;  %vm3679_vm12 = vcmp.ge.f32.partialorder %v11649_v53, 0.0  ;;  %vm3687_vm13 = vcmp.ge.f32.partialorder %v11650_v6, 0.0  ;;  %v3807_v62 = vmul.f32 0.01, %v11649_v53  ;;  %v3815_v48 = vmul.f32 0.01, %v11650_v6 }
 0x1d3   :  { %v11651_v7 = vsub.f32 %v9185_v17, %v9194_v18  ;;  %v11652_v49 = vsub.f32 %v9271_v39, %v9194_v18  ;;  %vm3681_vm14 = vcmp.ge.f32.partialorder %v11661_v47, 0.0  ;;  %vm3689_vm15 = vcmp.ge.f32.partialorder %v11665_v24, 0.0 }
 0x1d4   :  { %v9448_v54 = vsel %vm3679_vm12, %v11649_v53, %v3807_v62  ;;  %v9451_v19 = vsel %vm3687_vm13, %v11650_v6, %v3815_v48 }
 0x1d7   :  { %v9441_v22 = vpop.eup %6835 }
 0x1d8   :  { %v9453_v32 = vpop.eup %6837  ;;  %v3169_v4 = vmul.f32 %v9441_v22, %v9218_v11  ;;  %v3177_v38 = vmul.f32 %v9441_v22, %v11651_v7  ;;  %v3185_v50 = vmul.f32 %v9441_v22, %v11652_v49  ;;  %v3193_v53 = vmul.f32 %v9441_v22, %v2617_v2  ;;  %v11654_v2 = vld [vmem:[#allocation23_spill] sm:$0xff] }
 0x1d9   :  { %v9466_v62 = vpop.eup %6839  ;;  %v3171_v6 = vmul.f32 %v9453_v32, %v9222_v15  ;;  %v11653_v11 = vsub.f32 %v9200_v0, %v9196_v40  ;;  %v3187_v17 = vmul.f32 %v9453_v32, %v2611_v10  ;;  %v3195_v39 = vmul.f32 %v9453_v32, %v2619_v36 }
 0x1da   :  { %v9479_v49 = vpop.eup %6841  ;;  %v3338_v7 = vmul.f32 %v11654_v2, %v3169_v4  ;;  %v3170_v28 = vmul.f32 %v9466_v62, %v9237_v8  ;;  %v3346_v15 = vmul.f32 %v11654_v2, %v3177_v38  ;;  %v11655_v0 = vsub.f32 %v9241_v29, %v9204_v25  ;;  %v11658_v8 = vld [vmem:[#allocation24_spill] sm:$0xff]  ;;  %v11660_v29 = vld [vmem:[#allocation27_spill] sm:$0xff] }
 0x1db   :  { %v3179_v48 = vmul.f32 %v9453_v32, %v11653_v11  ;;  %v3340_v20 = vmul.f32 %v11656_v43, %v3171_v6  ;;  %v3172_v10 = vmul.f32 %v9479_v49, %v9258_v1  ;;  %v11657_v4 = vsub.f32 %v9245_v23, %v9224_v56 }
 0x1dc   :  { %v3178_v11 = vmul.f32 %v9466_v62, %v11655_v0  ;;  %v9498_v61 = vadd.f32 %v11658_v8, %v3338_v7  ;;  %v9501_v38 = vadd.f32 %v11658_v8, %v3346_v15  ;;  %v3809_v6 = vmul.f32 0.01, %v11661_v47 }
 0x1dd   :  { %v3348_v36 = vmul.f32 %v11656_v43, %v3179_v48  ;;  %v3180_v42 = vmul.f32 %v9479_v49, %v11657_v4  ;;  %v9506_v45 = vadd.f32 %v11662_v55, %v3340_v20  ;;  %v11664_v48 = vld [vmem:[#allocation28_spill] sm:$0xff]  ;;  %v3817_v4 = vmul.f32 0.01, %v11665_v24 }
 0x1de   :  { %11659 = vst [vmem:[#allocation15_spill] sm:$0xff] %v9498_v61  ;;  %v3347_v0 = vmul.f32 %v11660_v29, %v3178_v11  ;;  %v9514_v7 = vmul.f32 0.01, %v9498_v61  ;;  %v9517_v15 = vmul.f32 %v11660_v29, %v3170_v28  ;;  %v9520_v11 = vmul.f32 %v11664_v48, %v3172_v10  ;;  %v11671_v61 = vld [vmem:[#allocation32_spill] sm:$0xff] }
 0x1df   :  { %11663 = vst [vmem:[#allocation48_spill] sm:$0xff] %v9506_v45  ;;  %v9509_v1 = vadd.f32 %v11662_v55, %v3348_v36  ;;  %v3349_v23 = vmul.f32 %v11664_v48, %v3180_v42  ;;  %v9523_v13 = vmul.f32 0.01, %v9501_v38  ;;  %v9526_v20 = vmul.f32 0.01, %v9506_v45  ;;  %v11670_v42 = vld [vmem:[#allocation31_spill] sm:$0xff] }
 0x1e0   :  { %11666 = vst [vmem:[#allocation6_spill] sm:$0xff] %v9514_v7  ;;  %v9532_v58 = vadd.f32 %v11670_v42, %v3347_v0  ;;  %v3354_v28 = vmul.f32 %v11654_v2, %v3185_v50  ;;  %v3356_v10 = vmul.f32 %v11656_v43, %v3187_v17  ;;  %v3364_v45 = vmul.f32 %v11656_v43, %v3195_v39 }
 0x1e1   :  { %11667 = vst [vmem:[#allocation51_spill] sm:$0xff] %v9523_v13  ;;  %11668 = vst [vmem:[#allocation49_spill] sm:$0xff] %v9526_v20  ;;  %v9529_v36 = vmul.f32 0.01, %v9509_v1  ;;  %v9535_v7 = vadd.f32 %v11671_v61, %v3349_v23  ;;  %v11673_v13 = vsub.f32 %v9326_v30, %v9204_v25  ;;  %v3362_v23 = vmul.f32 %v11654_v2, %v3193_v53 }
 0x1e2   :  { %v11675_v50 = vsub.f32 %v9374_v9, %v9204_v25  ;;  %v11676_v30 = vsub.f32 %v9379_v57, %v9224_v56  ;;  %v9571_v9 = vadd.f32 %v11662_v55, %v3364_v45 }
 0x1e3   :  { %11669 = vst [vmem:[#allocation52_spill] sm:$0xff] %v9529_v36  ;;  %11672 = vst [vmem:[#allocation39_spill] sm:$0xff] %v9535_v7  ;;  %v3186_v20 = vmul.f32 %v9466_v62, %v11673_v13  ;;  %v11674_v36 = vsub.f32 %v9354_v34, %v9224_v56  ;;  %v9560_v34 = vadd.f32 %v11658_v8, %v3354_v28 }
 0x1e4   :  { %v3194_v17 = vmul.f32 %v9466_v62, %v11675_v50  ;;  %v3196_v13 = vmul.f32 %v9479_v49, %v11676_v30  ;;  %v9568_v7 = vadd.f32 %v11658_v8, %v3362_v23  ;;  %v11678_v23 = vsub.f32 %v9394_v44, %v9196_v40 }
 0x1e5   :  { %v3188_v0 = vmul.f32 %v9479_v49, %v11674_v36  ;;  %v9563_v36 = vadd.f32 %v11662_v55, %v3356_v10  ;;  %v3355_v53 = vmul.f32 %v11660_v29, %v3186_v20  ;;  %v11677_v20 = vsub.f32 %v9383_v5, %v9194_v18 }
 0x1e6   :  { %v3363_v57 = vmul.f32 %v11660_v29, %v3194_v17  ;;  %v3365_v50 = vmul.f32 %v11664_v48, %v3196_v13  ;;  %v3203_v45 = vmul.f32 %v9453_v32, %v11678_v23  ;;  %v11679_v13 = vsub.f32 %v9398_v26, %v9204_v25 }
 0x1e7   :  { %v3357_v39 = vmul.f32 %v11664_v48, %v3188_v0  ;;  %v9576_v28 = vadd.f32 %v11670_v42, %v3355_v53  ;;  %v3201_v0 = vmul.f32 %v9441_v22, %v11677_v20  ;;  %v11680_v5 = vsub.f32 %v9402_v33, %v9224_v56 }
 0x1e8   :  { %v9590_v17 = vadd.f32 %v11670_v42, %v3363_v57  ;;  %v9593_v30 = vadd.f32 %v11671_v61, %v3365_v50  ;;  %v3202_v53 = vmul.f32 %v9466_v62, %v11679_v13  ;;  %v3372_v20 = vmul.f32 %v11656_v43, %v3203_v45 }
 0x1e9   :  { %v9579_v10 = vadd.f32 %v11671_v61, %v3357_v39  ;;  %v3204_v39 = vmul.f32 %v9479_v49, %v11680_v5  ;;  %v3370_v44 = vmul.f32 %v11654_v2, %v3201_v0  ;;  %v11681_v57 = vsub.f32 %v9406_v60, %v9194_v18 }
 0x1ea   :  { %v11682_v23 = vsub.f32 %v9415_v37, %v9196_v40  ;;  %v3371_v13 = vmul.f32 %v11660_v29, %v3202_v53  ;;  %v11683_v5 = vsub.f32 %v9421_v35, %v9204_v25  ;;  %v11684_v45 = vsub.f32 %v9425_v3, %v9224_v56 }
 0x1eb   :  { %v3209_v50 = vmul.f32 %v9441_v22, %v11681_v57  ;;  %v3373_v33 = vmul.f32 %v11664_v48, %v3204_v39  ;;  %v9624_v57 = vadd.f32 %v11658_v8, %v3370_v44  ;;  %v9627_v37 = vadd.f32 %v11662_v55, %v3372_v20 }
 0x1ec   :  { %v3211_v26 = vmul.f32 %v9453_v32, %v11682_v23  ;;  %v3210_v0 = vmul.f32 %v9466_v62, %v11683_v5  ;;  %v3212_v60 = vmul.f32 %v9479_v49, %v11684_v45  ;;  %v9632_v23 = vadd.f32 %v11670_v42, %v3371_v13  ;;  %v11688_v45 = vld [vmem:[#allocation58_spill] sm:$0xff] }
 0x1ed   :  { %11685 = vst [vmem:[#allocation8_spill] sm:$0xff] %v9627_v37  ;;  %v3378_v53 = vmul.f32 %v11654_v2, %v3209_v50  ;;  %v9635_v35 = vadd.f32 %v11671_v61, %v3373_v33  ;;  %v4039_v50 = vpack.c.bf16 %v9451_v19, %v9448_v54  ;;  %vm3696_vm0 = vcmp.ge.f32.partialorder %v11688_v45, 0.0  ;;  %v11690_v19 = vld [vmem:[#allocation59_spill] sm:$0xff] }
 0x1ee   :  { %v3380_v39 = vmul.f32 %v11656_v43, %v3211_v26  ;;  %v3379_v3 = vmul.f32 %v11660_v29, %v3210_v0  ;;  %v3381_v5 = vmul.f32 %v11664_v48, %v3212_v60  ;;  %v3937_v26 = vsel %vm3681_vm14, %v11661_v47, %v3809_v6  ;;  %v11691_v6 = vld [vmem:[#allocation62_spill] sm:$0xff] }
 0x1ef   :  { %v9640_v44 = vadd.f32 %v11658_v8, %v3378_v53  ;;  %v3945_v0 = vsel %vm3689_vm15, %v11665_v24, %v3817_v4  ;;  %4655 = vmatmul.mubr.bf16.gmra.mrb[76].mxu0 %v4039_v50  ;;  %v11689_v53 = vld [vmem:[#allocation61_spill] sm:$0xff]  ;;  %v3824_v54 = vmul.f32 0.01, %v11688_v45  ;;  %vm3698_vm2 = vcmp.ge.f32.partialorder %v11690_v19, 0.0 }
 0x1f0   :  { %v9643_v20 = vadd.f32 %v11662_v55, %v3380_v39  ;;  %v9651_v13 = vadd.f32 %v11670_v42, %v3379_v3  ;;  %v9654_v33 = vadd.f32 %v11671_v61, %v3381_v5  ;;  %v4041_v60 = vpack.c.bf16 %v3945_v0, %v3937_v26 }
 0x1f1   :  { %11686 = vst [vmem:[#allocation16_spill] sm:$0xff] %v9640_v44  ;;  %vm3704_vm1 = vcmp.ge.f32.partialorder %v11689_v53, 0.0  ;;  %v3832_v47 = vmul.f32 0.01, %v11689_v53  ;;  %vm3706_vm3 = vcmp.ge.f32.partialorder %v11691_v6, 0.0  ;;  %v3952_v24 = vsel %vm3696_vm0, %v11688_v45, %v3824_v54 }
 0x1f2   :  { %11687 = vst [vmem:[#allocation66_spill] sm:$0xff] %v9643_v20  ;;  %v3826_v39 = vmul.f32 0.01, %v11690_v19  ;;  %v3834_v3 = vmul.f32 0.01, %v11691_v6  ;;  %4752 = vmatmul.mubr.bf16.gmra.mrb[76].mxu1 %v4041_v60  ;;  %v2175_v5 = vadd.f32 %v11602_v16, %v8921_v12  ;;  %v2177_v50 = vadd.f32 %v11603_v63, %v8947_v46 }
 0x1f3   :  { %v3960_v4 = vsel %vm3704_vm1, %v11689_v53, %v3832_v47  ;;  %v2176_v37 = vadd.f32 %v11605_v59, %v8928_v21  ;;  %v2178_v53 = vadd.f32 %v11607_v14, %v8957_v41  ;;  %v2183_v46 = vadd.f32 %v11602_v16, %v8939_v52 }
 0x1f4   :  { %v4048_v26 = vpack.c.bf16 %v3960_v4, %v3952_v24  ;;  %v3954_v0 = vsel %vm3698_vm2, %v11690_v19, %v3826_v39  ;;  %v3962_v20 = vsel %vm3706_vm3, %v11691_v6, %v3834_v3  ;;  %v2641_v60 = vsub.f32 %v2175_v5, %v9194_v18 }
 0x1f5   :  { %v4050_v44 = vpack.c.bf16 %v3962_v20, %v3954_v0  ;;  %v2643_v45 = vsub.f32 %v2177_v50, %v9196_v40  ;;  %v2642_v12 = vsub.f32 %v2176_v37, %v9204_v25  ;;  %v2185_v54 = vadd.f32 %v11603_v63, %v8965_v31 }
 0x1f6   :  { %4662 = vmatprep.mubr.bf16.mxu0 %v4048_v26  ;;  %v2184_v21 = vadd.f32 %v11605_v59, %v8949_v51  ;;  %v3217_v20 = vmul.f32 %v9441_v22, %v2641_v60  ;;  %v2644_v19 = vsub.f32 %v2178_v53, %v9224_v56  ;;  %v2186_v41 = vadd.f32 %v11607_v14, %v8972_v27 }
 0x1f7   :  { %4759 = vmatprep.mubr.bf16.mxu1 %v4050_v44  ;;  %v3219_v47 = vmul.f32 %v9453_v32, %v2643_v45  ;;  %v3218_v37 = vmul.f32 %v9466_v62, %v2642_v12  ;;  %v2649_v52 = vsub.f32 %v2183_v46, %v9194_v18  ;;  %v2651_v6 = vsub.f32 %v2185_v54, %v9196_v40 }
 0x1f8   :  { %v2650_v31 = vsub.f32 %v2184_v21, %v9204_v25  ;;  %v3386_v51 = vmul.f32 %v11654_v2, %v3217_v20  ;;  %v3220_v39 = vmul.f32 %v9479_v49, %v2644_v19  ;;  %v2652_v3 = vsub.f32 %v2186_v41, %v9224_v56  ;;  %v11693_v20 = vld [vmem:[#allocation21_spill] sm:$0xff] }
 0x1f9   :  { %v3388_v44 = vmul.f32 %v11656_v43, %v3219_v47  ;;  %v3387_v24 = vmul.f32 %v11660_v29, %v3218_v37  ;;  %v3225_v27 = vmul.f32 %v9441_v22, %v2649_v52  ;;  %v3227_v4 = vmul.f32 %v9453_v32, %v2651_v6  ;;  %v11694_v47 = vld [vmem:[#allocation22_spill] sm:$0xff] }
 0x1fa   :  { %v3226_v5 = vmul.f32 %v9466_v62, %v2650_v31  ;;  %v9706_v50 = vadd.f32 %v11658_v8, %v3386_v51  ;;  %v3389_v0 = vmul.f32 %v11664_v48, %v3220_v39  ;;  %v3228_v60 = vmul.f32 %v9479_v49, %v2652_v3  ;;  %v11697_v51 = vld [vmem:[#allocation57_spill] sm:$0xff] }
 0x1fb   :  { %v9709_v26 = vadd.f32 %v11662_v55, %v3388_v44  ;;  %v9714_v45 = vadd.f32 %v11670_v42, %v3387_v24  ;;  %v3394_v53 = vmul.f32 %v11654_v2, %v3225_v27  ;;  %v3396_v12 = vmul.f32 %v11656_v43, %v3227_v4  ;;  %v11698_v44 = vld [vmem:[#allocation60_spill] sm:$0xff]  ;;  %v11699_v27 = vld [vmem:[#allocation30_spill] sm:$0xff] }
 0x1fc   :  { %v3395_v46 = vmul.f32 %v11660_v29, %v3226_v5  ;;  %v9720_v54 = vadd.f32 %v11671_v61, %v3389_v0  ;;  %v3397_v21 = vmul.f32 %v11664_v48, %v3228_v60  ;;  %vm3695_vm4 = vcmp.ge.f32.partialorder %v11693_v20, 0.0  ;;  %v11700_v5 = vld [vmem:[#allocation67_spill] sm:$0xff] }
 0x1fd   :  { %11692 = vst [vmem:[#allocation42_spill] sm:$0xff] %v9709_v26  ;;  %vm3703_vm5 = vcmp.ge.f32.partialorder %v11694_v47, 0.0  ;;  %v9726_v19 = vadd.f32 %v11658_v8, %v3394_v53  ;;  %v9729_v41 = vadd.f32 %v11662_v55, %v3396_v12  ;;  %v3823_v52 = vmul.f32 0.01, %v11693_v20  ;;  %v11702_v26 = vld [vmem:[#allocation68_spill] sm:$0xff] }
 0x1fe   :  { %v9732_v37 = vadd.f32 %v11670_v42, %v3395_v46  ;;  %v9736_v6 = vadd.f32 %v11671_v61, %v3397_v21  ;;  %v3831_v31 = vmul.f32 0.01, %v11694_v47  ;;  %vm3697_vm6 = vcmp.ge.f32.partialorder %v11697_v51, 0.0  ;;  %v11701_v21 = vld [vmem:[#allocation35_spill] sm:$0xff] }
 0x1ff   :  { %11695 = vst [vmem:[#allocation74_spill] sm:$0xff] %v9726_v19  ;;  %11696 = vst [vmem:[#allocation53_spill] sm:$0xff] %v9729_v41  ;;  %vm3705_vm7 = vcmp.ge.f32.partialorder %v11698_v44, 0.0  ;;  %v3951_v39 = vsel %vm3695_vm4, %v11693_v20, %v3823_v52  ;;  %v3825_v3 = vmul.f32 0.01, %v11697_v51  ;;  %vm3712_vm8 = vcmp.ge.f32.partialorder %v11699_v27, 0.0 }
 0x200   :  { %v3833_v24 = vmul.f32 0.01, %v11698_v44  ;;  %v3959_v4 = vsel %vm3703_vm5, %v11694_v47, %v3831_v31  ;;  %vm3720_vm9 = vcmp.ge.f32.partialorder %v11700_v5, 0.0  ;;  %v3840_v0 = vmul.f32 0.01, %v11699_v27 }
 0x201   :  { %v3848_v60 = vmul.f32 0.01, %v11700_v5  ;;  %v4047_v53 = vpack.c.bf16 %v3959_v4, %v3951_v39  ;;  %v3953_v12 = vsel %vm3697_vm6, %v11697_v51, %v3825_v3  ;;  %vm3714_vm10 = vcmp.ge.f32.partialorder %v11701_v21, 0.0  ;;  %v11703_v39 = vld [vmem:[#allocation38_spill] sm:$0xff]  ;;  %v11706_v4 = vld [vmem:[#allocation36_spill] sm:$0xff] }
 0x202   :  { %v3961_v46 = vsel %vm3705_vm7, %v11698_v44, %v3833_v24  ;;  %v3968_v52 = vsel %vm3712_vm8, %v11699_v27, %v3840_v0  ;;  %vm3722_vm11 = vcmp.ge.f32.partialorder %v11702_v26, 0.0  ;;  %v3842_v31 = vmul.f32 0.01, %v11701_v21  ;;  %v11704_v44 = vld [vmem:[#allocation40_spill] sm:$0xff]  ;;  %v11705_v24 = vld [vmem:[#allocation10_spill] sm:$0xff] }
 0x203   :  { %v4049_v20 = vpack.c.bf16 %v3961_v46, %v3953_v12  ;;  %v3976_v41 = vsel %vm3720_vm9, %v11700_v5, %v3848_v60  ;;  %4663 = vmatmul.mubr.bf16.gmra.mrb[80].mxu0 %v4047_v53  ;;  %v3850_v19 = vmul.f32 0.01, %v11702_v26  ;;  %v2191_v51 = vadd.f32 %v11602_v16, %v11703_v39  ;;  %v11707_v0 = vld [vmem:[#allocation80_spill] sm:$0xff] }
 0x204   :  { %v4056_v47 = vpack.c.bf16 %v3976_v41, %v3968_v52  ;;  %v2193_v3 = vadd.f32 %v11603_v63, %v11704_v44  ;;  %v2192_v27 = vadd.f32 %v11605_v59, %v11705_v24  ;;  %v2194_v5 = vadd.f32 %v11607_v14, %v11706_v4  ;;  %v11708_v46 = vld [vmem:[#allocation44_spill] sm:$0xff] }
 0x205   :  { %4760 = vmatmul.mubr.bf16.gmra.mrb[80].mxu1 %v4049_v20  ;;  %v2199_v41 = vadd.f32 %v11602_v16, %v11707_v0  ;;  %v3970_v60 = vsel %vm3714_vm10, %v11701_v21, %v3842_v31  ;;  %v3978_v53 = vsel %vm3722_vm11, %v11702_v26, %v3850_v19  ;;  %v2657_v12 = vsub.f32 %v2191_v51, %v9194_v18  ;;  %v11709_v31 = vld [vmem:[#allocation41_spill] sm:$0xff]  ;;  %v11710_v0 = vld [vmem:[#allocation43_spill] sm:$0xff] }
 0x206   :  { %4670 = vmatprep.mubr.bf16.mxu0 %v4056_v47  ;;  %v2201_v20 = vadd.f32 %v11603_v63, %v11708_v46  ;;  %v4058_v52 = vpack.c.bf16 %v3978_v53, %v3970_v60  ;;  %v2659_v39 = vsub.f32 %v2193_v3, %v9196_v40  ;;  %v2658_v44 = vsub.f32 %v2192_v27, %v9204_v25 }
 0x207   :  { %v2660_v24 = vsub.f32 %v2194_v5, %v9224_v56  ;;  %v3233_v47 = vmul.f32 %v9441_v22, %v2657_v12  ;;  %v2665_v4 = vsub.f32 %v2199_v41, %v9194_v18  ;;  %v2200_v26 = vadd.f32 %v11605_v59, %v11709_v31 }
 0x208   :  { %v2667_v21 = vsub.f32 %v2201_v20, %v9196_v40  ;;  %4767 = vmatprep.mubr.bf16.mxu1 %v4058_v52  ;;  %v3235_v19 = vmul.f32 %v9453_v32, %v2659_v39  ;;  %v3234_v51 = vmul.f32 %v9466_v62, %v2658_v44  ;;  %v2202_v27 = vadd.f32 %v11607_v14, %v11710_v0  ;;  %v11717_v0 = vld [vmem:[#allocation63_spill] sm:$0xff] }
 0x209   :  { %v3236_v3 = vmul.f32 %v9479_v49, %v2660_v24  ;;  %v3402_v5 = vmul.f32 %v11654_v2, %v3233_v47  ;;  %v3241_v60 = vmul.f32 %v9441_v22, %v2665_v4  ;;  %v2666_v53 = vsub.f32 %v2200_v26, %v9204_v25 }
 0x20a   :  { %v3243_v41 = vmul.f32 %v9453_v32, %v2667_v21  ;;  %v3404_v12 = vmul.f32 %v11656_v43, %v3235_v19  ;;  %v3403_v46 = vmul.f32 %v11660_v29, %v3234_v51  ;;  %v2668_v52 = vsub.f32 %v2202_v27, %v9224_v56 }
 0x20b   :  { %v3405_v20 = vmul.f32 %v11664_v48, %v3236_v3  ;;  %v9796_v39 = vadd.f32 %v11658_v8, %v3402_v5  ;;  %v3410_v44 = vmul.f32 %v11654_v2, %v3241_v60  ;;  %v3242_v47 = vmul.f32 %v9466_v62, %v2666_v53  ;;  %v11718_v5 = vld [vmem:[#allocation64_spill] sm:$0xff] }
 0x20c   :  { %v3412_v24 = vmul.f32 %v11656_v43, %v3243_v41  ;;  %v9802_v4 = vadd.f32 %v11662_v55, %v3404_v12  ;;  %v9805_v21 = vadd.f32 %v11670_v42, %v3403_v46  ;;  %v3244_v26 = vmul.f32 %v9479_v49, %v2668_v52  ;;  %v11720_v12 = vld [vmem:[#allocation29_spill] sm:$0xff] }
 0x20d   :  { %11711 = vst [vmem:[#allocation20_spill] sm:$0xff] %v9796_v39  ;;  %v9808_v31 = vadd.f32 %v11671_v61, %v3405_v20  ;;  %v9812_v19 = vadd.f32 %v11658_v8, %v3410_v44  ;;  %v3411_v3 = vmul.f32 %v11660_v29, %v3242_v47  ;;  %vm3711_vm12 = vcmp.ge.f32.partialorder %v11717_v0, 0.0  ;;  %v11721_v46 = vld [vmem:[#allocation65_spill] sm:$0xff] }
 0x20e   :  { %11712 = vst [vmem:[#allocation23_spill] sm:$0xff] %v9802_v4  ;;  %11713 = vst [vmem:[#allocation25_spill] sm:$0xff] %v9805_v21  ;;  %v9815_v51 = vadd.f32 %v11662_v55, %v3412_v24  ;;  %v3413_v27 = vmul.f32 %v11664_v48, %v3244_v26  ;;  %vm3719_vm13 = vcmp.ge.f32.partialorder %v11718_v5, 0.0  ;;  %v3839_v60 = vmul.f32 0.01, %v11717_v0  ;;  %v11724_v4 = vld [vmem:[#allocation34_spill] sm:$0xff] }
 0x20f   :  { %11714 = vst [vmem:[#allocation24_spill] sm:$0xff] %v9808_v31  ;;  %11715 = vst [vmem:[#allocation27_spill] sm:$0xff] %v9812_v19  ;;  %v3847_v41 = vmul.f32 0.01, %v11718_v5  ;;  %v9824_v53 = vadd.f32 %v11670_v42, %v3411_v3  ;;  %vm3713_vm14 = vcmp.ge.f32.partialorder %v11720_v12, 0.0  ;;  %vm3721_vm15 = vcmp.ge.f32.partialorder %v11721_v46, 0.0 }
 0x210   :  { %11716 = vst [vmem:[#allocation54_spill] sm:$0xff] %v9815_v51  ;;  %v3841_v20 = vmul.f32 0.01, %v11720_v12  ;;  %v9830_v52 = vadd.f32 %v11671_v61, %v3413_v27  ;;  %v3967_v44 = vsel %vm3711_vm12, %v11717_v0, %v3839_v60  ;;  %v3849_v47 = vmul.f32 0.01, %v11721_v46  ;;  %v11723_v3 = vld [vmem:[#allocation70_spill] sm:$0xff] }
 0x211   :  { %11719 = vst [vmem:[#allocation26_spill] sm:$0xff] %v9824_v53  ;;  %v3975_v24 = vsel %vm3719_vm13, %v11718_v5, %v3847_v41  ;;  %vm3728_vm0 = vcmp.ge.f32.partialorder %v11723_v3, 0.0  ;;  %vm3736_vm1 = vcmp.ge.f32.partialorder %v11724_v4, 0.0  ;;  %v3856_v39 = vmul.f32 0.01, %v11723_v3  ;;  %v11726_v5 = vld [vmem:[#allocation75_spill] sm:$0xff] }
 0x212   :  { %11722 = vst [vmem:[#allocation28_spill] sm:$0xff] %v9830_v52  ;;  %v4055_v26 = vpack.c.bf16 %v3975_v24, %v3967_v44  ;;  %v3969_v51 = vsel %vm3713_vm14, %v11720_v12, %v3841_v20  ;;  %v3977_v19 = vsel %vm3721_vm15, %v11721_v46, %v3849_v47  ;;  %v3864_v27 = vmul.f32 0.01, %v11724_v4  ;;  %v11725_v52 = vld [vmem:[#allocation71_spill] sm:$0xff]  ;;  %v11728_v24 = vld [vmem:[#allocation13_spill] sm:$0xff] }
 0x213   :  { %vm3730_vm2 = vcmp.ge.f32.partialorder %v11725_v52, 0.0  ;;  %v4057_v0 = vpack.c.bf16 %v3977_v19, %v3969_v51  ;;  %vm3738_vm3 = vcmp.ge.f32.partialorder %v11726_v5, 0.0  ;;  %v3858_v60 = vmul.f32 0.01, %v11725_v52  ;;  %v11727_v44 = vld [vmem:[#allocation47_spill] sm:$0xff] }
 0x214   :  { %4671 = vmatmul.mubr.bf16.gmra.mrb[84].mxu0 %v4055_v26  ;;  %v3866_v41 = vmul.f32 0.01, %v11726_v5  ;;  %v3984_v12 = vsel %vm3728_vm0, %v11723_v3, %v3856_v39  ;;  %v3992_v20 = vsel %vm3736_vm1, %v11724_v4, %v3864_v27  ;;  %v2207_v46 = vadd.f32 %v11602_v16, %v11727_v44  ;;  %v11729_v26 = vld [vmem:[#allocation11_spill] sm:$0xff]  ;;  %v11730_v3 = vld [vmem:[#allocation82_spill] sm:$0xff] }
 0x215   :  { %v2209_v47 = vadd.f32 %v11603_v63, %v11728_v24  ;;  %4768 = vmatmul.mubr.bf16.gmra.mrb[84].mxu1 %v4057_v0  ;;  %v4064_v31 = vpack.c.bf16 %v3992_v20, %v3984_v12  ;;  %v3986_v19 = vsel %vm3730_vm2, %v11725_v52, %v3858_v60  ;;  %v2208_v53 = vadd.f32 %v11605_v59, %v11729_v26  ;;  %v11731_v0 = vld [vmem:[#allocation12_spill] sm:$0xff]  ;;  %v11732_v52 = vld [vmem:[#allocation45_spill] sm:$0xff]  ;;  %v11733_v60 = vld [vmem:[#allocation14_spill] sm:$0xff] }
 0x216   :  { %v3994_v51 = vsel %vm3738_vm3, %v11726_v5, %v3866_v41  ;;  %v2673_v39 = vsub.f32 %v2207_v46, %v9194_v18  ;;  %v2210_v27 = vadd.f32 %v11607_v14, %v11730_v3  ;;  %v2215_v12 = vadd.f32 %v11602_v16, %v11731_v0 }
 0x217   :  { %v4066_v21 = vpack.c.bf16 %v3994_v51, %v3986_v19  ;;  %v2675_v4 = vsub.f32 %v2209_v47, %v9196_v40  ;;  %4678 = vmatprep.mubr.bf16.mxu0 %v4064_v31  ;;  %v2674_v44 = vsub.f32 %v2208_v53, %v9204_v25  ;;  %v2217_v5 = vadd.f32 %v11603_v63, %v11732_v52  ;;  %v11734_v47 = vld [vmem:[#allocation18_spill] sm:$0xff] }
 0x218   :  { %v2216_v41 = vadd.f32 %v11605_v59, %v11733_v60  ;;  %v3249_v20 = vmul.f32 %v9441_v22, %v2673_v39  ;;  %v2676_v24 = vsub.f32 %v2210_v27, %v9224_v56  ;;  %v2218_v31 = vadd.f32 %v11607_v14, %v11734_v47 }
 0x219   :  { %4775 = vmatprep.mubr.bf16.mxu1 %v4066_v21  ;;  %v3251_v46 = vmul.f32 %v9453_v32, %v2675_v4  ;;  %v3250_v53 = vmul.f32 %v9466_v62, %v2674_v44  ;;  %v2681_v19 = vsub.f32 %v2215_v12, %v9194_v18  ;;  %v2683_v51 = vsub.f32 %v2217_v5, %v9196_v40 }
 0x21a   :  { %v2682_v26 = vsub.f32 %v2216_v41, %v9204_v25  ;;  %v3418_v3 = vmul.f32 %v11654_v2, %v3249_v20  ;;  %v3252_v39 = vmul.f32 %v9479_v49, %v2676_v24  ;;  %v2684_v4 = vsub.f32 %v2218_v31, %v9224_v56 }
 0x21b   :  { %v3420_v21 = vmul.f32 %v11656_v43, %v3251_v46  ;;  %v3419_v27 = vmul.f32 %v11660_v29, %v3250_v53  ;;  %v3257_v0 = vmul.f32 %v9441_v22, %v2681_v19  ;;  %v3259_v44 = vmul.f32 %v9453_v32, %v2683_v51  ;;  %v11739_v19 = vld [vmem:[#allocation69_spill] sm:$0xff]  ;;  %v11740_v51 = vld [vmem:[#allocation72_spill] sm:$0xff] }
 0x21c   :  { %v3258_v12 = vmul.f32 %v9466_v62, %v2682_v26  ;;  %v9884_v52 = vadd.f32 %v11658_v8, %v3418_v3  ;;  %v3421_v60 = vmul.f32 %v11664_v48, %v3252_v39  ;;  %v3260_v41 = vmul.f32 %v9479_v49, %v2684_v4 }
 0x21d   :  { %v9887_v5 = vadd.f32 %v11662_v55, %v3420_v21  ;;  %v9892_v20 = vadd.f32 %v11670_v42, %v3419_v27  ;;  %v3426_v46 = vmul.f32 %v11654_v2, %v3257_v0  ;;  %v3428_v24 = vmul.f32 %v11656_v43, %v3259_v44  ;;  %v11745_v0 = vld [vmem:[#allocation17_spill] sm:$0xff] }
 0x21e   :  { %11735 = vst [vmem:[#allocation56_spill] sm:$0xff] %v9884_v52  ;;  %v3427_v47 = vmul.f32 %v11660_v29, %v3258_v12  ;;  %v9898_v31 = vadd.f32 %v11671_v61, %v3421_v60  ;;  %v3429_v53 = vmul.f32 %v11664_v48, %v3260_v41  ;;  %vm3727_vm4 = vcmp.ge.f32.partialorder %v11739_v19, 0.0  ;;  %v11746_v44 = vld [vmem:[#allocation73_spill] sm:$0xff] }
 0x21f   :  { %11736 = vst [vmem:[#allocation31_spill] sm:$0xff] %v9887_v5  ;;  %11737 = vst [vmem:[#allocation32_spill] sm:$0xff] %v9892_v20  ;;  %vm3735_vm5 = vcmp.ge.f32.partialorder %v11740_v51, 0.0  ;;  %v9904_v26 = vadd.f32 %v11658_v8, %v3426_v46  ;;  %v9907_v3 = vadd.f32 %v11662_v55, %v3428_v24  ;;  %v3855_v39 = vmul.f32 0.01, %v11739_v19  ;;  %v11747_v46 = vld [vmem:[#allocation37_spill] sm:$0xff] }
 0x220   :  { %11738 = vst [vmem:[#allocation58_spill] sm:$0xff] %v9898_v31  ;;  %v9910_v21 = vadd.f32 %v11670_v42, %v3427_v47  ;;  %v9914_v4 = vadd.f32 %v11671_v61, %v3429_v53  ;;  %v3863_v27 = vmul.f32 0.01, %v11740_v51  ;;  %vm3729_vm6 = vcmp.ge.f32.partialorder %v11745_v0, 0.0  ;;  %v11748_v47 = vld [vmem:[#allocation33_spill] sm:$0xff] }
 0x221   :  { %11741 = vst [vmem:[#allocation61_spill] sm:$0xff] %v9904_v26  ;;  %11742 = vst [vmem:[#allocation59_spill] sm:$0xff] %v9907_v3  ;;  %vm3737_vm7 = vcmp.ge.f32.partialorder %v11746_v44, 0.0  ;;  %v3983_v12 = vsel %vm3727_vm4, %v11739_v19, %v3855_v39  ;;  %v3857_v60 = vmul.f32 0.01, %v11745_v0  ;;  %vm3744_vm8 = vcmp.ge.f32.partialorder %v11747_v46, 0.0 }
 0x222   :  { %11743 = vst [vmem:[#allocation62_spill] sm:$0xff] %v9910_v21  ;;  %11744 = vst [vmem:[#allocation21_spill] sm:$0xff] %v9914_v4  ;;  %v3865_v41 = vmul.f32 0.01, %v11746_v44  ;;  %v3991_v24 = vsel %vm3735_vm5, %v11740_v51, %v3863_v27  ;;  %vm3752_vm9 = vcmp.ge.f32.partialorder %v11748_v47, 0.0  ;;  %v11749_v19 = vld [vmem:[#allocation9_spill] sm:$0xff] }
 0x223   :  { %v3872_v53 = vmul.f32 0.01, %v11747_v46  ;;  %v3880_v3 = vmul.f32 0.01, %v11748_v47  ;;  %v4063_v5 = vpack.c.bf16 %v3991_v24, %v3983_v12  ;;  %v3985_v26 = vsel %vm3729_vm6, %v11745_v0, %v3857_v60  ;;  %v11750_v21 = vld [vmem:[#allocation81_spill] sm:$0xff]  ;;  %v11751_v12 = vld [vmem:[#allocation19_spill] sm:$0xff] }
 0x224   :  { %v3993_v52 = vsel %vm3737_vm7, %v11746_v44, %v3865_v41  ;;  %vm3746_vm10 = vcmp.ge.f32.partialorder %v11749_v19, 0.0  ;;  %vm3754_vm11 = vcmp.ge.f32.partialorder %v11750_v21, 0.0  ;;  %v3874_v27 = vmul.f32 0.01, %v11749_v19  ;;  %v11752_v44 = vld [vmem:[#allocation83_spill] sm:$0xff]  ;;  %v11754_v41 = vld [vmem:[#allocation85_spill] sm:$0xff] }
 0x225   :  { %v4065_v39 = vpack.c.bf16 %v3993_v52, %v3985_v26  ;;  %v4000_v4 = vsel %vm3744_vm8, %v11747_v46, %v3872_v53  ;;  %v4008_v31 = vsel %vm3752_vm9, %v11748_v47, %v3880_v3  ;;  %4679 = vmatmul.mubr.bf16.gmra.mrb[88].mxu0 %v4063_v5  ;;  %v3882_v20 = vmul.f32 0.01, %v11750_v21  ;;  %v11753_v52 = vld [vmem:[#allocation46_spill] sm:$0xff] }
 0x226   :  { %v4072_v51 = vpack.c.bf16 %v4008_v31, %v4000_v4  ;;  %v2223_v0 = vadd.f32 %v11602_v16, %v11751_v12  ;;  %v2225_v60 = vadd.f32 %v11603_v63, %v11752_v44  ;;  %v2224_v26 = vadd.f32 %v11605_v59, %v11753_v52  ;;  %v11755_v46 = vld [vmem:[#allocation50_spill] sm:$0xff] }
 0x227   :  { %4776 = vmatmul.mubr.bf16.gmra.mrb[88].mxu1 %v4065_v39  ;;  %v2226_v3 = vadd.f32 %v11607_v14, %v11754_v41  ;;  %v2231_v5 = vadd.f32 %v11602_v16, %v11755_v46  ;;  %v4002_v31 = vsel %vm3746_vm10, %v11749_v19, %v3874_v27  ;;  %v4010_v4 = vsel %vm3754_vm11, %v11750_v21, %v3882_v20  ;;  %v11756_v47 = vld [vmem:[#allocation86_spill] sm:$0xff]  ;;  %v11757_v27 = vld [vmem:[#allocation84_spill] sm:$0xff]  ;;  %v11758_v46 = vld [vmem:[#allocation87_spill] sm:$0xff] }
 0x228   :  { %4686 = vmatprep.mubr.bf16.mxu0 %v4072_v51  ;;  %v2689_v24 = vsub.f32 %v2223_v0, %v9194_v18  ;;  %v2233_v53 = vadd.f32 %v11603_v63, %v11756_v47  ;;  %v4074_v39 = vpack.c.bf16 %v4010_v4, %v4002_v31  ;;  %v2691_v12 = vsub.f32 %v2225_v60, %v9196_v40 }
 0x229   :  { %v2690_v44 = vsub.f32 %v2224_v26, %v9204_v25  ;;  %v2692_v52 = vsub.f32 %v2226_v3, %v9224_v56  ;;  %v2697_v41 = vsub.f32 %v2231_v5, %v9194_v18  ;;  %v2232_v20 = vadd.f32 %v11605_v59, %v11757_v27 }
 0x22a   :  { %v3265_v51 = vmul.f32 %v9441_v22, %v2689_v24  ;;  %v2699_v19 = vsub.f32 %v2233_v53, %v9196_v40  ;;  %4783 = vmatprep.mubr.bf16.mxu1 %v4074_v39  ;;  %v3267_v21 = vmul.f32 %v9453_v32, %v2691_v12  ;;  %v2234_v26 = vadd.f32 %v11607_v14, %v11758_v46  ;;  %v11764_v46 = vld [vmem:[#allocation76_spill] sm:$0xff] }
 0x22b   :  { %v3266_v0 = vmul.f32 %v9466_v62, %v2690_v44  ;;  %v3268_v60 = vmul.f32 %v9479_v49, %v2692_v52  ;;  %v3273_v31 = vmul.f32 %v9441_v22, %v2697_v41  ;;  %v2698_v4 = vsub.f32 %v2232_v20, %v9204_v25 }
 0x22c   :  { %v3434_v3 = vmul.f32 %v11654_v2, %v3265_v51  ;;  %v3275_v5 = vmul.f32 %v9453_v32, %v2699_v19  ;;  %v3436_v24 = vmul.f32 %v11656_v43, %v3267_v21  ;;  %v2700_v39 = vsub.f32 %v2234_v26, %v9224_v56 }
 0x22d   :  { %v3435_v47 = vmul.f32 %v11660_v29, %v3266_v0  ;;  %v3437_v53 = vmul.f32 %v11664_v48, %v3268_v60  ;;  %v3442_v44 = vmul.f32 %v11654_v2, %v3273_v31  ;;  %v3274_v51 = vmul.f32 %v9466_v62, %v2698_v4 }
 0x22e   :  { %v9974_v12 = vadd.f32 %v11658_v8, %v3434_v3  ;;  %v3444_v52 = vmul.f32 %v11656_v43, %v3275_v5  ;;  %v9980_v41 = vadd.f32 %v11662_v55, %v3436_v24  ;;  %v3276_v20 = vmul.f32 %v9479_v49, %v2700_v39  ;;  %v11765_v3 = vld [vmem:[#allocation78_spill] sm:$0xff]  ;;  %v11767_v24 = vld [vmem:[#allocation77_spill] sm:$0xff] }
 0x22f   :  { %v9983_v19 = vadd.f32 %v11670_v42, %v3435_v47  ;;  %v9986_v27 = vadd.f32 %v11671_v61, %v3437_v53  ;;  %v9990_v21 = vadd.f32 %v11658_v8, %v3442_v44  ;;  %v3443_v60 = vmul.f32 %v11660_v29, %v3274_v51  ;;  %v11768_v47 = vld [vmem:[#allocation79_spill] sm:$0xff] }
 0x230   :  { %11759 = vst [vmem:[#allocation22_spill] sm:$0xff] %v9974_v12  ;;  %11760 = vst [vmem:[#allocation57_spill] sm:$0xff] %v9980_v41  ;;  %v9993_v0 = vadd.f32 %v11662_v55, %v3444_v52  ;;  %vm3743_vm12 = vcmp.ge.f32.partialorder %v11764_v46, 0.0  ;;  %v3445_v26 = vmul.f32 %v11664_v48, %v3276_v20  ;;  %vm3751_vm13 = vcmp.ge.f32.partialorder %v11765_v3, 0.0 }
 0x231   :  { %11761 = vst [vmem:[#allocation60_spill] sm:$0xff] %v9986_v27  ;;  %11762 = vst [vmem:[#allocation30_spill] sm:$0xff] %v9990_v21  ;;  %v3871_v31 = vmul.f32 0.01, %v11764_v46  ;;  %v3879_v5 = vmul.f32 0.01, %v11765_v3  ;;  %v10002_v4 = vadd.f32 %v11670_v42, %v3443_v60 }
 0x232   :  { %11763 = vst [vmem:[#allocation67_spill] sm:$0xff] %v9993_v0  ;;  %vm3745_vm14 = vcmp.ge.f32.partialorder %v11767_v24, 0.0  ;;  %vm3753_vm15 = vcmp.ge.f32.partialorder %v11768_v47, 0.0  ;;  %v3873_v53 = vmul.f32 0.01, %v11767_v24  ;;  %v10008_v39 = vadd.f32 %v11671_v61, %v3445_v26  ;;  %v11770_v60 = vld [vmem:[#allocation88_spill] sm:$0xff] }
 0x233   :  { %11766 = vst [vmem:[#allocation35_spill] sm:$0xff] %v10002_v4  ;;  %v3999_v44 = vsel %vm3743_vm12, %v11764_v46, %v3871_v31  ;;  %v4007_v52 = vsel %vm3751_vm13, %v11765_v3, %v3879_v5  ;;  %v3881_v51 = vmul.f32 0.01, %v11768_v47  ;;  %v2239_v41 = vadd.f32 %v11602_v16, %v11770_v60  ;;  %v11771_v21 = vld [vmem:[#allocation7_spill] sm:$0xff]  ;;  %v11772_v4 = vld [vmem:[#allocation89_spill] sm:$0xff] }
 0x234   :  { %11769 = vst [vmem:[#allocation68_spill] sm:$0xff] %v10008_v39  ;;  %v4071_v20 = vpack.c.bf16 %v4007_v52, %v3999_v44  ;;  %v4001_v0 = vsel %vm3745_vm14, %v11767_v24, %v3873_v53  ;;  %v2241_v12 = vadd.f32 %v11603_v63, %v11771_v21  ;;  %v2240_v26 = vadd.f32 %v11605_v59, %v11772_v4  ;;  %v11773_v39 = vld [vmem:[#allocation91_spill] sm:$0xff]  ;;  %v11775_v44 = vld [vmem:[#allocation92_spill] sm:$0xff]  ;;  %v11776_v52 = vld [vmem:[#allocation90_spill] sm:$0xff] }
 0x235   :  { %v4009_v27 = vsel %vm3753_vm15, %v11768_v47, %v3881_v51  ;;  %v2242_v46 = vadd.f32 %v11607_v14, %v11773_v39  ;;  %v11774_v3 = vld [vmem:[#allocation55_spill] sm:$0xff]  ;;  %v2705_v24 = vsub.f32 %v2239_v41, %v9194_v18  ;;  %v2249_v21 = vadd.f32 %v11603_v63, %v11775_v44 }
 0x236   :  { %v2247_v31 = vadd.f32 %v11602_v16, %v11774_v3  ;;  %4687 = vmatmul.mubr.bf16.gmra.mrb[92].mxu0 %v4071_v20  ;;  %v4073_v5 = vpack.c.bf16 %v4009_v27, %v4001_v0  ;;  %v2707_v53 = vsub.f32 %v2241_v12, %v9196_v40  ;;  %vm3643_vm0 = vcmp.ge.f32.partialorder %v9501_v38, 0.0  ;;  %v11777_v0 = vld [vmem:[#allocation93_spill] sm:$0xff] }
 0x237   :  { %v2706_v47 = vsub.f32 %v2240_v26, %v9204_v25  ;;  %v2708_v4 = vsub.f32 %v2242_v46, %v9224_v56  ;;  %v2248_v16 = vadd.f32 %v11605_v59, %v11776_v52  ;;  %v3281_v27 = vmul.f32 %v9441_v22, %v2705_v24 }
 0x238   :  { %v2713_v39 = vsub.f32 %v2247_v31, %v9194_v18  ;;  %4784 = vmatmul.mubr.bf16.gmra.mrb[92].mxu1 %v4073_v5  ;;  %v3283_v41 = vmul.f32 %v9453_v32, %v2707_v53  ;;  %v2715_v12 = vsub.f32 %v2249_v21, %v9196_v40  ;;  %v2250_v63 = vadd.f32 %v11607_v14, %v11777_v0 }
 0x239   :  { %vm3645_vm1 = vcmp.ge.f32.partialorder %v9509_v1, 0.0  ;;  %v3282_v51 = vmul.f32 %v9466_v62, %v2706_v47  ;;  %v3284_v20 = vmul.f32 %v9479_v49, %v2708_v4  ;;  %v2714_v59 = vsub.f32 %v2248_v16, %v9204_v25  ;;  %v11778_v4 = vld [vmem:[#allocation39_spill] sm:$0xff] }
 0x23a   :  { %v3289_v18 = vmul.f32 %v9441_v22, %v2713_v39  ;;  %v3450_v60 = vmul.f32 %v11654_v2, %v3281_v27  ;;  %v3452_v26 = vmul.f32 %v11656_v43, %v3283_v41  ;;  %v3291_v46 = vmul.f32 %v9453_v32, %v2715_v12  ;;  %v11780_v27 = vld [vmem:[#allocation6_spill] sm:$0xff]  ;;  %v11781_v41 = vld [vmem:[#allocation51_spill] sm:$0xff] }
 0x23b   :  { %v2716_v40 = vsub.f32 %v2250_v63, %v9224_v56  ;;  %v3451_v14 = vmul.f32 %v11660_v29, %v3282_v51  ;;  %v3453_v3 = vmul.f32 %v11664_v48, %v3284_v20  ;;  %v3290_v5 = vmul.f32 %v9466_v62, %v2714_v59  ;;  %v11782_v51 = vld [vmem:[#allocation48_spill] sm:$0xff]  ;;  %v11783_v20 = vld [vmem:[#allocation49_spill] sm:$0xff] }
 0x23c   :  { %v3458_v31 = vmul.f32 %v11654_v2, %v3289_v18  ;;  %v10054_v22 = vadd.f32 %v11658_v8, %v3450_v60  ;;  %v10057_v25 = vadd.f32 %v11662_v55, %v3452_v26  ;;  %v3460_v24 = vmul.f32 %v11656_v43, %v3291_v46  ;;  %v11784_v59 = vld [vmem:[#allocation52_spill] sm:$0xff] }
 0x23d   :  { %v3292_v32 = vmul.f32 %v9479_v49, %v2716_v40  ;;  %v10062_v56 = vadd.f32 %v11670_v42, %v3451_v14  ;;  %v10065_v53 = vadd.f32 %v11671_v61, %v3453_v3  ;;  %v3459_v62 = vmul.f32 %v11660_v29, %v3290_v5 }
 0x23e   :  { %v10068_v2 = vadd.f32 %v11658_v8, %v3458_v31  ;;  %v10072_v44 = vadd.f32 %v11662_v55, %v3460_v24  ;;  %v3508_v43 = vadd.f32 %v11670_v42, %v9517_v15  ;;  %vm3644_vm2 = vcmp.ge.f32.partialorder %v9532_v58, 0.0 }
 0x23f   :  { %v3461_v21 = vmul.f32 %v11664_v48, %v3292_v32  ;;  %v10079_v49 = vadd.f32 %v11670_v42, %v3459_v62  ;;  %v3772_v47 = vmul.f32 0.01, %v9532_v58  ;;  %v3510_v8 = vadd.f32 %v11671_v61, %v9520_v11  ;;  %v11779_v42 = vld [vmem:[#allocation15_spill] sm:$0xff] }
 0x240   :  { %vm3646_vm3 = vcmp.ge.f32.partialorder %v11778_v4, 0.0  ;;  %vm3636_vm4 = vcmp.ge.f32.partialorder %v3508_v43, 0.0  ;;  %v3764_v29 = vmul.f32 0.01, %v3508_v43  ;;  %v3774_v48 = vmul.f32 0.01, %v11778_v4 }
 0x241   :  { %v10086_v55 = vadd.f32 %v11671_v61, %v3461_v21  ;;  %v3900_v15 = vsel %vm3644_vm2, %v9532_v58, %v3772_v47  ;;  %vm3638_vm5 = vcmp.ge.f32.partialorder %v3510_v8, 0.0  ;;  %v3766_v39 = vmul.f32 0.01, %v3510_v8 }
 0x242   :  { %vm3635_vm6 = vcmp.ge.f32.partialorder %v11779_v42, 0.0  ;;  %v3892_v52 = vsel %vm3636_vm4, %v3508_v43, %v3764_v29  ;;  %v3902_v16 = vsel %vm3646_vm3, %v11778_v4, %v3774_v48  ;;  %v3899_v61 = vsel %vm3643_vm0, %v9501_v38, %v11781_v41 }
 0x243   :  { %v3891_v11 = vsel %vm3635_vm6, %v11779_v42, %v11780_v27  ;;  %v4020_v12 = vpack.c.bf16 %v3900_v15, %v3892_v52  ;;  %v3894_v0 = vsel %vm3638_vm5, %v3510_v8, %v3766_v39  ;;  %vm3637_vm7 = vcmp.ge.f32.partialorder %v11782_v51, 0.0  ;;  %v11787_v27 = vld [vmem:[#allocation66_spill] sm:$0xff] }
 0x244   :  { %v4019_v63 = vpack.c.bf16 %v3899_v61, %v3891_v11  ;;  %v4022_v58 = vpack.c.bf16 %v3902_v16, %v3894_v0  ;;  %v3893_v18 = vsel %vm3637_vm7, %v11782_v51, %v11783_v20  ;;  %v3901_v60 = vsel %vm3645_vm1, %v9509_v1, %v11784_v59 }
 0x245   :  { %vm3652_vm8 = vcmp.ge.f32.partialorder %v9576_v28, 0.0  ;;  %4824 = vmatprep.mubr.bf16.mxu0 %v4020_v12  ;;  %v4021_v26 = vpack.c.bf16 %v3901_v60, %v3893_v18  ;;  %vm3660_vm9 = vcmp.ge.f32.partialorder %v9590_v17, 0.0  ;;  %v3780_v38 = vmul.f32 0.01, %v9576_v28 }
 0x246   :  { %v3788_v46 = vmul.f32 0.01, %v9590_v17  ;;  %4921 = vmatprep.mubr.bf16.mxu1 %v4022_v58  ;;  %4825 = vmatmul.mubr.bf16.vlgmr.msra.gmra.mrb[96].mxu0 %v4019_v63  ;;  %vm3654_vm10 = vcmp.ge.f32.partialorder %v9579_v10, 0.0  ;;  %vm3662_vm11 = vcmp.ge.f32.partialorder %v9593_v30, 0.0  ;;  %v3782_v40 = vmul.f32 0.01, %v9579_v10 }
 0x247   :  { %v3790_v1 = vmul.f32 0.01, %v9593_v30  ;;  %4922 = vmatmul.mubr.bf16.vlgmr.msra.gmra.mrb[96].mxu1 %v4021_v26  ;;  %v3908_v14 = vsel %vm3652_vm8, %v9576_v28, %v3780_v38  ;;  %vm3651_vm12 = vcmp.ge.f32.partialorder %v9560_v34, 0.0  ;;  %vm3659_vm13 = vcmp.ge.f32.partialorder %v9568_v7, 0.0  ;;  %v11788_v26 = vld [vmem:[#allocation74_spill] sm:$0xff] }
 0x248   :  { %v3916_v3 = vsel %vm3660_vm9, %v9590_v17, %v3788_v46  ;;  %v3910_v5 = vsel %vm3654_vm10, %v9579_v10, %v3782_v40  ;;  %v3779_v32 = vmul.f32 0.01, %v9560_v34  ;;  %v3787_v21 = vmul.f32 0.01, %v9568_v7 }
 0x249   :  { %v4028_v31 = vpack.c.bf16 %v3916_v3, %v3908_v14  ;;  %v3918_v24 = vsel %vm3662_vm11, %v9593_v30, %v3790_v1  ;;  %vm3653_vm14 = vcmp.ge.f32.partialorder %v9563_v36, 0.0  ;;  %vm3661_vm15 = vcmp.ge.f32.partialorder %v9571_v9, 0.0 }
 0x24a   :  { %v4030_v62 = vpack.c.bf16 %v3918_v24, %v3910_v5  ;;  %v3907_v28 = vsel %vm3651_vm12, %v9560_v34, %v3779_v32  ;;  %v3781_v17 = vmul.f32 0.01, %v9563_v36  ;;  %v3789_v43 = vmul.f32 0.01, %v9571_v9  ;;  %v11792_v32 = vld [vmem:[#allocation26_spill] sm:$0xff] }
 0x24b   :  { %4832 = vmatprep.mubr.bf16.mxu0 %v4028_v31  ;;  %vm3668_vm0 = vcmp.ge.f32.partialorder %v9632_v23, 0.0  ;;  %v3915_v10 = vsel %vm3659_vm13, %v9568_v7, %v3787_v21  ;;  %vm3676_vm1 = vcmp.ge.f32.partialorder %v9651_v13, 0.0  ;;  %v3796_v30 = vmul.f32 0.01, %v9632_v23  ;;  %v11789_v31 = vld [vmem:[#allocation42_spill] sm:$0xff] }
 0x24c   :  { %4929 = vmatprep.mubr.bf16.mxu1 %v4030_v62  ;;  %v3804_v47 = vmul.f32 0.01, %v9651_v13  ;;  %v4027_v8 = vpack.c.bf16 %v3915_v10, %v3907_v28  ;;  %v3909_v4 = vsel %vm3653_vm14, %v9563_v36, %v3781_v17  ;;  %v3917_v34 = vsel %vm3661_vm15, %v9571_v9, %v3789_v43  ;;  %v11785_v36 = vld [vmem:[#allocation16_spill] sm:$0xff] }
 0x24d   :  { %vm3670_vm2 = vcmp.ge.f32.partialorder %v9635_v35, 0.0  ;;  %v4029_v29 = vpack.c.bf16 %v3917_v34, %v3909_v4  ;;  %v3924_v48 = vsel %vm3668_vm0, %v9632_v23, %v3796_v30  ;;  %vm3678_vm3 = vcmp.ge.f32.partialorder %v9654_v33, 0.0  ;;  %v11786_v23 = vld [vmem:[#allocation8_spill] sm:$0xff] }
 0x24e   :  { %v3932_v15 = vsel %vm3676_vm1, %v9651_v13, %v3804_v47  ;;  %4833 = vmatmul.mubr.bf16.gmra.mrb[100].mxu0 %v4027_v8  ;;  %v3798_v39 = vmul.f32 0.01, %v9635_v35  ;;  %v3806_v42 = vmul.f32 0.01, %v9654_v33  ;;  %vm3667_vm4 = vcmp.ge.f32.partialorder %v9624_v57, 0.0  ;;  %v11793_v43 = vld [vmem:[#allocation24_spill] sm:$0xff] }
 0x24f   :  { %v4036_v7 = vpack.c.bf16 %v3932_v15, %v3924_v48  ;;  %4930 = vmatmul.mubr.bf16.gmra.mrb[100].mxu1 %v4029_v29  ;;  %vm3675_vm5 = vcmp.ge.f32.partialorder %v11785_v36, 0.0  ;;  %v3795_v9 = vmul.f32 0.01, %v9624_v57  ;;  %v3803_v52 = vmul.f32 0.01, %v11785_v36  ;;  %v11794_v8 = vld [vmem:[#allocation28_spill] sm:$0xff] }
 0x250   :  { %vm3669_vm6 = vcmp.ge.f32.partialorder %v11786_v23, 0.0  ;;  %v3926_v13 = vsel %vm3670_vm2, %v9635_v35, %v3798_v39  ;;  %v3934_v16 = vsel %vm3678_vm3, %v9654_v33, %v3806_v42  ;;  %vm3677_vm7 = vcmp.ge.f32.partialorder %v11787_v27, 0.0  ;;  %v11795_v48 = vld [vmem:[#allocation20_spill] sm:$0xff]  ;;  %v11796_v15 = vld [vmem:[#allocation27_spill] sm:$0xff] }
 0x251   :  { %4840 = vmatprep.mubr.bf16.mxu0 %v4036_v7  ;;  %v3797_v11 = vmul.f32 0.01, %v11786_v23  ;;  %v4038_v41 = vpack.c.bf16 %v3934_v16, %v3926_v13  ;;  %v3923_v61 = vsel %vm3667_vm4, %v9624_v57, %v3795_v9  ;;  %v3931_v12 = vsel %vm3675_vm5, %v11785_v36, %v3803_v52  ;;  %v11797_v42 = vld [vmem:[#allocation23_spill] sm:$0xff]  ;;  %v11798_v52 = vld [vmem:[#allocation54_spill] sm:$0xff] }
 0x252   :  { %v3805_v0 = vmul.f32 0.01, %v11787_v27  ;;  %v4035_v63 = vpack.c.bf16 %v3931_v12, %v3923_v61  ;;  %vm3684_vm8 = vcmp.ge.f32.partialorder %v9714_v45, 0.0  ;;  %vm3692_vm9 = vcmp.ge.f32.partialorder %v9732_v37, 0.0  ;;  %v11799_v12 = vld [vmem:[#allocation32_spill] sm:$0xff] }
 0x253   :  { %v3925_v51 = vsel %vm3669_vm6, %v11786_v23, %v3797_v11  ;;  %4937 = vmatprep.mubr.bf16.mxu1 %v4038_v41  ;;  %v3812_v33 = vmul.f32 0.01, %v9714_v45  ;;  %v3820_v58 = vmul.f32 0.01, %v9732_v37  ;;  %vm3686_vm10 = vcmp.ge.f32.partialorder %v9720_v54, 0.0 }
 0x254   :  { %v3933_v35 = vsel %vm3677_vm7, %v11787_v27, %v3805_v0  ;;  %vm3694_vm11 = vcmp.ge.f32.partialorder %v9736_v6, 0.0  ;;  %v3814_v20 = vmul.f32 0.01, %v9720_v54  ;;  %v3822_v18 = vmul.f32 0.01, %v9736_v6  ;;  %v11800_v0 = vld [vmem:[#allocation62_spill] sm:$0xff] }
 0x255   :  { %v4037_v57 = vpack.c.bf16 %v3933_v35, %v3925_v51  ;;  %v3940_v59 = vsel %vm3684_vm8, %v9714_v45, %v3812_v33  ;;  %v3948_v60 = vsel %vm3692_vm9, %v9732_v37, %v3820_v58  ;;  %vm3683_vm12 = vcmp.ge.f32.partialorder %v9706_v50, 0.0  ;;  %v11790_v45 = vld [vmem:[#allocation53_spill] sm:$0xff]  ;;  %v11801_v33 = vld [vmem:[#allocation58_spill] sm:$0xff] }
 0x256   :  { %vm3691_vm13 = vcmp.ge.f32.partialorder %v11788_v26, 0.0  ;;  %4841 = vmatmul.mubr.bf16.gmra.mrb[104].mxu0 %v4035_v63  ;;  %v4044_v38 = vpack.c.bf16 %v3948_v60, %v3940_v59  ;;  %v3942_v46 = vsel %vm3686_vm10, %v9720_v54, %v3814_v20  ;;  %v3950_v40 = vsel %vm3694_vm11, %v9736_v6, %v3822_v18  ;;  %v11791_v54 = vld [vmem:[#allocation25_spill] sm:$0xff] }
 0x257   :  { %v3811_v1 = vmul.f32 0.01, %v9706_v50  ;;  %4938 = vmatmul.mubr.bf16.gmra.mrb[104].mxu1 %v4037_v57  ;;  %v4046_v14 = vpack.c.bf16 %v3950_v40, %v3942_v46  ;;  %v3819_v3 = vmul.f32 0.01, %v11788_v26  ;;  %vm3685_vm14 = vcmp.ge.f32.partialorder %v11789_v31, 0.0  ;;  %v11802_v57 = vld [vmem:[#allocation21_spill] sm:$0xff] }
 0x258   :  { %vm3693_vm15 = vcmp.ge.f32.partialorder %v11790_v45, 0.0  ;;  %4848 = vmatprep.mubr.bf16.mxu0 %v4044_v38  ;;  %v3813_v5 = vmul.f32 0.01, %v11789_v31  ;;  %v3821_v24 = vmul.f32 0.01, %v11790_v45  ;;  %vm3700_vm0 = vcmp.ge.f32.partialorder %v11791_v54, 0.0 }
 0x259   :  { %v3939_v37 = vsel %vm3683_vm12, %v9706_v50, %v3811_v1  ;;  %4945 = vmatprep.mubr.bf16.mxu1 %v4046_v14  ;;  %v3947_v6 = vsel %vm3691_vm13, %v11788_v26, %v3819_v3  ;;  %vm3708_vm1 = vcmp.ge.f32.partialorder %v11792_v32, 0.0  ;;  %v3828_v62 = vmul.f32 0.01, %v11791_v54  ;;  %v11803_v26 = vld [vmem:[#allocation56_spill] sm:$0xff]  ;;  %v11804_v38 = vld [vmem:[#allocation61_spill] sm:$0xff] }
 0x25a   :  { %v3836_v21 = vmul.f32 0.01, %v11792_v32  ;;  %v4043_v28 = vpack.c.bf16 %v3947_v6, %v3939_v37  ;;  %v3941_v50 = vsel %vm3685_vm14, %v11789_v31, %v3813_v5  ;;  %v3949_v17 = vsel %vm3693_vm15, %v11790_v45, %v3821_v24  ;;  %v11805_v45 = vld [vmem:[#allocation31_spill] sm:$0xff] }
 0x25b   :  { %vm3702_vm2 = vcmp.ge.f32.partialorder %v11793_v43, 0.0  ;;  %v4045_v10 = vpack.c.bf16 %v3949_v17, %v3941_v50  ;;  %v3956_v30 = vsel %vm3700_vm0, %v11791_v54, %v3828_v62  ;;  %vm3710_vm3 = vcmp.ge.f32.partialorder %v11794_v8, 0.0  ;;  %v11806_v37 = vld [vmem:[#allocation59_spill] sm:$0xff] }
 0x25c   :  { %v3964_v47 = vsel %vm3708_vm1, %v11792_v32, %v3836_v21  ;;  %v3830_v34 = vmul.f32 0.01, %v11793_v43  ;;  %v3838_v29 = vmul.f32 0.01, %v11794_v8  ;;  %vm3699_vm4 = vcmp.ge.f32.partialorder %v11795_v48, 0.0  ;;  %v11807_v32 = vld [vmem:[#allocation35_spill] sm:$0xff] }
 0x25d   :  { %v4052_v4 = vpack.c.bf16 %v3964_v47, %v3956_v30  ;;  %vm3707_vm5 = vcmp.ge.f32.partialorder %v11796_v15, 0.0  ;;  %v3827_v7 = vmul.f32 0.01, %v11795_v48  ;;  %v3835_v39 = vmul.f32 0.01, %v11796_v15 }
 0x25e   :  { %vm3701_vm6 = vcmp.ge.f32.partialorder %v11797_v42, 0.0  ;;  %4849 = vmatmul.mubr.bf16.gmra.mrb[108].mxu0 %v4043_v28  ;;  %v3958_v36 = vsel %vm3702_vm2, %v11793_v43, %v3830_v34  ;;  %v3966_v9 = vsel %vm3710_vm3, %v11794_v8, %v3838_v29  ;;  %vm3709_vm7 = vcmp.ge.f32.partialorder %v11798_v52, 0.0  ;;  %v11808_v43 = vld [vmem:[#allocation60_spill] sm:$0xff] }
 0x25f   :  { %v3829_v23 = vmul.f32 0.01, %v11797_v42  ;;  %4946 = vmatmul.mubr.bf16.gmra.mrb[108].mxu1 %v4045_v10  ;;  %4856 = vmatprep.mubr.bf16.mxu0 %v4052_v4  ;;  %v4054_v13 = vpack.c.bf16 %v3966_v9, %v3958_v36  ;;  %v3955_v16 = vsel %vm3699_vm4, %v11795_v48, %v3827_v7  ;;  %v3963_v27 = vsel %vm3707_vm5, %v11796_v15, %v3835_v39  ;;  %v11809_v8 = vld [vmem:[#allocation68_spill] sm:$0xff]  ;;  %v11810_v48 = vld [vmem:[#allocation22_spill] sm:$0xff]  ;;  %v11813_v9 = vld [vmem:[#allocation67_spill] sm:$0xff] }
 0x260   :  { %v3837_v11 = vmul.f32 0.01, %v11798_v52  ;;  %v4051_v41 = vpack.c.bf16 %v3963_v27, %v3955_v16  ;;  %vm3716_vm8 = vcmp.ge.f32.partialorder %v11799_v12, 0.0  ;;  %vm3724_vm9 = vcmp.ge.f32.partialorder %v11800_v0, 0.0  ;;  %v11811_v15 = vld [vmem:[#allocation30_spill] sm:$0xff] }
 0x261   :  { %v3957_v61 = vsel %vm3701_vm6, %v11797_v42, %v3829_v23  ;;  %4953 = vmatprep.mubr.bf16.mxu1 %v4054_v13  ;;  %v3844_v51 = vmul.f32 0.01, %v11799_v12  ;;  %v3852_v35 = vmul.f32 0.01, %v11800_v0  ;;  %vm3718_vm10 = vcmp.ge.f32.partialorder %v11801_v33, 0.0  ;;  %v11812_v42 = vld [vmem:[#allocation57_spill] sm:$0xff] }
 0x262   :  { %v3965_v63 = vsel %vm3709_vm7, %v11798_v52, %v3837_v11  ;;  %vm3726_vm11 = vcmp.ge.f32.partialorder %v11802_v57, 0.0  ;;  %v3846_v20 = vmul.f32 0.01, %v11801_v33  ;;  %v3854_v18 = vmul.f32 0.01, %v11802_v57 }
 0x263   :  { %v4053_v58 = vpack.c.bf16 %v3965_v63, %v3957_v61  ;;  %v3972_v59 = vsel %vm3716_vm8, %v11799_v12, %v3844_v51  ;;  %v3980_v60 = vsel %vm3724_vm9, %v11800_v0, %v3852_v35  ;;  %vm3715_vm12 = vcmp.ge.f32.partialorder %v11803_v26, 0.0 }
 0x264   :  { %vm3723_vm13 = vcmp.ge.f32.partialorder %v11804_v38, 0.0  ;;  %v4060_v46 = vpack.c.bf16 %v3980_v60, %v3972_v59  ;;  %v3974_v40 = vsel %vm3718_vm10, %v11801_v33, %v3846_v20  ;;  %v3982_v1 = vsel %vm3726_vm11, %v11802_v57, %v3854_v18 }
 0x265   :  { %v3843_v14 = vmul.f32 0.01, %v11803_v26  ;;  %v4062_v3 = vpack.c.bf16 %v3982_v1, %v3974_v40  ;;  %v3851_v31 = vmul.f32 0.01, %v11804_v38  ;;  %vm3717_vm14 = vcmp.ge.f32.partialorder %v11805_v45, 0.0 }
 0x266   :  { %vm3725_vm15 = vcmp.ge.f32.partialorder %v11806_v37, 0.0  ;;  %4857 = vmatmul.mubr.bf16.gmra.mrb[112].mxu0 %v4051_v41  ;;  %v3845_v24 = vmul.f32 0.01, %v11805_v45  ;;  %v3853_v54 = vmul.f32 0.01, %v11806_v37  ;;  %vm3732_vm0 = vcmp.ge.f32.partialorder %v9983_v19, 0.0 }
 0x267   :  { %v3971_v5 = vsel %vm3715_vm12, %v11803_v26, %v3843_v14  ;;  %4954 = vmatmul.mubr.bf16.gmra.mrb[112].mxu1 %v4053_v58  ;;  %4864 = vmatprep.mubr.bf16.mxu0 %v4060_v46  ;;  %v3979_v6 = vsel %vm3723_vm13, %v11804_v38, %v3851_v31  ;;  %vm3740_vm1 = vcmp.ge.f32.partialorder %v11807_v32, 0.0  ;;  %v3860_v62 = vmul.f32 0.01, %v9983_v19 }
 0x268   :  { %v3868_v21 = vmul.f32 0.01, %v11807_v32  ;;  %4961 = vmatprep.mubr.bf16.mxu1 %v4062_v3  ;;  %v4059_v28 = vpack.c.bf16 %v3979_v6, %v3971_v5  ;;  %v3973_v50 = vsel %vm3717_vm14, %v11805_v45, %v3845_v24  ;;  %v3981_v17 = vsel %vm3725_vm15, %v11806_v37, %v3853_v54  ;;  %v10282_v3 = vld [vmem:[%s11289_s7] ss:$0 sm:$0xff] }
 0x269   :  { %vm3734_vm2 = vcmp.ge.f32.partialorder %v11808_v43, 0.0  ;;  %v4061_v10 = vpack.c.bf16 %v3981_v17, %v3973_v50  ;;  %v3988_v30 = vsel %vm3732_vm0, %v9983_v19, %v3860_v62  ;;  %vm3742_vm3 = vcmp.ge.f32.partialorder %v11809_v8, 0.0 }
 0x26a   :  { %v3996_v47 = vsel %vm3740_vm1, %v11807_v32, %v3868_v21  ;;  %v3862_v34 = vmul.f32 0.01, %v11808_v43  ;;  %v3870_v29 = vmul.f32 0.01, %v11809_v8  ;;  %vm3731_vm4 = vcmp.ge.f32.partialorder %v11810_v48, 0.0 }
 0x26b   :  { %v4068_v4 = vpack.c.bf16 %v3996_v47, %v3988_v30  ;;  %vm3739_vm5 = vcmp.ge.f32.partialorder %v11811_v15, 0.0  ;;  %v3859_v7 = vmul.f32 0.01, %v11810_v48  ;;  %v3867_v39 = vmul.f32 0.01, %v11811_v15 }
 0x26c   :  { %vm3733_vm6 = vcmp.ge.f32.partialorder %v11812_v42, 0.0  ;;  %v3990_v19 = vsel %vm3734_vm2, %v11808_v43, %v3862_v34  ;;  %v3998_v36 = vsel %vm3742_vm3, %v11809_v8, %v3870_v29  ;;  %vm3741_vm7 = vcmp.ge.f32.partialorder %v11813_v9, 0.0 }
 0x26d   :  { %v3861_v52 = vmul.f32 0.01, %v11812_v42  ;;  %v4070_v23 = vpack.c.bf16 %v3998_v36, %v3990_v19  ;;  %v3987_v13 = vsel %vm3731_vm4, %v11810_v48, %v3859_v7  ;;  %v3995_v16 = vsel %vm3739_vm5, %v11811_v15, %v3867_v39 }
 0x26e   :  { %v3869_v27 = vmul.f32 0.01, %v11813_v9  ;;  %4865 = vmatmul.mubr.bf16.gmra.mrb[116].mxu0 %v4059_v28  ;;  %v4067_v11 = vpack.c.bf16 %v3995_v16, %v3987_v13  ;;  %vm3748_vm8 = vcmp.ge.f32.partialorder %v10062_v56, 0.0  ;;  %vm3756_vm9 = vcmp.ge.f32.partialorder %v10079_v49, 0.0 }
 0x26f   :  { %v3989_v41 = vsel %vm3733_vm6, %v11812_v42, %v3861_v52  ;;  %4962 = vmatmul.mubr.bf16.gmra.mrb[116].mxu1 %v4061_v10  ;;  %4872 = vmatprep.mubr.bf16.mxu0 %v4068_v4  ;;  %v3876_v12 = vmul.f32 0.01, %v10062_v56  ;;  %v3884_v0 = vmul.f32 0.01, %v10079_v49  ;;  %vm3750_vm10 = vcmp.ge.f32.partialorder %v10065_v53, 0.0 }
 0x270   :  { %v3997_v61 = vsel %vm3741_vm7, %v11813_v9, %v3869_v27  ;;  %4969 = vmatprep.mubr.bf16.mxu1 %v4070_v23  ;;  %vm3758_vm11 = vcmp.ge.f32.partialorder %v10086_v55, 0.0  ;;  %v3878_v51 = vmul.f32 0.01, %v10065_v53  ;;  %v3886_v35 = vmul.f32 0.01, %v10086_v55 }
 0x271   :  { %v4069_v63 = vpack.c.bf16 %v3997_v61, %v3989_v41  ;;  %v4004_v33 = vsel %vm3748_vm8, %v10062_v56, %v3876_v12  ;;  %v4012_v58 = vsel %vm3756_vm9, %v10079_v49, %v3884_v0  ;;  %vm3747_vm12 = vcmp.ge.f32.partialorder %v10054_v22, 0.0 }
 0x272   :  { %vm3755_vm13 = vcmp.ge.f32.partialorder %v10068_v2, 0.0  ;;  %v4076_v57 = vpack.c.bf16 %v4012_v58, %v4004_v33  ;;  %v4006_v20 = vsel %vm3750_vm10, %v10065_v53, %v3878_v51  ;;  %v4014_v18 = vsel %vm3758_vm11, %v10086_v55, %v3886_v35 }
 0x273   :  { %v3875_v59 = vmul.f32 0.01, %v10054_v22  ;;  %v4078_v60 = vpack.c.bf16 %v4014_v18, %v4006_v20  ;;  %v3883_v26 = vmul.f32 0.01, %v10068_v2  ;;  %vm3749_vm14 = vcmp.ge.f32.partialorder %v10057_v25, 0.0 }
 0x274   :  { %vm3757_vm15 = vcmp.ge.f32.partialorder %v10072_v44, 0.0  ;;  %v3877_v56 = vmul.f32 0.01, %v10057_v25  ;;  %v3885_v49 = vmul.f32 0.01, %v10072_v44 }
 0x275   :  { %v4003_v38 = vsel %vm3747_vm12, %v10054_v22, %v3875_v59  ;;  %v4011_v46 = vsel %vm3755_vm13, %v10068_v2, %v3883_v26 }
 0x276   :  { %4873 = vmatmul.mubr.bf16.gmra.mrb[120].mxu0 %v4067_v11  ;;  %v4075_v53 = vpack.c.bf16 %v4011_v46, %v4003_v38  ;;  %v4005_v55 = vsel %vm3749_vm14, %v10057_v25, %v3877_v56  ;;  %v4013_v40 = vsel %vm3757_vm15, %v10072_v44, %v3885_v49 }
 0x277   :  { %4970 = vmatmul.mubr.bf16.gmra.mrb[120].mxu1 %v4069_v63  ;;  %4880 = vmatprep.mubr.bf16.mxu0 %v4076_v57  ;;  %v4077_v1 = vpack.c.bf16 %v4013_v40, %v4005_v55 }
 0x278   :  { %4977 = vmatprep.mubr.bf16.mxu1 %v4078_v60 }
 0x279   :  { %v6248_v14 = vpop.f32.mrb[64].mxu0 }
 0x27a   :  { %v6249_v22 = vpop.f32.mrb[65].mxu0 }
 0x27b   :  { %v6250_v2 = vadd.f32 %v6249_v22, %v6248_v14  ;;  %v6251_v31 = vpop.f32.mrb[66].mxu0  ;;  %v6819_v22 = vld [vmem:[%s11292_s10] sm:$0xff]  }
 0x27c   :  { %v6312_v45 = vpop.f32.mrb[64].mxu1  ;;  %v6252_v37 = vpop.f32.mrb[67].mxu0  ;;  %6521 = vmatprep.subr.bf16.mxu0 %v6819_v22 }
 0x27d   :  { %v4633_v25 = vadd.f32 %v6250_v2, %v10282_v3  ;;  %v6313_v44 = vpop.f32.mrb[65].mxu1  ;;  %v6253_v5 = vadd.f32 %v6252_v37, %v6251_v31  ;;  %6522 = vmatpush3.bf16.msra.mxu0 %v6819_v22  ;;  %v6820_v2 = vld [vmem:[%s11292_s10 + $0x8] sm:$0xff]   ;;  %v6821_v31 = vld [vmem:[%s11292_s10 + $0x10] sm:$0xff]  }
 0x27e   :  { %4881 = vmatmul.mubr.bf16.gmra.mrb[124].mxu0 %v4075_v53  ;;  %v6314_v24 = vadd.f32 %v6313_v44, %v6312_v45  ;;  %v6315_v54 = vpop.f32.mrb[66].mxu1  ;;  %6523 = vmatprep.subr.bf16.mxu0 %v6820_v2  ;;  %v6822_v44 = vld [vmem:[%s11292_s10 + $0x18] sm:$0xff]  }
 0x27f   :  { %4978 = vmatmul.mubr.bf16.gmra.mrb[124].mxu1 %v4077_v1  ;;  %v4636_v6 = vadd.f32 %v6253_v5, %v10282_v3  ;;  %v6316_v32 = vpop.f32.mrb[67].mxu1 }
 0x280   :  { %v10286_v62 = vadd.f32 %v6314_v24, %v4633_v25  ;;  %v6317_v21 = vadd.f32 %v6316_v32, %v6315_v54 }
 0x281   :  { %6524 = vmatpush3.bf16.msra.mxu0 %v6820_v2 }
 0x282   :  { %v10288_v28 = vadd.f32 %v6317_v21, %v4636_v6  ;;  %6525 = vmatprep.subr.bf16.mxu0 %v6821_v31 }
 0x285   :  { %6526 = vmatpush3.bf16.msra.mxu0 %v6821_v31 }
 0x286   :  { %6527 = vmatprep.subr.bf16.mxu0 %v6822_v44 }
 0x287   :  { %v6254_v50 = vpop.f32.mrb[68].mxu0 }
 0x288   :  { %v6255_v17 = vpop.f32.mrb[69].mxu0 }
 0x289   :  { %v6256_v43 = vadd.f32 %v6255_v17, %v6254_v50  ;;  %v6257_v10 = vpop.f32.mrb[70].mxu0  ;;  %6528 = vmatpush3.bf16.msra.mxu0 %v6822_v44 }
 0x28a   :  { %v6318_v30 = vpop.f32.mrb[68].mxu1  ;;  %v6258_v47 = vpop.f32.mrb[71].mxu0 }
 0x28b   :  { %v4641_v8 = vadd.f32 %v6256_v43, %v10282_v3  ;;  %v6319_v4 = vpop.f32.mrb[69].mxu1  ;;  %v6259_v34 = vadd.f32 %v6258_v47, %v6257_v10 }
 0x28c   :  { %v6320_v29 = vadd.f32 %v6319_v4, %v6318_v30  ;;  %v6321_v48 = vpop.f32.mrb[70].mxu1  ;;  %v6823_v30 = vld [vmem:[%s11292_s10 + $0x20] sm:$0xff]  }
 0x28d   :  { %v4644_v15 = vadd.f32 %v6259_v34, %v10282_v3  ;;  %v6322_v7 = vpop.f32.mrb[71].mxu1  ;;  %6529 = vmatprep.subr.bf16.mxu0 %v6823_v30  ;;  %v6824_v34 = vld [vmem:[%s11292_s10 + $0x28] sm:$0xff]  }
 0x28e   :  { %v10292_v39 = vadd.f32 %v6320_v29, %v4641_v8  ;;  %v6323_v42 = vadd.f32 %v6322_v7, %v6321_v48  ;;  %6530 = vmatpush3.bf16.msra.mxu0 %v6823_v30  ;;  %v6825_v29 = vld [vmem:[%s11292_s10 + $0x30] sm:$0xff]   ;;  %v6826_v7 = vld [vmem:[%s11292_s10 + $0x38] sm:$0xff]  }
 0x28f   :  { %6531 = vmatprep.subr.bf16.mxu0 %v6824_v34 }
 0x290   :  { %v10294_v19 = vadd.f32 %v6323_v42, %v4644_v15 }
 0x292   :  { %6532 = vmatpush3.bf16.msra.mxu0 %v6824_v34 }
 0x293   :  { %6533 = vmatprep.subr.bf16.mxu0 %v6825_v29 }
 0x296   :  { %6534 = vmatpush3.bf16.msra.mxu0 %v6825_v29 }
 0x297   :  { %6535 = vmatprep.subr.bf16.mxu0 %v6826_v7 }
 0x29a   :  { %v6260_v36 = vpop.f32.mrb[72].mxu0  ;;  %6536 = vmatpush3.bf16.msra.mxu0 %v6826_v7 }
 0x29b   :  { %v6261_v9 = vpop.f32.mrb[73].mxu0 }
 0x29c   :  { %v6262_v52 = vadd.f32 %v6261_v9, %v6260_v36  ;;  %v6263_v23 = vpop.f32.mrb[74].mxu0  ;;  %v6324_v13 = vpop.f32.mrb[72].mxu1 }
 0x29d   :  { %v6264_v16 = vpop.f32.mrb[75].mxu0  ;;  %v6325_v11 = vpop.f32.mrb[73].mxu1 }
 0x29e   :  { %v4649_v27 = vadd.f32 %v6262_v52, %v10282_v3  ;;  %v6265_v41 = vadd.f32 %v6264_v16, %v6263_v23  ;;  %v6326_v61 = vadd.f32 %v6325_v11, %v6324_v13  ;;  %v6327_v12 = vpop.f32.mrb[74].mxu1 }
 0x29f   :  { %v6328_v63 = vpop.f32.mrb[75].mxu1 }
 0x2a0   :  { %v4652_v0 = vadd.f32 %v6265_v41, %v10282_v3  ;;  %v10298_v51 = vadd.f32 %v6326_v61, %v4649_v27  ;;  %v6329_v35 = vadd.f32 %v6328_v63, %v6327_v12 }
 0x2a2   :  { %v10300_v33 = vadd.f32 %v6329_v35, %v4652_v0 }
 0x2c2   :  { %v6266_v58 = vpop.f32.mrb[76].mxu0 }
 0x2c3   :  { %v6267_v57 = vpop.f32.mrb[77].mxu0 }
 0x2c4   :  { %v6268_v18 = vadd.f32 %v6267_v57, %v6266_v58  ;;  %v6269_v59 = vpop.f32.mrb[78].mxu0 }
 0x2c5   :  { %v6330_v20 = vpop.f32.mrb[76].mxu1  ;;  %v6270_v26 = vpop.f32.mrb[79].mxu0 }
 0x2c6   :  { %v6331_v60 = vpop.f32.mrb[77].mxu1  ;;  %v4657_v56 = vadd.f32 %v6268_v18, %v10282_v3  ;;  %v6271_v46 = vadd.f32 %v6270_v26, %v6269_v59 }
 0x2c7   :  { %v6332_v49 = vadd.f32 %v6331_v60, %v6330_v20  ;;  %v6333_v38 = vpop.f32.mrb[78].mxu1 }
 0x2c8   :  { %v6334_v53 = vpop.f32.mrb[79].mxu1  ;;  %v4660_v40 = vadd.f32 %v6271_v46, %v10282_v3 }
 0x2c9   :  { %v10303_v55 = vadd.f32 %v6332_v49, %v4657_v56  ;;  %v6335_v1 = vadd.f32 %v6334_v53, %v6333_v38 }
 0x2cb   :  { %v10306_v14 = vadd.f32 %v6335_v1, %v4660_v40 }
 0x2d6   :  { %v6272_v45 = vpop.f32.mrb[80].mxu0 }
 0x2d7   :  { %v6273_v25 = vpop.f32.mrb[81].mxu0 }
 0x2d8   :  { %v6336_v37 = vpop.f32.mrb[80].mxu1  ;;  %v6274_v5 = vadd.f32 %v6273_v25, %v6272_v45  ;;  %v6275_v54 = vpop.f32.mrb[82].mxu0 }
 0x2d9   :  { %v6337_v24 = vpop.f32.mrb[81].mxu1  ;;  %v6276_v21 = vpop.f32.mrb[83].mxu0 }
 0x2da   :  { %v6338_v6 = vadd.f32 %v6337_v24, %v6336_v37  ;;  %v6339_v32 = vpop.f32.mrb[82].mxu1  ;;  %v4665_v50 = vadd.f32 %v6274_v5, %v10282_v3  ;;  %v6277_v17 = vadd.f32 %v6276_v21, %v6275_v54 }
 0x2db   :  { %v6340_v43 = vpop.f32.mrb[83].mxu1 }
 0x2dc   :  { %v6341_v10 = vadd.f32 %v6340_v43, %v6339_v32  ;;  %v10324_v47 = vadd.f32 %v6338_v6, %v4665_v50  ;;  %v4668_v8 = vadd.f32 %v6277_v17, %v10282_v3 }
 0x2de   :  { %v10327_v4 = vadd.f32 %v6341_v10, %v4668_v8 }
 0x2e7   :  { %v6278_v48 = vpop.f32.mrb[84].mxu0 }
 0x2e8   :  { %v6279_v15 = vpop.f32.mrb[85].mxu0  ;;  %v6342_v42 = vpop.f32.mrb[84].mxu1 }
 0x2e9   :  { %v6280_v36 = vadd.f32 %v6279_v15, %v6278_v48  ;;  %v6281_v9 = vpop.f32.mrb[86].mxu0  ;;  %v6343_v52 = vpop.f32.mrb[85].mxu1 }
 0x2ea   :  { %v6282_v23 = vpop.f32.mrb[87].mxu0  ;;  %v6344_v16 = vadd.f32 %v6343_v52, %v6342_v42  ;;  %v6345_v27 = vpop.f32.mrb[86].mxu1 }
 0x2eb   :  { %v4673_v13 = vadd.f32 %v6280_v36, %v10282_v3  ;;  %v6283_v11 = vadd.f32 %v6282_v23, %v6281_v9  ;;  %v6346_v41 = vpop.f32.mrb[87].mxu1 }
 0x2ec   :  { %v6347_v0 = vadd.f32 %v6346_v41, %v6345_v27 }
 0x2ed   :  { %v10339_v61 = vadd.f32 %v6344_v16, %v4673_v13  ;;  %v4676_v12 = vadd.f32 %v6283_v11, %v10282_v3 }
 0x2ef   :  { %v10342_v63 = vadd.f32 %v6347_v0, %v4676_v12 }
 0x2f8   :  { %v6284_v35 = vpop.f32.mrb[88].mxu0 }
 0x2f9   :  { %v6285_v57 = vpop.f32.mrb[89].mxu0 }
 0x2fa   :  { %v6348_v58 = vpop.f32.mrb[88].mxu1  ;;  %v6286_v20 = vadd.f32 %v6285_v57, %v6284_v35  ;;  %v6287_v59 = vpop.f32.mrb[90].mxu0 }
 0x2fb   :  { %v6349_v18 = vpop.f32.mrb[89].mxu1  ;;  %v6288_v56 = vpop.f32.mrb[91].mxu0 }
 0x2fc   :  { %v6350_v60 = vadd.f32 %v6349_v18, %v6348_v58  ;;  %v6351_v26 = vpop.f32.mrb[90].mxu1  ;;  %v4681_v49 = vadd.f32 %v6286_v20, %v10282_v3  ;;  %v6289_v38 = vadd.f32 %v6288_v56, %v6287_v59 }
 0x2fd   :  { %v6352_v46 = vpop.f32.mrb[91].mxu1 }
 0x2fe   :  { %v6353_v53 = vadd.f32 %v6352_v46, %v6351_v26  ;;  %v10345_v40 = vadd.f32 %v6350_v60, %v4681_v49  ;;  %v4684_v1 = vadd.f32 %v6289_v38, %v10282_v3 }
 0x300   :  { %v10348_v22 = vadd.f32 %v6353_v53, %v4684_v1 }
 0x309   :  { %v6290_v2 = vpop.f32.mrb[92].mxu0 }
 0x30a   :  { %v6291_v31 = vpop.f32.mrb[93].mxu0 }
 0x30b   :  { %v6354_v45 = vpop.f32.mrb[92].mxu1  ;;  %v6292_v37 = vadd.f32 %v6291_v31, %v6290_v2  ;;  %v6293_v25 = vpop.f32.mrb[94].mxu0 }
 0x30c   :  { %v6355_v44 = vpop.f32.mrb[93].mxu1  ;;  %v6294_v5 = vpop.f32.mrb[95].mxu0 }
 0x30d   :  { %v4689_v24 = vadd.f32 %v6292_v37, %v10282_v3  ;;  %v6356_v54 = vadd.f32 %v6355_v44, %v6354_v45  ;;  %v6357_v6 = vpop.f32.mrb[94].mxu1  ;;  %v6295_v32 = vadd.f32 %v6294_v5, %v6293_v25 }
 0x30e   :  { %v6358_v21 = vpop.f32.mrb[95].mxu1 }
 0x30f   :  { %v10351_v50 = vadd.f32 %v6356_v54, %v4689_v24  ;;  %v4692_v17 = vadd.f32 %v6295_v32, %v10282_v3  ;;  %v6359_v43 = vadd.f32 %v6358_v21, %v6357_v6 }
 0x311   :  { %v10354_v10 = vadd.f32 %v6359_v43, %v4692_v17 }
 0x319   :  { %v6376_v30 = vpop.f32.mrb[96].mxu0 }
 0x31a   :  { %v6440_v8 = vpop.f32.mrb[96].mxu1  ;;  %v6377_v34 = vpop.f32.mrb[97].mxu0 }
 0x31b   :  { %v6378_v29 = vadd.f32 %v6377_v34, %v6376_v30  ;;  %v6441_v48 = vpop.f32.mrb[97].mxu1  ;;  %v6379_v15 = vpop.f32.mrb[98].mxu0 }
 0x31c   :  { %v6442_v7 = vadd.f32 %v6441_v48, %v6440_v8  ;;  %v6443_v42 = vpop.f32.mrb[98].mxu1  ;;  %v6380_v36 = vpop.f32.mrb[99].mxu0 }
 0x31d   :  { %v4827_v9 = vadd.f32 %v6378_v29, %v10286_v62  ;;  %v6381_v52 = vadd.f32 %v6380_v36, %v6379_v15  ;;  %v6444_v23 = vpop.f32.mrb[99].mxu1 }
 0x31e   :  { %v6445_v13 = vadd.f32 %v6444_v23, %v6443_v42 }
 0x31f   :  { %v4924_v16 = vadd.f32 %v6442_v7, %v4827_v9  ;;  %v4830_v3 = vadd.f32 %v6381_v52, %v10288_v28 }
 0x321   :  { %v5019_v27 = vrot.slane %v4924_v16, 4  ;;  %v10358_v11 = vadd.f32 %v6445_v13, %v4830_v3  ;;  %v6382_v41 = vpop.f32.mrb[100].mxu0 }
 0x322   :  { %v6446_v12 = vpop.f32.mrb[100].mxu1  ;;  %v6383_v0 = vpop.f32.mrb[101].mxu0 }
 0x323   :  { %v5020_v35 = vadd.f32 %v5019_v27, %v4924_v16  ;;  %v6384_v58 = vadd.f32 %v6383_v0, %v6382_v41  ;;  %v6447_v57 = vpop.f32.mrb[101].mxu1  ;;  %v6385_v20 = vpop.f32.mrb[102].mxu0 }
 0x324   :  { %v6448_v18 = vadd.f32 %v6447_v57, %v6446_v12  ;;  %v6449_v59 = vpop.f32.mrb[102].mxu1  ;;  %v6386_v60 = vpop.f32.mrb[103].mxu0 }
 0x325   :  { %v5021_v62 = vrot.slane %v5020_v35, 2  ;;  %v4835_v26 = vadd.f32 %v6384_v58, %v10292_v39  ;;  %v6387_v56 = vadd.f32 %v6386_v60, %v6385_v20  ;;  %v6450_v49 = vpop.f32.mrb[103].mxu1 }
 0x326   :  { %v6451_v38 = vadd.f32 %v6450_v49, %v6449_v59 }
 0x327   :  { %v5022_v28 = vadd.f32 %v5021_v62, %v5020_v35  ;;  %v10361_v46 = vadd.f32 %v6448_v18, %v4835_v26  ;;  %v4838_v53 = vadd.f32 %v6387_v56, %v10294_v19 }
 0x329   :  { %v5023_v1 = vrot.slane %v5022_v28, 1  ;;  %v10364_v2 = vadd.f32 %v6451_v38, %v4838_v53  ;;  %v6388_v31 = vpop.f32.mrb[104].mxu0 }
 0x32a   :  { %v6452_v45 = vpop.f32.mrb[104].mxu1  ;;  %v6389_v37 = vpop.f32.mrb[105].mxu0 }
 0x32b   :  { %v5024_v25 = vadd.f32 %v5023_v1, %v5022_v28  ;;  %v6390_v44 = vadd.f32 %v6389_v37, %v6388_v31  ;;  %v6453_v5 = vpop.f32.mrb[105].mxu1  ;;  %v6391_v24 = vpop.f32.mrb[106].mxu0 }
 0x32c   :  { %v6454_v54 = vadd.f32 %v6453_v5, %v6452_v45  ;;  %v6455_v39 = vpop.f32.mrb[106].mxu1  ;;  %v6392_v6 = vpop.f32.mrb[107].mxu0 }
 0x32d   :  { %v10366_v32 = vmul.f32 0.125, %v5024_v25  ;;  %v4843_v21 = vadd.f32 %v6390_v44, %v10298_v51  ;;  %v6393_v17 = vadd.f32 %v6392_v6, %v6391_v24  ;;  %v6456_v43 = vpop.f32.mrb[107].mxu1 }
 0x32e   :  { %v6457_v19 = vadd.f32 %v6456_v43, %v6455_v39 }
 0x32f   :  { %v10370_v30 = vsub.f32 %v4924_v16, %v10366_v32  ;;  %v5027_v8 = vsub.f32 %v10358_v11, %v10366_v32  ;;  %v5028_v34 = vsub.f32 %v10361_v46, %v10366_v32  ;;  %v5029_v29 = vsub.f32 %v10364_v2, %v10366_v32 }
 0x330   :  { %v10378_v48 = vadd.f32 %v6454_v54, %v4843_v21  ;;  %v4846_v15 = vadd.f32 %v6393_v17, %v10300_v33 }
 0x331   :  { %v5042_v51 = vmul.f32 %v10370_v30, %v10370_v30  ;;  %v6394_v7 = vpop.f32.mrb[108].mxu0 }
 0x332   :  { %v5030_v42 = vsub.f32 %v10378_v48, %v10366_v32  ;;  %v10385_v36 = vadd.f32 %v6457_v19, %v4846_v15  ;;  %v6458_v9 = vpop.f32.mrb[108].mxu1  ;;  %v6395_v52 = vpop.f32.mrb[109].mxu0 }
 0x333   :  { %v5089_v23 = vrot.slane %v5042_v51, 4  ;;  %v6396_v13 = vadd.f32 %v6395_v52, %v6394_v7  ;;  %v6459_v16 = vpop.f32.mrb[109].mxu1  ;;  %v6397_v3 = vpop.f32.mrb[110].mxu0 }
 0x334   :  { %v5031_v27 = vsub.f32 %v10385_v36, %v10366_v32  ;;  %v6460_v41 = vadd.f32 %v6459_v16, %v6458_v9  ;;  %v6461_v33 = vpop.f32.mrb[110].mxu1  ;;  %v6398_v12 = vpop.f32.mrb[111].mxu0 }
 0x335   :  { %v5090_v0 = vadd.f32 %v5089_v23, %v5042_v51  ;;  %v4851_v35 = vadd.f32 %v6396_v13, %v10303_v55  ;;  %v6399_v58 = vadd.f32 %v6398_v12, %v6397_v3  ;;  %v6462_v57 = vpop.f32.mrb[111].mxu1 }
 0x336   :  { %v6463_v20 = vadd.f32 %v6462_v57, %v6461_v33 }
 0x337   :  { %v5091_v18 = vrot.slane %v5090_v0, 2  ;;  %v10390_v59 = vadd.f32 %v6460_v41, %v4851_v35  ;;  %v4854_v60 = vadd.f32 %v6399_v58, %v10306_v14 }
 0x339   :  { %v5092_v62 = vadd.f32 %v5091_v18, %v5090_v0  ;;  %v5032_v26 = vsub.f32 %v10390_v59, %v10366_v32  ;;  %v10395_v56 = vadd.f32 %v6463_v20, %v4854_v60  ;;  %v6400_v49 = vpop.f32.mrb[112].mxu0 }
 0x33a   :  { %v6464_v38 = vpop.f32.mrb[112].mxu1  ;;  %v6401_v28 = vpop.f32.mrb[113].mxu0 }
 0x33b   :  { %v5093_v53 = vrot.slane %v5092_v62, 1  ;;  %v5033_v55 = vsub.f32 %v10395_v56, %v10366_v32  ;;  %v6402_v1 = vadd.f32 %v6401_v28, %v6400_v49  ;;  %v6465_v31 = vpop.f32.mrb[113].mxu1  ;;  %v6403_v45 = vpop.f32.mrb[114].mxu0 }
 0x33c   :  { %v6466_v37 = vadd.f32 %v6465_v31, %v6464_v38  ;;  %v6467_v25 = vpop.f32.mrb[114].mxu1  ;;  %v6404_v44 = vpop.f32.mrb[115].mxu0 }
 0x33d   :  { %v5094_v14 = vadd.f32 %v5093_v53, %v5092_v62  ;;  %v4859_v5 = vadd.f32 %v6402_v1, %v10324_v47  ;;  %v6405_v24 = vadd.f32 %v6404_v44, %v6403_v45  ;;  %v6468_v54 = vpop.f32.mrb[115].mxu1 }
 0x33e   :  { %v6469_v39 = vadd.f32 %v6468_v54, %v6467_v25 }
 0x33f   :  { %v5095_v6 = vmul.f32 0.125, %v5094_v14  ;;  %v4956_v21 = vadd.f32 %v6466_v37, %v4859_v5  ;;  %v4862_v17 = vadd.f32 %v6405_v24, %v10327_v4  ;;  %v10432_v24 = vld [vmem:[%s11291_s9] ss:$0 sm:$0xff]  ;;  %s6125_s9 = sshll.u32 %s6943_s5, 4  ;;  %s6126_s9 = int_to_ptr.vmem [resolvable:$true] %s6125_s9 }
 0x340   :  { %s6915_s24 = scalar_lea.vmem %s6126_s9, 16384  ;;  %p6920_p1 = scmp.lt.s32.totalorder %s6126_s9, %s6126_s9 }
 0x341   :  { %v5096_v43 = vadd.f32 1e-05, %v5095_v6  ;;  %v5034_v19 = vsub.f32 %v4956_v21, %v10366_v32  ;;  %v4959_v15 = vadd.f32 %v6469_v39, %v4862_v17  ;;  %v6406_v51 = vpop.f32.mrb[116].mxu0  ;;  %p6916_p0 = scmp.ne.s32.totalorder %s6126_s9, %s6915_s24  ;;  %p6921_p2 = scmp.lt.s32.totalorder %s6915_s24, %s6915_s24 }
 0x342   :  { %v6470_v7 = vpop.f32.mrb[116].mxu1  ;;  %v6407_v9 = vpop.f32.mrb[117].mxu0 }
 0x343   :  { %6843 = vrsqrt.f32 %v5096_v43  ;;  %v5035_v52 = vsub.f32 %v4959_v15, %v10366_v32  ;;  %v6408_v23 = vadd.f32 %v6407_v9, %v6406_v51  ;;  %v6471_v13 = vpop.f32.mrb[117].mxu1  ;;  %v6409_v47 = vpop.f32.mrb[118].mxu0  ;;  %p6922_p3 = por %p6921_p2, %p6920_p1 }
 0x344   :  { %v6472_v16 = vadd.f32 %v6471_v13, %v6470_v7  ;;  %v6473_v3 = vpop.f32.mrb[118].mxu1  ;;  %v6410_v41 = vpop.f32.mrb[119].mxu0 }
 0x345   :  { %v4867_v33 = vadd.f32 %v6408_v23, %v10339_v61  ;;  %v6411_v12 = vadd.f32 %v6410_v41, %v6409_v47  ;;  %v6474_v4 = vpop.f32.mrb[119].mxu1  ;;  %p6923_p4 = pnand %p6922_p3, %p6916_p0 }
 0x346   :  { %v6475_v0 = vadd.f32 %v6474_v4, %v6473_v3 }
 0x347   :  { %v4964_v35 = vadd.f32 %v6472_v16, %v4867_v33  ;;  %v4870_v58 = vadd.f32 %v6411_v12, %v10342_v63  ;;  %v10412_v63 = vld [vmem:[%s11290_s8] ss:$0 sm:$0xff] }
 0x349   :  { %v5036_v57 = vsub.f32 %v4964_v35, %v10366_v32  ;;  %v4967_v20 = vadd.f32 %v6475_v0, %v4870_v58  ;;  %v6412_v18 = vpop.f32.mrb[120].mxu0 }
 0x34a   :  { %v6476_v60 = vpop.f32.mrb[120].mxu1  ;;  %v6413_v62 = vpop.f32.mrb[121].mxu0 }
 0x34b   :  { %v5037_v56 = vsub.f32 %v4967_v20, %v10366_v32  ;;  %v6414_v49 = vadd.f32 %v6413_v62, %v6412_v18  ;;  %v6477_v38 = vpop.f32.mrb[121].mxu1  ;;  %v6415_v28 = vpop.f32.mrb[122].mxu0 }
 0x34c   :  { %v6478_v53 = vadd.f32 %v6477_v38, %v6476_v60  ;;  %v6479_v1 = vpop.f32.mrb[122].mxu1  ;;  %v6416_v61 = vpop.f32.mrb[123].mxu0 }
 0x34d   :  { %v10407_v31 = vpop.eup %6843  ;;  %v4875_v45 = vadd.f32 %v6414_v49, %v10345_v40  ;;  %v6417_v37 = vadd.f32 %v6416_v61, %v6415_v28  ;;  %v6480_v25 = vpop.f32.mrb[123].mxu1 }
 0x34e   :  { %v5098_v44 = vmul.f32 %v10407_v31, %v10370_v30  ;;  %v5099_v14 = vmul.f32 %v10407_v31, %v5027_v8  ;;  %v5100_v5 = vmul.f32 %v10407_v31, %v5028_v34  ;;  %v5101_v40 = vmul.f32 %v10407_v31, %v5029_v29 }
 0x34f   :  { %v5102_v11 = vmul.f32 %v10407_v31, %v5030_v42  ;;  %v5103_v46 = vmul.f32 %v10407_v31, %v5031_v27  ;;  %v5104_v2 = vmul.f32 %v10407_v31, %v5032_v26  ;;  %v5105_v30 = vmul.f32 %v10407_v31, %v5033_v55 }
 0x350   :  { %v5120_v8 = vmul.f32 %v10412_v63, %v5098_v44  ;;  %v5121_v34 = vmul.f32 %v10412_v63, %v5099_v14  ;;  %v5122_v29 = vmul.f32 %v10412_v63, %v5100_v5  ;;  %v5123_v48 = vmul.f32 %v10412_v63, %v5101_v40 }
 0x351   :  { %v5124_v42 = vmul.f32 %v10412_v63, %v5102_v11  ;;  %v5125_v36 = vmul.f32 %v10412_v63, %v5103_v46  ;;  %v5126_v27 = vmul.f32 %v10412_v63, %v5104_v2  ;;  %v10455_v59 = vmul.f32 %v10412_v63, %v5105_v30  ;;  %v6418_v26 = vpop.f32.mrb[124].mxu0 }
 0x352   :  { %v5144_v55 = vadd.f32 %v10432_v24, %v5122_v29  ;;  %v5145_v54 = vadd.f32 %v10432_v24, %v5123_v48  ;;  %v5106_v39 = vmul.f32 %v10407_v31, %v5034_v19  ;;  %v5107_v6 = vmul.f32 %v10407_v31, %v5035_v52  ;;  %v6482_v21 = vpop.f32.mrb[124].mxu1  ;;  %v6419_v17 = vpop.f32.mrb[125].mxu0 }
 0x353   :  { %v5108_v43 = vmul.f32 %v10407_v31, %v5036_v57  ;;  %v5109_v15 = vmul.f32 %v10407_v31, %v5037_v56  ;;  %v4972_v51 = vadd.f32 %v6478_v53, %v4875_v45  ;;  %v4878_v7 = vadd.f32 %v6417_v37, %v10348_v22  ;;  %v6483_v9 = vpop.f32.mrb[125].mxu1  ;;  %v6421_v23 = vpop.f32.mrb[126].mxu0 }
 0x354   :  { %vm5160_vm0 = vcmp.ge.f32.partialorder %v5144_v55, 0.0  ;;  %v5176_v13 = vmul.f32 0.01, %v5144_v55  ;;  %vm5161_vm1 = vcmp.ge.f32.partialorder %v5145_v54, 0.0  ;;  %v5177_v47 = vmul.f32 0.01, %v5145_v54 }
 0x355   :  { %v5128_v16 = vmul.f32 %v10412_v63, %v5106_v39  ;;  %v5129_v19 = vmul.f32 %v10412_v63, %v5107_v6  ;;  %v5130_v52 = vmul.f32 %v10412_v63, %v5108_v43  ;;  %v5131_v3 = vmul.f32 %v10412_v63, %v5109_v15  ;;  %v6485_v41 = vpop.f32.mrb[126].mxu1  ;;  %v6422_v33 = vpop.f32.mrb[127].mxu0 }
 0x356   :  { %v5038_v12 = vsub.f32 %v4972_v51, %v10366_v32  ;;  %v6481_v4 = vadd.f32 %v6480_v25, %v6479_v1  ;;  %v6420_v22 = vadd.f32 %v6419_v17, %v6418_v26  ;;  %v6484_v0 = vadd.f32 %v6483_v9, %v6482_v21  ;;  %v6486_v35 = vpop.f32.mrb[127].mxu1 }
 0x357   :  { %v6423_v58 = vadd.f32 %v6422_v33, %v6421_v23  ;;  %v6487_v57 = vadd.f32 %v6486_v35, %v6485_v41  ;;  %v5142_v20 = vadd.f32 %v10432_v24, %v5120_v8  ;;  %v5143_v18 = vadd.f32 %v10432_v24, %v5121_v34 }
 0x358   :  { %v5110_v60 = vmul.f32 %v10407_v31, %v5038_v12  ;;  %v4975_v62 = vadd.f32 %v6481_v4, %v4878_v7  ;;  %v4883_v56 = vadd.f32 %v6420_v22, %v10351_v50  ;;  %v5192_v49 = vsel %vm5160_vm0, %v5144_v55, %v5176_v13 }
 0x359   :  { %v4886_v38 = vadd.f32 %v6423_v58, %v10354_v10  ;;  %vm5158_vm2 = vcmp.ge.f32.partialorder %v5142_v20, 0.0  ;;  %vm5159_vm3 = vcmp.ge.f32.partialorder %v5143_v18, 0.0  ;;  %v5174_v28 = vmul.f32 0.01, %v5142_v20 }
 0x35a   :  { %v5132_v53 = vmul.f32 %v10412_v63, %v5110_v60  ;;  %v5039_v1 = vsub.f32 %v4975_v62, %v10366_v32  ;;  %v4980_v61 = vadd.f32 %v6484_v0, %v4883_v56  ;;  %v5175_v45 = vmul.f32 0.01, %v5143_v18 }
 0x35b   :  { %v4983_v37 = vadd.f32 %v6487_v57, %v4886_v38  ;;  %v5190_v25 = vsel %vm5158_vm2, %v5142_v20, %v5174_v28  ;;  %v5193_v44 = vsel %vm5161_vm1, %v5145_v54, %v5177_v47  ;;  %v5146_v14 = vadd.f32 %v10432_v24, %v5124_v42 }
 0x35c   :  { %v5111_v50 = vmul.f32 %v10407_v31, %v5039_v1  ;;  %v5040_v5 = vsub.f32 %v4980_v61, %v10366_v32  ;;  %v5191_v10 = vsel %vm5159_vm3, %v5143_v18, %v5175_v45  ;;  %v5207_v40 = vpack.c.bf16 %v5193_v44, %v5192_v49  ;;  %v6223_v49 = vld [vmem:[%s11293_s11] ss:$0 sm:$0xff] }
 0x35d   :  { %v5041_v11 = vsub.f32 %v4983_v37, %v10366_v32  ;;  %v5206_v46 = vpack.c.bf16 %v5191_v10, %v5190_v25  ;;  %v5147_v2 = vadd.f32 %v10432_v24, %v5125_v36  ;;  %vm5162_vm4 = vcmp.ge.f32.partialorder %v5146_v14, 0.0 }
 0x35e   :  { %v5133_v30 = vmul.f32 %v10412_v63, %v5111_v50  ;;  %v5112_v8 = vmul.f32 %v10407_v31, %v5040_v5  ;;  %v5178_v34 = vmul.f32 0.01, %v5146_v14  ;;  %v5148_v29 = vadd.f32 %v10432_v24, %v5126_v27 }
 0x35f   :  { %v5113_v48 = vmul.f32 %v10407_v31, %v5041_v11  ;;  %6537 = vmatprep.mubr.bf16.mxu0 %v5206_v46  ;;  %vm5163_vm5 = vcmp.ge.f32.partialorder %v5147_v2, 0.0  ;;  %v5179_v42 = vmul.f32 0.01, %v5147_v2  ;;  %v5149_v26 = vadd.f32 %v10432_v24, %v10455_v59 }
 0x360   :  { %v5134_v32 = vmul.f32 %v10412_v63, %v5112_v8  ;;  %6538 = vmatmul.mubr.bf16.vlgmr.msra.gmra.mrb[128].mxu0 %v5207_v40  ;;  %v5194_v36 = vsel %vm5162_vm4, %v5146_v14, %v5178_v34  ;;  %vm5164_vm6 = vcmp.ge.f32.partialorder %v5148_v29, 0.0  ;;  %v5180_v55 = vmul.f32 0.01, %v5148_v29 }
 0x361   :  { %v5135_v54 = vmul.f32 %v10412_v63, %v5113_v48  ;;  %v5195_v39 = vsel %vm5163_vm5, %v5147_v2, %v5179_v42  ;;  %vm5165_vm7 = vcmp.ge.f32.partialorder %v5149_v26, 0.0  ;;  %v5181_v6 = vmul.f32 0.01, %v5149_v26 }
 0x362   :  { %v5208_v27 = vpack.c.bf16 %v5195_v39, %v5194_v36  ;;  %v5196_v21 = vsel %vm5164_vm6, %v5148_v29, %v5180_v55  ;;  %v5150_v31 = vadd.f32 %v10432_v24, %v5128_v16  ;;  %v5151_v17 = vadd.f32 %v10432_v24, %v5129_v19 }
 0x363   :  { %v5197_v43 = vsel %vm5165_vm7, %v5149_v26, %v5181_v6  ;;  %v5152_v59 = vadd.f32 %v10432_v24, %v5130_v52  ;;  %v5153_v15 = vadd.f32 %v10432_v24, %v5131_v3  ;;  %v5154_v51 = vadd.f32 %v10432_v24, %v5132_v53 }
 0x364   :  { %6541 = vmatprep.mubr.bf16.mxu0 %v5208_v27  ;;  %v5209_v7 = vpack.c.bf16 %v5197_v43, %v5196_v21  ;;  %vm5166_vm8 = vcmp.ge.f32.partialorder %v5150_v31, 0.0  ;;  %vm5167_vm9 = vcmp.ge.f32.partialorder %v5151_v17, 0.0  ;;  %v5182_v63 = vmul.f32 0.01, %v5150_v31 }
 0x365   :  { %v5183_v9 = vmul.f32 0.01, %v5151_v17  ;;  %vm5168_vm10 = vcmp.ge.f32.partialorder %v5152_v59, 0.0  ;;  %vm5169_vm11 = vcmp.ge.f32.partialorder %v5153_v15, 0.0  ;;  %v5184_v23 = vmul.f32 0.01, %v5152_v59 }
 0x366   :  { %v5198_v13 = vsel %vm5166_vm8, %v5150_v31, %v5182_v63  ;;  %v5185_v47 = vmul.f32 0.01, %v5153_v15  ;;  %v5155_v16 = vadd.f32 %v10432_v24, %v5133_v30  ;;  %vm5170_vm12 = vcmp.ge.f32.partialorder %v5154_v51, 0.0 }
 0x367   :  { %v5199_v19 = vsel %vm5167_vm9, %v5151_v17, %v5183_v9  ;;  %v5200_v52 = vsel %vm5168_vm10, %v5152_v59, %v5184_v23  ;;  %v5186_v41 = vmul.f32 0.01, %v5154_v51  ;;  %v5156_v3 = vadd.f32 %v10432_v24, %v5134_v32 }
 0x368   :  { %6542 = vmatmul.mubr.bf16.gmra.mrb[132].mxu0 %v5209_v7  ;;  %v5210_v33 = vpack.c.bf16 %v5199_v19, %v5198_v13  ;;  %v5201_v12 = vsel %vm5169_vm11, %v5153_v15, %v5185_v47  ;;  %vm5171_vm13 = vcmp.ge.f32.partialorder %v5155_v16, 0.0  ;;  %v5187_v4 = vmul.f32 0.01, %v5155_v16  ;;  %v10565_v19 = vld [vmem:[%s11294_s12] sm:$0xff] }
 0x369   :  { %v5211_v22 = vpack.c.bf16 %v5201_v12, %v5200_v52  ;;  %v5157_v0 = vadd.f32 %v10432_v24, %v5135_v54  ;;  %v5202_v35 = vsel %vm5170_vm12, %v5154_v51, %v5186_v41  ;;  %vm5172_vm14 = vcmp.ge.f32.partialorder %v5156_v3, 0.0  ;;  %v5699_v12 = vld [vmem:[%s11295_s13 + $0x48] sm:$0xff] }
 0x36a   :  { %6545 = vmatprep.mubr.bf16.mxu0 %v5210_v33  ;;  %v5203_v58 = vsel %vm5171_vm13, %v5155_v16, %v5187_v4  ;;  %v5188_v57 = vmul.f32 0.01, %v5156_v3  ;;  %v5691_v33 = vld [vmem:[%s11295_s13 + $0x8] sm:$0xff]  ;;  %vm6942_vm0 = vmmov 0  }
 0x36b   :  { %v5212_v20 = vpack.c.bf16 %v5203_v58, %v5202_v35  ;;  %vm5173_vm15 = vcmp.ge.f32.partialorder %v5157_v0, 0.0  ;;  %v5189_v18 = vmul.f32 0.01, %v5157_v0  ;;  %v6612_v4 = vpack.c.bf16 %v5699_v12, %v5691_v33  ;;  %v5707_v58 = vld [vmem:[%s11295_s13 + $0x88] sm:$0xff]  ;;  %v5802_v33 = vld [vmem:[%s11295_s13 + $0x380] sm:$0xff] }
 0x36c   :  { %v5204_v60 = vsel %vm5172_vm14, %v5156_v3, %v5188_v57  ;;  %v5383_v3 = vmul.f32 %v10565_v19, %v10565_v19  ;;  %v5715_v57 = vld [vmem:[%s11295_s13 + $0xc8] sm:$0xff]  ;;  %v5810_v12 = vld [vmem:[%s11295_s13 + $0x3c0] sm:$0xff] }
 0x36d   :  { %v5205_v62 = vsel %vm5173_vm15, %v5157_v0, %v5189_v18  ;;  %v5698_v0 = vld [vmem:[%s11295_s13 + $0x40] sm:$0xff]  ;;  %6613 = vmatprep.subr.bf16.mxu0 %v6612_v4  ;;  %v6616_v18 = vpack.c.bf16 %v5715_v57, %v5707_v58  ;;  %v5695_v4 = vld [vmem:[%s11295_s13 + $0x28] sm:$0xff] }
 0x36e   :  { %v5213_v56 = vpack.c.bf16 %v5205_v62, %v5204_v60  ;;  %v5714_v60 = vld [vmem:[%s11295_s13 + $0xc0] sm:$0xff]  ;;  %v6940_v62 = vmov 0.0|0.0  }
 0x36f   :  { %6588 = vmatprep.subr.bf16.mxu1 %v6940_v62 }
 0x370   :  { %6546 = vmatmul.mubr.bf16.gmra.mrb[136].mxu0 %v5211_v22  ;;  %v5690_v22 = vld [vmem:[%s11295_s13] sm:$0xff] }
 0x371   :  { %6549 = vmatprep.mubr.bf16.mxu0 %v5212_v20  ;;  %v6614_v35 = vpack.c.bf16 %v5698_v0, %v5690_v22  ;;  %v5706_v20 = vld [vmem:[%s11295_s13 + $0x80] sm:$0xff]  ;;  %v5703_v22 = vld [vmem:[%s11295_s13 + $0x68] sm:$0xff]  ;;  %v6642_v0 = vpack.c.bf16 %v5810_v12, %v5802_v33 }
 0x373   :  { %6615 = vmatpush1.bf16.msra.mxu0 %v6614_v35  ;;  %v6676_v35 = vpack.c.bf16 %v5703_v22, %v5695_v4 }
 0x374   :  { %6617 = vmatprep.subr.bf16.mxu0 %v6616_v18 }
 0x378   :  { %6550 = vmatmul.mubr.bf16.gmra.mrb[140].mxu0 %v5213_v56  ;;  %v5723_v56 = vld [vmem:[%s11295_s13 + $0x108] sm:$0xff] }
 0x433   :  { %v6539_v38 = vpop.f32.mrb[128].mxu0 }
 0x434   :  { %v10502_v24 = vadd.f32 %v6539_v38, %v6223_v49  ;;  %v5319_v28 = vpop.f32.mrb[129].mxu0  ;;  %v6618_v38 = vpack.c.bf16 %v5714_v60, %v5706_v20 }
 0x435   :  { %v10504_v53 = vadd.f32 %v6223_v49, %v5319_v28  ;;  %v6540_v1 = vpop.f32.mrb[130].mxu0 }
 0x436   :  { %v10506_v61 = vadd.f32 %v6540_v1, %v6223_v49  ;;  %v5322_v45 = vpop.f32.mrb[131].mxu0  ;;  %v5398_v37 = vmul.f32 %v10502_v24, %v10502_v24  ;;  %v5722_v1 = vld [vmem:[%s11295_s13 + $0x100] sm:$0xff]  ;;  %6619 = vmatpush1.bf16.msra.mxu0 %v6618_v38 }
 0x437   :  { %v10510_v25 = vadd.f32 %v6223_v49, %v5322_v45  ;;  %v5396_v44 = vmul.f32 %v10504_v53, %v10504_v53  ;;  %v5730_v45 = vld [vmem:[%s11295_s13 + $0x140] sm:$0xff] }
 0x438   :  { %5416 = vadd.xlane.f32.xlu1 %v5398_v37  ;;  %v5399_v14 = vmul.f32 %v10506_v61, %v10506_v61  ;;  %v5739_v37 = vld [vmem:[%s11295_s13 + $0x188] sm:$0xff] }
 0x439   :  { %5412 = vadd.xlane.f32.xlu0 %v5396_v44  ;;  %v5397_v5 = vmul.f32 %v10510_v25, %v10510_v25  ;;  %v5747_v44 = vld [vmem:[%s11295_s13 + $0x1c8] sm:$0xff] }
 0x43b   :  { %v6543_v50 = vpop.f32.mrb[132].mxu0 }
 0x43c   :  { %5418 = vadd.xlane.f32.xlu1 %v5399_v14  ;;  %v5335_v10 = vpop.f32.mrb[133].mxu0  ;;  %v10520_v2 = vadd.f32 %v6543_v50, %v6223_v49  ;;  %v6622_v14 = vpack.c.bf16 %v5730_v45, %v5722_v1  ;;  %v6624_v50 = vpack.c.bf16 %v5747_v44, %v5739_v37 }
 0x43d   :  { %v10518_v40 = vadd.f32 %v6223_v49, %v5335_v10  ;;  %v6544_v11 = vpop.f32.mrb[134].mxu0  ;;  %5414 = vadd.xlane.f32.xlu0 %v5397_v5  ;;  %v5738_v5 = vld [vmem:[%s11295_s13 + $0x180] sm:$0xff] }
 0x43e   :  { %v5338_v46 = vpop.f32.mrb[135].mxu0  ;;  %v10526_v34 = vadd.f32 %v6544_v11, %v6223_v49  ;;  %v5402_v42 = vmul.f32 %v10520_v2, %v10520_v2  ;;  %v5746_v10 = vld [vmem:[%s11295_s13 + $0x1c0] sm:$0xff]  ;;  %v5755_v11 = vld [vmem:[%s11295_s13 + $0x208] sm:$0xff] }
 0x43f   :  { %v10522_v30 = vadd.f32 %v6223_v49, %v5338_v46  ;;  %v5400_v8 = vmul.f32 %v10518_v40, %v10518_v40  ;;  %v5763_v46 = vld [vmem:[%s11295_s13 + $0x248] sm:$0xff] }
 0x440   :  { %v5403_v55 = vmul.f32 %v10526_v34, %v10526_v34 }
 0x441   :  { %5420 = vadd.xlane.f32.xlu0 %v5400_v8  ;;  %v5401_v29 = vmul.f32 %v10522_v30, %v10522_v30  ;;  %v6626_v8 = vpack.c.bf16 %v5746_v10, %v5738_v5 }
 0x443   :  { %v6547_v48 = vpop.f32.mrb[136].mxu0  ;;  %5422 = vadd.xlane.f32.xlu1 %v5401_v29  ;;  %v6628_v29 = vpack.c.bf16 %v5763_v46, %v5755_v11 }
 0x444   :  { %v5351_v26 = vpop.f32.mrb[137].mxu0  ;;  %v10536_v39 = vadd.f32 %v6547_v48, %v6223_v49  ;;  %v5754_v48 = vld [vmem:[%s11295_s13 + $0x200] sm:$0xff] }
 0x445   :  { %v10532_v32 = vadd.f32 %v6223_v49, %v5351_v26  ;;  %v6548_v36 = vpop.f32.mrb[138].mxu0  ;;  %5424 = vadd.xlane.f32.xlu0 %v5402_v42  ;;  %v5762_v42 = vld [vmem:[%s11295_s13 + $0x240] sm:$0xff]  ;;  %v5771_v26 = vld [vmem:[%s11295_s13 + $0x288] sm:$0xff] }
 0x446   :  { %v5354_v54 = vpop.f32.mrb[139].mxu0  ;;  %v10542_v21 = vadd.f32 %v6548_v36, %v6223_v49  ;;  %v5406_v43 = vmul.f32 %v10536_v39, %v10536_v39  ;;  %v5779_v36 = vld [vmem:[%s11295_s13 + $0x2c8] sm:$0xff] }
 0x447   :  { %v10538_v6 = vadd.f32 %v6223_v49, %v5354_v54  ;;  %5426 = vadd.xlane.f32.xlu1 %v5403_v55  ;;  %v5404_v27 = vmul.f32 %v10532_v32, %v10532_v32  ;;  %v6630_v55 = vpack.c.bf16 %v5762_v42, %v5754_v48  ;;  %v6632_v54 = vpack.c.bf16 %v5779_v36, %v5771_v26 }
 0x448   :  { %v5407_v7 = vmul.f32 %v10542_v21, %v10542_v21 }
 0x449   :  { %5428 = vadd.xlane.f32.xlu0 %v5404_v27  ;;  %v5405_v31 = vmul.f32 %v10538_v6, %v10538_v6  ;;  %v5770_v27 = vld [vmem:[%s11295_s13 + $0x280] sm:$0xff] }
 0x44b   :  { %5430 = vadd.xlane.f32.xlu1 %v5405_v31  ;;  %v6551_v17 = vpop.f32.mrb[140].mxu0  ;;  %v5778_v31 = vld [vmem:[%s11295_s13 + $0x2c0] sm:$0xff] }
 0x44c   :  { %v5367_v59 = vpop.f32.mrb[141].mxu0  ;;  %v10552_v9 = vadd.f32 %v6551_v17, %v6223_v49  ;;  %v5787_v17 = vld [vmem:[%s11295_s13 + $0x308] sm:$0xff] }
 0x44d   :  { %v10548_v15 = vadd.f32 %v6223_v49, %v5367_v59  ;;  %5432 = vadd.xlane.f32.xlu0 %v5406_v43  ;;  %v6552_v51 = vpop.f32.mrb[142].mxu0  ;;  %v5795_v43 = vld [vmem:[%s11295_s13 + $0x348] sm:$0xff]  ;;  %v6941_v59 = vmov 0.0  }
 0x44e   :  { %v5370_v63 = vpop.f32.mrb[143].mxu0  ;;  %v10558_v47 = vadd.f32 %v6552_v51, %v6223_v49  ;;  %v5410_v52 = vmul.f32 %v10552_v9, %v10552_v9  ;;  %5882 = vmatprep.mubr.f32.mxu0 %v6941_v59  ;;  %v6634_v51 = vpack.c.bf16 %v5778_v31, %v5770_v27  ;;  %6585 = vmatprep.mubr.msk.f32.mxu1 %vm6942_vm0, %v6941_v59 }
 0x44f   :  { %v10554_v23 = vadd.f32 %v6223_v49, %v5370_v63  ;;  %5434 = vadd.xlane.f32.xlu1 %v5407_v7  ;;  %v5408_v13 = vmul.f32 %v10548_v15, %v10548_v15  ;;  %v5731_v49 = vld [vmem:[%s11295_s13 + $0x148] sm:$0xff]  ;;  %v6636_v7 = vpack.c.bf16 %v5795_v43, %v5787_v17  ;;  %v5786_v63 = vld [vmem:[%s11295_s13 + $0x300] sm:$0xff] }
 0x450   :  { %v5411_v41 = vmul.f32 %v10558_v47, %v10558_v47  ;;  %v6620_v28 = vpack.c.bf16 %v5731_v49, %v5723_v56 }
 0x451   :  { %5436 = vadd.xlane.f32.xlu0 %v5408_v13  ;;  %v5409_v16 = vmul.f32 %v10554_v23, %v10554_v23  ;;  %v5794_v13 = vld [vmem:[%s11295_s13 + $0x340] sm:$0xff] }
 0x452   :  { %6621 = vmatprep.subr.bf16.mxu0 %v6620_v28 }
 0x453   :  { %5438 = vadd.xlane.f32.xlu1 %v5409_v16  ;;  %6623 = vmatpush1.bf16.msra.mxu0 %v6622_v14  ;;  %v5803_v16 = vld [vmem:[%s11295_s13 + $0x388] sm:$0xff] }
 0x454   :  { %6625 = vmatprep.subr.bf16.mxu0 %v6624_v50 }
 0x455   :  { %5440 = vadd.xlane.f32.xlu0 %v5410_v52  ;;  %v5811_v52 = vld [vmem:[%s11295_s13 + $0x3c8] sm:$0xff] }
 0x457   :  { %5442 = vadd.xlane.f32.xlu1 %v5411_v41  ;;  %6627 = vmatpush1.bf16.msra.mxu0 %v6626_v8  ;;  %v6638_v41 = vpack.c.bf16 %v5794_v13, %v5786_v63 }
 0x458   :  { %6629 = vmatprep.subr.bf16.mxu0 %v6628_v29 }
 0x459   :  { %5384 = vadd.xlane.f32.xlu0 %v5383_v3  ;;  %v6640_v3 = vpack.c.bf16 %v5811_v52, %v5803_v16 }
 0x45b   :  { %6631 = vmatpush1.bf16.msra.mxu0 %v6630_v55 }
 0x45c   :  { %6633 = vmatprep.subr.bf16.mxu0 %v6632_v54 }
 0x45f   :  { %6635 = vmatpush1.bf16.msra.mxu0 %v6634_v51 }
 0x460   :  { %6637 = vmatprep.subr.bf16.mxu0 %v6636_v7 }
 0x463   :  { %6639 = vmatpush1.bf16.msra.mxu0 %v6638_v41 }
 0x464   :  { %6641 = vmatprep.subr.bf16.mxu0 %v6640_v3 }
 0x467   :  { %6643 = vmatpush1.bf16.msra.mxu0 %v6642_v0 }
 0x468   :  { %6677 = vmatprep.subr.bf16.mxu0 %v6676_v35 }
 0x4c5   :  { %v5417_v58 = vpop.xlane.xlu1 %5416 }
 0x4c6   :  { %6845 = vrsqrt.f32 %v5417_v58  ;;  %v5413_v57 = vpop.xlane.xlu0 %5412  ;;  %vm5460_vm1 = vcmp.eq.f32.partialorder %v5417_v58, inf  ;;  %vm5462_vm2 = vcmp.eq.f32.partialorder %v5417_v58, 0.0  ;;  %v5463_v49 = vand.u32 2147483648, %v5417_v58 }
 0x4c7   :  { %6847 = vrsqrt.f32 %v5413_v57  ;;  %vm5446_vm3 = vcmp.eq.f32.partialorder %v5413_v57, inf  ;;  %vm5448_vm4 = vcmp.eq.f32.partialorder %v5413_v57, 0.0  ;;  %v5449_v37 = vand.u32 2147483648, %v5413_v57 }
 0x4c9   :  { %v5419_v20 = vpop.xlane.xlu1 %5418 }
 0x4ca   :  { %6849 = vrsqrt.f32 %v5419_v20  ;;  %v5415_v18 = vpop.xlane.xlu0 %5414  ;;  %vm5467_vm5 = vcmp.eq.f32.partialorder %v5419_v20, inf  ;;  %vm5469_vm6 = vcmp.eq.f32.partialorder %v5419_v20, 0.0  ;;  %v5470_v50 = vand.u32 2147483648, %v5419_v20 }
 0x4cb   :  { %6851 = vrsqrt.f32 %v5415_v18  ;;  %vm5453_vm7 = vcmp.eq.f32.partialorder %v5415_v18, inf  ;;  %vm5455_vm8 = vcmp.eq.f32.partialorder %v5415_v18, 0.0  ;;  %v5456_v46 = vand.u32 2147483648, %v5415_v18 }
 0x4ce   :  { %v10678_v60 = vpop.xlane.xlu0 %5420 }
 0x4cf   :  { %6853 = vrsqrt.f32 %v10678_v60  ;;  %vm5474_vm9 = vcmp.eq.f32.partialorder %v10678_v60, inf  ;;  %vm5476_vm10 = vcmp.eq.f32.partialorder %v10678_v60, 0.0  ;;  %v5477_v31 = vand.u32 2147483648, %v10678_v60 }
 0x4d0   :  { %v6846_v56 = vpop.eup %6845  ;;  %v10681_v38 = vpop.xlane.xlu1 %5422 }
 0x4d1   :  { %v6848_v28 = vpop.eup %6847  ;;  %v5459_v1 = vmul.f32 %v6846_v56, %v5417_v58  ;;  %6855 = vrsqrt.f32 %v10681_v38  ;;  %vm5481_vm11 = vcmp.eq.f32.partialorder %v10681_v38, inf  ;;  %vm5483_vm12 = vcmp.eq.f32.partialorder %v10681_v38, 0.0 }
 0x4d2   :  { %v5445_v45 = vmul.f32 %v6848_v28, %v5413_v57  ;;  %v10684_v44 = vpop.xlane.xlu0 %5424  ;;  %v5484_v16 = vand.u32 2147483648, %v10681_v38 }
 0x4d3   :  { %v5461_v14 = vsel %vm5460_vm1, %v5417_v58, %v5459_v1  ;;  %6857 = vrsqrt.f32 %v10684_v44  ;;  %vm5488_vm13 = vcmp.eq.f32.partialorder %v10684_v44, inf  ;;  %vm5490_vm14 = vcmp.eq.f32.partialorder %v10684_v44, 0.0 }
 0x4d4   :  { %v6850_v5 = vpop.eup %6849  ;;  %v5464_v10 = vsel %vm5462_vm2, %v5463_v49, %v5461_v14  ;;  %v5447_v11 = vsel %vm5446_vm3, %v5413_v57, %v5445_v45  ;;  %v10688_v8 = vpop.xlane.xlu1 %5426  ;;  %v5491_v12 = vand.u32 2147483648, %v10684_v44 }
 0x4d5   :  { %v6852_v29 = vpop.eup %6851  ;;  %v5558_v48 = vmax.f32 %v5464_v10, 1e-12  ;;  %v5450_v42 = vsel %vm5448_vm4, %v5449_v37, %v5447_v11  ;;  %v5466_v26 = vmul.f32 %v6850_v5, %v5419_v20  ;;  %6859 = vrsqrt.f32 %v10688_v8 }
 0x4d6   :  { %v5556_v36 = vmax.f32 %v5450_v42, 1e-12  ;;  %v5452_v55 = vmul.f32 %v6852_v29, %v5415_v18  ;;  %v10694_v54 = vpop.xlane.xlu0 %5428  ;;  %vm5495_vm15 = vcmp.eq.f32.partialorder %v10688_v8, inf  ;;  %vm5497_vm0 = vcmp.eq.f32.partialorder %v10688_v8, 0.0 }
 0x4d7   :  { %6861 = vrcp.f32 %v5558_v48  ;;  %v5468_v27 = vsel %vm5467_vm5, %v5419_v20, %v5466_v26  ;;  %v5498_v57 = vand.u32 2147483648, %v10688_v8  ;;  %vm5502_vm1 = vcmp.eq.f32.partialorder %v10694_v54, inf }
 0x4d8   :  { %6863 = vrcp.f32 %v5556_v36  ;;  %v5471_v17 = vsel %vm5469_vm6, %v5470_v50, %v5468_v27  ;;  %v5454_v43 = vsel %vm5453_vm7, %v5415_v18, %v5452_v55  ;;  %v10702_v51 = vpop.xlane.xlu1 %5430  ;;  %vm5504_vm2 = vcmp.eq.f32.partialorder %v10694_v54, 0.0 }
 0x4d9   :  { %v6854_v7 = vpop.eup %6853  ;;  %v5559_v63 = vmax.f32 %v5471_v17, 1e-12  ;;  %v5457_v13 = vsel %vm5455_vm8, %v5456_v46, %v5454_v43  ;;  %6865 = vrsqrt.f32 %v10694_v54  ;;  %v5505_v1 = vand.u32 2147483648, %v10694_v54 }
 0x4da   :  { %v5557_v52 = vmax.f32 %v5457_v13, 1e-12  ;;  %v5473_v41 = vmul.f32 %v6854_v7, %v10678_v60  ;;  %6867 = vrsqrt.f32 %v10702_v51  ;;  %v10710_v3 = vpop.xlane.xlu0 %5432  ;;  %vm5509_vm3 = vcmp.eq.f32.partialorder %v10702_v51, inf }
 0x4db   :  { %v6856_v33 = vpop.eup %6855  ;;  %6869 = vrcp.f32 %v5559_v63  ;;  %vm5511_vm4 = vcmp.eq.f32.partialorder %v10702_v51, 0.0  ;;  %v5512_v10 = vand.u32 2147483648, %v10702_v51  ;;  %vm5516_vm5 = vcmp.eq.f32.partialorder %v10710_v3, inf }
 0x4dc   :  { %6871 = vrcp.f32 %v5557_v52  ;;  %v5475_v4 = vsel %vm5474_vm9, %v10678_v60, %v5473_v41  ;;  %v5480_v22 = vmul.f32 %v6856_v33, %v10681_v38  ;;  %v10720_v0 = vpop.xlane.xlu1 %5434  ;;  %vm5518_vm6 = vcmp.eq.f32.partialorder %v10710_v3, 0.0 }
 0x4dd   :  { %v6858_v35 = vpop.eup %6857  ;;  %v5478_v58 = vsel %vm5476_vm10, %v5477_v31, %v5475_v4  ;;  %6873 = vrsqrt.f32 %v10710_v3  ;;  %v5519_v26 = vand.u32 2147483648, %v10710_v3  ;;  %vm5523_vm7 = vcmp.eq.f32.partialorder %v10720_v0, inf }
 0x4de   :  { %v5560_v20 = vmax.f32 %v5478_v58, 1e-12  ;;  %v5482_v18 = vsel %vm5481_vm11, %v10681_v38, %v5480_v22  ;;  %v5487_v56 = vmul.f32 %v6858_v35, %v10684_v44  ;;  %6875 = vrsqrt.f32 %v10720_v0  ;;  %v10733_v49 = vpop.xlane.xlu0 %5436 }
 0x4df   :  { %v6860_v60 = vpop.eup %6859  ;;  %v5485_v28 = vsel %vm5483_vm12, %v5484_v16, %v5482_v18  ;;  %6877 = vrsqrt.f32 %v10733_v49  ;;  %vm5525_vm8 = vcmp.eq.f32.partialorder %v10720_v0, 0.0  ;;  %vm5530_vm9 = vcmp.eq.f32.partialorder %v10733_v49, inf }
 0x4e0   :  { %v5561_v45 = vmax.f32 %v5485_v28, 1e-12  ;;  %v5489_v37 = vsel %vm5488_vm13, %v10684_v44, %v5487_v56  ;;  %v5494_v14 = vmul.f32 %v6860_v60, %v10688_v8  ;;  %v10745_v50 = vpop.xlane.xlu1 %5438  ;;  %6879 = vrcp.f32 %v5560_v20 }
 0x4e1   :  { %v10747_v5 = vpop.eup %6861  ;;  %v5492_v38 = vsel %vm5490_vm14, %v5491_v12, %v5489_v37  ;;  %vm5532_vm10 = vcmp.eq.f32.partialorder %v10733_v49, 0.0  ;;  %v5533_v13 = vand.u32 2147483648, %v10733_v49  ;;  %vm5537_vm11 = vcmp.eq.f32.partialorder %v10745_v50, inf }
 0x4e2   :  { %v6864_v11 = vpop.eup %6863  ;;  %6881 = vrcp.f32 %v5561_v45  ;;  %v5562_v46 = vmax.f32 %v5492_v38, 1e-12  ;;  %v5496_v29 = vsel %vm5495_vm15, %v10688_v8, %v5494_v14  ;;  %v10757_v48 = vpop.xlane.xlu0 %5440  ;;  %v5526_v8 = vand.u32 2147483648, %v10720_v0 }
 0x4e3   :  { %v6866_v42 = vpop.eup %6865  ;;  %v5499_v44 = vsel %vm5497_vm0, %v5498_v57, %v5496_v29  ;;  %6883 = vrsqrt.f32 %v10745_v50  ;;  %vm5539_vm12 = vcmp.eq.f32.partialorder %v10745_v50, 0.0  ;;  %v5540_v20 = vand.u32 2147483648, %v10745_v50 }
 0x4e4   :  { %v6868_v36 = vpop.eup %6867  ;;  %6885 = vrcp.f32 %v5562_v46  ;;  %v5563_v55 = vmax.f32 %v5499_v44, 1e-12  ;;  %v5501_v27 = vmul.f32 %v6866_v42, %v10694_v54  ;;  %v10766_v31 = vpop.xlane.xlu1 %5442  ;;  %vm5544_vm13 = vcmp.eq.f32.partialorder %v10757_v48, inf }
 0x4e5   :  { %v6870_v17 = vpop.eup %6869  ;;  %v5508_v43 = vmul.f32 %v6868_v36, %v10702_v51  ;;  %6887 = vrsqrt.f32 %v10757_v48  ;;  %vm5546_vm14 = vcmp.eq.f32.partialorder %v10757_v48, 0.0  ;;  %vm5551_vm15 = vcmp.eq.f32.partialorder %v10766_v31, inf }
 0x4e6   :  { %v6872_v7 = vpop.eup %6871  ;;  %6889 = vrcp.f32 %v5563_v55  ;;  %v5503_v63 = vsel %vm5502_vm1, %v10694_v54, %v5501_v27  ;;  %v10777_v16 = vpop.xlane.xlu0 %5384 }
 0x4e7   :  { %v6874_v52 = vpop.eup %6873  ;;  %v5506_v41 = vsel %vm5504_vm2, %v5505_v1, %v5503_v63  ;;  %v5510_v33 = vsel %vm5509_vm3, %v10702_v51, %v5508_v43  ;;  %6891 = vrsqrt.f32 %v10766_v31  ;;  %v5573_v1 = vmul.f32 %v6864_v11, %v10504_v53 }
 0x4e8   :  { %v6876_v12 = vpop.eup %6875  ;;  %v5564_v4 = vmax.f32 %v5506_v41, 1e-12  ;;  %v5513_v22 = vsel %vm5511_vm4, %v5512_v10, %v5510_v33  ;;  %v5515_v35 = vmul.f32 %v6874_v52, %v10710_v3  ;;  %6893 = vrsqrt.f32 %v10777_v16 }
 0x4e9   :  { %v6878_v54 = vpop.eup %6877  ;;  %v5565_v58 = vmax.f32 %v5513_v22, 1e-12  ;;  %v5522_v57 = vmul.f32 %v6876_v12, %v10720_v0  ;;  %v5575_v10 = vmul.f32 %v6872_v7, %v10510_v25  ;;  %5604 = vst [vmem:[%s11299_s17] sm:$0xff] %v5573_v1  ;;  %v5577_v53 = vmul.f32 %v10747_v5, %v10502_v24 }
 0x4ea   :  { %6895 = vrcp.f32 %v5564_v4  ;;  %v5517_v51 = vsel %vm5516_vm5, %v10710_v3, %v5515_v35  ;;  %v5529_v18 = vmul.f32 %v6878_v54, %v10733_v49  ;;  %v6880_v56 = vpop.eup %6879  ;;  %vm5388_vm0 = vcmp.eq.f32.partialorder %v10777_v16, inf }
 0x4eb   :  { %6897 = vrcp.f32 %v5565_v58  ;;  %v5520_v60 = vsel %vm5518_vm6, %v5519_v26, %v5517_v51  ;;  %v5524_v28 = vsel %vm5523_vm7, %v10720_v0, %v5522_v57  ;;  %v5579_v0 = vmul.f32 %v6870_v17, %v10506_v61  ;;  %5605 = vst [vmem:[%s11299_s17 + $0x8] sm:$0xff] %v5575_v10  ;;  %5606 = vst [vmem:[%s11299_s17 + $0x10] sm:$0xff] %v5577_v53 }
 0x4ec   :  { %v6882_v45 = vpop.eup %6881  ;;  %v5566_v37 = vmax.f32 %v5520_v60, 1e-12  ;;  %v5527_v14 = vsel %vm5525_vm8, %v5526_v8, %v5524_v28  ;;  %v5531_v38 = vsel %vm5530_vm9, %v10733_v49, %v5529_v18  ;;  %v6589_v25 = vpack.c.bf16 %v5575_v10, %v5573_v1  ;;  %v5702_v28 = vld [vmem:[%s11295_s13 + $0x60] sm:$0xff]  ;;  %v5711_v1 = vld [vmem:[%s11295_s13 + $0xa8] sm:$0xff] }
 0x4ed   :  { %v6884_v46 = vpop.eup %6883  ;;  %v5567_v3 = vmax.f32 %v5527_v14, 1e-12  ;;  %v5534_v29 = vsel %vm5532_vm10, %v5533_v13, %v5531_v38  ;;  %v5547_v26 = vand.u32 2147483648, %v10757_v48  ;;  %5607 = vst [vmem:[%s11299_s17 + $0x18] sm:$0xff] %v5579_v0  ;;  %v5581_v24 = vmul.f32 %v6880_v56, %v10518_v40 }
 0x4ee   :  { %v6886_v11 = vpop.eup %6885  ;;  %6899 = vrcp.f32 %v5566_v37  ;;  %v5568_v42 = vmax.f32 %v5534_v29, 1e-12  ;;  %v5536_v44 = vmul.f32 %v6884_v46, %v10745_v50  ;;  %v5583_v61 = vmul.f32 %v6882_v45, %v10522_v30  ;;  %6590 = vmatpush3.bf16.xpose.msra.mxu1 %v6589_v25  ;;  %v5718_v29 = vld [vmem:[%s11295_s13 + $0xe0] sm:$0xff]  ;;  %v5743_v25 = vld [vmem:[%s11295_s13 + $0x1a8] sm:$0xff] }
 0x4ef   :  { %v6888_v49 = vpop.eup %6887  ;;  %6901 = vrcp.f32 %v5567_v3  ;;  %v10837_v27 = vmul.f32 %v6886_v11, %v10520_v2  ;;  %6591 = vmatprep.subr.bf16.mxu1 %v6940_v62  ;;  %5608 = vst [vmem:[%s11299_s17 + $0x20] sm:$0xff] %v5581_v24  ;;  %v5391_v7 = vand.u32 2147483648, %v10777_v16  ;;  %vm5390_vm1 = vcmp.eq.f32.partialorder %v10777_v16, 0.0 }
 0x4f0   :  { %v6890_v5 = vpop.eup %6889  ;;  %6903 = vrcp.f32 %v5568_v42  ;;  %v5538_v36 = vsel %vm5537_vm11, %v10745_v50, %v5536_v44  ;;  %v5543_v55 = vmul.f32 %v6888_v49, %v10757_v48  ;;  %5609 = vst [vmem:[%s11299_s17 + $0x28] sm:$0xff] %v5583_v61  ;;  %vm5553_vm2 = vcmp.eq.f32.partialorder %v10766_v31, 0.0  ;;  %v5726_v42 = vld [vmem:[%s11295_s13 + $0x120] sm:$0xff]  ;;  %v5751_v49 = vld [vmem:[%s11295_s13 + $0x1e8] sm:$0xff] }
 0x4f1   :  { %v6892_v17 = vpop.eup %6891  ;;  %v5541_v43 = vsel %vm5539_vm12, %v5540_v20, %v5538_v36  ;;  %v10851_v40 = vmul.f32 %v6890_v5, %v10526_v34  ;;  %5610 = vst [vmem:[%s11299_s17 + $0x30] sm:$0xff] %v10837_v27  ;;  %v5554_v34 = vand.u32 2147483648, %v10766_v31  ;;  %v6592_v22 = vpack.c.bf16 %v5579_v0, %v5577_v53  ;;  %v5735_v53 = vld [vmem:[%s11295_s13 + $0x168] sm:$0xff]  ;;  %v5734_v44 = vld [vmem:[%s11295_s13 + $0x160] sm:$0xff] }
 0x4f2   :  { %v6894_v2 = vpop.eup %6893  ;;  %v5569_v30 = vmax.f32 %v5541_v43, 1e-12  ;;  %v5545_v50 = vsel %vm5544_vm13, %v10757_v48, %v5543_v55  ;;  %v5550_v8 = vmul.f32 %v6892_v17, %v10766_v31  ;;  %v5750_v5 = vld [vmem:[%s11295_s13 + $0x1e0] sm:$0xff]  ;;  %v5759_v36 = vld [vmem:[%s11295_s13 + $0x228] sm:$0xff] }
 0x4f3   :  { %v5548_v63 = vsel %vm5546_vm14, %v5547_v26, %v5545_v50  ;;  %v5387_v13 = vmul.f32 %v6894_v2, %v10777_v16  ;;  %5611 = vst [vmem:[%s11299_s17 + $0x38] sm:$0xff] %v10851_v40  ;;  %v6686_v26 = vpack.c.bf16 %v5734_v44, %v5726_v42  ;;  %v5767_v55 = vld [vmem:[%s11295_s13 + $0x268] sm:$0xff]  ;;  %v5766_v2 = vld [vmem:[%s11295_s13 + $0x260] sm:$0xff] }
 0x4f4   :  { %v6896_v52 = vpop.eup %6895  ;;  %6905 = vrcp.f32 %v5569_v30  ;;  %v5570_v41 = vmax.f32 %v5548_v63, 1e-12  ;;  %v5552_v33 = vsel %vm5551_vm15, %v10766_v31, %v5550_v8  ;;  %v6692_v43 = vpack.c.bf16 %v5767_v55, %v5759_v36  ;;  %v5775_v30 = vld [vmem:[%s11295_s13 + $0x2a8] sm:$0xff]  ;;  %v5774_v63 = vld [vmem:[%s11295_s13 + $0x2a0] sm:$0xff]  ;;  %v5772_v36 = vld [vmem:[%s11295_s13 + $0x290] sm:$0xff] }
 0x4f5   :  { %v6898_v48 = vpop.eup %6897  ;;  %v5555_v12 = vsel %vm5553_vm2, %v5554_v34, %v5552_v33  ;;  %v5389_v4 = vsel %vm5388_vm0, %v10777_v16, %v5387_v13  ;;  %v10879_v35 = vmul.f32 %v6896_v52, %v10532_v32  ;;  %v5783_v50 = vld [vmem:[%s11295_s13 + $0x2e8] sm:$0xff]  ;;  %v5782_v34 = vld [vmem:[%s11295_s13 + $0x2e0] sm:$0xff]  ;;  %v5780_v55 = vld [vmem:[%s11295_s13 + $0x2d0] sm:$0xff] }
 0x4f6   :  { %6907 = vrcp.f32 %v5570_v41  ;;  %v5571_v54 = vmax.f32 %v5555_v12, 1e-12  ;;  %v5392_v58 = vsel %vm5390_vm1, %v5391_v7, %v5389_v4  ;;  %v10882_v57 = vmul.f32 %v6898_v48, %v10538_v6  ;;  %6593 = vmatpush3.bf16.xpose.msra.mxu1 %v6592_v22  ;;  %v5791_v13 = vld [vmem:[%s11295_s13 + $0x328] sm:$0xff]  ;;  %v5790_v12 = vld [vmem:[%s11295_s13 + $0x320] sm:$0xff] }
 0x4f7   :  { %v5393_v20 = vmax.f32 %v5392_v58, 1e-12  ;;  %5612 = vst [vmem:[%s11299_s17 + $0x40] sm:$0xff] %v10879_v35  ;;  %6594 = vmatprep.subr.bf16.mxu1 %v6940_v62  ;;  %v6696_v7 = vpack.c.bf16 %v5783_v50, %v5775_v30  ;;  %v5799_v52 = vld [vmem:[%s11295_s13 + $0x368] sm:$0xff]  ;;  %v6698_v33 = vpack.c.bf16 %v5782_v34, %v5774_v63  ;;  %v5798_v4 = vld [vmem:[%s11295_s13 + $0x360] sm:$0xff]  ;;  %v5796_v30 = vld [vmem:[%s11295_s13 + $0x350] sm:$0xff] }
 0x4f8   :  { %v6900_v31 = vpop.eup %6899  ;;  %6909 = vrcp.f32 %v5571_v54  ;;  %5613 = vst [vmem:[%s11299_s17 + $0x48] sm:$0xff] %v10882_v57  ;;  %v6700_v48 = vpack.c.bf16 %v5799_v52, %v5791_v13  ;;  %v5807_v22 = vld [vmem:[%s11295_s13 + $0x3a8] sm:$0xff]  ;;  %v6702_v54 = vpack.c.bf16 %v5798_v4, %v5790_v12  ;;  %v5805_v50 = vld [vmem:[%s11295_s13 + $0x398] sm:$0xff]  ;;  %v5804_v34 = vld [vmem:[%s11295_s13 + $0x390] sm:$0xff] }
 0x4f9   :  { %v6902_v32 = vpop.eup %6901  ;;  %6911 = vrcp.f32 %v5393_v20  ;;  %v10894_v6 = vmul.f32 %v6900_v31, %v10536_v39  ;;  %v5814_v20 = vld [vmem:[%s11295_s13 + $0x3e0] sm:$0xff]  ;;  %v5812_v13 = vld [vmem:[%s11295_s13 + $0x3d0] sm:$0xff]  ;;  %v5697_v52 = vld [vmem:[%s11295_s13 + $0x38] sm:$0xff] }
 0x4fa   :  { %v6904_v16 = vpop.eup %6903  ;;  %v10897_v51 = vmul.f32 %v6902_v32, %v10542_v21  ;;  %v6595_v21 = vpack.c.bf16 %v5583_v61, %v5581_v24  ;;  %v6688_v24 = vpack.c.bf16 %v5751_v49, %v5743_v25  ;;  %v5742_v61 = vld [vmem:[%s11295_s13 + $0x1a0] sm:$0xff]  ;;  %v5756_v25 = vld [vmem:[%s11295_s13 + $0x210] sm:$0xff] }
 0x4fb   :  { %5614 = vst [vmem:[%s11299_s17 + $0x50] sm:$0xff] %v10894_v6  ;;  %v10904_v18 = vmul.f32 %v6904_v16, %v10548_v15  ;;  %v5694_v15 = vld [vmem:[%s11295_s13 + $0x20] sm:$0xff]  ;;  %v6690_v17 = vpack.c.bf16 %v5750_v5, %v5742_v61  ;;  %v5701_v16 = vld [vmem:[%s11295_s13 + $0x58] sm:$0xff]  ;;  %v5764_v49 = vld [vmem:[%s11295_s13 + $0x250] sm:$0xff] }
 0x4fc   :  { %5615 = vst [vmem:[%s11299_s17 + $0x58] sm:$0xff] %v10897_v51  ;;  %v6678_v38 = vpack.c.bf16 %v5702_v28, %v5694_v15  ;;  %v6604_v41 = vpack.c.bf16 %v10897_v51, %v10894_v6  ;;  %v5693_v6 = vld [vmem:[%s11295_s13 + $0x18] sm:$0xff]  ;;  %v5708_v28 = vld [vmem:[%s11295_s13 + $0x90] sm:$0xff]  ;;  %v6662_v61 = vpack.c.bf16 %v5764_v49, %v5756_v25 }
 0x4fd   :  { %5616 = vst [vmem:[%s11299_s17 + $0x60] sm:$0xff] %v10904_v18  ;;  %v6644_v51 = vpack.c.bf16 %v5701_v16, %v5693_v6  ;;  %v5696_v12 = vld [vmem:[%s11295_s13 + $0x30] sm:$0xff]  ;;  %v5817_v25 = vld [vmem:[%s11295_s13 + $0x3f8] sm:$0xff] }
 0x4fe   :  { %v6906_v39 = vpop.eup %6905  ;;  %6596 = vmatpush3.bf16.xpose.msra.mxu1 %v6595_v21  ;;  %v5709_v21 = vld [vmem:[%s11295_s13 + $0x98] sm:$0xff]  ;;  %v5704_v4 = vld [vmem:[%s11295_s13 + $0x70] sm:$0xff] }
 0x4ff   :  { %v10915_v56 = vmul.f32 %v6906_v39, %v10554_v23  ;;  %6597 = vmatprep.subr.bf16.mxu1 %v6940_v62  ;;  %v5719_v23 = vld [vmem:[%s11295_s13 + $0xe8] sm:$0xff] }
 0x500   :  { %v6908_v60 = vpop.eup %6907  ;;  %v6680_v3 = vpack.c.bf16 %v5719_v23, %v5711_v1  ;;  %v5716_v1 = vld [vmem:[%s11295_s13 + $0xd0] sm:$0xff]  ;;  %v5725_v23 = vld [vmem:[%s11295_s13 + $0x118] sm:$0xff] }
 0x501   :  { %5617 = vst [vmem:[%s11299_s17 + $0x68] sm:$0xff] %v10915_v56  ;;  %v10935_v45 = vmul.f32 %v6908_v60, %v10552_v9  ;;  %v5710_v9 = vld [vmem:[%s11295_s13 + $0xa0] sm:$0xff]  ;;  %v6607_v31 = vpack.c.bf16 %v10915_v56, %v10904_v18  ;;  %v5700_v18 = vld [vmem:[%s11295_s13 + $0x50] sm:$0xff]  ;;  %v5717_v56 = vld [vmem:[%s11295_s13 + $0xd8] sm:$0xff] }
 0x502   :  { %v6910_v37 = vpop.eup %6909  ;;  %v6682_v0 = vpack.c.bf16 %v5718_v29, %v5710_v9  ;;  %v6648_v15 = vpack.c.bf16 %v5717_v56, %v5709_v21  ;;  %v5749_v9 = vld [vmem:[%s11295_s13 + $0x1d8] sm:$0xff]  ;;  %v5744_v56 = vld [vmem:[%s11295_s13 + $0x1b0] sm:$0xff] }
 0x503   :  { %v6912_v14 = vpop.eup %6911  ;;  %v10938_v10 = vmul.f32 %v6910_v37, %v10558_v47  ;;  %5618 = vst [vmem:[%s11299_s17 + $0x70] sm:$0xff] %v10935_v45  ;;  %v5727_v47 = vld [vmem:[%s11295_s13 + $0x128] sm:$0xff]  ;;  %v6650_v37 = vpack.c.bf16 %v5716_v1, %v5708_v28  ;;  %v5769_v28 = vld [vmem:[%s11295_s13 + $0x278] sm:$0xff] }
 0x504   :  { %v10945_v46 = vmul.f32 %v6912_v14, %v10565_v19  ;;  %v6598_v19 = vpack.c.bf16 %v10851_v40, %v10837_v27  ;;  %v6684_v11 = vpack.c.bf16 %v5735_v53, %v5727_v47  ;;  %v6601_v27 = vpack.c.bf16 %v10882_v57, %v10879_v35  ;;  %v5758_v40 = vld [vmem:[%s11295_s13 + $0x220] sm:$0xff]  ;;  %v5815_v35 = vld [vmem:[%s11295_s13 + $0x3e8] sm:$0xff]  ;;  %v5740_v53 = vld [vmem:[%s11295_s13 + $0x190] sm:$0xff] }
 0x505   :  { %5619 = vst [vmem:[%s11299_s17 + $0x78] sm:$0xff] %v10938_v10  ;;  %v6694_v8 = vpack.c.bf16 %v5766_v2, %v5758_v40  ;;  %v6704_v58 = vpack.c.bf16 %v5815_v35, %v5807_v22  ;;  %v5806_v57 = vld [vmem:[%s11295_s13 + $0x3a0] sm:$0xff]  ;;  %v6610_v39 = vpack.c.bf16 %v10938_v10, %v10935_v45  ;;  %v5733_v45 = vld [vmem:[%s11295_s13 + $0x158] sm:$0xff]  ;;  %v5732_v10 = vld [vmem:[%s11295_s13 + $0x150] sm:$0xff] }
 0x506   :  { %5883 = vmatmul.mubr.f32.vlgmr.msra.gmra.mrb[144].mxu0 %v10945_v46  ;;  %6599 = vmatpush3.bf16.xpose.msra.mxu1 %v6598_v19  ;;  %v6706_v32 = vpack.c.bf16 %v5814_v20, %v5806_v57  ;;  %v6652_v14 = vpack.c.bf16 %v5733_v45, %v5725_v23  ;;  %v5748_v19 = vld [vmem:[%s11295_s13 + $0x1d0] sm:$0xff]  ;;  %v5713_v22 = vld [vmem:[%s11295_s13 + $0xb8] sm:$0xff] }
 0x507   :  { %6679 = vmatpush1.bf16.msra.mxu0 %v6678_v38  ;;  %6024 = vmatprep.mubr.f32.mxu0 %v6941_v59  ;;  %v5724_v38 = vld [vmem:[%s11295_s13 + $0x110] sm:$0xff]  ;;  %v6658_v42 = vpack.c.bf16 %v5748_v19, %v5740_v53  ;;  %v5721_v35 = vld [vmem:[%s11295_s13 + $0xf8] sm:$0xff] }
 0x508   :  { %6681 = vmatprep.subr.bf16.mxu0 %v6680_v3  ;;  %6600 = vmatprep.subr.bf16.mxu1 %v6940_v62  ;;  %v5741_v3 = vld [vmem:[%s11295_s13 + $0x198] sm:$0xff]  ;;  %v6654_v29 = vpack.c.bf16 %v5732_v10, %v5724_v38  ;;  %v5788_v2 = vld [vmem:[%s11295_s13 + $0x310] sm:$0xff] }
 0x509   :  { %v6656_v47 = vpack.c.bf16 %v5749_v9, %v5741_v3  ;;  %v5712_v57 = vld [vmem:[%s11295_s13 + $0xb0] sm:$0xff]  ;;  %v5785_v38 = vld [vmem:[%s11295_s13 + $0x2f8] sm:$0xff] }
 0x50a   :  { %v5720_v20 = vld [vmem:[%s11295_s13 + $0xf0] sm:$0xff]  ;;  %v5801_v53 = vld [vmem:[%s11295_s13 + $0x378] sm:$0xff] }
 0x50b   :  { %6683 = vmatpush1.bf16.msra.mxu0 %v6682_v0  ;;  %v5757_v0 = vld [vmem:[%s11295_s13 + $0x218] sm:$0xff]  ;;  %v6714_v6 = vpack.c.bf16 %v5720_v20, %v5712_v57  ;;  %v5760_v45 = vld [vmem:[%s11295_s13 + $0x230] sm:$0xff] }
 0x50c   :  { %6685 = vmatprep.subr.bf16.mxu0 %v6684_v11  ;;  %v5765_v11 = vld [vmem:[%s11295_s13 + $0x258] sm:$0xff]  ;;  %v5776_v9 = vld [vmem:[%s11295_s13 + $0x2b0] sm:$0xff] }
 0x50d   :  { %v6660_v44 = vpack.c.bf16 %v5765_v11, %v5757_v0  ;;  %v5792_v11 = vld [vmem:[%s11295_s13 + $0x330] sm:$0xff] }
 0x50e   :  { %6602 = vmatpush3.bf16.xpose.msra.mxu1 %v6601_v27  ;;  %v5789_v27 = vld [vmem:[%s11295_s13 + $0x318] sm:$0xff] }
 0x50f   :  { %6687 = vmatpush1.bf16.msra.mxu0 %v6686_v26  ;;  %6603 = vmatprep.subr.bf16.mxu1 %v6940_v62  ;;  %v5773_v26 = vld [vmem:[%s11295_s13 + $0x298] sm:$0xff] }
 0x510   :  { %6689 = vmatprep.subr.bf16.mxu0 %v6688_v24  ;;  %v5781_v24 = vld [vmem:[%s11295_s13 + $0x2d8] sm:$0xff] }
 0x511   :  { %v6664_v5 = vpack.c.bf16 %v5781_v24, %v5773_v26  ;;  %v5808_v24 = vld [vmem:[%s11295_s13 + $0x3b0] sm:$0xff] }
 0x513   :  { %6691 = vmatpush1.bf16.msra.mxu0 %v6690_v17  ;;  %v5797_v17 = vld [vmem:[%s11295_s13 + $0x358] sm:$0xff] }
 0x514   :  { %6693 = vmatprep.subr.bf16.mxu0 %v6692_v43  ;;  %v6666_v43 = vpack.c.bf16 %v5780_v55, %v5772_v36  ;;  %v6668_v40 = vpack.c.bf16 %v5797_v17, %v5789_v27 }
 0x516   :  { %6605 = vmatpush3.bf16.xpose.msra.mxu1 %v6604_v41  ;;  %v5705_v41 = vld [vmem:[%s11295_s13 + $0x78] sm:$0xff] }
 0x517   :  { %6695 = vmatpush1.bf16.msra.mxu0 %v6694_v8  ;;  %6606 = vmatprep.subr.bf16.mxu1 %v6940_v62  ;;  %v5813_v8 = vld [vmem:[%s11295_s13 + $0x3d8] sm:$0xff] }
 0x518   :  { %6697 = vmatprep.subr.bf16.mxu0 %v6696_v7  ;;  %v6670_v7 = vpack.c.bf16 %v5796_v30, %v5788_v2  ;;  %v6672_v63 = vpack.c.bf16 %v5813_v8, %v5805_v50 }
 0x51b   :  { %6699 = vmatpush1.bf16.msra.mxu0 %v6698_v33  ;;  %v6674_v33 = vpack.c.bf16 %v5812_v13, %v5804_v34 }
 0x51c   :  { %6701 = vmatprep.subr.bf16.mxu0 %v6700_v48  ;;  %v6708_v48 = vpack.c.bf16 %v5705_v41, %v5697_v52 }
 0x51e   :  { %6608 = vmatpush3.bf16.xpose.msra.mxu1 %v6607_v31  ;;  %v5729_v31 = vld [vmem:[%s11295_s13 + $0x138] sm:$0xff] }
 0x51f   :  { %6703 = vmatpush1.bf16.msra.mxu0 %v6702_v54  ;;  %6609 = vmatprep.subr.bf16.mxu1 %v6940_v62  ;;  %v5692_v62 = vld [vmem:[%s11295_s13 + $0x10] sm:$0xff]  ;;  %v6710_v54 = vpack.c.bf16 %v5704_v4, %v5696_v12 }
 0x520   :  { %6705 = vmatprep.subr.bf16.mxu0 %v6704_v58  ;;  %v6646_v60 = vpack.c.bf16 %v5700_v18, %v5692_v62  ;;  %v6712_v58 = vpack.c.bf16 %v5721_v35, %v5713_v22  ;;  %v5745_v62 = vld [vmem:[%s11295_s13 + $0x1b8] sm:$0xff] }
 0x521   :  { %v5753_v18 = vld [vmem:[%s11295_s13 + $0x1f8] sm:$0xff] }
 0x522   :  { %v6720_v21 = vpack.c.bf16 %v5753_v18, %v5745_v62 }
 0x523   :  { %6707 = vmatpush1.bf16.msra.mxu0 %v6706_v32  ;;  %v5737_v32 = vld [vmem:[%s11295_s13 + $0x178] sm:$0xff] }
 0x524   :  { %v6716_v16 = vpack.c.bf16 %v5737_v32, %v5729_v31 }
 0x526   :  { %6025 = vmatmul.mubr.f32.vlgmr.msra.gmra.mrb[146].mxu0 %v10945_v46  ;;  %6611 = vmatpush3.bf16.xpose.msra.mxu1 %v6610_v39  ;;  %v5736_v39 = vld [vmem:[%s11295_s13 + $0x170] sm:$0xff] }
 0x527   :  { %6645 = vmatprep.subr.bf16.mxu1 %v6644_v51  ;;  %v5728_v51 = vld [vmem:[%s11295_s13 + $0x130] sm:$0xff] }
 0x52d   :  { %6586 = vmatmul.mubr.f32.vlgmr.msra.gmra.mrb[128].mxu1 %v10945_v46 }
 0x52e   :  { %6647 = vmatpush1.bf16.msra.mxu1 %v6646_v60  ;;  %5953 = vmatprep.mubr.f32.mxu1 %v6941_v59  ;;  %v5752_v60 = vld [vmem:[%s11295_s13 + $0x1f0] sm:$0xff] }
 0x52f   :  { %6649 = vmatprep.subr.bf16.mxu1 %v6648_v15  ;;  %v5761_v15 = vld [vmem:[%s11295_s13 + $0x238] sm:$0xff]  ;;  %v6722_v1 = vpack.c.bf16 %v5752_v60, %v5744_v56 }
 0x530   :  { %v6724_v23 = vpack.c.bf16 %v5769_v28, %v5761_v15 }
 0x532   :  { %6651 = vmatpush1.bf16.msra.mxu1 %v6650_v37  ;;  %v5768_v37 = vld [vmem:[%s11295_s13 + $0x270] sm:$0xff] }
 0x533   :  { %6653 = vmatprep.subr.bf16.mxu1 %v6652_v14  ;;  %v5777_v14 = vld [vmem:[%s11295_s13 + $0x2b8] sm:$0xff]  ;;  %v6726_v10 = vpack.c.bf16 %v5768_v37, %v5760_v45 }
 0x534   :  { %v6728_v3 = vpack.c.bf16 %v5785_v38, %v5777_v14 }
 0x536   :  { %6655 = vmatpush1.bf16.msra.mxu1 %v6654_v29  ;;  %v5784_v29 = vld [vmem:[%s11295_s13 + $0x2f0] sm:$0xff] }
 0x537   :  { %6657 = vmatprep.subr.bf16.mxu1 %v6656_v47  ;;  %v5793_v47 = vld [vmem:[%s11295_s13 + $0x338] sm:$0xff]  ;;  %v6730_v19 = vpack.c.bf16 %v5784_v29, %v5776_v9 }
 0x538   :  { %v6732_v0 = vpack.c.bf16 %v5801_v53, %v5793_v47 }
 0x53a   :  { %6659 = vmatpush1.bf16.msra.mxu1 %v6658_v42  ;;  %v5800_v42 = vld [vmem:[%s11295_s13 + $0x370] sm:$0xff] }
 0x53b   :  { %6661 = vmatprep.subr.bf16.mxu1 %v6660_v44  ;;  %v5809_v44 = vld [vmem:[%s11295_s13 + $0x3b8] sm:$0xff]  ;;  %v6734_v49 = vpack.c.bf16 %v5800_v42, %v5792_v11 }
 0x53c   :  { %v6736_v26 = vpack.c.bf16 %v5817_v25, %v5809_v44 }
 0x53e   :  { %6663 = vmatpush1.bf16.msra.mxu1 %v6662_v61  ;;  %v5816_v61 = vld [vmem:[%s11295_s13 + $0x3f0] sm:$0xff] }
 0x53f   :  { %6665 = vmatprep.subr.bf16.mxu1 %v6664_v5  ;;  %v6738_v5 = vpack.c.bf16 %v5816_v61, %v5808_v24 }
 0x542   :  { %6667 = vmatpush1.bf16.msra.mxu1 %v6666_v43 }
 0x543   :  { %6669 = vmatprep.subr.bf16.mxu1 %v6668_v40 }
 0x546   :  { %6671 = vmatpush1.bf16.msra.mxu1 %v6670_v7 }
 0x547   :  { %6673 = vmatprep.subr.bf16.mxu1 %v6672_v63 }
 0x54a   :  { %6675 = vmatpush1.bf16.msra.mxu1 %v6674_v33 }
 0x54b   :  { %6709 = vmatprep.subr.bf16.mxu1 %v6708_v48 }
 0x54d   :  { %5954 = vmatmul.mubr.f32.vlgmr.msra.gmra.mrb[130].mxu1 %v10945_v46 }
 0x54e   :  { %6711 = vmatpush1.bf16.msra.mxu1 %v6710_v54  ;;  %6095 = vmatprep.mubr.f32.mxu1 %v6941_v59  ;;  %v6718_v59 = vpack.c.bf16 %v5736_v39, %v5728_v51 }
 0x54f   :  { %6713 = vmatprep.subr.bf16.mxu1 %v6712_v58 }
 0x552   :  { %6715 = vmatpush1.bf16.msra.mxu1 %v6714_v6 }
 0x553   :  { %6717 = vmatprep.subr.bf16.mxu1 %v6716_v16 }
 0x556   :  { %6719 = vmatpush1.bf16.msra.mxu1 %v6718_v59 }
 0x557   :  { %6721 = vmatprep.subr.bf16.mxu1 %v6720_v21 }
 0x55a   :  { %6723 = vmatpush1.bf16.msra.mxu1 %v6722_v1 }
 0x55b   :  { %6725 = vmatprep.subr.bf16.mxu1 %v6724_v23 }
 0x55e   :  { %6727 = vmatpush1.bf16.msra.mxu1 %v6726_v10 }
 0x55f   :  { %6729 = vmatprep.subr.bf16.mxu1 %v6728_v3 }
 0x562   :  { %6731 = vmatpush1.bf16.msra.mxu1 %v6730_v19 }
 0x563   :  { %6733 = vmatprep.subr.bf16.mxu1 %v6732_v0 }
 0x566   :  { %6735 = vmatpush1.bf16.msra.mxu1 %v6734_v49 }
 0x567   :  { %6737 = vmatprep.subr.bf16.mxu1 %v6736_v26 }
 0x56a   :  { %6739 = vmatpush1.bf16.msra.mxu1 %v6738_v5 }
 0x56d   :  { %6096 = vmatmul.mubr.f32.vlgmr.msra.gmra.mrb[132].mxu1 %v10945_v46 }
 0x56e   :  { %6926 = shalt.err (!%p6923_p4)
}
 0x56f   :  { %s6927_s13 = scalar_lea.hbm %s11296_s14, 16384 }
 0x570   :  { %p6928_p5 = scmp.ne.s32.totalorder %s11296_s14, %s6927_s13  ;;  %p6931_p6 = scmp.lt.u32.totalorder %s6927_s13, %s11296_s14 }
 0x572   :  { %p6933_p7 = pnand %p6931_p6, %p6928_p5 }
 0x574   :  { %6936 = shalt.err (!%p6933_p7)
}
 0x575   :  { %s6944_s2 = smov 1024   ;;  %s6945_s27 = smov 64  }
 0x576   :  { %6131 = dma.vmem_to_hbm [thread:$0]  %s6126_s9, 16384, %s11296_s14, [#allocation4], %s6944_s2, %s6944_s2, %s6945_s27  }
 0x5d9   :  { %v5884_v46 = vpop.f32.mrb[144].mxu0 }
 0x5da   :  { %v6104_v36 = vmul.f32 20.0, %v5884_v46  ;;  %v5886_v55 = vpop.f32.mrb[145].mxu0 }
 0x5db   :  { %v6105_v27 = vmul.f32 20.0, %v5886_v55 }
 0x5dc   :  { %6112 = vst [vmem:[%s11298_s16] sm:$0xff] %v6104_v36 }
 0x5dd   :  { %6113 = vst [vmem:[%s11298_s16 + $0x8] sm:$0xff] %v6105_v27 }
 0x5f9   :  { %v6026_v17 = vpop.f32.mrb[146].mxu0 }
 0x5fa   :  { %v6108_v43 = vmul.f32 20.0, %v6026_v17  ;;  %v6028_v40 = vpop.f32.mrb[147].mxu0 }
 0x5fb   :  { %v6109_v2 = vmul.f32 20.0, %v6028_v40 }
 0x5fc   :  { %6116 = vst [vmem:[%s11298_s16 + $0x20] sm:$0xff] %v6108_v43 }
 0x5fd   :  { %6117 = vst [vmem:[%s11298_s16 + $0x28] sm:$0xff] %v6109_v2 }
 0x600   :  { %v5686_v30 = vpop.f32.mrb[128].mxu1 }
 0x601   :  { %v6102_v50 = vmul.f32 20.0, %v5686_v30  ;;  %v6587_v8 = vpop.f32.mrb[129].mxu1 }
 0x603   :  { %6103 = vst [vmem:[%s11297_s15] sm:$0xff] %v6102_v50 }
 0x620   :  { %v5955_v7 = vpop.f32.mrb[130].mxu1 }
 0x621   :  { %v6106_v63 = vmul.f32 20.0, %v5955_v7  ;;  %v5957_v34 = vpop.f32.mrb[131].mxu1 }
 0x622   :  { %v6107_v13 = vmul.f32 20.0, %v5957_v34 }
 0x623   :  { %6114 = vst [vmem:[%s11298_s16 + $0x10] sm:$0xff] %v6106_v63 }
 0x624   :  { %6115 = vst [vmem:[%s11298_s16 + $0x18] sm:$0xff] %v6107_v13 }
 0x640   :  { %v6097_v52 = vpop.f32.mrb[132].mxu1 }
 0x641   :  { %v6110_v41 = vmul.f32 20.0, %v6097_v52  ;;  %v6099_v33 = vpop.f32.mrb[133].mxu1 }
 0x642   :  { %v6111_v48 = vmul.f32 20.0, %v6099_v33 }
 0x643   :  { %6118 = vst [vmem:[%s11298_s16 + $0x30] sm:$0xff] %v6110_v41 }
 0x644   :  { %6119 = vst [vmem:[%s11298_s16 + $0x38] sm:$0xff] %v6111_v48 }
 0x645   :  { %6937 = dma.done.wait [#allocation4], 16384  }
 0x646   :  { %6938 = vsyncadd [#allocation4], 4294950912 }
 0x647   :  { %6147 = vsyncpa [#allocation4], 1 }

</bundles_post_ra>
